<compile_context>
chip_gen: v5e
topology: v5e:2x2
jax: 0.10.0
libtpu: 0.0.40
codegen_flags: <defaults>
</compile_context>

<pallas_src>
import jax
import jax.numpy as jnp
from jax import lax
from jax.experimental import pallas as pl
from jax.experimental.pallas import tpu as pltpu

EPS = 1e-6


def _mm(a, b):
    return jnp.dot(a, b, preferred_element_type=jnp.float32)


# ----------------------- in-kernel constants (traced) -----------------------
def _build_consts():
    f32 = jnp.float32

    def eye(n):
        r = lax.broadcasted_iota(jnp.int32, (n, n), 0)
        c = lax.broadcasted_iota(jnp.int32, (n, n), 1)
        return (r == c).astype(f32)

    I3, I6, I18 = eye(3), eye(6), eye(18)

    r3 = lax.broadcasted_iota(jnp.int32, (3, 3), 0)
    c3 = lax.broadcasted_iota(jnp.int32, (3, 3), 1)

    def at(i, j, s):
        return jnp.where((r3 == i) & (c3 == j), s, 0.0)

    # so(3) generators: skew(w) = w0*G0 + w1*G1 + w2*G2
    G0 = at(2, 1, 1.0) + at(1, 2, -1.0)
    G1 = at(0, 2, 1.0) + at(2, 0, -1.0)
    G2 = at(1, 0, 1.0) + at(0, 1, -1.0)

    r31 = lax.broadcasted_iota(jnp.int32, (3, 1), 0)
    E0 = (r31 == 0).astype(f32)
    E1 = (r31 == 1).astype(f32)
    E2 = (r31 == 2).astype(f32)

    r18 = lax.broadcasted_iota(jnp.int32, (18, 18), 0)
    c18 = lax.broadcasted_iota(jnp.int32, (18, 18), 1)
    upper18 = (c18 >= r18).astype(f32)        # triu mask (incl. diagonal)
    noneye18 = 1.0 - I18
    keep_r = jnp.logical_or(r18 < 3, r18 >= 9).astype(f32)
    keep_c = jnp.logical_or(c18 < 3, c18 >= 9).astype(f32)
    upred_mask = keep_r * keep_c              # == U_pred P U_pred^T as a mask

    rows6 = lax.broadcasted_iota(jnp.int32, (6, 6), 0)

    return dict(I3=I3, I6=I6, I18=I18, G0=G0, G1=G1, G2=G2,
                E0=E0, E1=E1, E2=E2, upper18=upper18, noneye18=noneye18,
                upred_mask=upred_mask, rows6=rows6)


# ----------------------------- math helpers ---------------------------------
def _skew(w, C):                                    # (3,1) -> (3,3), VPU only
    return w[0:1, 0:1] * C["G0"] + w[1:2, 0:1] * C["G1"] + w[2:3, 0:1] * C["G2"]


def _norm2(v):                                      # (3,1) -> (1,1)
    return (v[0:1, 0:1] * v[0:1, 0:1] + v[1:2, 0:1] * v[1:2, 0:1]
            + v[2:3, 0:1] * v[2:3, 0:1])


def _exp_SO3(phi, C):
    W = _skew(phi, C)
    th2 = _norm2(phi)
    th = jnp.sqrt(th2)
    small = th < EPS
    st = jnp.where(small, 1.0, th)
    A = jnp.where(small, 1.0 - th2 / 6.0, jnp.sin(st) / st)
    B = jnp.where(small, 0.5 - th2 / 24.0, (1.0 - jnp.cos(st)) / (st * st))
    return C["I3"] + A * W + B * _mm(W, W)


def _acos_newton(c):
    # TODO(synk): lax.acos/atan2 have no guaranteed Mosaic lowering; Newton
    # refinement of theta from cos(theta) is fp32-accurate away from theta~pi.
    c = jnp.clip(c, -1.0, 1.0)
    th = jnp.sqrt(jnp.maximum(2.0 * (1.0 - c), 0.0))
    for _ in range(4):
        s = jnp.sin(th)
        ok = s > 1e-6
        th = th + jnp.where(ok, (jnp.cos(th) - c) / jnp.where(ok, s, 1.0), 0.0)
    return th


def _log_SO3(Cm, C):                                # (3,3) -> (3,1)
    tr = Cm[0:1, 0:1] + Cm[1:2, 1:2] + Cm[2:3, 2:3]
    cos_t = jnp.clip(0.5 * (tr - 1.0), -1.0, 1.0)
    th = _acos_newton(cos_t)
    A = Cm - Cm.T
    w = A[2:3, 1:2] * C["E0"] + A[0:1, 2:3] * C["E1"] + A[1:2, 0:1] * C["E2"]
    small = th < EPS
    st = jnp.where(small, 1.0, jnp.sin(th))
    coef = jnp.where(small, 0.5, th / (2.0 * st))
    return coef * w


def _J_left_inv(phi, C):                            # (3,1) -> (3,3)
    W = _skew(phi, C)
    th2 = _norm2(phi)
    th = jnp.sqrt(th2)
    small = th < EPS
    st = jnp.where(small, 1.0, th)
    c = jnp.where(small, 1.0 / 12.0,
                  1.0 / (st * st) - (1.0 + jnp.cos(st)) / (2.0 * st * jnp.sin(st)))
    return C["I3"] - 0.5 * W + c * _mm(W, W)


def _force_symmetrical(M, C):                       # triu(M) + triu(M)^T*(1-I)
    up = M * C["upper18"]
    return up + up.T * C["noneye18"]


def _inv6(S, C):
    # Unpivoted Gauss-Jordan; S = H P H^T + R is SPD.  Rank-1 updates on VPU.
    M, Inv = S, C["I6"]
    rows6 = C["rows6"]
    for i in range(6):
        inv_p = 1.0 / M[i:i + 1, i:i + 1]
        mrow = M[i:i + 1, :] * inv_p                # (1,6)
        irow = Inv[i:i + 1, :] * inv_p
        col = M[:, i:i + 1]                         # (6,1)
        Mn = M - col * mrow                         # broadcast, no MXU
        In = Inv - col * irow
        is_i = rows6 == i
        M = jnp.where(is_i, mrow, Mn)
        Inv = jnp.where(is_i, irow, In)
    return Inv


def _row3(col, C):                                  # (3,1) -> (1,3), no transpose
    return jnp.sum(col * C["I3"], axis=0, keepdims=True)


# --------------------------- one IMU sub-step --------------------------------
def _predict_one_step(t_acc, C_acc, r_acc, v_acc, dt, g_k, v_k, bw_k, ba_k,
                      covar, gyro, accel, noise, F_scr, G_scr, phi_scr, C):
    f32 = jnp.float32
    dt2 = dt * dt
    w = gyro - bw_k
    w_sk = _skew(w, C)
    C_acc_T = C_acc.T
    a = accel - ba_k
    v = _mm(C_acc_T, v_k - g_k * t_acc + v_acc)
    v_sk = _skew(v, C)
    exp_int_w = _exp_SO3(dt * w, C)
    exp_int_w_T = exp_int_w.T

    # Variable blocks of F (constant -I3 blocks were stored once per kernel
    # invocation); all variable positions are rewritten every sub-step.
    F_scr[3:6, 3:6] = -w_sk
    F_scr[6:9, 3:6] = -_mm(C_acc, v_sk)
    F_scr[6:9, 9:12] = C_acc
    F_scr[9:12, 0:3] = -C_acc_T
    F_scr[9:12, 3:6] = -_skew(_mm(C_acc_T, g_k), C)
    F_scr[9:12, 9:12] = -w_sk
    F_scr[9:12, 12:15] = -v_sk
    F = F_scr[...]

    G_scr[9:12, 0:3] = -v_sk                        # only varying block of G
    G = G_scr[...]

    Phi = C["I18"] + F * dt + 0.5 * _mm(F, F) * dt2
    phi_scr[...] = Phi
    phi_scr[6:9, 12:15] = jnp.zeros((3, 3), f32)
    phi_scr[3:6, 3:6] = exp_int_w_T
    phi_scr[9:12, 9:12] = exp_int_w_T
    Phi = phi_scr[...]

    PG = _mm(Phi, G)                                # (18,12)
    Q = _mm(_mm(PG, noise), PG.T) * dt
    covar = _mm(_mm(Phi, covar), Phi.T) + Q
    covar = _force_symmetrical(covar, C)

    r_acc = r_acc + v_acc * dt + 0.5 * _mm(C_acc, dt2 * a)
    v_acc = v_acc + _mm(C_acc, dt * a)
    C_acc = _mm(C_acc, exp_int_w)
    t_acc = t_acc + dt
    return t_acc, C_acc, r_acc, v_acc, covar


# ----------------------------- the Pallas kernel -----------------------------
def _make_kernel(t_vis, s_imu):
    n_sub = s_imu - 1

    def kernel(imu_ref, noise_ref, pose0_ref, covar0_ref,
               g0_ref, v0_ref, bw0_ref, ba0_ref,
               vis_ref, viscov_ref, tic_ref,
               pose_out, state_out, covar_out,
               pose_scr, covar_scr, g_scr, v_scr, bw_scr, ba_scr,
               F_scr, G_scr, phi_scr, H_scr, U_scr, st_scr):
        f32 = jnp.float32
        C = _build_consts()
        I3, I18 = C["I3"], C["I18"]

        # carried filter state for this batch element
        pose_scr[...] = pose0_ref[...]
        covar_scr[...] = covar0_ref[...]
        g_scr[...] = g0_ref[...]
        v_scr[...] = v0_ref[...]
        bw_scr[...] = bw0_ref[...]
        ba_scr[...] = ba0_ref[...]

        # constant structure of the block matrices (written once per b)
        F_scr[...] = jnp.zeros((18, 18), f32)
        F_scr[3:6, 12:15] = -I3
        F_scr[9:12, 15:18] = -I3
        G_scr[...] = jnp.zeros((18, 12), f32)
        G_scr[3:6, 0:3] = -I3
        G_scr[9:12, 6:9] = -I3
        G_scr[12:15, 3:6] = I3
        G_scr[15:18, 9:12] = I3
        H_scr[...] = jnp.zeros((6, 18), f32)
        U_scr[...] = I18

        noise = noise_ref[...]
        Tic = tic_ref[...]
        C_cal = Tic[0:3, 0:3]
        C_cal_T = C_cal.T
        r_cal = Tic[0:3, 3:4]
        r_cal_sk = _skew(r_cal, C)

        def step(k, carry):
            prev_pose = pose_scr[...]
            prev_covar = covar_scr[...]
            g_k = g_scr[...]
            v_k = v_scr[...]
            bw_k = bw_scr[...]
            ba_k = ba_scr[...]

            imu = imu_ref[k]                       # (7, S_imu)
            vis = vis_ref[k]                       # (6, 1)
            vis_cov = viscov_ref[k]                # (6, 6)

            # ------------------------------ predict --------------------------
            C_acc = I3
            r_acc = jnp.zeros((3, 1), f32)
            v_acc = jnp.zeros((3, 1), f32)
            t_acc = jnp.zeros((1, 1), f32)
            pred_covar = prev_covar * C["upred_mask"]   # U_pred P U_pred^T

            for tau in range(n_sub):               # static unroll (S_imu small)
                t = imu[0:1, tau:tau + 1]
                tp1 = imu[0:1, tau + 1:tau + 2]
                gyro = imu[1:4, tau:tau + 1]
                accel = imu[4:7, tau:tau + 1]
                dt = tp1 - t
                t_acc, C_acc, r_acc, v_acc, pred_covar = _predict_one_step(
                    t_acc, C_acc, r_acc, v_acc, dt, g_k, v_k, bw_k, ba_k,
                    pred_covar, gyro, accel, noise, F_scr, G_scr, phi_scr, C)

            C_pred = C_acc
            r_pred = v_k * t_acc - 0.5 * g_k * t_acc * t_acc + r_acc
            v_pred = _mm(C_acc.T, v_k - g_k * t_acc + v_acc)

            # ------------------------------ update ---------------------------
            CcT_Cp = _mm(C_cal_T, C_pred)
            phi_pred = _log_SO3(_mm(CcT_Cp, C_cal), C)
            res_rot = vis[0:3, :] - phi_pred
            res_trans = (vis[3:6, :] - _mm(CcT_Cp, r_cal)
                         - _mm(C_cal_T, r_pred - r_cal))

            # H (after torch's H = -H sign flip), assembled in scratch
            H_scr[0:3, 3:6] = _mm(_J_left_inv(-phi_pred, C), C_cal_T)
            H_scr[3:6, 3:6] = -_mm(CcT_Cp, r_cal_sk)
            H_scr[3:6, 6:9] = C_cal_T
            H = H_scr[...]
            HT = H.T
            PHT = _mm(pred_covar, HT)                       # (18,6)
            S_mat = _mm(H, PHT) + vis_cov
            K = _mm(PHT, _inv6(S_mat, C))                   # (18,6)
            # K @ residual without assembling the (6,1) residual
            est_error = _mm(K[:, 0:3], res_rot) + _mm(K[:, 3:6], res_trans)
            est_covar = _mm(I18 - _mm(K, H), pred_covar)

            g_est = g_k + est_error[0:3, :]
            C_est = _mm(C_pred, _exp_SO3(est_error[3:6, :], C))
            r_est = r_pred + est_error[6:9, :]
            v_est = v_pred + est_error[9:12, :]
            bw_est = bw_k + est_error[12:15, :]
            ba_est = ba_k + est_error[15:18, :]

            # ---------------------------- composition -------------------------
            C_t = C_est.T
            new_R = _mm(C_t, prev_pose[0:3, 0:3])
            new_t = _mm(C_t, prev_pose[0:3, 3:4] - r_est)
            new_g = _mm(C_t, g_est)

            U_scr[0:3, 0:3] = C_t
            U_scr[0:3, 3:6] = _skew(new_g, C)
            Ucomp = U_scr[...]
            new_covar = _force_symmetrical(_mm(_mm(Ucomp, est_covar), Ucomp.T), C)

            # carried state (bottom row of pose_scr stays [0,0,0,1])
            pose_scr[0:3, 0:3] = new_R
            pose_scr[0:3, 3:4] = new_t
            covar_scr[...] = new_covar
            g_scr[...] = new_g
            v_scr[...] = v_est
            bw_scr[...] = bw_est
            ba_scr[...] = ba_est

            # packed encode_state_b row: [g(3), C(9), r(3), v(3), bw(3), ba(3)]
            st_scr[0:1, 0:3] = _row3(new_g, C)
            st_scr[0:1, 3:6] = C_est[0:1, :]
            st_scr[0:1, 6:9] = C_est[1:2, :]
            st_scr[0:1, 9:12] = C_est[2:3, :]
            st_scr[0:1, 12:15] = _row3(r_est, C)
            st_scr[0:1, 15:18] = _row3(v_est, C)
            st_scr[0:1, 18:21] = _row3(bw_est, C)
            st_scr[0:1, 21:24] = _row3(ba_est, C)

            pose_out[k] = pose_scr[...]
            state_out[k] = st_scr[...]
            covar_out[k] = new_covar
            return carry

        lax.fori_loop(0, t_vis, step, 0)

    return kernel


# ----------------------------- JAX wrapper -----------------------------------
def imu_kalman_filter_forward(imu_data, imu_noise_covar, prev_pose, prev_state,
                              prev_covar, vis_meas, vis_meas_covar, T_imu_cam):
    f32 = jnp.float32
    B, T_vis = vis_meas.shape[0], vis_meas.shape[1]
    S_imu = imu_data.shape[2]

    # decode_state_b (glue): only g, v, bw, ba of prev_state feed the filter.
    g0 = prev_state[:, 0:3].reshape(B, 3, 1).astype(f32)
    v0 = prev_state[:, 15:18].reshape(B, 3, 1).astype(f32)
    bw0 = prev_state[:, 18:21].reshape(B, 3, 1).astype(f32)
    ba0 = prev_state[:, 21:24].reshape(B, 3, 1).astype(f32)

    imu_t = jnp.transpose(imu_data, (0, 1, 3, 2)).astype(f32)   # (B,T,7,S)

    kernel = _make_kernel(T_vis, S_imu)

    out_shapes = (
        jax.ShapeDtypeStruct((B, T_vis, 4, 4), f32),     # poses
        jax.ShapeDtypeStruct((B, T_vis, 1, 24), f32),    # packed states
        jax.ShapeDtypeStruct((B, T_vis, 18, 18), f32),   # covars
    )

    def per_b(*shape):      # whole per-b slab; leading batch dim squeezed
        nd = len(shape)
        return pl.BlockSpec((None,) + shape, lambda b: (b,) + (0,) * nd)

    in_specs = [
        per_b(T_vis, 7, S_imu),                           # imu
        pl.BlockSpec((12, 12), lambda b: (0, 0)),         # imu_noise_covar
        per_b(4, 4),                                      # prev_pose
        per_b(18, 18),                                    # prev_covar
        per_b(3, 1), per_b(3, 1), per_b(3, 1), per_b(3, 1),  # g0,v0,bw0,ba0
        per_b(T_vis, 6, 1),                               # vis_meas
        per_b(T_vis, 6, 6),                               # vis_meas_covar
        per_b(4, 4),                                      # T_imu_cam
    ]
    out_specs = (
        per_b(T_vis, 4, 4),
        per_b(T_vis, 1, 24),
        per_b(T_vis, 18, 18),
    )
    scratch = [
        pltpu.VMEM((4, 4), f32),      # pose
        pltpu.VMEM((18, 18), f32),    # covar
        pltpu.VMEM((3, 1), f32),      # g
        pltpu.VMEM((3, 1), f32),      # v
        pltpu.VMEM((3, 1), f32),      # bw
        pltpu.VMEM((3, 1), f32),      # ba
        pltpu.VMEM((18, 18), f32),    # F
        pltpu.VMEM((18, 12), f32),    # G
        pltpu.VMEM((18, 18), f32),    # Phi
        pltpu.VMEM((6, 18), f32),     # H
        pltpu.VMEM((18, 18), f32),    # U (composition)
        pltpu.VMEM((1, 24), f32),     # packed state row
    ]

    poses, states_packed, covars = pl.pallas_call(
        kernel,
        out_shape=out_shapes,
        grid=(B,),
        in_specs=in_specs,
        out_specs=out_specs,
        scratch_shapes=scratch,
        compiler_params=pltpu.CompilerParams(
            dimension_semantics=("parallel",)),
    )(imu_t, imu_noise_covar.astype(f32), prev_pose.astype(f32),
      prev_covar.astype(f32), g0, v0, bw0, ba0,
      vis_meas.astype(f32), vis_meas_covar.astype(f32), T_imu_cam.astype(f32))

    states = states_packed[:, :, 0, :]                    # (B, T_vis, 24)
    poses_full = jnp.concatenate([prev_pose[:, None].astype(f32), poses], axis=1)
    states_full = jnp.concatenate([prev_state[:, None].astype(f32), states], axis=1)
    covars_full = jnp.concatenate([prev_covar[:, None].astype(f32), covars], axis=1)
    return poses_full, states_full, covars_full


# ----------------------------- deterministic test -----------------------------
def _host_rot(rotvec):
    th = jnp.sqrt(jnp.sum(rotvec * rotvec) + 1e-12)
    k = rotvec / th
    K = jnp.array([[0., -k[2], k[1]], [k[2], 0., -k[0]], [-k[1], k[0], 0.]],
                  dtype=jnp.float32)
    return (jnp.eye(3, dtype=jnp.float32) + jnp.sin(th) * K
            + (1.0 - jnp.cos(th)) * (K @ K))


if __name__ == "__main__":
    key = jax.random.PRNGKey(0)
    B, T_vis, S_imu = 2, 3, 4
    ks = jax.random.split(key, 20)

    # IMU data (B, T, S, 7): [timestamp, gyro(3), accel(3)] per sample
    t_stamps = (jnp.arange(S_imu, dtype=jnp.float32) * 0.01)[None, None, :, None]
    t_stamps = jnp.broadcast_to(t_stamps, (B, T_vis, S_imu, 1))
    gyro = 0.05 * jax.random.normal(ks[0], (B, T_vis, S_imu, 3), dtype=jnp.float32)
    accel = 0.5 * jax.random.normal(ks[1], (B, T_vis, S_imu, 3), dtype=jnp.float32)
    imu_data = jnp.concatenate([t_stamps, gyro, accel], axis=-1)

    imu_noise_covar = jnp.diag(
        1e-3 + 1e-3 * jax.random.uniform(ks[2], (12,), dtype=jnp.float32))

    def make_se3(kr, kt, rot_scale, t_scale):
        Rs = jnp.stack([_host_rot(rot_scale * jax.random.normal(k_, (3,), dtype=jnp.float32))
                        for k_ in jax.random.split(kr, B)])
        ts = t_scale * jax.random.normal(kt, (B, 3, 1), dtype=jnp.float32)
        top = jnp.concatenate([Rs, ts], axis=-1)
        bot = jnp.broadcast_to(jnp.array([[0., 0., 0., 1.]], dtype=jnp.float32),
                               (B, 1, 4))
        return jnp.concatenate([top, bot], axis=1)

    prev_pose = make_se3(ks[3], ks[4], 0.1, 0.1)
    T_imu_cam = make_se3(ks[5], ks[6], 0.1, 0.05)

    # prev_state (B, 24): [g(3), C(9), r(3), v(3), bw(3), ba(3)]
    g0 = jnp.broadcast_to(jnp.array([0., 0., 9.81], dtype=jnp.float32), (B, 3))
    C0 = jnp.stack([_host_rot(0.05 * jax.random.normal(k_, (3,), dtype=jnp.float32))
                    for k_ in jax.random.split(ks[7], B)])
    r0 = 0.1 * jax.random.normal(ks[8], (B, 3), dtype=jnp.float32)
    v0 = 0.1 * jax.random.normal(ks[9], (B, 3), dtype=jnp.float32)
    bw0 = 0.01 * jax.random.normal(ks[10], (B, 3), dtype=jnp.float32)
    ba0 = 0.01 * jax.random.normal(ks[11], (B, 3), dtype=jnp.float32)
    prev_state = jnp.concatenate([g0, C0.reshape(B, 9), r0, v0, bw0, ba0], axis=-1)

    L = 0.05 * jax.random.normal(ks[12], (B, 18, 18), dtype=jnp.float32)
    prev_covar = (jnp.matmul(L, jnp.transpose(L, (0, 2, 1)))
                  + 0.01 * jnp.eye(18, dtype=jnp.float32))

    vis_rot = 0.05 * jax.random.normal(ks[13], (B, T_vis, 3, 1), dtype=jnp.float32)
    vis_trans = 0.1 * jax.random.normal(ks[14], (B, T_vis, 3, 1), dtype=jnp.float32)
    vis_meas = jnp.concatenate([vis_rot, vis_trans], axis=2)

    d = 0.01 + 0.01 * jax.random.uniform(ks[15], (B, T_vis, 6), dtype=jnp.float32)
    vis_meas_covar = d[..., :, None] * jnp.eye(6, dtype=jnp.float32)

    poses, states, covars = jax.block_until_ready(
        imu_kalman_filter_forward(imu_data, imu_noise_covar, prev_pose, prev_state,
                                  prev_covar, vis_meas, vis_meas_covar, T_imu_cam))

    assert poses.shape == (B, T_vis + 1, 4, 4)
    assert states.shape == (B, T_vis + 1, 24)
    assert covars.shape == (B, T_vis + 1, 18, 18)
    assert bool(jnp.all(jnp.isfinite(poses)) & jnp.all(jnp.isfinite(states))
                & jnp.all(jnp.isfinite(covars)))
    print("KERNEL_OK")
</pallas_src>

<mosaic_0001>
module attributes {stable_mosaic.version = 11 : i64} {
  func.func @kernel(%arg0: i32, %arg1: memref<1x3x7x4xf32, #tpu.memory_space<vmem>>, %arg2: memref<12x12xf32, #tpu.memory_space<vmem>>, %arg3: memref<1x4x4xf32, #tpu.memory_space<vmem>>, %arg4: memref<1x18x18xf32, #tpu.memory_space<vmem>>, %arg5: memref<1x3x1xf32, #tpu.memory_space<vmem>>, %arg6: memref<1x3x1xf32, #tpu.memory_space<vmem>>, %arg7: memref<1x3x1xf32, #tpu.memory_space<vmem>>, %arg8: memref<1x3x1xf32, #tpu.memory_space<vmem>>, %arg9: memref<1x3x6x1xf32, #tpu.memory_space<vmem>>, %arg10: memref<1x3x6x6xf32, #tpu.memory_space<vmem>>, %arg11: memref<1x4x4xf32, #tpu.memory_space<vmem>>, %arg12: memref<1x3x4x4xf32, #tpu.memory_space<vmem>>, %arg13: memref<1x3x1x24xf32, #tpu.memory_space<vmem>>, %arg14: memref<1x3x18x18xf32, #tpu.memory_space<vmem>>, %arg15: memref<4x4xf32, #tpu.memory_space<vmem>>, %arg16: memref<18x18xf32, #tpu.memory_space<vmem>>, %arg17: memref<3x1xf32, #tpu.memory_space<vmem>>, %arg18: memref<3x1xf32, #tpu.memory_space<vmem>>, %arg19: memref<3x1xf32, #tpu.memory_space<vmem>>, %arg20: memref<3x1xf32, #tpu.memory_space<vmem>>, %arg21: memref<18x18xf32, #tpu.memory_space<vmem>>, %arg22: memref<18x12xf32, #tpu.memory_space<vmem>>, %arg23: memref<18x18xf32, #tpu.memory_space<vmem>>, %arg24: memref<6x18xf32, #tpu.memory_space<vmem>>, %arg25: memref<18x18xf32, #tpu.memory_space<vmem>>, %arg26: memref<1x24xf32, #tpu.memory_space<vmem>>) attributes {dimension_semantics = [#tpu.dimension_semantics<parallel>], iteration_bounds = array<i64: 2>, scalar_prefetch = 0 : i64, scratch_operands = 12 : i64, tpu.core_type = #tpu.core_type<tc>, window_params = [{transform_indices = @transform_0, window_bounds = array<i64: 1, 3, 7, 4>}, {pipeline_mode = #tpu.pipeline_mode<synchronous>, transform_indices = @transform_1, window_bounds = array<i64: 12, 12>}, {transform_indices = @transform_2, window_bounds = array<i64: 1, 4, 4>}, {transform_indices = @transform_3, window_bounds = array<i64: 1, 18, 18>}, {transform_indices = @transform_4, window_bounds = array<i64: 1, 3, 1>}, {transform_indices = @transform_5, window_bounds = array<i64: 1, 3, 1>}, {transform_indices = @transform_6, window_bounds = array<i64: 1, 3, 1>}, {transform_indices = @transform_7, window_bounds = array<i64: 1, 3, 1>}, {transform_indices = @transform_8, window_bounds = array<i64: 1, 3, 6, 1>}, {transform_indices = @transform_9, window_bounds = array<i64: 1, 3, 6, 6>}, {transform_indices = @transform_10, window_bounds = array<i64: 1, 4, 4>}, {transform_indices = @transform_11, window_bounds = array<i64: 1, 3, 4, 4>}, {transform_indices = @transform_12, window_bounds = array<i64: 1, 3, 1, 24>}, {transform_indices = @transform_13, window_bounds = array<i64: 1, 3, 18, 18>}]} {
    %0 = tpu.iota {dimensions = array<i32: 0>} : vector<3x3xi32>
    %1 = tpu.iota {dimensions = array<i32: 1>} : vector<3x3xi32>
    %2 = arith.cmpi eq, %0, %1 : vector<3x3xi32>
    %3 = arith.extui %2 : vector<3x3xi1> to vector<3x3xi32>
    %4 = arith.sitofp %3 : vector<3x3xi32> to vector<3x3xf32>
    %5 = tpu.iota {dimensions = array<i32: 0>} : vector<6x6xi32>
    %6 = tpu.iota {dimensions = array<i32: 1>} : vector<6x6xi32>
    %7 = arith.cmpi eq, %5, %6 : vector<6x6xi32>
    %8 = arith.extui %7 : vector<6x6xi1> to vector<6x6xi32>
    %9 = arith.sitofp %8 : vector<6x6xi32> to vector<6x6xf32>
    %10 = tpu.iota {dimensions = array<i32: 0>} : vector<18x18xi32>
    %11 = tpu.iota {dimensions = array<i32: 1>} : vector<18x18xi32>
    %12 = arith.cmpi eq, %10, %11 : vector<18x18xi32>
    %13 = arith.extui %12 : vector<18x18xi1> to vector<18x18xi32>
    %14 = arith.sitofp %13 : vector<18x18xi32> to vector<18x18xf32>
    %15 = tpu.iota {dimensions = array<i32: 0>} : vector<3x3xi32>
    %16 = tpu.iota {dimensions = array<i32: 1>} : vector<3x3xi32>
    %c2_i32 = arith.constant 2 : i32
    %17 = vector.broadcast %c2_i32 : i32 to vector<3x3xi32>
    %18 = arith.cmpi eq, %15, %17 : vector<3x3xi32>
    %c1_i32 = arith.constant 1 : i32
    %19 = vector.broadcast %c1_i32 : i32 to vector<3x3xi32>
    %20 = arith.cmpi eq, %16, %19 : vector<3x3xi32>
    %21 = arith.andi %18, %20 : vector<3x3xi1>
    %cst = arith.constant 1.000000e+00 : f32
    %cst_0 = arith.constant 0.000000e+00 : f32
    %22 = vector.broadcast %cst : f32 to vector<3x3xf32>
    %23 = vector.broadcast %cst_0 : f32 to vector<3x3xf32>
    %24 = arith.select %21, %22, %23 : vector<3x3xi1>, vector<3x3xf32>
    %c1_i32_1 = arith.constant 1 : i32
    %25 = vector.broadcast %c1_i32_1 : i32 to vector<3x3xi32>
    %26 = arith.cmpi eq, %15, %25 : vector<3x3xi32>
    %c2_i32_2 = arith.constant 2 : i32
    %27 = vector.broadcast %c2_i32_2 : i32 to vector<3x3xi32>
    %28 = arith.cmpi eq, %16, %27 : vector<3x3xi32>
    %29 = arith.andi %26, %28 : vector<3x3xi1>
    %cst_3 = arith.constant -1.000000e+00 : f32
    %cst_4 = arith.constant 0.000000e+00 : f32
    %30 = vector.broadcast %cst_3 : f32 to vector<3x3xf32>
    %31 = vector.broadcast %cst_4 : f32 to vector<3x3xf32>
    %32 = arith.select %29, %30, %31 : vector<3x3xi1>, vector<3x3xf32>
    %33 = arith.addf %24, %32 : vector<3x3xf32>
    %c0_i32 = arith.constant 0 : i32
    %34 = vector.broadcast %c0_i32 : i32 to vector<3x3xi32>
    %35 = arith.cmpi eq, %15, %34 : vector<3x3xi32>
    %c2_i32_5 = arith.constant 2 : i32
    %36 = vector.broadcast %c2_i32_5 : i32 to vector<3x3xi32>
    %37 = arith.cmpi eq, %16, %36 : vector<3x3xi32>
    %38 = arith.andi %35, %37 : vector<3x3xi1>
    %cst_6 = arith.constant 1.000000e+00 : f32
    %cst_7 = arith.constant 0.000000e+00 : f32
    %39 = vector.broadcast %cst_6 : f32 to vector<3x3xf32>
    %40 = vector.broadcast %cst_7 : f32 to vector<3x3xf32>
    %41 = arith.select %38, %39, %40 : vector<3x3xi1>, vector<3x3xf32>
    %c2_i32_8 = arith.constant 2 : i32
    %42 = vector.broadcast %c2_i32_8 : i32 to vector<3x3xi32>
    %43 = arith.cmpi eq, %15, %42 : vector<3x3xi32>
    %c0_i32_9 = arith.constant 0 : i32
    %44 = vector.broadcast %c0_i32_9 : i32 to vector<3x3xi32>
    %45 = arith.cmpi eq, %16, %44 : vector<3x3xi32>
    %46 = arith.andi %43, %45 : vector<3x3xi1>
    %cst_10 = arith.constant -1.000000e+00 : f32
    %cst_11 = arith.constant 0.000000e+00 : f32
    %47 = vector.broadcast %cst_10 : f32 to vector<3x3xf32>
    %48 = vector.broadcast %cst_11 : f32 to vector<3x3xf32>
    %49 = arith.select %46, %47, %48 : vector<3x3xi1>, vector<3x3xf32>
    %50 = arith.addf %41, %49 : vector<3x3xf32>
    %c1_i32_12 = arith.constant 1 : i32
    %51 = vector.broadcast %c1_i32_12 : i32 to vector<3x3xi32>
    %52 = arith.cmpi eq, %15, %51 : vector<3x3xi32>
    %c0_i32_13 = arith.constant 0 : i32
    %53 = vector.broadcast %c0_i32_13 : i32 to vector<3x3xi32>
    %54 = arith.cmpi eq, %16, %53 : vector<3x3xi32>
    %55 = arith.andi %52, %54 : vector<3x3xi1>
    %cst_14 = arith.constant 1.000000e+00 : f32
    %cst_15 = arith.constant 0.000000e+00 : f32
    %56 = vector.broadcast %cst_14 : f32 to vector<3x3xf32>
    %57 = vector.broadcast %cst_15 : f32 to vector<3x3xf32>
    %58 = arith.select %55, %56, %57 : vector<3x3xi1>, vector<3x3xf32>
    %c0_i32_16 = arith.constant 0 : i32
    %59 = vector.broadcast %c0_i32_16 : i32 to vector<3x3xi32>
    %60 = arith.cmpi eq, %15, %59 : vector<3x3xi32>
    %c1_i32_17 = arith.constant 1 : i32
    %61 = vector.broadcast %c1_i32_17 : i32 to vector<3x3xi32>
    %62 = arith.cmpi eq, %16, %61 : vector<3x3xi32>
    %63 = arith.andi %60, %62 : vector<3x3xi1>
    %cst_18 = arith.constant -1.000000e+00 : f32
    %cst_19 = arith.constant 0.000000e+00 : f32
    %64 = vector.broadcast %cst_18 : f32 to vector<3x3xf32>
    %65 = vector.broadcast %cst_19 : f32 to vector<3x3xf32>
    %66 = arith.select %63, %64, %65 : vector<3x3xi1>, vector<3x3xf32>
    %67 = arith.addf %58, %66 : vector<3x3xf32>
    %68 = tpu.iota {dimensions = array<i32: 0>} : vector<3x1xi32>
    %c0_i32_20 = arith.constant 0 : i32
    %69 = vector.broadcast %c0_i32_20 : i32 to vector<3x1xi32>
    %70 = arith.cmpi eq, %68, %69 : vector<3x1xi32>
    %71 = arith.extui %70 : vector<3x1xi1> to vector<3x1xi32>
    %72 = arith.sitofp %71 : vector<3x1xi32> to vector<3x1xf32>
    %c1_i32_21 = arith.constant 1 : i32
    %73 = vector.broadcast %c1_i32_21 : i32 to vector<3x1xi32>
    %74 = arith.cmpi eq, %68, %73 : vector<3x1xi32>
    %75 = arith.extui %74 : vector<3x1xi1> to vector<3x1xi32>
    %76 = arith.sitofp %75 : vector<3x1xi32> to vector<3x1xf32>
    %c2_i32_22 = arith.constant 2 : i32
    %77 = vector.broadcast %c2_i32_22 : i32 to vector<3x1xi32>
    %78 = arith.cmpi eq, %68, %77 : vector<3x1xi32>
    %79 = arith.extui %78 : vector<3x1xi1> to vector<3x1xi32>
    %80 = arith.sitofp %79 : vector<3x1xi32> to vector<3x1xf32>
    %81 = tpu.iota {dimensions = array<i32: 0>} : vector<18x18xi32>
    %82 = tpu.iota {dimensions = array<i32: 1>} : vector<18x18xi32>
    %83 = arith.cmpi sge, %82, %81 : vector<18x18xi32>
    %84 = arith.extui %83 : vector<18x18xi1> to vector<18x18xi32>
    %85 = arith.sitofp %84 : vector<18x18xi32> to vector<18x18xf32>
    %cst_23 = arith.constant 1.000000e+00 : f32
    %86 = vector.broadcast %cst_23 : f32 to vector<18x18xf32>
    %87 = arith.subf %86, %14 : vector<18x18xf32>
    %c3_i32 = arith.constant 3 : i32
    %88 = vector.broadcast %c3_i32 : i32 to vector<18x18xi32>
    %89 = arith.cmpi slt, %81, %88 : vector<18x18xi32>
    %c9_i32 = arith.constant 9 : i32
    %90 = vector.broadcast %c9_i32 : i32 to vector<18x18xi32>
    %91 = arith.cmpi sge, %81, %90 : vector<18x18xi32>
    %92 = arith.ori %89, %91 : vector<18x18xi1>
    %93 = arith.extui %92 : vector<18x18xi1> to vector<18x18xi32>
    %94 = arith.sitofp %93 : vector<18x18xi32> to vector<18x18xf32>
    %c3_i32_24 = arith.constant 3 : i32
    %95 = vector.broadcast %c3_i32_24 : i32 to vector<18x18xi32>
    %96 = arith.cmpi slt, %82, %95 : vector<18x18xi32>
    %c9_i32_25 = arith.constant 9 : i32
    %97 = vector.broadcast %c9_i32_25 : i32 to vector<18x18xi32>
    %98 = arith.cmpi sge, %82, %97 : vector<18x18xi32>
    %99 = arith.ori %96, %98 : vector<18x18xi1>
    %100 = arith.extui %99 : vector<18x18xi1> to vector<18x18xi32>
    %101 = arith.sitofp %100 : vector<18x18xi32> to vector<18x18xf32>
    %102 = arith.mulf %94, %101 : vector<18x18xf32>
    %103 = tpu.iota {dimensions = array<i32: 0>} : vector<6x6xi32>
    %c0 = arith.constant 0 : index
    %c0_26 = arith.constant 0 : index
    %c0_27 = arith.constant 0 : index
    %104 = vector.load %arg3[%c0, %c0_26, %c0_27] : memref<1x4x4xf32, #tpu.memory_space<vmem>>, vector<1x4x4xf32>
    %105 = vector.shape_cast %104 : vector<1x4x4xf32> to vector<4x4xf32>
    %c0_28 = arith.constant 0 : index
    %c0_29 = arith.constant 0 : index
    %106 = vector.load %arg15[%c0_28, %c0_29] : memref<4x4xf32, #tpu.memory_space<vmem>>, vector<4x4xf32>
    tpu.vector_store %arg15[%c0_28, %c0_29], %105 {strides = array<i32>} : memref<4x4xf32, #tpu.memory_space<vmem>>, vector<4x4xf32>,
    %c0_30 = arith.constant 0 : index
    %c0_31 = arith.constant 0 : index
    %c0_32 = arith.constant 0 : index
    %107 = vector.load %arg4[%c0_30, %c0_31, %c0_32] : memref<1x18x18xf32, #tpu.memory_space<vmem>>, vector<1x18x18xf32>
    %108 = vector.shape_cast %107 : vector<1x18x18xf32> to vector<18x18xf32>
    %c0_33 = arith.constant 0 : index
    %c0_34 = arith.constant 0 : index
    %109 = vector.load %arg16[%c0_33, %c0_34] : memref<18x18xf32, #tpu.memory_space<vmem>>, vector<18x18xf32>
    tpu.vector_store %arg16[%c0_33, %c0_34], %108 {strides = array<i32>} : memref<18x18xf32, #tpu.memory_space<vmem>>, vector<18x18xf32>,
    %c0_35 = arith.constant 0 : index
    %c0_36 = arith.constant 0 : index
    %c0_37 = arith.constant 0 : index
    %110 = vector.load %arg5[%c0_35, %c0_36, %c0_37] : memref<1x3x1xf32, #tpu.memory_space<vmem>>, vector<1x3x1xf32>
    %111 = vector.shape_cast %110 : vector<1x3x1xf32> to vector<3x1xf32>
    %c0_38 = arith.constant 0 : index
    %c0_39 = arith.constant 0 : index
    %112 = vector.load %arg17[%c0_38, %c0_39] : memref<3x1xf32, #tpu.memory_space<vmem>>, vector<3x1xf32>
    tpu.vector_store %arg17[%c0_38, %c0_39], %111 {strides = array<i32>} : memref<3x1xf32, #tpu.memory_space<vmem>>, vector<3x1xf32>,
    %c0_40 = arith.constant 0 : index
    %c0_41 = arith.constant 0 : index
    %c0_42 = arith.constant 0 : index
    %113 = vector.load %arg6[%c0_40, %c0_41, %c0_42] : memref<1x3x1xf32, #tpu.memory_space<vmem>>, vector<1x3x1xf32>
    %114 = vector.shape_cast %113 : vector<1x3x1xf32> to vector<3x1xf32>
    %c0_43 = arith.constant 0 : index
    %c0_44 = arith.constant 0 : index
    %115 = vector.load %arg18[%c0_43, %c0_44] : memref<3x1xf32, #tpu.memory_space<vmem>>, vector<3x1xf32>
    tpu.vector_store %arg18[%c0_43, %c0_44], %114 {strides = array<i32>} : memref<3x1xf32, #tpu.memory_space<vmem>>, vector<3x1xf32>,
    %c0_45 = arith.constant 0 : index
    %c0_46 = arith.constant 0 : index
    %c0_47 = arith.constant 0 : index
    %116 = vector.load %arg7[%c0_45, %c0_46, %c0_47] : memref<1x3x1xf32, #tpu.memory_space<vmem>>, vector<1x3x1xf32>
    %117 = vector.shape_cast %116 : vector<1x3x1xf32> to vector<3x1xf32>
    %c0_48 = arith.constant 0 : index
    %c0_49 = arith.constant 0 : index
    %118 = vector.load %arg19[%c0_48, %c0_49] : memref<3x1xf32, #tpu.memory_space<vmem>>, vector<3x1xf32>
    tpu.vector_store %arg19[%c0_48, %c0_49], %117 {strides = array<i32>} : memref<3x1xf32, #tpu.memory_space<vmem>>, vector<3x1xf32>,
    %c0_50 = arith.constant 0 : index
    %c0_51 = arith.constant 0 : index
    %c0_52 = arith.constant 0 : index
    %119 = vector.load %arg8[%c0_50, %c0_51, %c0_52] : memref<1x3x1xf32, #tpu.memory_space<vmem>>, vector<1x3x1xf32>
    %120 = vector.shape_cast %119 : vector<1x3x1xf32> to vector<3x1xf32>
    %c0_53 = arith.constant 0 : index
    %c0_54 = arith.constant 0 : index
    %121 = vector.load %arg20[%c0_53, %c0_54] : memref<3x1xf32, #tpu.memory_space<vmem>>, vector<3x1xf32>
    tpu.vector_store %arg20[%c0_53, %c0_54], %120 {strides = array<i32>} : memref<3x1xf32, #tpu.memory_space<vmem>>, vector<3x1xf32>,
    %cst_55 = arith.constant 0.000000e+00 : f32
    %122 = vector.broadcast %cst_55 : f32 to vector<18x18xf32>
    %c0_56 = arith.constant 0 : index
    %c0_57 = arith.constant 0 : index
    %123 = vector.load %arg21[%c0_56, %c0_57] : memref<18x18xf32, #tpu.memory_space<vmem>>, vector<18x18xf32>
    tpu.vector_store %arg21[%c0_56, %c0_57], %122 {strides = array<i32>} : memref<18x18xf32, #tpu.memory_space<vmem>>, vector<18x18xf32>,
    %cst_58 = arith.constant 0.000000e+00 : f32
    %124 = vector.broadcast %cst_58 : f32 to vector<3x3xf32>
    %125 = arith.subf %124, %4 : vector<3x3xf32>
    %c3 = arith.constant 3 : index
    %c12 = arith.constant 12 : index
    %126 = vector.load %arg21[%c3, %c12] : memref<18x18xf32, #tpu.memory_space<vmem>>, vector<3x3xf32>
    tpu.vector_store %arg21[%c3, %c12], %125 {strides = array<i32>} : memref<18x18xf32, #tpu.memory_space<vmem>>, vector<3x3xf32>,
    %cst_59 = arith.constant 0.000000e+00 : f32
    %127 = vector.broadcast %cst_59 : f32 to vector<3x3xf32>
    %128 = arith.subf %127, %4 : vector<3x3xf32>
    %c9 = arith.constant 9 : index
    %c15 = arith.constant 15 : index
    %129 = vector.load %arg21[%c9, %c15] : memref<18x18xf32, #tpu.memory_space<vmem>>, vector<3x3xf32>
    tpu.vector_store %arg21[%c9, %c15], %128 {strides = array<i32>} : memref<18x18xf32, #tpu.memory_space<vmem>>, vector<3x3xf32>,
    %cst_60 = arith.constant 0.000000e+00 : f32
    %130 = vector.broadcast %cst_60 : f32 to vector<18x12xf32>
    %c0_61 = arith.constant 0 : index
    %c0_62 = arith.constant 0 : index
    %131 = vector.load %arg22[%c0_61, %c0_62] : memref<18x12xf32, #tpu.memory_space<vmem>>, vector<18x12xf32>
    tpu.vector_store %arg22[%c0_61, %c0_62], %130 {strides = array<i32>} : memref<18x12xf32, #tpu.memory_space<vmem>>, vector<18x12xf32>,
    %cst_63 = arith.constant 0.000000e+00 : f32
    %132 = vector.broadcast %cst_63 : f32 to vector<3x3xf32>
    %133 = arith.subf %132, %4 : vector<3x3xf32>
    %c3_64 = arith.constant 3 : index
    %c0_65 = arith.constant 0 : index
    %134 = vector.load %arg22[%c3_64, %c0_65] : memref<18x12xf32, #tpu.memory_space<vmem>>, vector<3x3xf32>
    tpu.vector_store %arg22[%c3_64, %c0_65], %133 {strides = array<i32>} : memref<18x12xf32, #tpu.memory_space<vmem>>, vector<3x3xf32>,
    %cst_66 = arith.constant 0.000000e+00 : f32
    %135 = vector.broadcast %cst_66 : f32 to vector<3x3xf32>
    %136 = arith.subf %135, %4 : vector<3x3xf32>
    %c9_67 = arith.constant 9 : index
    %c6 = arith.constant 6 : index
    %137 = vector.load %arg22[%c9_67, %c6] : memref<18x12xf32, #tpu.memory_space<vmem>>, vector<3x3xf32>
    tpu.vector_store %arg22[%c9_67, %c6], %136 {strides = array<i32>} : memref<18x12xf32, #tpu.memory_space<vmem>>, vector<3x3xf32>,
    %c12_68 = arith.constant 12 : index
    %c3_69 = arith.constant 3 : index
    %138 = vector.load %arg22[%c12_68, %c3_69] : memref<18x12xf32, #tpu.memory_space<vmem>>, vector<3x3xf32>
    tpu.vector_store %arg22[%c12_68, %c3_69], %4 {strides = array<i32>} : memref<18x12xf32, #tpu.memory_space<vmem>>, vector<3x3xf32>,
    %c15_70 = arith.constant 15 : index
    %c9_71 = arith.constant 9 : index
    %139 = vector.load %arg22[%c15_70, %c9_71] : memref<18x12xf32, #tpu.memory_space<vmem>>, vector<3x3xf32>
    tpu.vector_store %arg22[%c15_70, %c9_71], %4 {strides = array<i32>} : memref<18x12xf32, #tpu.memory_space<vmem>>, vector<3x3xf32>,
    %cst_72 = arith.constant 0.000000e+00 : f32
    %140 = vector.broadcast %cst_72 : f32 to vector<6x18xf32>
    %c0_73 = arith.constant 0 : index
    %c0_74 = arith.constant 0 : index
    %141 = vector.load %arg24[%c0_73, %c0_74] : memref<6x18xf32, #tpu.memory_space<vmem>>, vector<6x18xf32>
    tpu.vector_store %arg24[%c0_73, %c0_74], %140 {strides = array<i32>} : memref<6x18xf32, #tpu.memory_space<vmem>>, vector<6x18xf32>,
    %c0_75 = arith.constant 0 : index
    %c0_76 = arith.constant 0 : index
    %142 = vector.load %arg25[%c0_75, %c0_76] : memref<18x18xf32, #tpu.memory_space<vmem>>, vector<18x18xf32>
    tpu.vector_store %arg25[%c0_75, %c0_76], %14 {strides = array<i32>} : memref<18x18xf32, #tpu.memory_space<vmem>>, vector<18x18xf32>,
    %c0_77 = arith.constant 0 : index
    %c0_78 = arith.constant 0 : index
    %143 = vector.load %arg2[%c0_77, %c0_78] : memref<12x12xf32, #tpu.memory_space<vmem>>, vector<12x12xf32>
    %c0_79 = arith.constant 0 : index
    %c0_80 = arith.constant 0 : index
    %c0_81 = arith.constant 0 : index
    %144 = vector.load %arg11[%c0_79, %c0_80, %c0_81] : memref<1x4x4xf32, #tpu.memory_space<vmem>>, vector<1x4x4xf32>
    %145 = vector.shape_cast %144 : vector<1x4x4xf32> to vector<4x4xf32>
    %146 = vector.extract_strided_slice %145 {offsets = [0, 0], sizes = [3, 3], strides = [1, 1]} : vector<4x4xf32> to vector<3x3xf32>
    %147 = tpu.transpose %146, [1, 0] : vector<3x3xf32> -> vector<3x3xf32>
    %148 = vector.extract_strided_slice %145 {offsets = [0, 3], sizes = [3, 1], strides = [1, 1]} : vector<4x4xf32> to vector<3x1xf32>
    %149 = vector.extract_strided_slice %148 {offsets = [0, 0], sizes = [1, 1], strides = [1, 1]} : vector<3x1xf32> to vector<1x1xf32>
    %150 = vector.broadcast %149 : vector<1x1xf32> to vector<3x3xf32>
    %151 = arith.mulf %150, %33 : vector<3x3xf32>
    %152 = vector.extract_strided_slice %148 {offsets = [1, 0], sizes = [1, 1], strides = [1, 1]} : vector<3x1xf32> to vector<1x1xf32>
    %153 = vector.broadcast %152 : vector<1x1xf32> to vector<3x3xf32>
    %154 = arith.mulf %153, %50 : vector<3x3xf32>
    %155 = arith.addf %151, %154 : vector<3x3xf32>
    %156 = vector.extract_strided_slice %148 {offsets = [2, 0], sizes = [1, 1], strides = [1, 1]} : vector<3x1xf32> to vector<1x1xf32>
    %157 = vector.broadcast %156 : vector<1x1xf32> to vector<3x3xf32>
    %158 = arith.mulf %157, %67 : vector<3x3xf32>
    %159 = arith.addf %155, %158 : vector<3x3xf32>
    %c0_i32_82 = arith.constant 0 : i32
    %c3_i32_83 = arith.constant 3 : i32
    %160 = arith.addi %c0_i32_82, %c3_i32_83 : i32
    %c1_i32_84 = arith.constant 1 : i32
    scf.for %arg27 = %c0_i32_82 to %160 step %c1_i32_84  : i32 {
      %c0_86 = arith.constant 0 : index
      %c0_87 = arith.constant 0 : index
      %161 = vector.load %arg15[%c0_86, %c0_87] : memref<4x4xf32, #tpu.memory_space<vmem>>, vector<4x4xf32>
      %c0_88 = arith.constant 0 : index
      %c0_89 = arith.constant 0 : index
      %162 = vector.load %arg16[%c0_88, %c0_89] : memref<18x18xf32, #tpu.memory_space<vmem>>, vector<18x18xf32>
      %c0_90 = arith.constant 0 : index
      %c0_91 = arith.constant 0 : index
      %163 = vector.load %arg17[%c0_90, %c0_91] : memref<3x1xf32, #tpu.memory_space<vmem>>, vector<3x1xf32>
      %c0_92 = arith.constant 0 : index
      %c0_93 = arith.constant 0 : index
      %164 = vector.load %arg18[%c0_92, %c0_93] : memref<3x1xf32, #tpu.memory_space<vmem>>, vector<3x1xf32>
      %c0_94 = arith.constant 0 : index
      %c0_95 = arith.constant 0 : index
      %165 = vector.load %arg19[%c0_94, %c0_95] : memref<3x1xf32, #tpu.memory_space<vmem>>, vector<3x1xf32>
      %c0_96 = arith.constant 0 : index
      %c0_97 = arith.constant 0 : index
      %166 = vector.load %arg20[%c0_96, %c0_97] : memref<3x1xf32, #tpu.memory_space<vmem>>, vector<3x1xf32>
      %c0_98 = arith.constant 0 : index
      %167 = arith.index_cast %arg27 : i32 to index
      %c0_99 = arith.constant 0 : index
      %c0_100 = arith.constant 0 : index
      %168 = vector.load %arg1[%c0_98, %167, %c0_99, %c0_100] : memref<1x3x7x4xf32, #tpu.memory_space<vmem>>, vector<1x1x7x4xf32>
      %169 = vector.shape_cast %168 : vector<1x1x7x4xf32> to vector<7x4xf32>
      %c0_101 = arith.constant 0 : index
      %170 = arith.index_cast %arg27 : i32 to index
      %c0_102 = arith.constant 0 : index
      %c0_103 = arith.constant 0 : index
      %171 = vector.load %arg9[%c0_101, %170, %c0_102, %c0_103] : memref<1x3x6x1xf32, #tpu.memory_space<vmem>>, vector<1x1x6x1xf32>
      %172 = vector.shape_cast %171 : vector<1x1x6x1xf32> to vector<6x1xf32>
      %c0_104 = arith.constant 0 : index
      %173 = arith.index_cast %arg27 : i32 to index
      %c0_105 = arith.constant 0 : index
      %c0_106 = arith.constant 0 : index
      %174 = vector.load %arg10[%c0_104, %173, %c0_105, %c0_106] : memref<1x3x6x6xf32, #tpu.memory_space<vmem>>, vector<1x1x6x6xf32>
      %175 = vector.shape_cast %174 : vector<1x1x6x6xf32> to vector<6x6xf32>
      %cst_107 = arith.constant 0.000000e+00 : f32
      %176 = vector.broadcast %cst_107 : f32 to vector<3x1xf32>
      %cst_108 = arith.constant 0.000000e+00 : f32
      %177 = vector.broadcast %cst_108 : f32 to vector<3x1xf32>
      %cst_109 = arith.constant 0.000000e+00 : f32
      %178 = vector.broadcast %cst_109 : f32 to vector<1x1xf32>
      %179 = arith.mulf %162, %102 : vector<18x18xf32>
      %180 = vector.extract_strided_slice %169 {offsets = [0, 0], sizes = [1, 1], strides = [1, 1]} : vector<7x4xf32> to vector<1x1xf32>
      %181 = vector.extract_strided_slice %169 {offsets = [0, 1], sizes = [1, 1], strides = [1, 1]} : vector<7x4xf32> to vector<1x1xf32>
      %182 = vector.extract_strided_slice %169 {offsets = [1, 0], sizes = [3, 1], strides = [1, 1]} : vector<7x4xf32> to vector<3x1xf32>
      %183 = vector.extract_strided_slice %169 {offsets = [4, 0], sizes = [3, 1], strides = [1, 1]} : vector<7x4xf32> to vector<3x1xf32>
      %184 = arith.subf %181, %180 : vector<1x1xf32>
      %185 = arith.mulf %184, %184 : vector<1x1xf32>
      %186 = arith.subf %182, %165 : vector<3x1xf32>
      %187 = vector.extract_strided_slice %186 {offsets = [0, 0], sizes = [1, 1], strides = [1, 1]} : vector<3x1xf32> to vector<1x1xf32>
      %188 = vector.broadcast %187 : vector<1x1xf32> to vector<3x3xf32>
      %189 = arith.mulf %188, %33 : vector<3x3xf32>
      %190 = vector.extract_strided_slice %186 {offsets = [1, 0], sizes = [1, 1], strides = [1, 1]} : vector<3x1xf32> to vector<1x1xf32>
      %191 = vector.broadcast %190 : vector<1x1xf32> to vector<3x3xf32>
      %192 = arith.mulf %191, %50 : vector<3x3xf32>
      %193 = arith.addf %189, %192 : vector<3x3xf32>
      %194 = vector.extract_strided_slice %186 {offsets = [2, 0], sizes = [1, 1], strides = [1, 1]} : vector<3x1xf32> to vector<1x1xf32>
      %195 = vector.broadcast %194 : vector<1x1xf32> to vector<3x3xf32>
      %196 = arith.mulf %195, %67 : vector<3x3xf32>
      %197 = arith.addf %193, %196 : vector<3x3xf32>
      %198 = tpu.transpose %4, [1, 0] : vector<3x3xf32> -> vector<3x3xf32>
      %199 = arith.subf %183, %166 : vector<3x1xf32>
      %200 = vector.broadcast %178 : vector<1x1xf32> to vector<3x1xf32>
      %201 = arith.mulf %163, %200 : vector<3x1xf32>
      %202 = arith.subf %164, %201 : vector<3x1xf32>
      %203 = arith.addf %202, %177 : vector<3x1xf32>
      %cst_110 = arith.constant dense<0.000000e+00> : vector<3x1xf32>
      %204 = tpu.matmul %198, %203, %cst_110 {dimension_numbers = #tpu.dot_dimension_numbers<[1], [0], [0], [1], [0, 0, 1, 1], [], []>} : vector<3x3xf32>, vector<3x1xf32>, vector<3x1xf32> -> vector<3x1xf32>
      %205 = vector.extract_strided_slice %204 {offsets = [0, 0], sizes = [1, 1], strides = [1, 1]} : vector<3x1xf32> to vector<1x1xf32>
      %206 = vector.broadcast %205 : vector<1x1xf32> to vector<3x3xf32>
      %207 = arith.mulf %206, %33 : vector<3x3xf32>
      %208 = vector.extract_strided_slice %204 {offsets = [1, 0], sizes = [1, 1], strides = [1, 1]} : vector<3x1xf32> to vector<1x1xf32>
      %209 = vector.broadcast %208 : vector<1x1xf32> to vector<3x3xf32>
      %210 = arith.mulf %209, %50 : vector<3x3xf32>
      %211 = arith.addf %207, %210 : vector<3x3xf32>
      %212 = vector.extract_strided_slice %204 {offsets = [2, 0], sizes = [1, 1], strides = [1, 1]} : vector<3x1xf32> to vector<1x1xf32>
      %213 = vector.broadcast %212 : vector<1x1xf32> to vector<3x3xf32>
      %214 = arith.mulf %213, %67 : vector<3x3xf32>
      %215 = arith.addf %211, %214 : vector<3x3xf32>
      %216 = vector.broadcast %184 : vector<1x1xf32> to vector<3x1xf32>
      %217 = arith.mulf %216, %186 : vector<3x1xf32>
      %218 = vector.extract_strided_slice %217 {offsets = [0, 0], sizes = [1, 1], strides = [1, 1]} : vector<3x1xf32> to vector<1x1xf32>
      %219 = vector.broadcast %218 : vector<1x1xf32> to vector<3x3xf32>
      %220 = arith.mulf %219, %33 : vector<3x3xf32>
      %221 = vector.extract_strided_slice %217 {offsets = [1, 0], sizes = [1, 1], strides = [1, 1]} : vector<3x1xf32> to vector<1x1xf32>
      %222 = vector.broadcast %221 : vector<1x1xf32> to vector<3x3xf32>
      %223 = arith.mulf %222, %50 : vector<3x3xf32>
      %224 = arith.addf %220, %223 : vector<3x3xf32>
      %225 = vector.extract_strided_slice %217 {offsets = [2, 0], sizes = [1, 1], strides = [1, 1]} : vector<3x1xf32> to vector<1x1xf32>
      %226 = vector.broadcast %225 : vector<1x1xf32> to vector<3x3xf32>
      %227 = arith.mulf %226, %67 : vector<3x3xf32>
      %228 = arith.addf %224, %227 : vector<3x3xf32>
      %229 = vector.extract_strided_slice %217 {offsets = [0, 0], sizes = [1, 1], strides = [1, 1]} : vector<3x1xf32> to vector<1x1xf32>
      %230 = vector.extract_strided_slice %217 {offsets = [0, 0], sizes = [1, 1], strides = [1, 1]} : vector<3x1xf32> to vector<1x1xf32>
      %231 = arith.mulf %229, %230 : vector<1x1xf32>
      %232 = vector.extract_strided_slice %217 {offsets = [1, 0], sizes = [1, 1], strides = [1, 1]} : vector<3x1xf32> to vector<1x1xf32>
      %233 = vector.extract_strided_slice %217 {offsets = [1, 0], sizes = [1, 1], strides = [1, 1]} : vector<3x1xf32> to vector<1x1xf32>
      %234 = arith.mulf %232, %233 : vector<1x1xf32>
      %235 = arith.addf %231, %234 : vector<1x1xf32>
      %236 = vector.extract_strided_slice %217 {offsets = [2, 0], sizes = [1, 1], strides = [1, 1]} : vector<3x1xf32> to vector<1x1xf32>
      %237 = vector.extract_strided_slice %217 {offsets = [2, 0], sizes = [1, 1], strides = [1, 1]} : vector<3x1xf32> to vector<1x1xf32>
      %238 = arith.mulf %236, %237 : vector<1x1xf32>
      %239 = arith.addf %235, %238 : vector<1x1xf32>
      %240 = math.sqrt %239 : vector<1x1xf32>
      %cst_111 = arith.constant 9.99999997E-7 : f32
      %241 = vector.broadcast %cst_111 : f32 to vector<1x1xf32>
      %242 = arith.cmpf olt, %240, %241 : vector<1x1xf32>
      %cst_112 = arith.constant 1.000000e+00 : f32
      %243 = vector.broadcast %cst_112 : f32 to vector<1x1xf32>
      %244 = arith.select %242, %243, %240 : vector<1x1xi1>, vector<1x1xf32>
      %cst_113 = arith.constant 6.000000e+00 : f32
      %245 = vector.broadcast %cst_113 : f32 to vector<1x1xf32>
      %246 = arith.divf %239, %245 : vector<1x1xf32>
      %cst_114 = arith.constant 1.000000e+00 : f32
      %247 = vector.broadcast %cst_114 : f32 to vector<1x1xf32>
      %248 = arith.subf %247, %246 : vector<1x1xf32>
      %249 = math.sin %244 : vector<1x1xf32>
      %250 = arith.divf %249, %244 : vector<1x1xf32>
      %251 = arith.select %242, %248, %250 : vector<1x1xi1>, vector<1x1xf32>
      %cst_115 = arith.constant 2.400000e+01 : f32
      %252 = vector.broadcast %cst_115 : f32 to vector<1x1xf32>
      %253 = arith.divf %239, %252 : vector<1x1xf32>
      %cst_116 = arith.constant 5.000000e-01 : f32
      %254 = vector.broadcast %cst_116 : f32 to vector<1x1xf32>
      %255 = arith.subf %254, %253 : vector<1x1xf32>
      %256 = math.cos %244 : vector<1x1xf32>
      %cst_117 = arith.constant 1.000000e+00 : f32
      %257 = vector.broadcast %cst_117 : f32 to vector<1x1xf32>
      %258 = arith.subf %257, %256 : vector<1x1xf32>
      %259 = arith.mulf %244, %244 : vector<1x1xf32>
      %260 = arith.divf %258, %259 : vector<1x1xf32>
      %261 = arith.select %242, %255, %260 : vector<1x1xi1>, vector<1x1xf32>
      %262 = vector.broadcast %251 : vector<1x1xf32> to vector<3x3xf32>
      %263 = arith.mulf %262, %228 : vector<3x3xf32>
      %264 = arith.addf %4, %263 : vector<3x3xf32>
      %cst_118 = arith.constant dense<0.000000e+00> : vector<3x3xf32>
      %265 = tpu.matmul %228, %228, %cst_118 {dimension_numbers = #tpu.dot_dimension_numbers<[1], [0], [0], [1], [0, 0, 1, 1], [], []>} : vector<3x3xf32>, vector<3x3xf32>, vector<3x3xf32> -> vector<3x3xf32>
      %266 = vector.broadcast %261 : vector<1x1xf32> to vector<3x3xf32>
      %267 = arith.mulf %266, %265 : vector<3x3xf32>
      %268 = arith.addf %264, %267 : vector<3x3xf32>
      %269 = tpu.transpose %268, [1, 0] : vector<3x3xf32> -> vector<3x3xf32>
      %cst_119 = arith.constant 0.000000e+00 : f32
      %270 = vector.broadcast %cst_119 : f32 to vector<3x3xf32>
      %271 = arith.subf %270, %197 : vector<3x3xf32>
      %c3_120 = arith.constant 3 : index
      %c3_121 = arith.constant 3 : index
      %272 = vector.load %arg21[%c3_120, %c3_121] : memref<18x18xf32, #tpu.memory_space<vmem>>, vector<3x3xf32>
      tpu.vector_store %arg21[%c3_120, %c3_121], %271 {strides = array<i32>} : memref<18x18xf32, #tpu.memory_space<vmem>>, vector<3x3xf32>,
      %cst_122 = arith.constant dense<0.000000e+00> : vector<3x3xf32>
      %273 = tpu.matmul %4, %215, %cst_122 {dimension_numbers = #tpu.dot_dimension_numbers<[1], [0], [0], [1], [0, 0, 1, 1], [], []>} : vector<3x3xf32>, vector<3x3xf32>, vector<3x3xf32> -> vector<3x3xf32>
      %cst_123 = arith.constant 0.000000e+00 : f32
      %274 = vector.broadcast %cst_123 : f32 to vector<3x3xf32>
      %275 = arith.subf %274, %273 : vector<3x3xf32>
      %c6_124 = arith.constant 6 : index
      %c3_125 = arith.constant 3 : index
      %276 = vector.load %arg21[%c6_124, %c3_125] : memref<18x18xf32, #tpu.memory_space<vmem>>, vector<3x3xf32>
      tpu.vector_store %arg21[%c6_124, %c3_125], %275 {strides = array<i32>} : memref<18x18xf32, #tpu.memory_space<vmem>>, vector<3x3xf32>,
      %c6_126 = arith.constant 6 : index
      %c9_127 = arith.constant 9 : index
      %277 = vector.load %arg21[%c6_126, %c9_127] : memref<18x18xf32, #tpu.memory_space<vmem>>, vector<3x3xf32>
      tpu.vector_store %arg21[%c6_126, %c9_127], %4 {strides = array<i32>} : memref<18x18xf32, #tpu.memory_space<vmem>>, vector<3x3xf32>,
      %cst_128 = arith.constant 0.000000e+00 : f32
      %278 = vector.broadcast %cst_128 : f32 to vector<3x3xf32>
      %279 = arith.subf %278, %198 : vector<3x3xf32>
      %c9_129 = arith.constant 9 : index
      %c0_130 = arith.constant 0 : index
      %280 = vector.load %arg21[%c9_129, %c0_130] : memref<18x18xf32, #tpu.memory_space<vmem>>, vector<3x3xf32>
      tpu.vector_store %arg21[%c9_129, %c0_130], %279 {strides = array<i32>} : memref<18x18xf32, #tpu.memory_space<vmem>>, vector<3x3xf32>,
      %cst_131 = arith.constant dense<0.000000e+00> : vector<3x1xf32>
      %281 = tpu.matmul %198, %163, %cst_131 {dimension_numbers = #tpu.dot_dimension_numbers<[1], [0], [0], [1], [0, 0, 1, 1], [], []>} : vector<3x3xf32>, vector<3x1xf32>, vector<3x1xf32> -> vector<3x1xf32>
      %282 = vector.extract_strided_slice %281 {offsets = [0, 0], sizes = [1, 1], strides = [1, 1]} : vector<3x1xf32> to vector<1x1xf32>
      %283 = vector.broadcast %282 : vector<1x1xf32> to vector<3x3xf32>
      %284 = arith.mulf %283, %33 : vector<3x3xf32>
      %285 = vector.extract_strided_slice %281 {offsets = [1, 0], sizes = [1, 1], strides = [1, 1]} : vector<3x1xf32> to vector<1x1xf32>
      %286 = vector.broadcast %285 : vector<1x1xf32> to vector<3x3xf32>
      %287 = arith.mulf %286, %50 : vector<3x3xf32>
      %288 = arith.addf %284, %287 : vector<3x3xf32>
      %289 = vector.extract_strided_slice %281 {offsets = [2, 0], sizes = [1, 1], strides = [1, 1]} : vector<3x1xf32> to vector<1x1xf32>
      %290 = vector.broadcast %289 : vector<1x1xf32> to vector<3x3xf32>
      %291 = arith.mulf %290, %67 : vector<3x3xf32>
      %292 = arith.addf %288, %291 : vector<3x3xf32>
      %cst_132 = arith.constant 0.000000e+00 : f32
      %293 = vector.broadcast %cst_132 : f32 to vector<3x3xf32>
      %294 = arith.subf %293, %292 : vector<3x3xf32>
      %c9_133 = arith.constant 9 : index
      %c3_134 = arith.constant 3 : index
      %295 = vector.load %arg21[%c9_133, %c3_134] : memref<18x18xf32, #tpu.memory_space<vmem>>, vector<3x3xf32>
      tpu.vector_store %arg21[%c9_133, %c3_134], %294 {strides = array<i32>} : memref<18x18xf32, #tpu.memory_space<vmem>>, vector<3x3xf32>,
      %cst_135 = arith.constant 0.000000e+00 : f32
      %296 = vector.broadcast %cst_135 : f32 to vector<3x3xf32>
      %297 = arith.subf %296, %197 : vector<3x3xf32>
      %c9_136 = arith.constant 9 : index
      %c9_137 = arith.constant 9 : index
      %298 = vector.load %arg21[%c9_136, %c9_137] : memref<18x18xf32, #tpu.memory_space<vmem>>, vector<3x3xf32>
      tpu.vector_store %arg21[%c9_136, %c9_137], %297 {strides = array<i32>} : memref<18x18xf32, #tpu.memory_space<vmem>>, vector<3x3xf32>,
      %cst_138 = arith.constant 0.000000e+00 : f32
      %299 = vector.broadcast %cst_138 : f32 to vector<3x3xf32>
      %300 = arith.subf %299, %215 : vector<3x3xf32>
      %c9_139 = arith.constant 9 : index
      %c12_140 = arith.constant 12 : index
      %301 = vector.load %arg21[%c9_139, %c12_140] : memref<18x18xf32, #tpu.memory_space<vmem>>, vector<3x3xf32>
      tpu.vector_store %arg21[%c9_139, %c12_140], %300 {strides = array<i32>} : memref<18x18xf32, #tpu.memory_space<vmem>>, vector<3x3xf32>,
      %c0_141 = arith.constant 0 : index
      %c0_142 = arith.constant 0 : index
      %302 = vector.load %arg21[%c0_141, %c0_142] : memref<18x18xf32, #tpu.memory_space<vmem>>, vector<18x18xf32>
      %cst_143 = arith.constant 0.000000e+00 : f32
      %303 = vector.broadcast %cst_143 : f32 to vector<3x3xf32>
      %304 = arith.subf %303, %215 : vector<3x3xf32>
      %c9_144 = arith.constant 9 : index
      %c0_145 = arith.constant 0 : index
      %305 = vector.load %arg22[%c9_144, %c0_145] : memref<18x12xf32, #tpu.memory_space<vmem>>, vector<3x3xf32>
      tpu.vector_store %arg22[%c9_144, %c0_145], %304 {strides = array<i32>} : memref<18x12xf32, #tpu.memory_space<vmem>>, vector<3x3xf32>,
      %c0_146 = arith.constant 0 : index
      %c0_147 = arith.constant 0 : index
      %306 = vector.load %arg22[%c0_146, %c0_147] : memref<18x12xf32, #tpu.memory_space<vmem>>, vector<18x12xf32>
      %307 = vector.broadcast %184 : vector<1x1xf32> to vector<18x18xf32>
      %308 = arith.mulf %302, %307 : vector<18x18xf32>
      %309 = arith.addf %14, %308 : vector<18x18xf32>
      %cst_148 = arith.constant dense<0.000000e+00> : vector<18x18xf32>
      %310 = tpu.matmul %302, %302, %cst_148 {dimension_numbers = #tpu.dot_dimension_numbers<[1], [0], [0], [1], [0, 0, 1, 1], [], []>} : vector<18x18xf32>, vector<18x18xf32>, vector<18x18xf32> -> vector<18x18xf32>
      %cst_149 = arith.constant 5.000000e-01 : f32
      %311 = vector.broadcast %cst_149 : f32 to vector<18x18xf32>
      %312 = arith.mulf %311, %310 : vector<18x18xf32>
      %313 = vector.broadcast %185 : vector<1x1xf32> to vector<18x18xf32>
      %314 = arith.mulf %312, %313 : vector<18x18xf32>
      %315 = arith.addf %309, %314 : vector<18x18xf32>
      %c0_150 = arith.constant 0 : index
      %c0_151 = arith.constant 0 : index
      %316 = vector.load %arg23[%c0_150, %c0_151] : memref<18x18xf32, #tpu.memory_space<vmem>>, vector<18x18xf32>
      tpu.vector_store %arg23[%c0_150, %c0_151], %315 {strides = array<i32>} : memref<18x18xf32, #tpu.memory_space<vmem>>, vector<18x18xf32>,
      %cst_152 = arith.constant 0.000000e+00 : f32
      %317 = vector.broadcast %cst_152 : f32 to vector<3x3xf32>
      %c6_153 = arith.constant 6 : index
      %c12_154 = arith.constant 12 : index
      %318 = vector.load %arg23[%c6_153, %c12_154] : memref<18x18xf32, #tpu.memory_space<vmem>>, vector<3x3xf32>
      tpu.vector_store %arg23[%c6_153, %c12_154], %317 {strides = array<i32>} : memref<18x18xf32, #tpu.memory_space<vmem>>, vector<3x3xf32>,
      %c3_155 = arith.constant 3 : index
      %c3_156 = arith.constant 3 : index
      %319 = vector.load %arg23[%c3_155, %c3_156] : memref<18x18xf32, #tpu.memory_space<vmem>>, vector<3x3xf32>
      tpu.vector_store %arg23[%c3_155, %c3_156], %269 {strides = array<i32>} : memref<18x18xf32, #tpu.memory_space<vmem>>, vector<3x3xf32>,
      %c9_157 = arith.constant 9 : index
      %c9_158 = arith.constant 9 : index
      %320 = vector.load %arg23[%c9_157, %c9_158] : memref<18x18xf32, #tpu.memory_space<vmem>>, vector<3x3xf32>
      tpu.vector_store %arg23[%c9_157, %c9_158], %269 {strides = array<i32>} : memref<18x18xf32, #tpu.memory_space<vmem>>, vector<3x3xf32>,
      %c0_159 = arith.constant 0 : index
      %c0_160 = arith.constant 0 : index
      %321 = vector.load %arg23[%c0_159, %c0_160] : memref<18x18xf32, #tpu.memory_space<vmem>>, vector<18x18xf32>
      %cst_161 = arith.constant dense<0.000000e+00> : vector<18x12xf32>
      %322 = tpu.matmul %321, %306, %cst_161 {dimension_numbers = #tpu.dot_dimension_numbers<[1], [0], [0], [1], [0, 0, 1, 1], [], []>} : vector<18x18xf32>, vector<18x12xf32>, vector<18x12xf32> -> vector<18x12xf32>
      %cst_162 = arith.constant dense<0.000000e+00> : vector<18x12xf32>
      %323 = tpu.matmul %322, %143, %cst_162 {dimension_numbers = #tpu.dot_dimension_numbers<[1], [0], [0], [1], [0, 0, 1, 1], [], []>} : vector<18x12xf32>, vector<12x12xf32>, vector<18x12xf32> -> vector<18x12xf32>
      %324 = tpu.transpose %322, [1, 0] : vector<18x12xf32> -> vector<12x18xf32>
      %cst_163 = arith.constant dense<0.000000e+00> : vector<18x18xf32>
      %325 = tpu.matmul %323, %324, %cst_163 {dimension_numbers = #tpu.dot_dimension_numbers<[1], [0], [0], [1], [0, 0, 1, 1], [], []>} : vector<18x12xf32>, vector<12x18xf32>, vector<18x18xf32> -> vector<18x18xf32>
      %326 = vector.broadcast %184 : vector<1x1xf32> to vector<18x18xf32>
      %327 = arith.mulf %325, %326 : vector<18x18xf32>
      %cst_164 = arith.constant dense<0.000000e+00> : vector<18x18xf32>
      %328 = tpu.matmul %321, %179, %cst_164 {dimension_numbers = #tpu.dot_dimension_numbers<[1], [0], [0], [1], [0, 0, 1, 1], [], []>} : vector<18x18xf32>, vector<18x18xf32>, vector<18x18xf32> -> vector<18x18xf32>
      %329 = tpu.transpose %321, [1, 0] : vector<18x18xf32> -> vector<18x18xf32>
      %cst_165 = arith.constant dense<0.000000e+00> : vector<18x18xf32>
      %330 = tpu.matmul %328, %329, %cst_165 {dimension_numbers = #tpu.dot_dimension_numbers<[1], [0], [0], [1], [0, 0, 1, 1], [], []>} : vector<18x18xf32>, vector<18x18xf32>, vector<18x18xf32> -> vector<18x18xf32>
      %331 = arith.addf %330, %327 : vector<18x18xf32>
      %332 = arith.mulf %331, %85 : vector<18x18xf32>
      %333 = tpu.transpose %332, [1, 0] : vector<18x18xf32> -> vector<18x18xf32>
      %334 = arith.mulf %333, %87 : vector<18x18xf32>
      %335 = arith.addf %332, %334 : vector<18x18xf32>
      %336 = vector.broadcast %184 : vector<1x1xf32> to vector<3x1xf32>
      %337 = arith.mulf %177, %336 : vector<3x1xf32>
      %338 = arith.addf %176, %337 : vector<3x1xf32>
      %339 = vector.broadcast %185 : vector<1x1xf32> to vector<3x1xf32>
      %340 = arith.mulf %339, %199 : vector<3x1xf32>
      %cst_166 = arith.constant dense<0.000000e+00> : vector<3x1xf32>
      %341 = tpu.matmul %4, %340, %cst_166 {dimension_numbers = #tpu.dot_dimension_numbers<[1], [0], [0], [1], [0, 0, 1, 1], [], []>} : vector<3x3xf32>, vector<3x1xf32>, vector<3x1xf32> -> vector<3x1xf32>
      %cst_167 = arith.constant 5.000000e-01 : f32
      %342 = vector.broadcast %cst_167 : f32 to vector<3x1xf32>
      %343 = arith.mulf %342, %341 : vector<3x1xf32>
      %344 = arith.addf %338, %343 : vector<3x1xf32>
      %345 = vector.broadcast %184 : vector<1x1xf32> to vector<3x1xf32>
      %346 = arith.mulf %345, %199 : vector<3x1xf32>
      %cst_168 = arith.constant dense<0.000000e+00> : vector<3x1xf32>
      %347 = tpu.matmul %4, %346, %cst_168 {dimension_numbers = #tpu.dot_dimension_numbers<[1], [0], [0], [1], [0, 0, 1, 1], [], []>} : vector<3x3xf32>, vector<3x1xf32>, vector<3x1xf32> -> vector<3x1xf32>
      %348 = arith.addf %177, %347 : vector<3x1xf32>
      %cst_169 = arith.constant dense<0.000000e+00> : vector<3x3xf32>
      %349 = tpu.matmul %4, %268, %cst_169 {dimension_numbers = #tpu.dot_dimension_numbers<[1], [0], [0], [1], [0, 0, 1, 1], [], []>} : vector<3x3xf32>, vector<3x3xf32>, vector<3x3xf32> -> vector<3x3xf32>
      %350 = arith.addf %178, %184 : vector<1x1xf32>
      %351 = vector.extract_strided_slice %169 {offsets = [0, 1], sizes = [1, 1], strides = [1, 1]} : vector<7x4xf32> to vector<1x1xf32>
      %352 = vector.extract_strided_slice %169 {offsets = [0, 2], sizes = [1, 1], strides = [1, 1]} : vector<7x4xf32> to vector<1x1xf32>
      %353 = vector.extract_strided_slice %169 {offsets = [1, 1], sizes = [3, 1], strides = [1, 1]} : vector<7x4xf32> to vector<3x1xf32>
      %354 = vector.extract_strided_slice %169 {offsets = [4, 1], sizes = [3, 1], strides = [1, 1]} : vector<7x4xf32> to vector<3x1xf32>
      %355 = arith.subf %352, %351 : vector<1x1xf32>
      %356 = arith.mulf %355, %355 : vector<1x1xf32>
      %357 = arith.subf %353, %165 : vector<3x1xf32>
      %358 = vector.extract_strided_slice %357 {offsets = [0, 0], sizes = [1, 1], strides = [1, 1]} : vector<3x1xf32> to vector<1x1xf32>
      %359 = vector.broadcast %358 : vector<1x1xf32> to vector<3x3xf32>
      %360 = arith.mulf %359, %33 : vector<3x3xf32>
      %361 = vector.extract_strided_slice %357 {offsets = [1, 0], sizes = [1, 1], strides = [1, 1]} : vector<3x1xf32> to vector<1x1xf32>
      %362 = vector.broadcast %361 : vector<1x1xf32> to vector<3x3xf32>
      %363 = arith.mulf %362, %50 : vector<3x3xf32>
      %364 = arith.addf %360, %363 : vector<3x3xf32>
      %365 = vector.extract_strided_slice %357 {offsets = [2, 0], sizes = [1, 1], strides = [1, 1]} : vector<3x1xf32> to vector<1x1xf32>
      %366 = vector.broadcast %365 : vector<1x1xf32> to vector<3x3xf32>
      %367 = arith.mulf %366, %67 : vector<3x3xf32>
      %368 = arith.addf %364, %367 : vector<3x3xf32>
      %369 = tpu.transpose %349, [1, 0] : vector<3x3xf32> -> vector<3x3xf32>
      %370 = arith.subf %354, %166 : vector<3x1xf32>
      %371 = vector.broadcast %350 : vector<1x1xf32> to vector<3x1xf32>
      %372 = arith.mulf %163, %371 : vector<3x1xf32>
      %373 = arith.subf %164, %372 : vector<3x1xf32>
      %374 = arith.addf %373, %348 : vector<3x1xf32>
      %cst_170 = arith.constant dense<0.000000e+00> : vector<3x1xf32>
      %375 = tpu.matmul %369, %374, %cst_170 {dimension_numbers = #tpu.dot_dimension_numbers<[1], [0], [0], [1], [0, 0, 1, 1], [], []>} : vector<3x3xf32>, vector<3x1xf32>, vector<3x1xf32> -> vector<3x1xf32>
      %376 = vector.extract_strided_slice %375 {offsets = [0, 0], sizes = [1, 1], strides = [1, 1]} : vector<3x1xf32> to vector<1x1xf32>
      %377 = vector.broadcast %376 : vector<1x1xf32> to vector<3x3xf32>
      %378 = arith.mulf %377, %33 : vector<3x3xf32>
      %379 = vector.extract_strided_slice %375 {offsets = [1, 0], sizes = [1, 1], strides = [1, 1]} : vector<3x1xf32> to vector<1x1xf32>
      %380 = vector.broadcast %379 : vector<1x1xf32> to vector<3x3xf32>
      %381 = arith.mulf %380, %50 : vector<3x3xf32>
      %382 = arith.addf %378, %381 : vector<3x3xf32>
      %383 = vector.extract_strided_slice %375 {offsets = [2, 0], sizes = [1, 1], strides = [1, 1]} : vector<3x1xf32> to vector<1x1xf32>
      %384 = vector.broadcast %383 : vector<1x1xf32> to vector<3x3xf32>
      %385 = arith.mulf %384, %67 : vector<3x3xf32>
      %386 = arith.addf %382, %385 : vector<3x3xf32>
      %387 = vector.broadcast %355 : vector<1x1xf32> to vector<3x1xf32>
      %388 = arith.mulf %387, %357 : vector<3x1xf32>
      %389 = vector.extract_strided_slice %388 {offsets = [0, 0], sizes = [1, 1], strides = [1, 1]} : vector<3x1xf32> to vector<1x1xf32>
      %390 = vector.broadcast %389 : vector<1x1xf32> to vector<3x3xf32>
      %391 = arith.mulf %390, %33 : vector<3x3xf32>
      %392 = vector.extract_strided_slice %388 {offsets = [1, 0], sizes = [1, 1], strides = [1, 1]} : vector<3x1xf32> to vector<1x1xf32>
      %393 = vector.broadcast %392 : vector<1x1xf32> to vector<3x3xf32>
      %394 = arith.mulf %393, %50 : vector<3x3xf32>
      %395 = arith.addf %391, %394 : vector<3x3xf32>
      %396 = vector.extract_strided_slice %388 {offsets = [2, 0], sizes = [1, 1], strides = [1, 1]} : vector<3x1xf32> to vector<1x1xf32>
      %397 = vector.broadcast %396 : vector<1x1xf32> to vector<3x3xf32>
      %398 = arith.mulf %397, %67 : vector<3x3xf32>
      %399 = arith.addf %395, %398 : vector<3x3xf32>
      %400 = vector.extract_strided_slice %388 {offsets = [0, 0], sizes = [1, 1], strides = [1, 1]} : vector<3x1xf32> to vector<1x1xf32>
      %401 = vector.extract_strided_slice %388 {offsets = [0, 0], sizes = [1, 1], strides = [1, 1]} : vector<3x1xf32> to vector<1x1xf32>
      %402 = arith.mulf %400, %401 : vector<1x1xf32>
      %403 = vector.extract_strided_slice %388 {offsets = [1, 0], sizes = [1, 1], strides = [1, 1]} : vector<3x1xf32> to vector<1x1xf32>
      %404 = vector.extract_strided_slice %388 {offsets = [1, 0], sizes = [1, 1], strides = [1, 1]} : vector<3x1xf32> to vector<1x1xf32>
      %405 = arith.mulf %403, %404 : vector<1x1xf32>
      %406 = arith.addf %402, %405 : vector<1x1xf32>
      %407 = vector.extract_strided_slice %388 {offsets = [2, 0], sizes = [1, 1], strides = [1, 1]} : vector<3x1xf32> to vector<1x1xf32>
      %408 = vector.extract_strided_slice %388 {offsets = [2, 0], sizes = [1, 1], strides = [1, 1]} : vector<3x1xf32> to vector<1x1xf32>
      %409 = arith.mulf %407, %408 : vector<1x1xf32>
      %410 = arith.addf %406, %409 : vector<1x1xf32>
      %411 = math.sqrt %410 : vector<1x1xf32>
      %cst_171 = arith.constant 9.99999997E-7 : f32
      %412 = vector.broadcast %cst_171 : f32 to vector<1x1xf32>
      %413 = arith.cmpf olt, %411, %412 : vector<1x1xf32>
      %cst_172 = arith.constant 1.000000e+00 : f32
      %414 = vector.broadcast %cst_172 : f32 to vector<1x1xf32>
      %415 = arith.select %413, %414, %411 : vector<1x1xi1>, vector<1x1xf32>
      %cst_173 = arith.constant 6.000000e+00 : f32
      %416 = vector.broadcast %cst_173 : f32 to vector<1x1xf32>
      %417 = arith.divf %410, %416 : vector<1x1xf32>
      %cst_174 = arith.constant 1.000000e+00 : f32
      %418 = vector.broadcast %cst_174 : f32 to vector<1x1xf32>
      %419 = arith.subf %418, %417 : vector<1x1xf32>
      %420 = math.sin %415 : vector<1x1xf32>
      %421 = arith.divf %420, %415 : vector<1x1xf32>
      %422 = arith.select %413, %419, %421 : vector<1x1xi1>, vector<1x1xf32>
      %cst_175 = arith.constant 2.400000e+01 : f32
      %423 = vector.broadcast %cst_175 : f32 to vector<1x1xf32>
      %424 = arith.divf %410, %423 : vector<1x1xf32>
      %cst_176 = arith.constant 5.000000e-01 : f32
      %425 = vector.broadcast %cst_176 : f32 to vector<1x1xf32>
      %426 = arith.subf %425, %424 : vector<1x1xf32>
      %427 = math.cos %415 : vector<1x1xf32>
      %cst_177 = arith.constant 1.000000e+00 : f32
      %428 = vector.broadcast %cst_177 : f32 to vector<1x1xf32>
      %429 = arith.subf %428, %427 : vector<1x1xf32>
      %430 = arith.mulf %415, %415 : vector<1x1xf32>
      %431 = arith.divf %429, %430 : vector<1x1xf32>
      %432 = arith.select %413, %426, %431 : vector<1x1xi1>, vector<1x1xf32>
      %433 = vector.broadcast %422 : vector<1x1xf32> to vector<3x3xf32>
      %434 = arith.mulf %433, %399 : vector<3x3xf32>
      %435 = arith.addf %4, %434 : vector<3x3xf32>
      %cst_178 = arith.constant dense<0.000000e+00> : vector<3x3xf32>
      %436 = tpu.matmul %399, %399, %cst_178 {dimension_numbers = #tpu.dot_dimension_numbers<[1], [0], [0], [1], [0, 0, 1, 1], [], []>} : vector<3x3xf32>, vector<3x3xf32>, vector<3x3xf32> -> vector<3x3xf32>
      %437 = vector.broadcast %432 : vector<1x1xf32> to vector<3x3xf32>
      %438 = arith.mulf %437, %436 : vector<3x3xf32>
      %439 = arith.addf %435, %438 : vector<3x3xf32>
      %440 = tpu.transpose %439, [1, 0] : vector<3x3xf32> -> vector<3x3xf32>
      %cst_179 = arith.constant 0.000000e+00 : f32
      %441 = vector.broadcast %cst_179 : f32 to vector<3x3xf32>
      %442 = arith.subf %441, %368 : vector<3x3xf32>
      %c3_180 = arith.constant 3 : index
      %c3_181 = arith.constant 3 : index
      %443 = vector.load %arg21[%c3_180, %c3_181] : memref<18x18xf32, #tpu.memory_space<vmem>>, vector<3x3xf32>
      tpu.vector_store %arg21[%c3_180, %c3_181], %442 {strides = array<i32>} : memref<18x18xf32, #tpu.memory_space<vmem>>, vector<3x3xf32>,
      %cst_182 = arith.constant dense<0.000000e+00> : vector<3x3xf32>
      %444 = tpu.matmul %349, %386, %cst_182 {dimension_numbers = #tpu.dot_dimension_numbers<[1], [0], [0], [1], [0, 0, 1, 1], [], []>} : vector<3x3xf32>, vector<3x3xf32>, vector<3x3xf32> -> vector<3x3xf32>
      %cst_183 = arith.constant 0.000000e+00 : f32
      %445 = vector.broadcast %cst_183 : f32 to vector<3x3xf32>
      %446 = arith.subf %445, %444 : vector<3x3xf32>
      %c6_184 = arith.constant 6 : index
      %c3_185 = arith.constant 3 : index
      %447 = vector.load %arg21[%c6_184, %c3_185] : memref<18x18xf32, #tpu.memory_space<vmem>>, vector<3x3xf32>
      tpu.vector_store %arg21[%c6_184, %c3_185], %446 {strides = array<i32>} : memref<18x18xf32, #tpu.memory_space<vmem>>, vector<3x3xf32>,
      %c6_186 = arith.constant 6 : index
      %c9_187 = arith.constant 9 : index
      %448 = vector.load %arg21[%c6_186, %c9_187] : memref<18x18xf32, #tpu.memory_space<vmem>>, vector<3x3xf32>
      tpu.vector_store %arg21[%c6_186, %c9_187], %349 {strides = array<i32>} : memref<18x18xf32, #tpu.memory_space<vmem>>, vector<3x3xf32>,
      %cst_188 = arith.constant 0.000000e+00 : f32
      %449 = vector.broadcast %cst_188 : f32 to vector<3x3xf32>
      %450 = arith.subf %449, %369 : vector<3x3xf32>
      %c9_189 = arith.constant 9 : index
      %c0_190 = arith.constant 0 : index
      %451 = vector.load %arg21[%c9_189, %c0_190] : memref<18x18xf32, #tpu.memory_space<vmem>>, vector<3x3xf32>
      tpu.vector_store %arg21[%c9_189, %c0_190], %450 {strides = array<i32>} : memref<18x18xf32, #tpu.memory_space<vmem>>, vector<3x3xf32>,
      %cst_191 = arith.constant dense<0.000000e+00> : vector<3x1xf32>
      %452 = tpu.matmul %369, %163, %cst_191 {dimension_numbers = #tpu.dot_dimension_numbers<[1], [0], [0], [1], [0, 0, 1, 1], [], []>} : vector<3x3xf32>, vector<3x1xf32>, vector<3x1xf32> -> vector<3x1xf32>
      %453 = vector.extract_strided_slice %452 {offsets = [0, 0], sizes = [1, 1], strides = [1, 1]} : vector<3x1xf32> to vector<1x1xf32>
      %454 = vector.broadcast %453 : vector<1x1xf32> to vector<3x3xf32>
      %455 = arith.mulf %454, %33 : vector<3x3xf32>
      %456 = vector.extract_strided_slice %452 {offsets = [1, 0], sizes = [1, 1], strides = [1, 1]} : vector<3x1xf32> to vector<1x1xf32>
      %457 = vector.broadcast %456 : vector<1x1xf32> to vector<3x3xf32>
      %458 = arith.mulf %457, %50 : vector<3x3xf32>
      %459 = arith.addf %455, %458 : vector<3x3xf32>
      %460 = vector.extract_strided_slice %452 {offsets = [2, 0], sizes = [1, 1], strides = [1, 1]} : vector<3x1xf32> to vector<1x1xf32>
      %461 = vector.broadcast %460 : vector<1x1xf32> to vector<3x3xf32>
      %462 = arith.mulf %461, %67 : vector<3x3xf32>
      %463 = arith.addf %459, %462 : vector<3x3xf32>
      %cst_192 = arith.constant 0.000000e+00 : f32
      %464 = vector.broadcast %cst_192 : f32 to vector<3x3xf32>
      %465 = arith.subf %464, %463 : vector<3x3xf32>
      %c9_193 = arith.constant 9 : index
      %c3_194 = arith.constant 3 : index
      %466 = vector.load %arg21[%c9_193, %c3_194] : memref<18x18xf32, #tpu.memory_space<vmem>>, vector<3x3xf32>
      tpu.vector_store %arg21[%c9_193, %c3_194], %465 {strides = array<i32>} : memref<18x18xf32, #tpu.memory_space<vmem>>, vector<3x3xf32>,
      %cst_195 = arith.constant 0.000000e+00 : f32
      %467 = vector.broadcast %cst_195 : f32 to vector<3x3xf32>
      %468 = arith.subf %467, %368 : vector<3x3xf32>
      %c9_196 = arith.constant 9 : index
      %c9_197 = arith.constant 9 : index
      %469 = vector.load %arg21[%c9_196, %c9_197] : memref<18x18xf32, #tpu.memory_space<vmem>>, vector<3x3xf32>
      tpu.vector_store %arg21[%c9_196, %c9_197], %468 {strides = array<i32>} : memref<18x18xf32, #tpu.memory_space<vmem>>, vector<3x3xf32>,
      %cst_198 = arith.constant 0.000000e+00 : f32
      %470 = vector.broadcast %cst_198 : f32 to vector<3x3xf32>
      %471 = arith.subf %470, %386 : vector<3x3xf32>
      %c9_199 = arith.constant 9 : index
      %c12_200 = arith.constant 12 : index
      %472 = vector.load %arg21[%c9_199, %c12_200] : memref<18x18xf32, #tpu.memory_space<vmem>>, vector<3x3xf32>
      tpu.vector_store %arg21[%c9_199, %c12_200], %471 {strides = array<i32>} : memref<18x18xf32, #tpu.memory_space<vmem>>, vector<3x3xf32>,
      %c0_201 = arith.constant 0 : index
      %c0_202 = arith.constant 0 : index
      %473 = vector.load %arg21[%c0_201, %c0_202] : memref<18x18xf32, #tpu.memory_space<vmem>>, vector<18x18xf32>
      %cst_203 = arith.constant 0.000000e+00 : f32
      %474 = vector.broadcast %cst_203 : f32 to vector<3x3xf32>
      %475 = arith.subf %474, %386 : vector<3x3xf32>
      %c9_204 = arith.constant 9 : index
      %c0_205 = arith.constant 0 : index
      %476 = vector.load %arg22[%c9_204, %c0_205] : memref<18x12xf32, #tpu.memory_space<vmem>>, vector<3x3xf32>
      tpu.vector_store %arg22[%c9_204, %c0_205], %475 {strides = array<i32>} : memref<18x12xf32, #tpu.memory_space<vmem>>, vector<3x3xf32>,
      %c0_206 = arith.constant 0 : index
      %c0_207 = arith.constant 0 : index
      %477 = vector.load %arg22[%c0_206, %c0_207] : memref<18x12xf32, #tpu.memory_space<vmem>>, vector<18x12xf32>
      %478 = vector.broadcast %355 : vector<1x1xf32> to vector<18x18xf32>
      %479 = arith.mulf %473, %478 : vector<18x18xf32>
      %480 = arith.addf %14, %479 : vector<18x18xf32>
      %cst_208 = arith.constant dense<0.000000e+00> : vector<18x18xf32>
      %481 = tpu.matmul %473, %473, %cst_208 {dimension_numbers = #tpu.dot_dimension_numbers<[1], [0], [0], [1], [0, 0, 1, 1], [], []>} : vector<18x18xf32>, vector<18x18xf32>, vector<18x18xf32> -> vector<18x18xf32>
      %cst_209 = arith.constant 5.000000e-01 : f32
      %482 = vector.broadcast %cst_209 : f32 to vector<18x18xf32>
      %483 = arith.mulf %482, %481 : vector<18x18xf32>
      %484 = vector.broadcast %356 : vector<1x1xf32> to vector<18x18xf32>
      %485 = arith.mulf %483, %484 : vector<18x18xf32>
      %486 = arith.addf %480, %485 : vector<18x18xf32>
      %c0_210 = arith.constant 0 : index
      %c0_211 = arith.constant 0 : index
      %487 = vector.load %arg23[%c0_210, %c0_211] : memref<18x18xf32, #tpu.memory_space<vmem>>, vector<18x18xf32>
      tpu.vector_store %arg23[%c0_210, %c0_211], %486 {strides = array<i32>} : memref<18x18xf32, #tpu.memory_space<vmem>>, vector<18x18xf32>,
      %cst_212 = arith.constant 0.000000e+00 : f32
      %488 = vector.broadcast %cst_212 : f32 to vector<3x3xf32>
      %c6_213 = arith.constant 6 : index
      %c12_214 = arith.constant 12 : index
      %489 = vector.load %arg23[%c6_213, %c12_214] : memref<18x18xf32, #tpu.memory_space<vmem>>, vector<3x3xf32>
      tpu.vector_store %arg23[%c6_213, %c12_214], %488 {strides = array<i32>} : memref<18x18xf32, #tpu.memory_space<vmem>>, vector<3x3xf32>,
      %c3_215 = arith.constant 3 : index
      %c3_216 = arith.constant 3 : index
      %490 = vector.load %arg23[%c3_215, %c3_216] : memref<18x18xf32, #tpu.memory_space<vmem>>, vector<3x3xf32>
      tpu.vector_store %arg23[%c3_215, %c3_216], %440 {strides = array<i32>} : memref<18x18xf32, #tpu.memory_space<vmem>>, vector<3x3xf32>,
      %c9_217 = arith.constant 9 : index
      %c9_218 = arith.constant 9 : index
      %491 = vector.load %arg23[%c9_217, %c9_218] : memref<18x18xf32, #tpu.memory_space<vmem>>, vector<3x3xf32>
      tpu.vector_store %arg23[%c9_217, %c9_218], %440 {strides = array<i32>} : memref<18x18xf32, #tpu.memory_space<vmem>>, vector<3x3xf32>,
      %c0_219 = arith.constant 0 : index
      %c0_220 = arith.constant 0 : index
      %492 = vector.load %arg23[%c0_219, %c0_220] : memref<18x18xf32, #tpu.memory_space<vmem>>, vector<18x18xf32>
      %cst_221 = arith.constant dense<0.000000e+00> : vector<18x12xf32>
      %493 = tpu.matmul %492, %477, %cst_221 {dimension_numbers = #tpu.dot_dimension_numbers<[1], [0], [0], [1], [0, 0, 1, 1], [], []>} : vector<18x18xf32>, vector<18x12xf32>, vector<18x12xf32> -> vector<18x12xf32>
      %cst_222 = arith.constant dense<0.000000e+00> : vector<18x12xf32>
      %494 = tpu.matmul %493, %143, %cst_222 {dimension_numbers = #tpu.dot_dimension_numbers<[1], [0], [0], [1], [0, 0, 1, 1], [], []>} : vector<18x12xf32>, vector<12x12xf32>, vector<18x12xf32> -> vector<18x12xf32>
      %495 = tpu.transpose %493, [1, 0] : vector<18x12xf32> -> vector<12x18xf32>
      %cst_223 = arith.constant dense<0.000000e+00> : vector<18x18xf32>
      %496 = tpu.matmul %494, %495, %cst_223 {dimension_numbers = #tpu.dot_dimension_numbers<[1], [0], [0], [1], [0, 0, 1, 1], [], []>} : vector<18x12xf32>, vector<12x18xf32>, vector<18x18xf32> -> vector<18x18xf32>
      %497 = vector.broadcast %355 : vector<1x1xf32> to vector<18x18xf32>
      %498 = arith.mulf %496, %497 : vector<18x18xf32>
      %cst_224 = arith.constant dense<0.000000e+00> : vector<18x18xf32>
      %499 = tpu.matmul %492, %335, %cst_224 {dimension_numbers = #tpu.dot_dimension_numbers<[1], [0], [0], [1], [0, 0, 1, 1], [], []>} : vector<18x18xf32>, vector<18x18xf32>, vector<18x18xf32> -> vector<18x18xf32>
      %500 = tpu.transpose %492, [1, 0] : vector<18x18xf32> -> vector<18x18xf32>
      %cst_225 = arith.constant dense<0.000000e+00> : vector<18x18xf32>
      %501 = tpu.matmul %499, %500, %cst_225 {dimension_numbers = #tpu.dot_dimension_numbers<[1], [0], [0], [1], [0, 0, 1, 1], [], []>} : vector<18x18xf32>, vector<18x18xf32>, vector<18x18xf32> -> vector<18x18xf32>
      %502 = arith.addf %501, %498 : vector<18x18xf32>
      %503 = arith.mulf %502, %85 : vector<18x18xf32>
      %504 = tpu.transpose %503, [1, 0] : vector<18x18xf32> -> vector<18x18xf32>
      %505 = arith.mulf %504, %87 : vector<18x18xf32>
      %506 = arith.addf %503, %505 : vector<18x18xf32>
      %507 = vector.broadcast %355 : vector<1x1xf32> to vector<3x1xf32>
      %508 = arith.mulf %348, %507 : vector<3x1xf32>
      %509 = arith.addf %344, %508 : vector<3x1xf32>
      %510 = vector.broadcast %356 : vector<1x1xf32> to vector<3x1xf32>
      %511 = arith.mulf %510, %370 : vector<3x1xf32>
      %cst_226 = arith.constant dense<0.000000e+00> : vector<3x1xf32>
      %512 = tpu.matmul %349, %511, %cst_226 {dimension_numbers = #tpu.dot_dimension_numbers<[1], [0], [0], [1], [0, 0, 1, 1], [], []>} : vector<3x3xf32>, vector<3x1xf32>, vector<3x1xf32> -> vector<3x1xf32>
      %cst_227 = arith.constant 5.000000e-01 : f32
      %513 = vector.broadcast %cst_227 : f32 to vector<3x1xf32>
      %514 = arith.mulf %513, %512 : vector<3x1xf32>
      %515 = arith.addf %509, %514 : vector<3x1xf32>
      %516 = vector.broadcast %355 : vector<1x1xf32> to vector<3x1xf32>
      %517 = arith.mulf %516, %370 : vector<3x1xf32>
      %cst_228 = arith.constant dense<0.000000e+00> : vector<3x1xf32>
      %518 = tpu.matmul %349, %517, %cst_228 {dimension_numbers = #tpu.dot_dimension_numbers<[1], [0], [0], [1], [0, 0, 1, 1], [], []>} : vector<3x3xf32>, vector<3x1xf32>, vector<3x1xf32> -> vector<3x1xf32>
      %519 = arith.addf %348, %518 : vector<3x1xf32>
      %cst_229 = arith.constant dense<0.000000e+00> : vector<3x3xf32>
      %520 = tpu.matmul %349, %439, %cst_229 {dimension_numbers = #tpu.dot_dimension_numbers<[1], [0], [0], [1], [0, 0, 1, 1], [], []>} : vector<3x3xf32>, vector<3x3xf32>, vector<3x3xf32> -> vector<3x3xf32>
      %521 = arith.addf %350, %355 : vector<1x1xf32>
      %522 = vector.extract_strided_slice %169 {offsets = [0, 2], sizes = [1, 1], strides = [1, 1]} : vector<7x4xf32> to vector<1x1xf32>
      %523 = vector.extract_strided_slice %169 {offsets = [0, 3], sizes = [1, 1], strides = [1, 1]} : vector<7x4xf32> to vector<1x1xf32>
      %524 = vector.extract_strided_slice %169 {offsets = [1, 2], sizes = [3, 1], strides = [1, 1]} : vector<7x4xf32> to vector<3x1xf32>
      %525 = vector.extract_strided_slice %169 {offsets = [4, 2], sizes = [3, 1], strides = [1, 1]} : vector<7x4xf32> to vector<3x1xf32>
      %526 = arith.subf %523, %522 : vector<1x1xf32>
      %527 = arith.mulf %526, %526 : vector<1x1xf32>
      %528 = arith.subf %524, %165 : vector<3x1xf32>
      %529 = vector.extract_strided_slice %528 {offsets = [0, 0], sizes = [1, 1], strides = [1, 1]} : vector<3x1xf32> to vector<1x1xf32>
      %530 = vector.broadcast %529 : vector<1x1xf32> to vector<3x3xf32>
      %531 = arith.mulf %530, %33 : vector<3x3xf32>
      %532 = vector.extract_strided_slice %528 {offsets = [1, 0], sizes = [1, 1], strides = [1, 1]} : vector<3x1xf32> to vector<1x1xf32>
      %533 = vector.broadcast %532 : vector<1x1xf32> to vector<3x3xf32>
      %534 = arith.mulf %533, %50 : vector<3x3xf32>
      %535 = arith.addf %531, %534 : vector<3x3xf32>
      %536 = vector.extract_strided_slice %528 {offsets = [2, 0], sizes = [1, 1], strides = [1, 1]} : vector<3x1xf32> to vector<1x1xf32>
      %537 = vector.broadcast %536 : vector<1x1xf32> to vector<3x3xf32>
      %538 = arith.mulf %537, %67 : vector<3x3xf32>
      %539 = arith.addf %535, %538 : vector<3x3xf32>
      %540 = tpu.transpose %520, [1, 0] : vector<3x3xf32> -> vector<3x3xf32>
      %541 = arith.subf %525, %166 : vector<3x1xf32>
      %542 = vector.broadcast %521 : vector<1x1xf32> to vector<3x1xf32>
      %543 = arith.mulf %163, %542 : vector<3x1xf32>
      %544 = arith.subf %164, %543 : vector<3x1xf32>
      %545 = arith.addf %544, %519 : vector<3x1xf32>
      %cst_230 = arith.constant dense<0.000000e+00> : vector<3x1xf32>
      %546 = tpu.matmul %540, %545, %cst_230 {dimension_numbers = #tpu.dot_dimension_numbers<[1], [0], [0], [1], [0, 0, 1, 1], [], []>} : vector<3x3xf32>, vector<3x1xf32>, vector<3x1xf32> -> vector<3x1xf32>
      %547 = vector.extract_strided_slice %546 {offsets = [0, 0], sizes = [1, 1], strides = [1, 1]} : vector<3x1xf32> to vector<1x1xf32>
      %548 = vector.broadcast %547 : vector<1x1xf32> to vector<3x3xf32>
      %549 = arith.mulf %548, %33 : vector<3x3xf32>
      %550 = vector.extract_strided_slice %546 {offsets = [1, 0], sizes = [1, 1], strides = [1, 1]} : vector<3x1xf32> to vector<1x1xf32>
      %551 = vector.broadcast %550 : vector<1x1xf32> to vector<3x3xf32>
      %552 = arith.mulf %551, %50 : vector<3x3xf32>
      %553 = arith.addf %549, %552 : vector<3x3xf32>
      %554 = vector.extract_strided_slice %546 {offsets = [2, 0], sizes = [1, 1], strides = [1, 1]} : vector<3x1xf32> to vector<1x1xf32>
      %555 = vector.broadcast %554 : vector<1x1xf32> to vector<3x3xf32>
      %556 = arith.mulf %555, %67 : vector<3x3xf32>
      %557 = arith.addf %553, %556 : vector<3x3xf32>
      %558 = vector.broadcast %526 : vector<1x1xf32> to vector<3x1xf32>
      %559 = arith.mulf %558, %528 : vector<3x1xf32>
      %560 = vector.extract_strided_slice %559 {offsets = [0, 0], sizes = [1, 1], strides = [1, 1]} : vector<3x1xf32> to vector<1x1xf32>
      %561 = vector.broadcast %560 : vector<1x1xf32> to vector<3x3xf32>
      %562 = arith.mulf %561, %33 : vector<3x3xf32>
      %563 = vector.extract_strided_slice %559 {offsets = [1, 0], sizes = [1, 1], strides = [1, 1]} : vector<3x1xf32> to vector<1x1xf32>
      %564 = vector.broadcast %563 : vector<1x1xf32> to vector<3x3xf32>
      %565 = arith.mulf %564, %50 : vector<3x3xf32>
      %566 = arith.addf %562, %565 : vector<3x3xf32>
      %567 = vector.extract_strided_slice %559 {offsets = [2, 0], sizes = [1, 1], strides = [1, 1]} : vector<3x1xf32> to vector<1x1xf32>
      %568 = vector.broadcast %567 : vector<1x1xf32> to vector<3x3xf32>
      %569 = arith.mulf %568, %67 : vector<3x3xf32>
      %570 = arith.addf %566, %569 : vector<3x3xf32>
      %571 = vector.extract_strided_slice %559 {offsets = [0, 0], sizes = [1, 1], strides = [1, 1]} : vector<3x1xf32> to vector<1x1xf32>
      %572 = vector.extract_strided_slice %559 {offsets = [0, 0], sizes = [1, 1], strides = [1, 1]} : vector<3x1xf32> to vector<1x1xf32>
      %573 = arith.mulf %571, %572 : vector<1x1xf32>
      %574 = vector.extract_strided_slice %559 {offsets = [1, 0], sizes = [1, 1], strides = [1, 1]} : vector<3x1xf32> to vector<1x1xf32>
      %575 = vector.extract_strided_slice %559 {offsets = [1, 0], sizes = [1, 1], strides = [1, 1]} : vector<3x1xf32> to vector<1x1xf32>
      %576 = arith.mulf %574, %575 : vector<1x1xf32>
      %577 = arith.addf %573, %576 : vector<1x1xf32>
      %578 = vector.extract_strided_slice %559 {offsets = [2, 0], sizes = [1, 1], strides = [1, 1]} : vector<3x1xf32> to vector<1x1xf32>
      %579 = vector.extract_strided_slice %559 {offsets = [2, 0], sizes = [1, 1], strides = [1, 1]} : vector<3x1xf32> to vector<1x1xf32>
      %580 = arith.mulf %578, %579 : vector<1x1xf32>
      %581 = arith.addf %577, %580 : vector<1x1xf32>
      %582 = math.sqrt %581 : vector<1x1xf32>
      %cst_231 = arith.constant 9.99999997E-7 : f32
      %583 = vector.broadcast %cst_231 : f32 to vector<1x1xf32>
      %584 = arith.cmpf olt, %582, %583 : vector<1x1xf32>
      %cst_232 = arith.constant 1.000000e+00 : f32
      %585 = vector.broadcast %cst_232 : f32 to vector<1x1xf32>
      %586 = arith.select %584, %585, %582 : vector<1x1xi1>, vector<1x1xf32>
      %cst_233 = arith.constant 6.000000e+00 : f32
      %587 = vector.broadcast %cst_233 : f32 to vector<1x1xf32>
      %588 = arith.divf %581, %587 : vector<1x1xf32>
      %cst_234 = arith.constant 1.000000e+00 : f32
      %589 = vector.broadcast %cst_234 : f32 to vector<1x1xf32>
      %590 = arith.subf %589, %588 : vector<1x1xf32>
      %591 = math.sin %586 : vector<1x1xf32>
      %592 = arith.divf %591, %586 : vector<1x1xf32>
      %593 = arith.select %584, %590, %592 : vector<1x1xi1>, vector<1x1xf32>
      %cst_235 = arith.constant 2.400000e+01 : f32
      %594 = vector.broadcast %cst_235 : f32 to vector<1x1xf32>
      %595 = arith.divf %581, %594 : vector<1x1xf32>
      %cst_236 = arith.constant 5.000000e-01 : f32
      %596 = vector.broadcast %cst_236 : f32 to vector<1x1xf32>
      %597 = arith.subf %596, %595 : vector<1x1xf32>
      %598 = math.cos %586 : vector<1x1xf32>
      %cst_237 = arith.constant 1.000000e+00 : f32
      %599 = vector.broadcast %cst_237 : f32 to vector<1x1xf32>
      %600 = arith.subf %599, %598 : vector<1x1xf32>
      %601 = arith.mulf %586, %586 : vector<1x1xf32>
      %602 = arith.divf %600, %601 : vector<1x1xf32>
      %603 = arith.select %584, %597, %602 : vector<1x1xi1>, vector<1x1xf32>
      %604 = vector.broadcast %593 : vector<1x1xf32> to vector<3x3xf32>
      %605 = arith.mulf %604, %570 : vector<3x3xf32>
      %606 = arith.addf %4, %605 : vector<3x3xf32>
      %cst_238 = arith.constant dense<0.000000e+00> : vector<3x3xf32>
      %607 = tpu.matmul %570, %570, %cst_238 {dimension_numbers = #tpu.dot_dimension_numbers<[1], [0], [0], [1], [0, 0, 1, 1], [], []>} : vector<3x3xf32>, vector<3x3xf32>, vector<3x3xf32> -> vector<3x3xf32>
      %608 = vector.broadcast %603 : vector<1x1xf32> to vector<3x3xf32>
      %609 = arith.mulf %608, %607 : vector<3x3xf32>
      %610 = arith.addf %606, %609 : vector<3x3xf32>
      %611 = tpu.transpose %610, [1, 0] : vector<3x3xf32> -> vector<3x3xf32>
      %cst_239 = arith.constant 0.000000e+00 : f32
      %612 = vector.broadcast %cst_239 : f32 to vector<3x3xf32>
      %613 = arith.subf %612, %539 : vector<3x3xf32>
      %c3_240 = arith.constant 3 : index
      %c3_241 = arith.constant 3 : index
      %614 = vector.load %arg21[%c3_240, %c3_241] : memref<18x18xf32, #tpu.memory_space<vmem>>, vector<3x3xf32>
      tpu.vector_store %arg21[%c3_240, %c3_241], %613 {strides = array<i32>} : memref<18x18xf32, #tpu.memory_space<vmem>>, vector<3x3xf32>,
      %cst_242 = arith.constant dense<0.000000e+00> : vector<3x3xf32>
      %615 = tpu.matmul %520, %557, %cst_242 {dimension_numbers = #tpu.dot_dimension_numbers<[1], [0], [0], [1], [0, 0, 1, 1], [], []>} : vector<3x3xf32>, vector<3x3xf32>, vector<3x3xf32> -> vector<3x3xf32>
      %cst_243 = arith.constant 0.000000e+00 : f32
      %616 = vector.broadcast %cst_243 : f32 to vector<3x3xf32>
      %617 = arith.subf %616, %615 : vector<3x3xf32>
      %c6_244 = arith.constant 6 : index
      %c3_245 = arith.constant 3 : index
      %618 = vector.load %arg21[%c6_244, %c3_245] : memref<18x18xf32, #tpu.memory_space<vmem>>, vector<3x3xf32>
      tpu.vector_store %arg21[%c6_244, %c3_245], %617 {strides = array<i32>} : memref<18x18xf32, #tpu.memory_space<vmem>>, vector<3x3xf32>,
      %c6_246 = arith.constant 6 : index
      %c9_247 = arith.constant 9 : index
      %619 = vector.load %arg21[%c6_246, %c9_247] : memref<18x18xf32, #tpu.memory_space<vmem>>, vector<3x3xf32>
      tpu.vector_store %arg21[%c6_246, %c9_247], %520 {strides = array<i32>} : memref<18x18xf32, #tpu.memory_space<vmem>>, vector<3x3xf32>,
      %cst_248 = arith.constant 0.000000e+00 : f32
      %620 = vector.broadcast %cst_248 : f32 to vector<3x3xf32>
      %621 = arith.subf %620, %540 : vector<3x3xf32>
      %c9_249 = arith.constant 9 : index
      %c0_250 = arith.constant 0 : index
      %622 = vector.load %arg21[%c9_249, %c0_250] : memref<18x18xf32, #tpu.memory_space<vmem>>, vector<3x3xf32>
      tpu.vector_store %arg21[%c9_249, %c0_250], %621 {strides = array<i32>} : memref<18x18xf32, #tpu.memory_space<vmem>>, vector<3x3xf32>,
      %cst_251 = arith.constant dense<0.000000e+00> : vector<3x1xf32>
      %623 = tpu.matmul %540, %163, %cst_251 {dimension_numbers = #tpu.dot_dimension_numbers<[1], [0], [0], [1], [0, 0, 1, 1], [], []>} : vector<3x3xf32>, vector<3x1xf32>, vector<3x1xf32> -> vector<3x1xf32>
      %624 = vector.extract_strided_slice %623 {offsets = [0, 0], sizes = [1, 1], strides = [1, 1]} : vector<3x1xf32> to vector<1x1xf32>
      %625 = vector.broadcast %624 : vector<1x1xf32> to vector<3x3xf32>
      %626 = arith.mulf %625, %33 : vector<3x3xf32>
      %627 = vector.extract_strided_slice %623 {offsets = [1, 0], sizes = [1, 1], strides = [1, 1]} : vector<3x1xf32> to vector<1x1xf32>
      %628 = vector.broadcast %627 : vector<1x1xf32> to vector<3x3xf32>
      %629 = arith.mulf %628, %50 : vector<3x3xf32>
      %630 = arith.addf %626, %629 : vector<3x3xf32>
      %631 = vector.extract_strided_slice %623 {offsets = [2, 0], sizes = [1, 1], strides = [1, 1]} : vector<3x1xf32> to vector<1x1xf32>
      %632 = vector.broadcast %631 : vector<1x1xf32> to vector<3x3xf32>
      %633 = arith.mulf %632, %67 : vector<3x3xf32>
      %634 = arith.addf %630, %633 : vector<3x3xf32>
      %cst_252 = arith.constant 0.000000e+00 : f32
      %635 = vector.broadcast %cst_252 : f32 to vector<3x3xf32>
      %636 = arith.subf %635, %634 : vector<3x3xf32>
      %c9_253 = arith.constant 9 : index
      %c3_254 = arith.constant 3 : index
      %637 = vector.load %arg21[%c9_253, %c3_254] : memref<18x18xf32, #tpu.memory_space<vmem>>, vector<3x3xf32>
      tpu.vector_store %arg21[%c9_253, %c3_254], %636 {strides = array<i32>} : memref<18x18xf32, #tpu.memory_space<vmem>>, vector<3x3xf32>,
      %cst_255 = arith.constant 0.000000e+00 : f32
      %638 = vector.broadcast %cst_255 : f32 to vector<3x3xf32>
      %639 = arith.subf %638, %539 : vector<3x3xf32>
      %c9_256 = arith.constant 9 : index
      %c9_257 = arith.constant 9 : index
      %640 = vector.load %arg21[%c9_256, %c9_257] : memref<18x18xf32, #tpu.memory_space<vmem>>, vector<3x3xf32>
      tpu.vector_store %arg21[%c9_256, %c9_257], %639 {strides = array<i32>} : memref<18x18xf32, #tpu.memory_space<vmem>>, vector<3x3xf32>,
      %cst_258 = arith.constant 0.000000e+00 : f32
      %641 = vector.broadcast %cst_258 : f32 to vector<3x3xf32>
      %642 = arith.subf %641, %557 : vector<3x3xf32>
      %c9_259 = arith.constant 9 : index
      %c12_260 = arith.constant 12 : index
      %643 = vector.load %arg21[%c9_259, %c12_260] : memref<18x18xf32, #tpu.memory_space<vmem>>, vector<3x3xf32>
      tpu.vector_store %arg21[%c9_259, %c12_260], %642 {strides = array<i32>} : memref<18x18xf32, #tpu.memory_space<vmem>>, vector<3x3xf32>,
      %c0_261 = arith.constant 0 : index
      %c0_262 = arith.constant 0 : index
      %644 = vector.load %arg21[%c0_261, %c0_262] : memref<18x18xf32, #tpu.memory_space<vmem>>, vector<18x18xf32>
      %cst_263 = arith.constant 0.000000e+00 : f32
      %645 = vector.broadcast %cst_263 : f32 to vector<3x3xf32>
      %646 = arith.subf %645, %557 : vector<3x3xf32>
      %c9_264 = arith.constant 9 : index
      %c0_265 = arith.constant 0 : index
      %647 = vector.load %arg22[%c9_264, %c0_265] : memref<18x12xf32, #tpu.memory_space<vmem>>, vector<3x3xf32>
      tpu.vector_store %arg22[%c9_264, %c0_265], %646 {strides = array<i32>} : memref<18x12xf32, #tpu.memory_space<vmem>>, vector<3x3xf32>,
      %c0_266 = arith.constant 0 : index
      %c0_267 = arith.constant 0 : index
      %648 = vector.load %arg22[%c0_266, %c0_267] : memref<18x12xf32, #tpu.memory_space<vmem>>, vector<18x12xf32>
      %649 = vector.broadcast %526 : vector<1x1xf32> to vector<18x18xf32>
      %650 = arith.mulf %644, %649 : vector<18x18xf32>
      %651 = arith.addf %14, %650 : vector<18x18xf32>
      %cst_268 = arith.constant dense<0.000000e+00> : vector<18x18xf32>
      %652 = tpu.matmul %644, %644, %cst_268 {dimension_numbers = #tpu.dot_dimension_numbers<[1], [0], [0], [1], [0, 0, 1, 1], [], []>} : vector<18x18xf32>, vector<18x18xf32>, vector<18x18xf32> -> vector<18x18xf32>
      %cst_269 = arith.constant 5.000000e-01 : f32
      %653 = vector.broadcast %cst_269 : f32 to vector<18x18xf32>
      %654 = arith.mulf %653, %652 : vector<18x18xf32>
      %655 = vector.broadcast %527 : vector<1x1xf32> to vector<18x18xf32>
      %656 = arith.mulf %654, %655 : vector<18x18xf32>
      %657 = arith.addf %651, %656 : vector<18x18xf32>
      %c0_270 = arith.constant 0 : index
      %c0_271 = arith.constant 0 : index
      %658 = vector.load %arg23[%c0_270, %c0_271] : memref<18x18xf32, #tpu.memory_space<vmem>>, vector<18x18xf32>
      tpu.vector_store %arg23[%c0_270, %c0_271], %657 {strides = array<i32>} : memref<18x18xf32, #tpu.memory_space<vmem>>, vector<18x18xf32>,
      %cst_272 = arith.constant 0.000000e+00 : f32
      %659 = vector.broadcast %cst_272 : f32 to vector<3x3xf32>
      %c6_273 = arith.constant 6 : index
      %c12_274 = arith.constant 12 : index
      %660 = vector.load %arg23[%c6_273, %c12_274] : memref<18x18xf32, #tpu.memory_space<vmem>>, vector<3x3xf32>
      tpu.vector_store %arg23[%c6_273, %c12_274], %659 {strides = array<i32>} : memref<18x18xf32, #tpu.memory_space<vmem>>, vector<3x3xf32>,
      %c3_275 = arith.constant 3 : index
      %c3_276 = arith.constant 3 : index
      %661 = vector.load %arg23[%c3_275, %c3_276] : memref<18x18xf32, #tpu.memory_space<vmem>>, vector<3x3xf32>
      tpu.vector_store %arg23[%c3_275, %c3_276], %611 {strides = array<i32>} : memref<18x18xf32, #tpu.memory_space<vmem>>, vector<3x3xf32>,
      %c9_277 = arith.constant 9 : index
      %c9_278 = arith.constant 9 : index
      %662 = vector.load %arg23[%c9_277, %c9_278] : memref<18x18xf32, #tpu.memory_space<vmem>>, vector<3x3xf32>
      tpu.vector_store %arg23[%c9_277, %c9_278], %611 {strides = array<i32>} : memref<18x18xf32, #tpu.memory_space<vmem>>, vector<3x3xf32>,
      %c0_279 = arith.constant 0 : index
      %c0_280 = arith.constant 0 : index
      %663 = vector.load %arg23[%c0_279, %c0_280] : memref<18x18xf32, #tpu.memory_space<vmem>>, vector<18x18xf32>
      %cst_281 = arith.constant dense<0.000000e+00> : vector<18x12xf32>
      %664 = tpu.matmul %663, %648, %cst_281 {dimension_numbers = #tpu.dot_dimension_numbers<[1], [0], [0], [1], [0, 0, 1, 1], [], []>} : vector<18x18xf32>, vector<18x12xf32>, vector<18x12xf32> -> vector<18x12xf32>
      %cst_282 = arith.constant dense<0.000000e+00> : vector<18x12xf32>
      %665 = tpu.matmul %664, %143, %cst_282 {dimension_numbers = #tpu.dot_dimension_numbers<[1], [0], [0], [1], [0, 0, 1, 1], [], []>} : vector<18x12xf32>, vector<12x12xf32>, vector<18x12xf32> -> vector<18x12xf32>
      %666 = tpu.transpose %664, [1, 0] : vector<18x12xf32> -> vector<12x18xf32>
      %cst_283 = arith.constant dense<0.000000e+00> : vector<18x18xf32>
      %667 = tpu.matmul %665, %666, %cst_283 {dimension_numbers = #tpu.dot_dimension_numbers<[1], [0], [0], [1], [0, 0, 1, 1], [], []>} : vector<18x12xf32>, vector<12x18xf32>, vector<18x18xf32> -> vector<18x18xf32>
      %668 = vector.broadcast %526 : vector<1x1xf32> to vector<18x18xf32>
      %669 = arith.mulf %667, %668 : vector<18x18xf32>
      %cst_284 = arith.constant dense<0.000000e+00> : vector<18x18xf32>
      %670 = tpu.matmul %663, %506, %cst_284 {dimension_numbers = #tpu.dot_dimension_numbers<[1], [0], [0], [1], [0, 0, 1, 1], [], []>} : vector<18x18xf32>, vector<18x18xf32>, vector<18x18xf32> -> vector<18x18xf32>
      %671 = tpu.transpose %663, [1, 0] : vector<18x18xf32> -> vector<18x18xf32>
      %cst_285 = arith.constant dense<0.000000e+00> : vector<18x18xf32>
      %672 = tpu.matmul %670, %671, %cst_285 {dimension_numbers = #tpu.dot_dimension_numbers<[1], [0], [0], [1], [0, 0, 1, 1], [], []>} : vector<18x18xf32>, vector<18x18xf32>, vector<18x18xf32> -> vector<18x18xf32>
      %673 = arith.addf %672, %669 : vector<18x18xf32>
      %674 = arith.mulf %673, %85 : vector<18x18xf32>
      %675 = tpu.transpose %674, [1, 0] : vector<18x18xf32> -> vector<18x18xf32>
      %676 = arith.mulf %675, %87 : vector<18x18xf32>
      %677 = arith.addf %674, %676 : vector<18x18xf32>
      %678 = vector.broadcast %526 : vector<1x1xf32> to vector<3x1xf32>
      %679 = arith.mulf %519, %678 : vector<3x1xf32>
      %680 = arith.addf %515, %679 : vector<3x1xf32>
      %681 = vector.broadcast %527 : vector<1x1xf32> to vector<3x1xf32>
      %682 = arith.mulf %681, %541 : vector<3x1xf32>
      %cst_286 = arith.constant dense<0.000000e+00> : vector<3x1xf32>
      %683 = tpu.matmul %520, %682, %cst_286 {dimension_numbers = #tpu.dot_dimension_numbers<[1], [0], [0], [1], [0, 0, 1, 1], [], []>} : vector<3x3xf32>, vector<3x1xf32>, vector<3x1xf32> -> vector<3x1xf32>
      %cst_287 = arith.constant 5.000000e-01 : f32
      %684 = vector.broadcast %cst_287 : f32 to vector<3x1xf32>
      %685 = arith.mulf %684, %683 : vector<3x1xf32>
      %686 = arith.addf %680, %685 : vector<3x1xf32>
      %687 = vector.broadcast %526 : vector<1x1xf32> to vector<3x1xf32>
      %688 = arith.mulf %687, %541 : vector<3x1xf32>
      %cst_288 = arith.constant dense<0.000000e+00> : vector<3x1xf32>
      %689 = tpu.matmul %520, %688, %cst_288 {dimension_numbers = #tpu.dot_dimension_numbers<[1], [0], [0], [1], [0, 0, 1, 1], [], []>} : vector<3x3xf32>, vector<3x1xf32>, vector<3x1xf32> -> vector<3x1xf32>
      %690 = arith.addf %519, %689 : vector<3x1xf32>
      %cst_289 = arith.constant dense<0.000000e+00> : vector<3x3xf32>
      %691 = tpu.matmul %520, %610, %cst_289 {dimension_numbers = #tpu.dot_dimension_numbers<[1], [0], [0], [1], [0, 0, 1, 1], [], []>} : vector<3x3xf32>, vector<3x3xf32>, vector<3x3xf32> -> vector<3x3xf32>
      %692 = arith.addf %521, %526 : vector<1x1xf32>
      %693 = vector.broadcast %692 : vector<1x1xf32> to vector<3x1xf32>
      %694 = arith.mulf %164, %693 : vector<3x1xf32>
      %cst_290 = arith.constant 5.000000e-01 : f32
      %695 = vector.broadcast %cst_290 : f32 to vector<3x1xf32>
      %696 = arith.mulf %695, %163 : vector<3x1xf32>
      %697 = vector.broadcast %692 : vector<1x1xf32> to vector<3x1xf32>
      %698 = arith.mulf %696, %697 : vector<3x1xf32>
      %699 = vector.broadcast %692 : vector<1x1xf32> to vector<3x1xf32>
      %700 = arith.mulf %698, %699 : vector<3x1xf32>
      %701 = arith.subf %694, %700 : vector<3x1xf32>
      %702 = arith.addf %701, %686 : vector<3x1xf32>
      %703 = tpu.transpose %691, [1, 0] : vector<3x3xf32> -> vector<3x3xf32>
      %704 = vector.broadcast %692 : vector<1x1xf32> to vector<3x1xf32>
      %705 = arith.mulf %163, %704 : vector<3x1xf32>
      %706 = arith.subf %164, %705 : vector<3x1xf32>
      %707 = arith.addf %706, %690 : vector<3x1xf32>
      %cst_291 = arith.constant dense<0.000000e+00> : vector<3x1xf32>
      %708 = tpu.matmul %703, %707, %cst_291 {dimension_numbers = #tpu.dot_dimension_numbers<[1], [0], [0], [1], [0, 0, 1, 1], [], []>} : vector<3x3xf32>, vector<3x1xf32>, vector<3x1xf32> -> vector<3x1xf32>
      %cst_292 = arith.constant dense<0.000000e+00> : vector<3x3xf32>
      %709 = tpu.matmul %147, %691, %cst_292 {dimension_numbers = #tpu.dot_dimension_numbers<[1], [0], [0], [1], [0, 0, 1, 1], [], []>} : vector<3x3xf32>, vector<3x3xf32>, vector<3x3xf32> -> vector<3x3xf32>
      %cst_293 = arith.constant dense<0.000000e+00> : vector<3x3xf32>
      %710 = tpu.matmul %709, %146, %cst_293 {dimension_numbers = #tpu.dot_dimension_numbers<[1], [0], [0], [1], [0, 0, 1, 1], [], []>} : vector<3x3xf32>, vector<3x3xf32>, vector<3x3xf32> -> vector<3x3xf32>
      %711 = vector.extract_strided_slice %710 {offsets = [0, 0], sizes = [1, 1], strides = [1, 1]} : vector<3x3xf32> to vector<1x1xf32>
      %712 = vector.extract_strided_slice %710 {offsets = [1, 1], sizes = [1, 1], strides = [1, 1]} : vector<3x3xf32> to vector<1x1xf32>
      %713 = arith.addf %711, %712 : vector<1x1xf32>
      %714 = vector.extract_strided_slice %710 {offsets = [2, 2], sizes = [1, 1], strides = [1, 1]} : vector<3x3xf32> to vector<1x1xf32>
      %715 = arith.addf %713, %714 : vector<1x1xf32>
      %cst_294 = arith.constant 1.000000e+00 : f32
      %716 = vector.broadcast %cst_294 : f32 to vector<1x1xf32>
      %717 = arith.subf %715, %716 : vector<1x1xf32>
      %cst_295 = arith.constant 5.000000e-01 : f32
      %718 = vector.broadcast %cst_295 : f32 to vector<1x1xf32>
      %719 = arith.mulf %718, %717 : vector<1x1xf32>
      %cst_296 = arith.constant -1.000000e+00 : f32
      %cst_297 = arith.constant 1.000000e+00 : f32
      %720 = vector.broadcast %cst_296 : f32 to vector<1x1xf32>
      %721 = arith.maximumf %720, %719 : vector<1x1xf32>
      %722 = vector.broadcast %cst_297 : f32 to vector<1x1xf32>
      %723 = arith.minimumf %722, %721 : vector<1x1xf32>
      %cst_298 = arith.constant -1.000000e+00 : f32
      %cst_299 = arith.constant 1.000000e+00 : f32
      %724 = vector.broadcast %cst_298 : f32 to vector<1x1xf32>
      %725 = arith.maximumf %724, %723 : vector<1x1xf32>
      %726 = vector.broadcast %cst_299 : f32 to vector<1x1xf32>
      %727 = arith.minimumf %726, %725 : vector<1x1xf32>
      %cst_300 = arith.constant 1.000000e+00 : f32
      %728 = vector.broadcast %cst_300 : f32 to vector<1x1xf32>
      %729 = arith.subf %728, %727 : vector<1x1xf32>
      %cst_301 = arith.constant 2.000000e+00 : f32
      %730 = vector.broadcast %cst_301 : f32 to vector<1x1xf32>
      %731 = arith.mulf %730, %729 : vector<1x1xf32>
      %cst_302 = arith.constant 0.000000e+00 : f32
      %732 = vector.broadcast %cst_302 : f32 to vector<1x1xf32>
      %733 = arith.maximumf %731, %732 : vector<1x1xf32>
      %734 = math.sqrt %733 : vector<1x1xf32>
      %735 = math.sin %734 : vector<1x1xf32>
      %cst_303 = arith.constant 9.99999997E-7 : f32
      %736 = vector.broadcast %cst_303 : f32 to vector<1x1xf32>
      %737 = arith.cmpf ogt, %735, %736 : vector<1x1xf32>
      %738 = math.cos %734 : vector<1x1xf32>
      %739 = arith.subf %738, %727 : vector<1x1xf32>
      %cst_304 = arith.constant 1.000000e+00 : f32
      %740 = vector.broadcast %cst_304 : f32 to vector<1x1xf32>
      %741 = arith.select %737, %735, %740 : vector<1x1xi1>, vector<1x1xf32>
      %742 = arith.divf %739, %741 : vector<1x1xf32>
      %cst_305 = arith.constant 0.000000e+00 : f32
      %743 = vector.broadcast %cst_305 : f32 to vector<1x1xf32>
      %744 = arith.select %737, %742, %743 : vector<1x1xi1>, vector<1x1xf32>
      %745 = arith.addf %734, %744 : vector<1x1xf32>
      %746 = math.sin %745 : vector<1x1xf32>
      %cst_306 = arith.constant 9.99999997E-7 : f32
      %747 = vector.broadcast %cst_306 : f32 to vector<1x1xf32>
      %748 = arith.cmpf ogt, %746, %747 : vector<1x1xf32>
      %749 = math.cos %745 : vector<1x1xf32>
      %750 = arith.subf %749, %727 : vector<1x1xf32>
      %cst_307 = arith.constant 1.000000e+00 : f32
      %751 = vector.broadcast %cst_307 : f32 to vector<1x1xf32>
      %752 = arith.select %748, %746, %751 : vector<1x1xi1>, vector<1x1xf32>
      %753 = arith.divf %750, %752 : vector<1x1xf32>
      %cst_308 = arith.constant 0.000000e+00 : f32
      %754 = vector.broadcast %cst_308 : f32 to vector<1x1xf32>
      %755 = arith.select %748, %753, %754 : vector<1x1xi1>, vector<1x1xf32>
      %756 = arith.addf %745, %755 : vector<1x1xf32>
      %757 = math.sin %756 : vector<1x1xf32>
      %cst_309 = arith.constant 9.99999997E-7 : f32
      %758 = vector.broadcast %cst_309 : f32 to vector<1x1xf32>
      %759 = arith.cmpf ogt, %757, %758 : vector<1x1xf32>
      %760 = math.cos %756 : vector<1x1xf32>
      %761 = arith.subf %760, %727 : vector<1x1xf32>
      %cst_310 = arith.constant 1.000000e+00 : f32
      %762 = vector.broadcast %cst_310 : f32 to vector<1x1xf32>
      %763 = arith.select %759, %757, %762 : vector<1x1xi1>, vector<1x1xf32>
      %764 = arith.divf %761, %763 : vector<1x1xf32>
      %cst_311 = arith.constant 0.000000e+00 : f32
      %765 = vector.broadcast %cst_311 : f32 to vector<1x1xf32>
      %766 = arith.select %759, %764, %765 : vector<1x1xi1>, vector<1x1xf32>
      %767 = arith.addf %756, %766 : vector<1x1xf32>
      %768 = math.sin %767 : vector<1x1xf32>
      %cst_312 = arith.constant 9.99999997E-7 : f32
      %769 = vector.broadcast %cst_312 : f32 to vector<1x1xf32>
      %770 = arith.cmpf ogt, %768, %769 : vector<1x1xf32>
      %771 = math.cos %767 : vector<1x1xf32>
      %772 = arith.subf %771, %727 : vector<1x1xf32>
      %cst_313 = arith.constant 1.000000e+00 : f32
      %773 = vector.broadcast %cst_313 : f32 to vector<1x1xf32>
      %774 = arith.select %770, %768, %773 : vector<1x1xi1>, vector<1x1xf32>
      %775 = arith.divf %772, %774 : vector<1x1xf32>
      %cst_314 = arith.constant 0.000000e+00 : f32
      %776 = vector.broadcast %cst_314 : f32 to vector<1x1xf32>
      %777 = arith.select %770, %775, %776 : vector<1x1xi1>, vector<1x1xf32>
      %778 = arith.addf %767, %777 : vector<1x1xf32>
      %779 = tpu.transpose %710, [1, 0] : vector<3x3xf32> -> vector<3x3xf32>
      %780 = arith.subf %710, %779 : vector<3x3xf32>
      %781 = vector.extract_strided_slice %780 {offsets = [2, 1], sizes = [1, 1], strides = [1, 1]} : vector<3x3xf32> to vector<1x1xf32>
      %782 = vector.broadcast %781 : vector<1x1xf32> to vector<3x1xf32>
      %783 = arith.mulf %782, %72 : vector<3x1xf32>
      %784 = vector.extract_strided_slice %780 {offsets = [0, 2], sizes = [1, 1], strides = [1, 1]} : vector<3x3xf32> to vector<1x1xf32>
      %785 = vector.broadcast %784 : vector<1x1xf32> to vector<3x1xf32>
      %786 = arith.mulf %785, %76 : vector<3x1xf32>
      %787 = arith.addf %783, %786 : vector<3x1xf32>
      %788 = vector.extract_strided_slice %780 {offsets = [1, 0], sizes = [1, 1], strides = [1, 1]} : vector<3x3xf32> to vector<1x1xf32>
      %789 = vector.broadcast %788 : vector<1x1xf32> to vector<3x1xf32>
      %790 = arith.mulf %789, %80 : vector<3x1xf32>
      %791 = arith.addf %787, %790 : vector<3x1xf32>
      %cst_315 = arith.constant 9.99999997E-7 : f32
      %792 = vector.broadcast %cst_315 : f32 to vector<1x1xf32>
      %793 = arith.cmpf olt, %778, %792 : vector<1x1xf32>
      %794 = math.sin %778 : vector<1x1xf32>
      %cst_316 = arith.constant 1.000000e+00 : f32
      %795 = vector.broadcast %cst_316 : f32 to vector<1x1xf32>
      %796 = arith.select %793, %795, %794 : vector<1x1xi1>, vector<1x1xf32>
      %cst_317 = arith.constant 2.000000e+00 : f32
      %797 = vector.broadcast %cst_317 : f32 to vector<1x1xf32>
      %798 = arith.mulf %797, %796 : vector<1x1xf32>
      %799 = arith.divf %778, %798 : vector<1x1xf32>
      %cst_318 = arith.constant 5.000000e-01 : f32
      %800 = vector.broadcast %cst_318 : f32 to vector<1x1xf32>
      %801 = arith.select %793, %800, %799 : vector<1x1xi1>, vector<1x1xf32>
      %802 = vector.broadcast %801 : vector<1x1xf32> to vector<3x1xf32>
      %803 = arith.mulf %802, %791 : vector<3x1xf32>
      %804 = vector.extract_strided_slice %172 {offsets = [0, 0], sizes = [3, 1], strides = [1, 1]} : vector<6x1xf32> to vector<3x1xf32>
      %805 = arith.subf %804, %803 : vector<3x1xf32>
      %806 = vector.extract_strided_slice %172 {offsets = [3, 0], sizes = [3, 1], strides = [1, 1]} : vector<6x1xf32> to vector<3x1xf32>
      %cst_319 = arith.constant dense<0.000000e+00> : vector<3x1xf32>
      %807 = tpu.matmul %709, %148, %cst_319 {dimension_numbers = #tpu.dot_dimension_numbers<[1], [0], [0], [1], [0, 0, 1, 1], [], []>} : vector<3x3xf32>, vector<3x1xf32>, vector<3x1xf32> -> vector<3x1xf32>
      %808 = arith.subf %806, %807 : vector<3x1xf32>
      %809 = arith.subf %702, %148 : vector<3x1xf32>
      %cst_320 = arith.constant dense<0.000000e+00> : vector<3x1xf32>
      %810 = tpu.matmul %147, %809, %cst_320 {dimension_numbers = #tpu.dot_dimension_numbers<[1], [0], [0], [1], [0, 0, 1, 1], [], []>} : vector<3x3xf32>, vector<3x1xf32>, vector<3x1xf32> -> vector<3x1xf32>
      %811 = arith.subf %808, %810 : vector<3x1xf32>
      %cst_321 = arith.constant 0.000000e+00 : f32
      %812 = vector.broadcast %cst_321 : f32 to vector<3x1xf32>
      %813 = arith.subf %812, %803 : vector<3x1xf32>
      %814 = vector.extract_strided_slice %813 {offsets = [0, 0], sizes = [1, 1], strides = [1, 1]} : vector<3x1xf32> to vector<1x1xf32>
      %815 = vector.broadcast %814 : vector<1x1xf32> to vector<3x3xf32>
      %816 = arith.mulf %815, %33 : vector<3x3xf32>
      %817 = vector.extract_strided_slice %813 {offsets = [1, 0], sizes = [1, 1], strides = [1, 1]} : vector<3x1xf32> to vector<1x1xf32>
      %818 = vector.broadcast %817 : vector<1x1xf32> to vector<3x3xf32>
      %819 = arith.mulf %818, %50 : vector<3x3xf32>
      %820 = arith.addf %816, %819 : vector<3x3xf32>
      %821 = vector.extract_strided_slice %813 {offsets = [2, 0], sizes = [1, 1], strides = [1, 1]} : vector<3x1xf32> to vector<1x1xf32>
      %822 = vector.broadcast %821 : vector<1x1xf32> to vector<3x3xf32>
      %823 = arith.mulf %822, %67 : vector<3x3xf32>
      %824 = arith.addf %820, %823 : vector<3x3xf32>
      %825 = vector.extract_strided_slice %813 {offsets = [0, 0], sizes = [1, 1], strides = [1, 1]} : vector<3x1xf32> to vector<1x1xf32>
      %826 = vector.extract_strided_slice %813 {offsets = [0, 0], sizes = [1, 1], strides = [1, 1]} : vector<3x1xf32> to vector<1x1xf32>
      %827 = arith.mulf %825, %826 : vector<1x1xf32>
      %828 = vector.extract_strided_slice %813 {offsets = [1, 0], sizes = [1, 1], strides = [1, 1]} : vector<3x1xf32> to vector<1x1xf32>
      %829 = vector.extract_strided_slice %813 {offsets = [1, 0], sizes = [1, 1], strides = [1, 1]} : vector<3x1xf32> to vector<1x1xf32>
      %830 = arith.mulf %828, %829 : vector<1x1xf32>
      %831 = arith.addf %827, %830 : vector<1x1xf32>
      %832 = vector.extract_strided_slice %813 {offsets = [2, 0], sizes = [1, 1], strides = [1, 1]} : vector<3x1xf32> to vector<1x1xf32>
      %833 = vector.extract_strided_slice %813 {offsets = [2, 0], sizes = [1, 1], strides = [1, 1]} : vector<3x1xf32> to vector<1x1xf32>
      %834 = arith.mulf %832, %833 : vector<1x1xf32>
      %835 = arith.addf %831, %834 : vector<1x1xf32>
      %836 = math.sqrt %835 : vector<1x1xf32>
      %cst_322 = arith.constant 9.99999997E-7 : f32
      %837 = vector.broadcast %cst_322 : f32 to vector<1x1xf32>
      %838 = arith.cmpf olt, %836, %837 : vector<1x1xf32>
      %cst_323 = arith.constant 1.000000e+00 : f32
      %839 = vector.broadcast %cst_323 : f32 to vector<1x1xf32>
      %840 = arith.select %838, %839, %836 : vector<1x1xi1>, vector<1x1xf32>
      %841 = arith.mulf %840, %840 : vector<1x1xf32>
      %cst_324 = arith.constant 1.000000e+00 : f32
      %842 = vector.broadcast %cst_324 : f32 to vector<1x1xf32>
      %843 = arith.divf %842, %841 : vector<1x1xf32>
      %844 = math.cos %840 : vector<1x1xf32>
      %cst_325 = arith.constant 1.000000e+00 : f32
      %845 = vector.broadcast %cst_325 : f32 to vector<1x1xf32>
      %846 = arith.addf %845, %844 : vector<1x1xf32>
      %cst_326 = arith.constant 2.000000e+00 : f32
      %847 = vector.broadcast %cst_326 : f32 to vector<1x1xf32>
      %848 = arith.mulf %847, %840 : vector<1x1xf32>
      %849 = math.sin %840 : vector<1x1xf32>
      %850 = arith.mulf %848, %849 : vector<1x1xf32>
      %851 = arith.divf %846, %850 : vector<1x1xf32>
      %852 = arith.subf %843, %851 : vector<1x1xf32>
      %cst_327 = arith.constant 0.0833333358 : f32
      %853 = vector.broadcast %cst_327 : f32 to vector<1x1xf32>
      %854 = arith.select %838, %853, %852 : vector<1x1xi1>, vector<1x1xf32>
      %cst_328 = arith.constant 5.000000e-01 : f32
      %855 = vector.broadcast %cst_328 : f32 to vector<3x3xf32>
      %856 = arith.mulf %855, %824 : vector<3x3xf32>
      %857 = arith.subf %4, %856 : vector<3x3xf32>
      %cst_329 = arith.constant dense<0.000000e+00> : vector<3x3xf32>
      %858 = tpu.matmul %824, %824, %cst_329 {dimension_numbers = #tpu.dot_dimension_numbers<[1], [0], [0], [1], [0, 0, 1, 1], [], []>} : vector<3x3xf32>, vector<3x3xf32>, vector<3x3xf32> -> vector<3x3xf32>
      %859 = vector.broadcast %854 : vector<1x1xf32> to vector<3x3xf32>
      %860 = arith.mulf %859, %858 : vector<3x3xf32>
      %861 = arith.addf %857, %860 : vector<3x3xf32>
      %cst_330 = arith.constant dense<0.000000e+00> : vector<3x3xf32>
      %862 = tpu.matmul %861, %147, %cst_330 {dimension_numbers = #tpu.dot_dimension_numbers<[1], [0], [0], [1], [0, 0, 1, 1], [], []>} : vector<3x3xf32>, vector<3x3xf32>, vector<3x3xf32> -> vector<3x3xf32>
      %c0_331 = arith.constant 0 : index
      %c3_332 = arith.constant 3 : index
      %863 = vector.load %arg24[%c0_331, %c3_332] : memref<6x18xf32, #tpu.memory_space<vmem>>, vector<3x3xf32>
      tpu.vector_store %arg24[%c0_331, %c3_332], %862 {strides = array<i32>} : memref<6x18xf32, #tpu.memory_space<vmem>>, vector<3x3xf32>,
      %cst_333 = arith.constant dense<0.000000e+00> : vector<3x3xf32>
      %864 = tpu.matmul %709, %159, %cst_333 {dimension_numbers = #tpu.dot_dimension_numbers<[1], [0], [0], [1], [0, 0, 1, 1], [], []>} : vector<3x3xf32>, vector<3x3xf32>, vector<3x3xf32> -> vector<3x3xf32>
      %cst_334 = arith.constant 0.000000e+00 : f32
      %865 = vector.broadcast %cst_334 : f32 to vector<3x3xf32>
      %866 = arith.subf %865, %864 : vector<3x3xf32>
      %c3_335 = arith.constant 3 : index
      %c3_336 = arith.constant 3 : index
      %867 = vector.load %arg24[%c3_335, %c3_336] : memref<6x18xf32, #tpu.memory_space<vmem>>, vector<3x3xf32>
      tpu.vector_store %arg24[%c3_335, %c3_336], %866 {strides = array<i32>} : memref<6x18xf32, #tpu.memory_space<vmem>>, vector<3x3xf32>,
      %c3_337 = arith.constant 3 : index
      %c6_338 = arith.constant 6 : index
      %868 = vector.load %arg24[%c3_337, %c6_338] : memref<6x18xf32, #tpu.memory_space<vmem>>, vector<3x3xf32>
      tpu.vector_store %arg24[%c3_337, %c6_338], %147 {strides = array<i32>} : memref<6x18xf32, #tpu.memory_space<vmem>>, vector<3x3xf32>,
      %c0_339 = arith.constant 0 : index
      %c0_340 = arith.constant 0 : index
      %869 = vector.load %arg24[%c0_339, %c0_340] : memref<6x18xf32, #tpu.memory_space<vmem>>, vector<6x18xf32>
      %870 = tpu.transpose %869, [1, 0] : vector<6x18xf32> -> vector<18x6xf32>
      %cst_341 = arith.constant dense<0.000000e+00> : vector<18x6xf32>
      %871 = tpu.matmul %677, %870, %cst_341 {dimension_numbers = #tpu.dot_dimension_numbers<[1], [0], [0], [1], [0, 0, 1, 1], [], []>} : vector<18x18xf32>, vector<18x6xf32>, vector<18x6xf32> -> vector<18x6xf32>
      %cst_342 = arith.constant dense<0.000000e+00> : vector<6x6xf32>
      %872 = tpu.matmul %869, %871, %cst_342 {dimension_numbers = #tpu.dot_dimension_numbers<[1], [0], [0], [1], [0, 0, 1, 1], [], []>} : vector<6x18xf32>, vector<18x6xf32>, vector<6x6xf32> -> vector<6x6xf32>
      %873 = arith.addf %872, %175 : vector<6x6xf32>
      %874 = vector.extract_strided_slice %873 {offsets = [0, 0], sizes = [1, 1], strides = [1, 1]} : vector<6x6xf32> to vector<1x1xf32>
      %cst_343 = arith.constant 1.000000e+00 : f32
      %875 = vector.broadcast %cst_343 : f32 to vector<1x1xf32>
      %876 = arith.divf %875, %874 : vector<1x1xf32>
      %877 = vector.extract_strided_slice %873 {offsets = [0, 0], sizes = [1, 6], strides = [1, 1]} : vector<6x6xf32> to vector<1x6xf32>
      %878 = vector.broadcast %876 : vector<1x1xf32> to vector<1x6xf32>
      %879 = arith.mulf %877, %878 : vector<1x6xf32>
      %880 = vector.extract_strided_slice %9 {offsets = [0, 0], sizes = [1, 6], strides = [1, 1]} : vector<6x6xf32> to vector<1x6xf32>
      %881 = vector.broadcast %876 : vector<1x1xf32> to vector<1x6xf32>
      %882 = arith.mulf %880, %881 : vector<1x6xf32>
      %883 = vector.extract_strided_slice %873 {offsets = [0, 0], sizes = [6, 1], strides = [1, 1]} : vector<6x6xf32> to vector<6x1xf32>
      %884 = vector.broadcast %883 : vector<6x1xf32> to vector<6x6xf32>
      %885 = vector.broadcast %879 : vector<1x6xf32> to vector<6x6xf32>
      %886 = arith.mulf %884, %885 : vector<6x6xf32>
      %887 = arith.subf %873, %886 : vector<6x6xf32>
      %888 = vector.broadcast %883 : vector<6x1xf32> to vector<6x6xf32>
      %889 = vector.broadcast %882 : vector<1x6xf32> to vector<6x6xf32>
      %890 = arith.mulf %888, %889 : vector<6x6xf32>
      %891 = arith.subf %9, %890 : vector<6x6xf32>
      %c0_i32_344 = arith.constant 0 : i32
      %892 = vector.broadcast %c0_i32_344 : i32 to vector<6x6xi32>
      %893 = arith.cmpi eq, %103, %892 : vector<6x6xi32>
      %894 = vector.shape_cast %879 : vector<1x6xf32> to vector<1x6xf32>
      %895 = vector.broadcast %894 : vector<1x6xf32> to vector<6x6xf32>
      %896 = arith.select %893, %895, %887 : vector<6x6xi1>, vector<6x6xf32>
      %897 = vector.shape_cast %882 : vector<1x6xf32> to vector<1x6xf32>
      %898 = vector.broadcast %897 : vector<1x6xf32> to vector<6x6xf32>
      %899 = arith.select %893, %898, %891 : vector<6x6xi1>, vector<6x6xf32>
      %900 = vector.extract_strided_slice %896 {offsets = [1, 1], sizes = [1, 1], strides = [1, 1]} : vector<6x6xf32> to vector<1x1xf32>
      %cst_345 = arith.constant 1.000000e+00 : f32
      %901 = vector.broadcast %cst_345 : f32 to vector<1x1xf32>
      %902 = arith.divf %901, %900 : vector<1x1xf32>
      %903 = vector.extract_strided_slice %896 {offsets = [1, 0], sizes = [1, 6], strides = [1, 1]} : vector<6x6xf32> to vector<1x6xf32>
      %904 = vector.broadcast %902 : vector<1x1xf32> to vector<1x6xf32>
      %905 = arith.mulf %903, %904 : vector<1x6xf32>
      %906 = vector.extract_strided_slice %899 {offsets = [1, 0], sizes = [1, 6], strides = [1, 1]} : vector<6x6xf32> to vector<1x6xf32>
      %907 = vector.broadcast %902 : vector<1x1xf32> to vector<1x6xf32>
      %908 = arith.mulf %906, %907 : vector<1x6xf32>
      %909 = vector.extract_strided_slice %896 {offsets = [0, 1], sizes = [6, 1], strides = [1, 1]} : vector<6x6xf32> to vector<6x1xf32>
      %910 = vector.broadcast %909 : vector<6x1xf32> to vector<6x6xf32>
      %911 = vector.broadcast %905 : vector<1x6xf32> to vector<6x6xf32>
      %912 = arith.mulf %910, %911 : vector<6x6xf32>
      %913 = arith.subf %896, %912 : vector<6x6xf32>
      %914 = vector.broadcast %909 : vector<6x1xf32> to vector<6x6xf32>
      %915 = vector.broadcast %908 : vector<1x6xf32> to vector<6x6xf32>
      %916 = arith.mulf %914, %915 : vector<6x6xf32>
      %917 = arith.subf %899, %916 : vector<6x6xf32>
      %c1_i32_346 = arith.constant 1 : i32
      %918 = vector.broadcast %c1_i32_346 : i32 to vector<6x6xi32>
      %919 = arith.cmpi eq, %103, %918 : vector<6x6xi32>
      %920 = vector.shape_cast %905 : vector<1x6xf32> to vector<1x6xf32>
      %921 = vector.broadcast %920 : vector<1x6xf32> to vector<6x6xf32>
      %922 = arith.select %919, %921, %913 : vector<6x6xi1>, vector<6x6xf32>
      %923 = vector.shape_cast %908 : vector<1x6xf32> to vector<1x6xf32>
      %924 = vector.broadcast %923 : vector<1x6xf32> to vector<6x6xf32>
      %925 = arith.select %919, %924, %917 : vector<6x6xi1>, vector<6x6xf32>
      %926 = vector.extract_strided_slice %922 {offsets = [2, 2], sizes = [1, 1], strides = [1, 1]} : vector<6x6xf32> to vector<1x1xf32>
      %cst_347 = arith.constant 1.000000e+00 : f32
      %927 = vector.broadcast %cst_347 : f32 to vector<1x1xf32>
      %928 = arith.divf %927, %926 : vector<1x1xf32>
      %929 = vector.extract_strided_slice %922 {offsets = [2, 0], sizes = [1, 6], strides = [1, 1]} : vector<6x6xf32> to vector<1x6xf32>
      %930 = vector.broadcast %928 : vector<1x1xf32> to vector<1x6xf32>
      %931 = arith.mulf %929, %930 : vector<1x6xf32>
      %932 = vector.extract_strided_slice %925 {offsets = [2, 0], sizes = [1, 6], strides = [1, 1]} : vector<6x6xf32> to vector<1x6xf32>
      %933 = vector.broadcast %928 : vector<1x1xf32> to vector<1x6xf32>
      %934 = arith.mulf %932, %933 : vector<1x6xf32>
      %935 = vector.extract_strided_slice %922 {offsets = [0, 2], sizes = [6, 1], strides = [1, 1]} : vector<6x6xf32> to vector<6x1xf32>
      %936 = vector.broadcast %935 : vector<6x1xf32> to vector<6x6xf32>
      %937 = vector.broadcast %931 : vector<1x6xf32> to vector<6x6xf32>
      %938 = arith.mulf %936, %937 : vector<6x6xf32>
      %939 = arith.subf %922, %938 : vector<6x6xf32>
      %940 = vector.broadcast %935 : vector<6x1xf32> to vector<6x6xf32>
      %941 = vector.broadcast %934 : vector<1x6xf32> to vector<6x6xf32>
      %942 = arith.mulf %940, %941 : vector<6x6xf32>
      %943 = arith.subf %925, %942 : vector<6x6xf32>
      %c2_i32_348 = arith.constant 2 : i32
      %944 = vector.broadcast %c2_i32_348 : i32 to vector<6x6xi32>
      %945 = arith.cmpi eq, %103, %944 : vector<6x6xi32>
      %946 = vector.shape_cast %931 : vector<1x6xf32> to vector<1x6xf32>
      %947 = vector.broadcast %946 : vector<1x6xf32> to vector<6x6xf32>
      %948 = arith.select %945, %947, %939 : vector<6x6xi1>, vector<6x6xf32>
      %949 = vector.shape_cast %934 : vector<1x6xf32> to vector<1x6xf32>
      %950 = vector.broadcast %949 : vector<1x6xf32> to vector<6x6xf32>
      %951 = arith.select %945, %950, %943 : vector<6x6xi1>, vector<6x6xf32>
      %952 = vector.extract_strided_slice %948 {offsets = [3, 3], sizes = [1, 1], strides = [1, 1]} : vector<6x6xf32> to vector<1x1xf32>
      %cst_349 = arith.constant 1.000000e+00 : f32
      %953 = vector.broadcast %cst_349 : f32 to vector<1x1xf32>
      %954 = arith.divf %953, %952 : vector<1x1xf32>
      %955 = vector.extract_strided_slice %948 {offsets = [3, 0], sizes = [1, 6], strides = [1, 1]} : vector<6x6xf32> to vector<1x6xf32>
      %956 = vector.broadcast %954 : vector<1x1xf32> to vector<1x6xf32>
      %957 = arith.mulf %955, %956 : vector<1x6xf32>
      %958 = vector.extract_strided_slice %951 {offsets = [3, 0], sizes = [1, 6], strides = [1, 1]} : vector<6x6xf32> to vector<1x6xf32>
      %959 = vector.broadcast %954 : vector<1x1xf32> to vector<1x6xf32>
      %960 = arith.mulf %958, %959 : vector<1x6xf32>
      %961 = vector.extract_strided_slice %948 {offsets = [0, 3], sizes = [6, 1], strides = [1, 1]} : vector<6x6xf32> to vector<6x1xf32>
      %962 = vector.broadcast %961 : vector<6x1xf32> to vector<6x6xf32>
      %963 = vector.broadcast %957 : vector<1x6xf32> to vector<6x6xf32>
      %964 = arith.mulf %962, %963 : vector<6x6xf32>
      %965 = arith.subf %948, %964 : vector<6x6xf32>
      %966 = vector.broadcast %961 : vector<6x1xf32> to vector<6x6xf32>
      %967 = vector.broadcast %960 : vector<1x6xf32> to vector<6x6xf32>
      %968 = arith.mulf %966, %967 : vector<6x6xf32>
      %969 = arith.subf %951, %968 : vector<6x6xf32>
      %c3_i32_350 = arith.constant 3 : i32
      %970 = vector.broadcast %c3_i32_350 : i32 to vector<6x6xi32>
      %971 = arith.cmpi eq, %103, %970 : vector<6x6xi32>
      %972 = vector.shape_cast %957 : vector<1x6xf32> to vector<1x6xf32>
      %973 = vector.broadcast %972 : vector<1x6xf32> to vector<6x6xf32>
      %974 = arith.select %971, %973, %965 : vector<6x6xi1>, vector<6x6xf32>
      %975 = vector.shape_cast %960 : vector<1x6xf32> to vector<1x6xf32>
      %976 = vector.broadcast %975 : vector<1x6xf32> to vector<6x6xf32>
      %977 = arith.select %971, %976, %969 : vector<6x6xi1>, vector<6x6xf32>
      %978 = vector.extract_strided_slice %974 {offsets = [4, 4], sizes = [1, 1], strides = [1, 1]} : vector<6x6xf32> to vector<1x1xf32>
      %cst_351 = arith.constant 1.000000e+00 : f32
      %979 = vector.broadcast %cst_351 : f32 to vector<1x1xf32>
      %980 = arith.divf %979, %978 : vector<1x1xf32>
      %981 = vector.extract_strided_slice %974 {offsets = [4, 0], sizes = [1, 6], strides = [1, 1]} : vector<6x6xf32> to vector<1x6xf32>
      %982 = vector.broadcast %980 : vector<1x1xf32> to vector<1x6xf32>
      %983 = arith.mulf %981, %982 : vector<1x6xf32>
      %984 = vector.extract_strided_slice %977 {offsets = [4, 0], sizes = [1, 6], strides = [1, 1]} : vector<6x6xf32> to vector<1x6xf32>
      %985 = vector.broadcast %980 : vector<1x1xf32> to vector<1x6xf32>
      %986 = arith.mulf %984, %985 : vector<1x6xf32>
      %987 = vector.extract_strided_slice %974 {offsets = [0, 4], sizes = [6, 1], strides = [1, 1]} : vector<6x6xf32> to vector<6x1xf32>
      %988 = vector.broadcast %987 : vector<6x1xf32> to vector<6x6xf32>
      %989 = vector.broadcast %983 : vector<1x6xf32> to vector<6x6xf32>
      %990 = arith.mulf %988, %989 : vector<6x6xf32>
      %991 = arith.subf %974, %990 : vector<6x6xf32>
      %992 = vector.broadcast %987 : vector<6x1xf32> to vector<6x6xf32>
      %993 = vector.broadcast %986 : vector<1x6xf32> to vector<6x6xf32>
      %994 = arith.mulf %992, %993 : vector<6x6xf32>
      %995 = arith.subf %977, %994 : vector<6x6xf32>
      %c4_i32 = arith.constant 4 : i32
      %996 = vector.broadcast %c4_i32 : i32 to vector<6x6xi32>
      %997 = arith.cmpi eq, %103, %996 : vector<6x6xi32>
      %998 = vector.shape_cast %983 : vector<1x6xf32> to vector<1x6xf32>
      %999 = vector.broadcast %998 : vector<1x6xf32> to vector<6x6xf32>
      %1000 = arith.select %997, %999, %991 : vector<6x6xi1>, vector<6x6xf32>
      %1001 = vector.shape_cast %986 : vector<1x6xf32> to vector<1x6xf32>
      %1002 = vector.broadcast %1001 : vector<1x6xf32> to vector<6x6xf32>
      %1003 = arith.select %997, %1002, %995 : vector<6x6xi1>, vector<6x6xf32>
      %1004 = vector.extract_strided_slice %1000 {offsets = [5, 5], sizes = [1, 1], strides = [1, 1]} : vector<6x6xf32> to vector<1x1xf32>
      %cst_352 = arith.constant 1.000000e+00 : f32
      %1005 = vector.broadcast %cst_352 : f32 to vector<1x1xf32>
      %1006 = arith.divf %1005, %1004 : vector<1x1xf32>
      %1007 = vector.extract_strided_slice %1003 {offsets = [5, 0], sizes = [1, 6], strides = [1, 1]} : vector<6x6xf32> to vector<1x6xf32>
      %1008 = vector.broadcast %1006 : vector<1x1xf32> to vector<1x6xf32>
      %1009 = arith.mulf %1007, %1008 : vector<1x6xf32>
      %1010 = vector.extract_strided_slice %1000 {offsets = [0, 5], sizes = [6, 1], strides = [1, 1]} : vector<6x6xf32> to vector<6x1xf32>
      %1011 = vector.broadcast %1010 : vector<6x1xf32> to vector<6x6xf32>
      %1012 = vector.broadcast %1009 : vector<1x6xf32> to vector<6x6xf32>
      %1013 = arith.mulf %1011, %1012 : vector<6x6xf32>
      %1014 = arith.subf %1003, %1013 : vector<6x6xf32>
      %c5_i32 = arith.constant 5 : i32
      %1015 = vector.broadcast %c5_i32 : i32 to vector<6x6xi32>
      %1016 = arith.cmpi eq, %103, %1015 : vector<6x6xi32>
      %1017 = vector.shape_cast %1009 : vector<1x6xf32> to vector<1x6xf32>
      %1018 = vector.broadcast %1017 : vector<1x6xf32> to vector<6x6xf32>
      %1019 = arith.select %1016, %1018, %1014 : vector<6x6xi1>, vector<6x6xf32>
      %cst_353 = arith.constant dense<0.000000e+00> : vector<18x6xf32>
      %1020 = tpu.matmul %871, %1019, %cst_353 {dimension_numbers = #tpu.dot_dimension_numbers<[1], [0], [0], [1], [0, 0, 1, 1], [], []>} : vector<18x6xf32>, vector<6x6xf32>, vector<18x6xf32> -> vector<18x6xf32>
      %1021 = vector.extract_strided_slice %1020 {offsets = [0, 0], sizes = [18, 3], strides = [1, 1]} : vector<18x6xf32> to vector<18x3xf32>
      %cst_354 = arith.constant dense<0.000000e+00> : vector<18x1xf32>
      %1022 = tpu.matmul %1021, %805, %cst_354 {dimension_numbers = #tpu.dot_dimension_numbers<[1], [0], [0], [1], [0, 0, 1, 1], [], []>} : vector<18x3xf32>, vector<3x1xf32>, vector<18x1xf32> -> vector<18x1xf32>
      %1023 = vector.extract_strided_slice %1020 {offsets = [0, 3], sizes = [18, 3], strides = [1, 1]} : vector<18x6xf32> to vector<18x3xf32>
      %cst_355 = arith.constant dense<0.000000e+00> : vector<18x1xf32>
      %1024 = tpu.matmul %1023, %811, %cst_355 {dimension_numbers = #tpu.dot_dimension_numbers<[1], [0], [0], [1], [0, 0, 1, 1], [], []>} : vector<18x3xf32>, vector<3x1xf32>, vector<18x1xf32> -> vector<18x1xf32>
      %1025 = arith.addf %1022, %1024 : vector<18x1xf32>
      %cst_356 = arith.constant dense<0.000000e+00> : vector<18x18xf32>
      %1026 = tpu.matmul %1020, %869, %cst_356 {dimension_numbers = #tpu.dot_dimension_numbers<[1], [0], [0], [1], [0, 0, 1, 1], [], []>} : vector<18x6xf32>, vector<6x18xf32>, vector<18x18xf32> -> vector<18x18xf32>
      %1027 = arith.subf %14, %1026 : vector<18x18xf32>
      %cst_357 = arith.constant dense<0.000000e+00> : vector<18x18xf32>
      %1028 = tpu.matmul %1027, %677, %cst_357 {dimension_numbers = #tpu.dot_dimension_numbers<[1], [0], [0], [1], [0, 0, 1, 1], [], []>} : vector<18x18xf32>, vector<18x18xf32>, vector<18x18xf32> -> vector<18x18xf32>
      %1029 = vector.extract_strided_slice %1025 {offsets = [0, 0], sizes = [3, 1], strides = [1, 1]} : vector<18x1xf32> to vector<3x1xf32>
      %1030 = arith.addf %163, %1029 : vector<3x1xf32>
      %1031 = vector.extract_strided_slice %1025 {offsets = [3, 0], sizes = [3, 1], strides = [1, 1]} : vector<18x1xf32> to vector<3x1xf32>
      %1032 = vector.extract_strided_slice %1031 {offsets = [0, 0], sizes = [1, 1], strides = [1, 1]} : vector<3x1xf32> to vector<1x1xf32>
      %1033 = vector.broadcast %1032 : vector<1x1xf32> to vector<3x3xf32>
      %1034 = arith.mulf %1033, %33 : vector<3x3xf32>
      %1035 = vector.extract_strided_slice %1031 {offsets = [1, 0], sizes = [1, 1], strides = [1, 1]} : vector<3x1xf32> to vector<1x1xf32>
      %1036 = vector.broadcast %1035 : vector<1x1xf32> to vector<3x3xf32>
      %1037 = arith.mulf %1036, %50 : vector<3x3xf32>
      %1038 = arith.addf %1034, %1037 : vector<3x3xf32>
      %1039 = vector.extract_strided_slice %1031 {offsets = [2, 0], sizes = [1, 1], strides = [1, 1]} : vector<3x1xf32> to vector<1x1xf32>
      %1040 = vector.broadcast %1039 : vector<1x1xf32> to vector<3x3xf32>
      %1041 = arith.mulf %1040, %67 : vector<3x3xf32>
      %1042 = arith.addf %1038, %1041 : vector<3x3xf32>
      %1043 = vector.extract_strided_slice %1031 {offsets = [0, 0], sizes = [1, 1], strides = [1, 1]} : vector<3x1xf32> to vector<1x1xf32>
      %1044 = vector.extract_strided_slice %1031 {offsets = [0, 0], sizes = [1, 1], strides = [1, 1]} : vector<3x1xf32> to vector<1x1xf32>
      %1045 = arith.mulf %1043, %1044 : vector<1x1xf32>
      %1046 = vector.extract_strided_slice %1031 {offsets = [1, 0], sizes = [1, 1], strides = [1, 1]} : vector<3x1xf32> to vector<1x1xf32>
      %1047 = vector.extract_strided_slice %1031 {offsets = [1, 0], sizes = [1, 1], strides = [1, 1]} : vector<3x1xf32> to vector<1x1xf32>
      %1048 = arith.mulf %1046, %1047 : vector<1x1xf32>
      %1049 = arith.addf %1045, %1048 : vector<1x1xf32>
      %1050 = vector.extract_strided_slice %1031 {offsets = [2, 0], sizes = [1, 1], strides = [1, 1]} : vector<3x1xf32> to vector<1x1xf32>
      %1051 = vector.extract_strided_slice %1031 {offsets = [2, 0], sizes = [1, 1], strides = [1, 1]} : vector<3x1xf32> to vector<1x1xf32>
      %1052 = arith.mulf %1050, %1051 : vector<1x1xf32>
      %1053 = arith.addf %1049, %1052 : vector<1x1xf32>
      %1054 = math.sqrt %1053 : vector<1x1xf32>
      %cst_358 = arith.constant 9.99999997E-7 : f32
      %1055 = vector.broadcast %cst_358 : f32 to vector<1x1xf32>
      %1056 = arith.cmpf olt, %1054, %1055 : vector<1x1xf32>
      %cst_359 = arith.constant 1.000000e+00 : f32
      %1057 = vector.broadcast %cst_359 : f32 to vector<1x1xf32>
      %1058 = arith.select %1056, %1057, %1054 : vector<1x1xi1>, vector<1x1xf32>
      %cst_360 = arith.constant 6.000000e+00 : f32
      %1059 = vector.broadcast %cst_360 : f32 to vector<1x1xf32>
      %1060 = arith.divf %1053, %1059 : vector<1x1xf32>
      %cst_361 = arith.constant 1.000000e+00 : f32
      %1061 = vector.broadcast %cst_361 : f32 to vector<1x1xf32>
      %1062 = arith.subf %1061, %1060 : vector<1x1xf32>
      %1063 = math.sin %1058 : vector<1x1xf32>
      %1064 = arith.divf %1063, %1058 : vector<1x1xf32>
      %1065 = arith.select %1056, %1062, %1064 : vector<1x1xi1>, vector<1x1xf32>
      %cst_362 = arith.constant 2.400000e+01 : f32
      %1066 = vector.broadcast %cst_362 : f32 to vector<1x1xf32>
      %1067 = arith.divf %1053, %1066 : vector<1x1xf32>
      %cst_363 = arith.constant 5.000000e-01 : f32
      %1068 = vector.broadcast %cst_363 : f32 to vector<1x1xf32>
      %1069 = arith.subf %1068, %1067 : vector<1x1xf32>
      %1070 = math.cos %1058 : vector<1x1xf32>
      %cst_364 = arith.constant 1.000000e+00 : f32
      %1071 = vector.broadcast %cst_364 : f32 to vector<1x1xf32>
      %1072 = arith.subf %1071, %1070 : vector<1x1xf32>
      %1073 = arith.mulf %1058, %1058 : vector<1x1xf32>
      %1074 = arith.divf %1072, %1073 : vector<1x1xf32>
      %1075 = arith.select %1056, %1069, %1074 : vector<1x1xi1>, vector<1x1xf32>
      %1076 = vector.broadcast %1065 : vector<1x1xf32> to vector<3x3xf32>
      %1077 = arith.mulf %1076, %1042 : vector<3x3xf32>
      %1078 = arith.addf %4, %1077 : vector<3x3xf32>
      %cst_365 = arith.constant dense<0.000000e+00> : vector<3x3xf32>
      %1079 = tpu.matmul %1042, %1042, %cst_365 {dimension_numbers = #tpu.dot_dimension_numbers<[1], [0], [0], [1], [0, 0, 1, 1], [], []>} : vector<3x3xf32>, vector<3x3xf32>, vector<3x3xf32> -> vector<3x3xf32>
      %1080 = vector.broadcast %1075 : vector<1x1xf32> to vector<3x3xf32>
      %1081 = arith.mulf %1080, %1079 : vector<3x3xf32>
      %1082 = arith.addf %1078, %1081 : vector<3x3xf32>
      %cst_366 = arith.constant dense<0.000000e+00> : vector<3x3xf32>
      %1083 = tpu.matmul %691, %1082, %cst_366 {dimension_numbers = #tpu.dot_dimension_numbers<[1], [0], [0], [1], [0, 0, 1, 1], [], []>} : vector<3x3xf32>, vector<3x3xf32>, vector<3x3xf32> -> vector<3x3xf32>
      %1084 = vector.extract_strided_slice %1025 {offsets = [6, 0], sizes = [3, 1], strides = [1, 1]} : vector<18x1xf32> to vector<3x1xf32>
      %1085 = arith.addf %702, %1084 : vector<3x1xf32>
      %1086 = vector.extract_strided_slice %1025 {offsets = [9, 0], sizes = [3, 1], strides = [1, 1]} : vector<18x1xf32> to vector<3x1xf32>
      %1087 = arith.addf %708, %1086 : vector<3x1xf32>
      %1088 = vector.extract_strided_slice %1025 {offsets = [12, 0], sizes = [3, 1], strides = [1, 1]} : vector<18x1xf32> to vector<3x1xf32>
      %1089 = arith.addf %165, %1088 : vector<3x1xf32>
      %1090 = vector.extract_strided_slice %1025 {offsets = [15, 0], sizes = [3, 1], strides = [1, 1]} : vector<18x1xf32> to vector<3x1xf32>
      %1091 = arith.addf %166, %1090 : vector<3x1xf32>
      %1092 = tpu.transpose %1083, [1, 0] : vector<3x3xf32> -> vector<3x3xf32>
      %1093 = vector.extract_strided_slice %161 {offsets = [0, 0], sizes = [3, 3], strides = [1, 1]} : vector<4x4xf32> to vector<3x3xf32>
      %cst_367 = arith.constant dense<0.000000e+00> : vector<3x3xf32>
      %1094 = tpu.matmul %1092, %1093, %cst_367 {dimension_numbers = #tpu.dot_dimension_numbers<[1], [0], [0], [1], [0, 0, 1, 1], [], []>} : vector<3x3xf32>, vector<3x3xf32>, vector<3x3xf32> -> vector<3x3xf32>
      %1095 = vector.extract_strided_slice %161 {offsets = [0, 3], sizes = [3, 1], strides = [1, 1]} : vector<4x4xf32> to vector<3x1xf32>
      %1096 = arith.subf %1095, %1085 : vector<3x1xf32>
      %cst_368 = arith.constant dense<0.000000e+00> : vector<3x1xf32>
      %1097 = tpu.matmul %1092, %1096, %cst_368 {dimension_numbers = #tpu.dot_dimension_numbers<[1], [0], [0], [1], [0, 0, 1, 1], [], []>} : vector<3x3xf32>, vector<3x1xf32>, vector<3x1xf32> -> vector<3x1xf32>
      %cst_369 = arith.constant dense<0.000000e+00> : vector<3x1xf32>
      %1098 = tpu.matmul %1092, %1030, %cst_369 {dimension_numbers = #tpu.dot_dimension_numbers<[1], [0], [0], [1], [0, 0, 1, 1], [], []>} : vector<3x3xf32>, vector<3x1xf32>, vector<3x1xf32> -> vector<3x1xf32>
      %c0_370 = arith.constant 0 : index
      %c0_371 = arith.constant 0 : index
      %1099 = vector.load %arg25[%c0_370, %c0_371] : memref<18x18xf32, #tpu.memory_space<vmem>>, vector<3x3xf32>
      tpu.vector_store %arg25[%c0_370, %c0_371], %1092 {strides = array<i32>} : memref<18x18xf32, #tpu.memory_space<vmem>>, vector<3x3xf32>,
      %1100 = vector.extract_strided_slice %1098 {offsets = [0, 0], sizes = [1, 1], strides = [1, 1]} : vector<3x1xf32> to vector<1x1xf32>
      %1101 = vector.broadcast %1100 : vector<1x1xf32> to vector<3x3xf32>
      %1102 = arith.mulf %1101, %33 : vector<3x3xf32>
      %1103 = vector.extract_strided_slice %1098 {offsets = [1, 0], sizes = [1, 1], strides = [1, 1]} : vector<3x1xf32> to vector<1x1xf32>
      %1104 = vector.broadcast %1103 : vector<1x1xf32> to vector<3x3xf32>
      %1105 = arith.mulf %1104, %50 : vector<3x3xf32>
      %1106 = arith.addf %1102, %1105 : vector<3x3xf32>
      %1107 = vector.extract_strided_slice %1098 {offsets = [2, 0], sizes = [1, 1], strides = [1, 1]} : vector<3x1xf32> to vector<1x1xf32>
      %1108 = vector.broadcast %1107 : vector<1x1xf32> to vector<3x3xf32>
      %1109 = arith.mulf %1108, %67 : vector<3x3xf32>
      %1110 = arith.addf %1106, %1109 : vector<3x3xf32>
      %c0_372 = arith.constant 0 : index
      %c3_373 = arith.constant 3 : index
      %1111 = vector.load %arg25[%c0_372, %c3_373] : memref<18x18xf32, #tpu.memory_space<vmem>>, vector<3x3xf32>
      tpu.vector_store %arg25[%c0_372, %c3_373], %1110 {strides = array<i32>} : memref<18x18xf32, #tpu.memory_space<vmem>>, vector<3x3xf32>,
      %c0_374 = arith.constant 0 : index
      %c0_375 = arith.constant 0 : index
      %1112 = vector.load %arg25[%c0_374, %c0_375] : memref<18x18xf32, #tpu.memory_space<vmem>>, vector<18x18xf32>
      %cst_376 = arith.constant dense<0.000000e+00> : vector<18x18xf32>
      %1113 = tpu.matmul %1112, %1028, %cst_376 {dimension_numbers = #tpu.dot_dimension_numbers<[1], [0], [0], [1], [0, 0, 1, 1], [], []>} : vector<18x18xf32>, vector<18x18xf32>, vector<18x18xf32> -> vector<18x18xf32>
      %1114 = tpu.transpose %1112, [1, 0] : vector<18x18xf32> -> vector<18x18xf32>
      %cst_377 = arith.constant dense<0.000000e+00> : vector<18x18xf32>
      %1115 = tpu.matmul %1113, %1114, %cst_377 {dimension_numbers = #tpu.dot_dimension_numbers<[1], [0], [0], [1], [0, 0, 1, 1], [], []>} : vector<18x18xf32>, vector<18x18xf32>, vector<18x18xf32> -> vector<18x18xf32>
      %1116 = arith.mulf %1115, %85 : vector<18x18xf32>
      %1117 = tpu.transpose %1116, [1, 0] : vector<18x18xf32> -> vector<18x18xf32>
      %1118 = arith.mulf %1117, %87 : vector<18x18xf32>
      %1119 = arith.addf %1116, %1118 : vector<18x18xf32>
      %c0_378 = arith.constant 0 : index
      %c0_379 = arith.constant 0 : index
      %1120 = vector.load %arg15[%c0_378, %c0_379] : memref<4x4xf32, #tpu.memory_space<vmem>>, vector<3x3xf32>
      tpu.vector_store %arg15[%c0_378, %c0_379], %1094 {strides = array<i32>} : memref<4x4xf32, #tpu.memory_space<vmem>>, vector<3x3xf32>,
      %c0_380 = arith.constant 0 : index
      %c3_381 = arith.constant 3 : index
      %1121 = vector.load %arg15[%c0_380, %c3_381] : memref<4x4xf32, #tpu.memory_space<vmem>>, vector<3x1xf32>
      tpu.vector_store %arg15[%c0_380, %c3_381], %1097 {strides = array<i32>} : memref<4x4xf32, #tpu.memory_space<vmem>>, vector<3x1xf32>,
      %c0_382 = arith.constant 0 : index
      %c0_383 = arith.constant 0 : index
      %1122 = vector.load %arg16[%c0_382, %c0_383] : memref<18x18xf32, #tpu.memory_space<vmem>>, vector<18x18xf32>
      tpu.vector_store %arg16[%c0_382, %c0_383], %1119 {strides = array<i32>} : memref<18x18xf32, #tpu.memory_space<vmem>>, vector<18x18xf32>,
      %c0_384 = arith.constant 0 : index
      %c0_385 = arith.constant 0 : index
      %1123 = vector.load %arg17[%c0_384, %c0_385] : memref<3x1xf32, #tpu.memory_space<vmem>>, vector<3x1xf32>
      tpu.vector_store %arg17[%c0_384, %c0_385], %1098 {strides = array<i32>} : memref<3x1xf32, #tpu.memory_space<vmem>>, vector<3x1xf32>,
      %c0_386 = arith.constant 0 : index
      %c0_387 = arith.constant 0 : index
      %1124 = vector.load %arg18[%c0_386, %c0_387] : memref<3x1xf32, #tpu.memory_space<vmem>>, vector<3x1xf32>
      tpu.vector_store %arg18[%c0_386, %c0_387], %1087 {strides = array<i32>} : memref<3x1xf32, #tpu.memory_space<vmem>>, vector<3x1xf32>,
      %c0_388 = arith.constant 0 : index
      %c0_389 = arith.constant 0 : index
      %1125 = vector.load %arg19[%c0_388, %c0_389] : memref<3x1xf32, #tpu.memory_space<vmem>>, vector<3x1xf32>
      tpu.vector_store %arg19[%c0_388, %c0_389], %1089 {strides = array<i32>} : memref<3x1xf32, #tpu.memory_space<vmem>>, vector<3x1xf32>,
      %c0_390 = arith.constant 0 : index
      %c0_391 = arith.constant 0 : index
      %1126 = vector.load %arg20[%c0_390, %c0_391] : memref<3x1xf32, #tpu.memory_space<vmem>>, vector<3x1xf32>
      tpu.vector_store %arg20[%c0_390, %c0_391], %1091 {strides = array<i32>} : memref<3x1xf32, #tpu.memory_space<vmem>>, vector<3x1xf32>,
      %1127 = vector.broadcast %1098 : vector<3x1xf32> to vector<3x3xf32>
      %1128 = arith.mulf %1127, %4 : vector<3x3xf32>
      %cst_392 = arith.constant dense<0.000000e+00> : vector<3xf32>
      %1129 = vector.multi_reduction <add>, %1128, %cst_392 [0] : vector<3x3xf32> to vector<3xf32>
      %1130 = vector.shape_cast %1129 : vector<3xf32> to vector<1x3xf32>
      %c0_393 = arith.constant 0 : index
      %c0_394 = arith.constant 0 : index
      %1131 = vector.load %arg26[%c0_393, %c0_394] : memref<1x24xf32, #tpu.memory_space<vmem>>, vector<1x3xf32>
      tpu.vector_store %arg26[%c0_393, %c0_394], %1130 {strides = array<i32>} : memref<1x24xf32, #tpu.memory_space<vmem>>, vector<1x3xf32>,
      %1132 = vector.extract_strided_slice %1083 {offsets = [0, 0], sizes = [1, 3], strides = [1, 1]} : vector<3x3xf32> to vector<1x3xf32>
      %c0_395 = arith.constant 0 : index
      %c3_396 = arith.constant 3 : index
      %1133 = vector.load %arg26[%c0_395, %c3_396] : memref<1x24xf32, #tpu.memory_space<vmem>>, vector<1x3xf32>
      tpu.vector_store %arg26[%c0_395, %c3_396], %1132 {strides = array<i32>} : memref<1x24xf32, #tpu.memory_space<vmem>>, vector<1x3xf32>,
      %1134 = vector.extract_strided_slice %1083 {offsets = [1, 0], sizes = [1, 3], strides = [1, 1]} : vector<3x3xf32> to vector<1x3xf32>
      %c0_397 = arith.constant 0 : index
      %c6_398 = arith.constant 6 : index
      %1135 = vector.load %arg26[%c0_397, %c6_398] : memref<1x24xf32, #tpu.memory_space<vmem>>, vector<1x3xf32>
      tpu.vector_store %arg26[%c0_397, %c6_398], %1134 {strides = array<i32>} : memref<1x24xf32, #tpu.memory_space<vmem>>, vector<1x3xf32>,
      %1136 = vector.extract_strided_slice %1083 {offsets = [2, 0], sizes = [1, 3], strides = [1, 1]} : vector<3x3xf32> to vector<1x3xf32>
      %c0_399 = arith.constant 0 : index
      %c9_400 = arith.constant 9 : index
      %1137 = vector.load %arg26[%c0_399, %c9_400] : memref<1x24xf32, #tpu.memory_space<vmem>>, vector<1x3xf32>
      tpu.vector_store %arg26[%c0_399, %c9_400], %1136 {strides = array<i32>} : memref<1x24xf32, #tpu.memory_space<vmem>>, vector<1x3xf32>,
      %1138 = vector.broadcast %1085 : vector<3x1xf32> to vector<3x3xf32>
      %1139 = arith.mulf %1138, %4 : vector<3x3xf32>
      %cst_401 = arith.constant dense<0.000000e+00> : vector<3xf32>
      %1140 = vector.multi_reduction <add>, %1139, %cst_401 [0] : vector<3x3xf32> to vector<3xf32>
      %1141 = vector.shape_cast %1140 : vector<3xf32> to vector<1x3xf32>
      %c0_402 = arith.constant 0 : index
      %c12_403 = arith.constant 12 : index
      %1142 = vector.load %arg26[%c0_402, %c12_403] : memref<1x24xf32, #tpu.memory_space<vmem>>, vector<1x3xf32>
      tpu.vector_store %arg26[%c0_402, %c12_403], %1141 {strides = array<i32>} : memref<1x24xf32, #tpu.memory_space<vmem>>, vector<1x3xf32>,
      %1143 = vector.broadcast %1087 : vector<3x1xf32> to vector<3x3xf32>
      %1144 = arith.mulf %1143, %4 : vector<3x3xf32>
      %cst_404 = arith.constant dense<0.000000e+00> : vector<3xf32>
      %1145 = vector.multi_reduction <add>, %1144, %cst_404 [0] : vector<3x3xf32> to vector<3xf32>
      %1146 = vector.shape_cast %1145 : vector<3xf32> to vector<1x3xf32>
      %c0_405 = arith.constant 0 : index
      %c15_406 = arith.constant 15 : index
      %1147 = vector.load %arg26[%c0_405, %c15_406] : memref<1x24xf32, #tpu.memory_space<vmem>>, vector<1x3xf32>
      tpu.vector_store %arg26[%c0_405, %c15_406], %1146 {strides = array<i32>} : memref<1x24xf32, #tpu.memory_space<vmem>>, vector<1x3xf32>,
      %1148 = vector.broadcast %1089 : vector<3x1xf32> to vector<3x3xf32>
      %1149 = arith.mulf %1148, %4 : vector<3x3xf32>
      %cst_407 = arith.constant dense<0.000000e+00> : vector<3xf32>
      %1150 = vector.multi_reduction <add>, %1149, %cst_407 [0] : vector<3x3xf32> to vector<3xf32>
      %1151 = vector.shape_cast %1150 : vector<3xf32> to vector<1x3xf32>
      %c0_408 = arith.constant 0 : index
      %c18 = arith.constant 18 : index
      %1152 = vector.load %arg26[%c0_408, %c18] : memref<1x24xf32, #tpu.memory_space<vmem>>, vector<1x3xf32>
      tpu.vector_store %arg26[%c0_408, %c18], %1151 {strides = array<i32>} : memref<1x24xf32, #tpu.memory_space<vmem>>, vector<1x3xf32>,
      %1153 = vector.broadcast %1091 : vector<3x1xf32> to vector<3x3xf32>
      %1154 = arith.mulf %1153, %4 : vector<3x3xf32>
      %cst_409 = arith.constant dense<0.000000e+00> : vector<3xf32>
      %1155 = vector.multi_reduction <add>, %1154, %cst_409 [0] : vector<3x3xf32> to vector<3xf32>
      %1156 = vector.shape_cast %1155 : vector<3xf32> to vector<1x3xf32>
      %c0_410 = arith.constant 0 : index
      %c21 = arith.constant 21 : index
      %1157 = vector.load %arg26[%c0_410, %c21] : memref<1x24xf32, #tpu.memory_space<vmem>>, vector<1x3xf32>
      tpu.vector_store %arg26[%c0_410, %c21], %1156 {strides = array<i32>} : memref<1x24xf32, #tpu.memory_space<vmem>>, vector<1x3xf32>,
      %c0_411 = arith.constant 0 : index
      %c0_412 = arith.constant 0 : index
      %1158 = vector.load %arg15[%c0_411, %c0_412] : memref<4x4xf32, #tpu.memory_space<vmem>>, vector<4x4xf32>
      %c0_413 = arith.constant 0 : index
      %1159 = arith.index_cast %arg27 : i32 to index
      %c0_414 = arith.constant 0 : index
      %c0_415 = arith.constant 0 : index
      %1160 = vector.load %arg12[%c0_413, %1159, %c0_414, %c0_415] : memref<1x3x4x4xf32, #tpu.memory_space<vmem>>, vector<1x1x4x4xf32>
      %1161 = vector.shape_cast %1160 : vector<1x1x4x4xf32> to vector<4x4xf32>
      %1162 = vector.shape_cast %1158 : vector<4x4xf32> to vector<1x1x4x4xf32>
      tpu.vector_store %arg12[%c0_413, %1159, %c0_414, %c0_415], %1162 {strides = array<i32>} : memref<1x3x4x4xf32, #tpu.memory_space<vmem>>, vector<1x1x4x4xf32>,
      %c0_416 = arith.constant 0 : index
      %c0_417 = arith.constant 0 : index
      %1163 = vector.load %arg26[%c0_416, %c0_417] : memref<1x24xf32, #tpu.memory_space<vmem>>, vector<1x24xf32>
      %c0_418 = arith.constant 0 : index
      %1164 = arith.index_cast %arg27 : i32 to index
      %c0_419 = arith.constant 0 : index
      %c0_420 = arith.constant 0 : index
      %1165 = vector.load %arg13[%c0_418, %1164, %c0_419, %c0_420] : memref<1x3x1x24xf32, #tpu.memory_space<vmem>>, vector<1x1x1x24xf32>
      %1166 = vector.shape_cast %1165 : vector<1x1x1x24xf32> to vector<1x24xf32>
      %1167 = vector.shape_cast %1163 : vector<1x24xf32> to vector<1x1x1x24xf32>
      tpu.vector_store %arg13[%c0_418, %1164, %c0_419, %c0_420], %1167 {strides = array<i32>} : memref<1x3x1x24xf32, #tpu.memory_space<vmem>>, vector<1x1x1x24xf32>,
      %c0_421 = arith.constant 0 : index
      %1168 = arith.index_cast %arg27 : i32 to index
      %c0_422 = arith.constant 0 : index
      %c0_423 = arith.constant 0 : index
      %1169 = vector.load %arg14[%c0_421, %1168, %c0_422, %c0_423] : memref<1x3x18x18xf32, #tpu.memory_space<vmem>>, vector<1x1x18x18xf32>
      %1170 = vector.shape_cast %1169 : vector<1x1x18x18xf32> to vector<18x18xf32>
      %1171 = vector.shape_cast %1119 : vector<18x18xf32> to vector<1x1x18x18xf32>
      tpu.vector_store %arg14[%c0_421, %1168, %c0_422, %c0_423], %1171 {strides = array<i32>} : memref<1x3x18x18xf32, #tpu.memory_space<vmem>>, vector<1x1x18x18xf32>,
    }
    %c3_i32_85 = arith.constant 3 : i32
    return
  }
  func.func @transform_0(%arg0: i32) -> (i32, i32, i32, i32) {
    %c0_i32 = arith.constant 0 : i32
    %c0_i32_0 = arith.constant 0 : i32
    %c0_i32_1 = arith.constant 0 : i32
    %c0_i32_2 = arith.constant 0 : i32
    return %arg0, %c0_i32, %c0_i32_0, %c0_i32_1 : i32, i32, i32, i32
  }
  func.func @transform_1(%arg0: i32) -> (i32, i32) {
    %c0_i32 = arith.constant 0 : i32
    %c0_i32_0 = arith.constant 0 : i32
    %c0_i32_1 = arith.constant 0 : i32
    return %c0_i32, %c0_i32_0 : i32, i32
  }
  func.func @transform_2(%arg0: i32) -> (i32, i32, i32) {
    %c0_i32 = arith.constant 0 : i32
    %c0_i32_0 = arith.constant 0 : i32
    %c0_i32_1 = arith.constant 0 : i32
    return %arg0, %c0_i32, %c0_i32_0 : i32, i32, i32
  }
  func.func @transform_3(%arg0: i32) -> (i32, i32, i32) {
    %c0_i32 = arith.constant 0 : i32
    %c0_i32_0 = arith.constant 0 : i32
    %c0_i32_1 = arith.constant 0 : i32
    return %arg0, %c0_i32, %c0_i32_0 : i32, i32, i32
  }
  func.func @transform_4(%arg0: i32) -> (i32, i32, i32) {
    %c0_i32 = arith.constant 0 : i32
    %c0_i32_0 = arith.constant 0 : i32
    %c0_i32_1 = arith.constant 0 : i32
    return %arg0, %c0_i32, %c0_i32_0 : i32, i32, i32
  }
  func.func @transform_5(%arg0: i32) -> (i32, i32, i32) {
    %c0_i32 = arith.constant 0 : i32
    %c0_i32_0 = arith.constant 0 : i32
    %c0_i32_1 = arith.constant 0 : i32
    return %arg0, %c0_i32, %c0_i32_0 : i32, i32, i32
  }
  func.func @transform_6(%arg0: i32) -> (i32, i32, i32) {
    %c0_i32 = arith.constant 0 : i32
    %c0_i32_0 = arith.constant 0 : i32
    %c0_i32_1 = arith.constant 0 : i32
    return %arg0, %c0_i32, %c0_i32_0 : i32, i32, i32
  }
  func.func @transform_7(%arg0: i32) -> (i32, i32, i32) {
    %c0_i32 = arith.constant 0 : i32
    %c0_i32_0 = arith.constant 0 : i32
    %c0_i32_1 = arith.constant 0 : i32
    return %arg0, %c0_i32, %c0_i32_0 : i32, i32, i32
  }
  func.func @transform_8(%arg0: i32) -> (i32, i32, i32, i32) {
    %c0_i32 = arith.constant 0 : i32
    %c0_i32_0 = arith.constant 0 : i32
    %c0_i32_1 = arith.constant 0 : i32
    %c0_i32_2 = arith.constant 0 : i32
    return %arg0, %c0_i32, %c0_i32_0, %c0_i32_1 : i32, i32, i32, i32
  }
  func.func @transform_9(%arg0: i32) -> (i32, i32, i32, i32) {
    %c0_i32 = arith.constant 0 : i32
    %c0_i32_0 = arith.constant 0 : i32
    %c0_i32_1 = arith.constant 0 : i32
    %c0_i32_2 = arith.constant 0 : i32
    return %arg0, %c0_i32, %c0_i32_0, %c0_i32_1 : i32, i32, i32, i32
  }
  func.func @transform_10(%arg0: i32) -> (i32, i32, i32) {
    %c0_i32 = arith.constant 0 : i32
    %c0_i32_0 = arith.constant 0 : i32
    %c0_i32_1 = arith.constant 0 : i32
    return %arg0, %c0_i32, %c0_i32_0 : i32, i32, i32
  }
  func.func @transform_11(%arg0: i32) -> (i32, i32, i32, i32) {
    %c0_i32 = arith.constant 0 : i32
    %c0_i32_0 = arith.constant 0 : i32
    %c0_i32_1 = arith.constant 0 : i32
    %c0_i32_2 = arith.constant 0 : i32
    return %arg0, %c0_i32, %c0_i32_0, %c0_i32_1 : i32, i32, i32, i32
  }
  func.func @transform_12(%arg0: i32) -> (i32, i32, i32, i32) {
    %c0_i32 = arith.constant 0 : i32
    %c0_i32_0 = arith.constant 0 : i32
    %c0_i32_1 = arith.constant 0 : i32
    %c0_i32_2 = arith.constant 0 : i32
    return %arg0, %c0_i32, %c0_i32_0, %c0_i32_1 : i32, i32, i32, i32
  }
  func.func @transform_13(%arg0: i32) -> (i32, i32, i32, i32) {
    %c0_i32 = arith.constant 0 : i32
    %c0_i32_0 = arith.constant 0 : i32
    %c0_i32_1 = arith.constant 0 : i32
    %c0_i32_2 = arith.constant 0 : i32
    return %arg0, %c0_i32, %c0_i32_0, %c0_i32_1 : i32, i32, i32, i32
  }
}

</mosaic_0001>

<bundles_post_ra>
// kernel: tpu_custom_call.1
= control target key start
LH: loop header
LB: loop body
LE: loop exit
PB: predicated region body
PF: predicated region fallthrough
CT: control target
= control target key end

     0   :  { %s11063_s0 = inlined_call_operand.vmem [shape: f32[2,3,7,4], index: 0, kind: input, shape index: {}]   ;;  %s11064_s1 = inlined_call_operand.vmem [shape: f32[12,12], index: 1, kind: input, shape index: {}]   ;;  %s11065_s2 = inlined_call_operand.vmem [shape: f32[2,4,4], index: 2, kind: input, shape index: {}]   ;;  %s11066_s3 = inlined_call_operand.vmem [shape: f32[2,18,18], index: 3, kind: input, shape index: {}]   ;;  %s11067_s4 = inlined_call_operand.vmem [shape: f32[2,3,1], index: 4, kind: input, shape index: {}]   ;;  %s11068_s5 = inlined_call_operand.vmem [shape: f32[2,3,1], index: 5, kind: input, shape index: {}]   ;;  %s11069_s6 = inlined_call_operand.vmem [shape: f32[2,3,1], index: 6, kind: input, shape index: {}]   ;;  %s11070_s7 = inlined_call_operand.vmem [shape: f32[2,3,1], index: 7, kind: input, shape index: {}]   ;;  %s11071_s8 = inlined_call_operand.vmem [shape: f32[2,3,6,1], index: 8, kind: input, shape index: {}]   ;;  %s11072_s9 = inlined_call_operand.vmem [shape: f32[2,3,6,6], index: 9, kind: input, shape index: {}]   ;;  %s11073_s10 = inlined_call_operand.vmem [shape: f32[2,4,4], index: 10, kind: input, shape index: {}]   ;;  %s11074_s11 = inlined_call_operand.hbm [shape: f32[2,3,4,4], index: 11, kind: output, shape index: {0}]   ;;  %s11075_s12 = inlined_call_operand.hbm [shape: f32[2,3,1,24], index: 12, kind: output, shape index: {1}]   ;;  %s11076_s13 = inlined_call_operand.vmem [shape: f32[2,3,18,18], index: 13, kind: output, shape index: {2}]  }
   0x1   :  { %11148 = sst [smem:[#allocation48_spill]] %s11065_s2 }
   0x2   :  { %11149 = sst [smem:[#allocation49_spill]] %s11073_s10 }
   0x3   :  { %11150 = sst [smem:[#allocation50_spill]] %s11076_s13 }
   0x4   :  { %19 = vsyncpa [#allocation15], 0 }
   0x5   :  { %21 = vsyncpa [#allocation15 + $0x1], 0 }
   0x6   :  { %22 = vsyncpa [#allocation17], 0 }
   0x7   :  { %24 = vsyncpa [#allocation17 + $0x1], 0  ;;  %s8740_s25 = smov 0   ;;  %s8742_s26 = smov 0  }
   0x8   :  { %s8744_s27 = smov 0   ;;  %s8746_s28 = smov 0  }
   0x9 LB: > { %11151 = sst [smem:[#allocation20_spill]] %s8614_s25  ;;  %s8761_s29 = sadd.s32 4294967295, %s8626_s28   ;;  %s8626_s28 = sphi %s8746_s28, %s11387_s28   ;;  %s8622_s27 = sphi %s8744_s27, %s11390_s27   ;;  %s8618_s26 = sphi %s8742_s26, %s11389_s26   ;;  %s8614_s25 = sphi %s8740_s25, %s11388_s25  }
   0xa   : > { %11152 = sst [smem:[#allocation21_spill]] %s8618_s26  ;;  %s7943_s30 = sadd.s32 4294967294, %s8626_s28  }
   0xb   : > { %11153 = sst [smem:[#allocation22_spill]] %s8622_s27  ;;  %s8765_s14 = sadd.s32 1, %s8626_s28  }
   0xc   : > { %11154 = sst [smem:[#allocation23_spill]] %s8626_s28  ;;  %s318_s15 = sadd.s32 1, %s8622_s27 }
   0xd   : > { %11155 = sst [smem:[#allocation24_spill]] %s8765_s14  ;;  %s315_s16 = ssub.s32 %s8626_s28, %s8765_s14 }
   0xe   : > { %p328_p0 = scmp.ne.s32.totalorder %s8622_s27, %s8618_s26  ;;  %p316_p1 = scmp.eq.s32.totalorder %s315_s16, 0 }
   0xf   : > { %p329_p2 = scmp.eq.s32.totalorder %s8761_s29, 1  ;;  %p334_p3 = scmp.ne.s32.totalorder %s8618_s26, %s8614_s25 }
  0x10   : > { %p335_p4 = scmp.eq.s32.totalorder %s7943_s30, 1  ;;  %p7946_p7 = scmp.ge.s32.totalorder %s8626_s28, 1 }
  0x11   : > { %s8776_s17 = scalar_select %p316_p1, %s8622_s27, %s318_s15  }
  0x12   : > { %p8778_p5 = por %p329_p2, %p328_p0  ;;  %p8782_p6 = por %p335_p4, %p334_p3 }
  0x13   : > { %11156 = sst [smem:[#allocation25_spill]] %s8776_s17  ;;  %p482_p8 = scmp.lt.s32.totalorder %s8626_s28, 3 }
  0x14   : > { %s11158_s19 = scalar_select %p8782_p6, 1, 0 }
  0x15   : > { %p483_p9 = pnand %p7946_p7, %p482_p8 }
  0x16   : > { %11159 = sst [smem:[#allocation26_spill]] %s11158_s19 }
  0x17   : > { %486 = sbr.rel (%p483_p9) target bundleno = 7855 (0x1eaf), region = 64 }
  0x1c   : > { %v624_v0 = vlaneseq  ;;  %vm759_vm0 = vcmask 144384   ;;  %v8632_v1 = vmov 0.0   ;;  %p575_p10 = scmp.lt.s32.totalorder %s8761_s29, 1  ;;  %s8800_s21 = sand.u32 1, %s8618_s26   ;;  %vm11084_vm3 = vcmask 27648   ;;  %v8943_v33 = vld [vmem:[%s11064_s1] sm:$0xff] }
  0x1d   : > { %760 = vst.msk [vmem:[#allocation11] sm:$0x3f] %vm759_vm0, %v8632_v1  ;;  %s11162_s10 = sld [smem:[#allocation49_spill]]  ;;  %vm11085_vm4 = vcmask 2048   ;;  %s8633_s30 = smov 15   ;;  %vm11089_vm8 = vcmask 146432  }
  0x1e   : > { %v8790_v2 = vshrl.u32 %v624_v0, 7  ;;  %v8792_v3 = vand.u32 127, %v624_v0  ;;  %s576_s20 = scalar_select %p575_p10, %s8761_s29, 1  ;;  %vm11088_vm9 = vcmask 140288   ;;  %722 = vst.msk [vmem:[#allocation8 + $0x8] sm:$0xff] %vm11089_vm8, %v8632_v1  ;;  %vm11087_vm0 = vcmask 97280  }
  0x1f   : > { %s11163_s13 = sld [smem:[#allocation50_spill]]  ;;  %s8635_s19 = smov 6   ;;  %723 = vst.msk [vmem:[#allocation8 + $0x10] sm:$0x3] %vm11088_vm9, %v8632_v1  ;;  %v8948_v34 = vld [vmem:[%s11064_s1 + $0x8] sm:$0xf] }
  0x20   : > { %11160 = vst [vmem:[#allocation27_spill] sm:$0xff] %v8790_v2  ;;  %vm628_vm1 = vcmp.eq.s32.totalorder %v8790_v2, %v8792_v3  ;;  %vm666_vm2 = vcmp.ge.s32.totalorder %v8792_v3, %v8790_v2  ;;  %s8808_s22 = sshll.u32 %s576_s20, 2  ;;  %s8228_s23 = smul.u32 72, %s576_s20  ;;  %v631_v16 = vadd.s32 8, %v8790_v2  ;;  %v632_v17 = vadd.s32 16, %v8790_v2 }
  0x21   : > { %v8803_v4 = vsel %vm628_vm1, 1.0, %v8632_v1  ;;  %v8806_v5 = vsel %vm666_vm2, 1.0, %v8632_v1  ;;  %s8820_s16 = smul.u32 24, %s576_s20  ;;  %s11165_s2 = sld [smem:[#allocation48_spill]]  ;;  %vm678_vm5 = vcmp.lt.s32.totalorder %v8790_v2, 3  ;;  %vm693_vm6 = vcmp.lt.s32.totalorder %v8792_v3, 3 }
  0x22   : > { %v8811_v6 = vsub.f32 0.0, %v8803_v4  ;;  %v8814_v7 = vsub.f32 1.0, %v8803_v4  ;;  %s8634_s20 = smov 125   ;;  %s600_s28 = scalar_lea.vmem %s11069_s6, %s8808_s22  ;;  %v7967_v18 = vsel %vm678_vm5, 1.0, %v8632_v1  ;;  %vm694_vm7 = vcmp.ge.s32.totalorder %v8792_v3, 9  ;;  %761 = vst.msk [vmem:[#allocation12] sm:$0xff] %vm11089_vm8, %v8803_v4 }
  0x23   : > { %s618_s15 = scalar_lea.vmem %s11162_s10, %s8808_s22  ;;  %s604_s10 = scalar_lea.vmem %s11070_s7, %s8808_s22  ;;  %v717_v13 = vld [vmem:[%s600_s28] sm:$0x7]  ;;  %vm633_vm10 = vcmp.eq.s32.totalorder %v631_v16, %v8792_v3  ;;  %vm634_vm11 = vcmp.eq.s32.totalorder %v632_v17, %v8792_v3  ;;  %vm667_vm12 = vcmp.ge.s32.totalorder %v8792_v3, %v631_v16  ;;  %vm668_vm13 = vcmp.ge.s32.totalorder %v8792_v3, %v632_v17  ;;  %vm695_vm14 = vmor %vm693_vm6, %vm694_vm7  ;;  %721 = vst.msk [vmem:[#allocation8] sm:$0xff] %vm11089_vm8, %v8632_v1 }
  0x24   : > { %11161 = vst [vmem:[#allocation28_spill] sm:$0xff] %v8814_v7  ;;  %v8827_v8 = vld [vmem:[%s618_s15] sm:$0xf]  ;;  %731 = vrot.lane.b32.xlu2 %v8811_v6, %s8633_s30  ;;  %s592_s15 = scalar_lea.vmem %s11067_s4, %s8808_s22  ;;  %s596_s30 = scalar_lea.vmem %s11068_s5, %s8808_s22  ;;  %v8886_v19 = vsel %vm633_vm10, 1.0, %v8632_v1  ;;  %v8889_v20 = vsel %vm634_vm11, 1.0, %v8632_v1  ;;  %v8892_v21 = vsel %vm667_vm12, 1.0, %v8632_v1 }
  0x25   : > { %s8825_s26 = scalar_lea.vmem %s11163_s13, %s8228_s23  ;;  %11164 = vst [vmem:[#allocation29_spill] sm:$0xff] %v8827_v8  ;;  %800 = vrot.lane.b32.xlu0 %v8827_v8, %s8634_s20  ;;  %v814_v10 = vrot.slane %v8827_v8, 2  ;;  %v712_v11 = vld [vmem:[%s592_s15] sm:$0x7]  ;;  %v806_v15 = vrot.slane %v8827_v8, 1  ;;  %s8226_s15 = smul.u32 3, %s8800_s21 }
  0x26   : > { %714 = vst.msk [vmem:[#allocation4] sm:$0x7] %vm11085_vm4, %v712_v11  ;;  %v715_v12 = vld [vmem:[%s596_s30] sm:$0x7]  ;;  %s8636_s28 = smov 12   ;;  %s8637_s30 = smov 3  }
  0x27   : > { %s583_s24 = scalar_lea.vmem %s11165_s2, %s8808_s22  ;;  %815 = vrot.lane.b32.xlu1 %v814_v10, %s8634_s20  ;;  %716 = vst.msk [vmem:[#allocation5] sm:$0x7] %vm11085_vm4, %v715_v12  ;;  %v719_v14 = vld [vmem:[%s604_s10] sm:$0x7]  ;;  %s8225_s22 = smul.u32 12, %s8800_s21  ;;  %v8895_v22 = vsel %vm668_vm13, 1.0, %v8632_v1 }
  0x28   : > { %v701_v9 = vld [vmem:[%s583_s24] sm:$0xf]  ;;  %718 = vst.msk [vmem:[#allocation6] sm:$0x7] %vm11085_vm4, %v717_v13  ;;  %v8901_v23 = vsub.f32 1.0, %v8886_v19  ;;  %v8904_v24 = vsub.f32 1.0, %v8889_v20  ;;  %s588_s10 = scalar_lea.vmem %s11066_s3, %s8820_s16 }
  0x29   : > { %703 = vst.msk [vmem:[#allocation2] sm:$0xf] %vm11084_vm3, %v701_v9  ;;  %vm682_vm15 = vcmp.ge.s32.totalorder %v631_v16, 9  ;;  %v8907_v25 = vsel %vm695_vm14, 1.0, %v8632_v1  ;;  %v704_v29 = vld [vmem:[%s588_s10] sm:$0xff]  ;;  %v705_v30 = vld [vmem:[%s588_s10 + $0x8] sm:$0xff] }
  0x2a   : > { %720 = vst.msk [vmem:[#allocation7] sm:$0x7] %vm11085_vm4, %v719_v14  ;;  %v7968_v26 = vsel %vm682_vm15, 1.0, %v8632_v1  ;;  %v8913_v27 = vmul.f32 %v8907_v25, %v7967_v18  ;;  %v706_v31 = vld [vmem:[%s588_s10 + $0x10] sm:$0x3]  ;;  %vm11108_vm1 = vcmask 18432  }
  0x2b   : > { %11166 = vst [vmem:[#allocation30_spill] sm:$0xff] %v8907_v25  ;;  %v8918_v28 = vmul.f32 %v8907_v25, %v7968_v26  ;;  %vm734_vm2 = vcmask 141432   ;;  %vm11104_vm5 = vcmp.eq.s32.totalorder %v8790_v2, 2  ;;  %vm11105_vm6 = vcmp.eq.s32.totalorder %v8790_v2, 1  ;;  %s9019_s27 = scalar_lea.vmem [#allocation16], %s8226_s15  ;;  %s9021_s17 = smov 0  }
  0x2c   : > { %743 = vrot.lane.b32.xlu2 %v8811_v6, %s8635_s19  ;;  %11167 = vst [vmem:[#allocation31_spill] sm:$0xff] %v8913_v27  ;;  %v8955_v35 = vsel %vm11105_vm6, 1.0, %v8632_v1  ;;  %v8960_v36 = vsel %vm11104_vm5, 1.0, %v8632_v1  ;;  %vm11086_vm7 = vcmask 67632   ;;  %vm11106_vm10 = vcmp.eq.s32.totalorder %v8790_v2, 0 }
  0x2d   : > { %807 = vrot.lane.b32.xlu0 %v806_v15, %s8634_s20  ;;  %s8638_s20 = smov 9   ;;  %11168 = vst [vmem:[#allocation32_spill] sm:$0xff] %v8918_v28  ;;  %v8970_v41 = vsel %vm11106_vm10, 1.0, %v8632_v1  ;;  %vm11136_vm11 = vcmask 116832   ;;  %vm739_vm12 = vcmask 91136   ;;  %vm11138_vm13 = vcmask 43032  }
  0x2e   : > { %762 = vst.msk [vmem:[#allocation12 + $0x8] sm:$0xff] %vm11089_vm8, %v8886_v19  ;;  %vm11137_vm14 = vcmask 92232   ;;  %vm640_vm15 = vcmp.eq.s32.totalorder %v8792_v3, 1  ;;  %vm651_vm4 = vcmp.eq.s32.totalorder %v8792_v3, 0 }
  0x2f   : > { %726 = vrot.lane.b32.xlu1 %v8811_v6, %s8636_s28  ;;  %763 = vst.msk [vmem:[#allocation12 + $0x10] sm:$0x3] %vm11088_vm9, %v8889_v20  ;;  %vm641_vm3 = vmand %vm11104_vm5, %vm640_vm15 }
  0x30   : > { %708 = vst.msk [vmem:[#allocation3] sm:$0xff] %vm11089_vm8, %v704_v29  ;;  %v642_v45 = vsel %vm641_vm3, 1.0, %v8632_v1 }
  0x31   : > { %709 = vst.msk [vmem:[#allocation3 + $0x8] sm:$0xff] %vm11089_vm8, %v705_v30  ;;  %vm657_vm8 = vmand %vm11106_vm10, %vm640_vm15 }
  0x32   : > { %711 = vst.msk [vmem:[#allocation3 + $0x10] sm:$0x3] %vm11088_vm9, %v706_v31  ;;  %vm655_vm9 = vmand %vm11105_vm6, %vm651_vm4  ;;  %v658_v51 = vsel %vm657_vm8, -1.0, %v8632_v1 }
  0x33   : > { %737 = vst.msk [vmem:[#allocation9] sm:$0xff] %vm11087_vm0, %v8632_v1  ;;  %v656_v50 = vsel %vm655_vm9, 1.0, %v8632_v1 }
  0x34   : > { %738 = vst.msk [vmem:[#allocation9 + $0x8] sm:$0xff] %vm11087_vm0, %v8632_v1  ;;  %vm652_vm0 = vmand %vm11104_vm5, %vm651_vm4  ;;  %v9004_v54 = vadd.f32 %v658_v51, %v656_v50 }
  0x35   : > { %749 = vrot.lane.b32.xlu0 %v8803_v4, %s8637_s30  ;;  %742 = vst.msk [vmem:[#allocation9 + $0x3] sm:$0x7] %vm11108_vm1, %v8811_v6  ;;  %v653_v48 = vsel %vm652_vm0, -1.0, %v8632_v1 }
  0x36   : > { %11169 = vst [vmem:[#allocation33_spill] sm:$0xff] %v8943_v33 }
  0x37   : > { %754 = vrot.lane.b32.xlu1 %v8803_v4, %s8638_s20  ;;  %11170 = vst [vmem:[#allocation34_spill] sm:$0xff] %v8948_v34  ;;  %s9015_s20 = scalar_lea.vmem [#allocation14], %s8225_s22 }
  0x38   : > { %11171 = vst [vmem:[#allocation35_spill] sm:$0xff] %v8955_v35 }
  0x39   : > { %11172 = vst [vmem:[#allocation36_spill] sm:$0xff] %v8960_v36 }
  0x3a   : > { %11174 = vst [vmem:[#allocation38_spill] sm:$0xff] %v8970_v41 }
  0x3b   : > { %740 = vst.msk [vmem:[#allocation9 + $0x10] sm:$0x3] %vm739_vm12, %v8632_v1 }
  0x52   : > { %767 = vxpose.xlu2.b32.start.end [1/1] (short) (narrow) %v8827_v8, 8 }
  0x7e   : > { %v732_v32 = vpop.permute.xlu2 %731 }
  0x7f   : > { %735 = vst.msk [vmem:[#allocation8 + $0x9] sm:$0x7] %vm734_vm2, %v732_v32  ;;  %vm644_vm2 = vcmp.eq.s32.totalorder %v8792_v3, 2 }
  0x80   : > { %vm645_vm12 = vmand %vm11105_vm6, %vm644_vm2 }
  0x81   : > { %v646_v46 = vsel %vm645_vm12, -1.0, %v8632_v1 }
  0x82   : > { %v8998_v49 = vadd.f32 %v646_v46, %v642_v45 }
  0x86   : > { %v744_v37 = vpop.permute.xlu2 %743 }
  0x87   : > { %747 = vst.msk [vmem:[#allocation9 + $0x9] sm:$0x7] %vm11086_vm7, %v744_v37  ;;  %vm649_vm7 = vmand %vm11106_vm10, %vm644_vm2 }
  0x88   : > { %v650_v47 = vsel %vm649_vm7, 1.0, %v8632_v1 }
  0x89   : > { %v9002_v53 = vadd.f32 %v653_v48, %v650_v47 }
  0x97   : > { %v8963_v38 = vpop.permute.xlu0 %800 }
  0x98   : > { %11173 = vst [vmem:[#allocation37_spill] sm:$0xff] %v8963_v38 }
  0x99   : > { %8229 = vpush %v8963_v38  ;;  %v816_v39 = vpop.permute.xlu1 %815 }
  0x9f   : > { %v808_v40 = vpop.permute.xlu0 %807 }
  0xa0   : > { %8231 = vpush %v808_v40 }
  0xa1   : > { %8233 = vpush %v816_v39  ;;  %v727_v42 = vpop.permute.xlu1 %726 }
  0xa2   : > { %730 = vst.msk [vmem:[#allocation8 + $0x3] sm:$0x7] %vm11136_vm11, %v727_v42 }
  0xa7   : > { %v750_v43 = vpop.permute.xlu0 %749 }
  0xa8   : > { %753 = vst.msk [vmem:[#allocation9 + $0xc] sm:$0x7] %vm11138_vm13, %v750_v43 }
  0xa9   : > { %v8975_v44 = vpop.permute.xlu1 %754 }
  0xaa   : > { %11175 = vst [vmem:[#allocation39_spill] sm:$0xff] %v8975_v44 }
  0xab   : > { %758 = vst.msk [vmem:[#allocation9 + $0xf] sm:$0x7] %vm11137_vm14, %v8975_v44 }
  0xca   : > { %s8230_s19 = spop %8229 }
  0xcb   : > { %v803_v52 = vstv %s8230_s19 }
  0xcc   : > { %v805_v55 = vmul.f32 %v803_v52, %v8998_v49 }
  0xd1   : > { %s8232_s28 = spop %8231 }
  0xd2   : > { %v810_v56 = vstv %s8232_s28  ;;  %s8234_s30 = spop %8233 }
  0xd3   : > { %v812_v57 = vmul.f32 %v810_v56, %v9002_v53  ;;  %v818_v58 = vstv %s8234_s30 }
  0xd4   : > { %v820_v59 = vmul.f32 %v818_v58, %v9004_v54 }
  0xd5   : > { %v813_v60 = vadd.f32 %v812_v57, %v805_v55 }
  0xd7   : > { %v9009_v61 = vadd.f32 %v820_v59, %v813_v60 }
  0xd9   : > { %11176 = vst [vmem:[#allocation40_spill] sm:$0xff] %v9009_v61 }
  0xeb   : > { %v9011_v62 = vpop.trf.xlu2 }
  0xec   : > { %11177 = vst [vmem:[#allocation41_spill] sm:$0xff] %v9011_v62 }
  0xed LB: >> { %v11178_v34 = vld [vmem:[#allocation34_spill] sm:$0xff]  ;;  %v11179_v33 = vld [vmem:[#allocation33_spill] sm:$0xff]  ;;  %874 = vxpose.xlu0.b32.start.end [1/1] (short) (narrow) %v8803_v4, 8  ;;  %s9028_s10 = sshll.u32 %s8630_s17, 3  ;;  %s11180_s24 = scalar_lea.vmem %s11063_s0, %s8820_s16  ;;  %v832_v9 = vld [vmem:[#allocation4] sm:$0x7]  ;;  %s8630_s17 = sphi %s9021_s17, %s827_s17  }
  0xee   : >> { %s9036_s15 = scalar_lea.vmem %s11180_s24, %s9028_s10  ;;  %v834_v0 = vld [vmem:[#allocation6] sm:$0x7]  ;;  %s11133_s14 = smov 1   ;;  %v910_v10 = vmul.f32 0.0, %v832_v9  ;;  %v833_v11 = vld [vmem:[#allocation5] sm:$0x7] }
  0xef   : >> { %v838_v63 = vld [vmem:[%s9036_s15] sm:$0x7f]  ;;  %v9039_v1 = vrot.slane %v834_v0, 7  ;;  %vm917_vm3 = vcmask 1042432   ;;  %vm913_vm4 = vcmask 23552   ;;  %vm11181_vm1 = vcmask 18432  }
  0xf0   : >> { %v911_v12 = vsub.f32 %v833_v11, %v910_v10  ;;  %7983 = vmatpush.msk.msra.mxu3 %vm917_vm3, %v832_v9  ;;  %s11123_s2 = smov 127   ;;  %v9339_v35 = vld [vmem:[#allocation9 + $0x10] sm:$0x3]  ;;  %vm11197_vm13 = vcmask 43032   ;;  %vm11199_vm14 = vcmask 92232   ;;  %vm11200_vm11 = vcmask 116832  }
  0xf1   : >> { %v855_v3 = vsub.f32 %v838_v63, %v9039_v1  ;;  %v11198_v44 = vld [vmem:[#allocation39_spill] sm:$0xff]  ;;  %v11204_v25 = vld [vmem:[#allocation30_spill] sm:$0xff]  ;;  %v11205_v28 = vld [vmem:[#allocation32_spill] sm:$0xff] }
  0xf2   : >> { %7971 = vmatpush.msk.msra.mxu0 %vm917_vm3, %v911_v12  ;;  %v11206_v27 = vld [vmem:[#allocation31_spill] sm:$0xff] }
  0xf3   : >> { %v857_v6 = vrot.slane %v855_v3, 1  ;;  %v862_v56 = vrot.slane %v855_v3, 2  ;;  %v868_v57 = vrot.slane %v855_v3, 3 }
  0xf5   : >> { %959 = vrot.lane.b32.xlu1 %v857_v6, %s11133_s14  ;;  %8235 = vpush %v857_v6 }
  0xf6   : >> { %8237 = vpush %v862_v56 }
  0xf7   : >> { %8239 = vpush %v868_v57 }
 0x126   : >> { %s9169_s19 = spop %8235 }
 0x127   : >> { %s9171_s28 = spop %8237 }
 0x128   : >> { %s9176_s30 = spop %8239 }
 0x15b   : >> { %847 = vrot.lane.b32.xlu0 %v838_v63, %s11133_s14 }
 0x163   : >> { %1936 = vrot.lane.b32.xlu0 %v9039_v1, %s11133_s14 }
 0x167   : >> { %v960_v17 = vpop.permute.xlu1 %959 }
 0x191   : >> { %v890_v13 = vpop.trf.xlu0 }
 0x192   : >> { %7972 = vmatmul.msk.f32.vlgmr.msra.gmra.mxu0 %vm913_vm4, %v890_v13  ;;  %7984 = vmatmul.msk.f32.vlgmr.msra.gmra.mxu3 %vm913_vm4, %v890_v13  ;;  %v1480_v14 = vsub.f32 0.0, %v890_v13 }
 0x194   : >> { %1481 = vst.msk [vmem:[#allocation8 + $0x9] sm:$0x7] %vm11181_vm1, %v1480_v14 }
 0x1cd   : >> { %v848_v15 = vpop.permute.xlu0 %847 }
 0x1ce   : >> { %v9051_v16 = vsub.f32 %v838_v63, %v848_v15 }
 0x1d0   : >> { %v9054_v18 = vperm.slane %v9051_v16, 0 }
 0x1d2   : >> { %v962_v26 = vmul.f32 %v960_v17, %v9054_v18 }
 0x1d4   : >> { %v986_v29 = vmul.f32 %v962_v26, %v962_v26  ;;  %964 = vrot.lane.b32.xlu1 %v962_v26, %s11123_s2  ;;  %v970_v30 = vrot.slane %v962_v26, 1  ;;  %v978_v45 = vrot.slane %v962_v26, 2  ;;  %v11100_v26 = vmov 683565275  }
 0x1d5   : >> { %v1937_v31 = vpop.permute.xlu0 %1936 }
 0x1d6   : >> { %v988_v32 = vrot.slane %v986_v29, 1  ;;  %v9058_v37 = vsub.f32 %v838_v63, %v1937_v31  ;;  %971 = vrot.lane.b32.xlu2 %v970_v30, %s11123_s2  ;;  %v991_v40 = vrot.slane %v986_v29, 2  ;;  %v11098_v30 = vmov 2475754826  }
 0x1d8   : >> { %v990_v39 = vadd.f32 %v988_v32, %v986_v29  ;;  %v1941_v42 = vrot.slane %v9058_v37, 1 }
 0x1da   : >> { %v9062_v43 = vadd.f32 %v991_v40, %v990_v39  ;;  %2051 = vrot.lane.b32.xlu0 %v1941_v42, %s11133_s14  ;;  %v11096_v39 = vmov 2131351028  }
 0x1dc   : >> { %8460 = vrsqrt.f32 %v9062_v43  ;;  %vm1001_vm8 = vcmp.eq.f32.partialorder %v9062_v43, inf  ;;  %v1004_v58 = vand.u32 2147483648, %v9062_v43  ;;  %vm1003_vm9 = vcmp.eq.f32.partialorder %v9062_v43, 0.0 }
 0x1de   : >> { %979 = vrot.lane.b32.xlu2 %v978_v45, %s11123_s2  ;;  %v11094_v45 = vmov 2102212464  }
 0x1e2   : >> { %v8461_v46 = vpop.eup %8460  ;;  %1942 = vrot.lane.b32.xlu0 %v1941_v42, %s11123_s2 }
 0x1e3   : >> { %v995_v47 = vmul.f32 %v8461_v46, %v9062_v43 }
 0x1e5   : >> { %v996_v48 = vmul.f32 %v8461_v46, %v995_v47 }
 0x1e7   : >> { %v997_v50 = vmul.f32 0.5, %v996_v48  ;;  %v11092_v48 = vmov 920167782  }
 0x1e9   : >> { %v998_v51 = vsub.f32 1.5, %v997_v50 }
 0x1eb   : >> { %v999_v52 = vmul.f32 %v8461_v46, %v998_v51 }
 0x1ed   : >> { %v1000_v55 = vmul.f32 %v999_v52, %v9062_v43  ;;  %v11090_v52 = vmov 1326507024  }
 0x1ef   : >> { %v1002_v59 = vsel %vm1001_vm8, %v9062_v43, %v1000_v55 }
 0x1f0   : >> { %v9074_v60 = vsel %vm1003_vm9, %v1004_v58, %v1002_v59 }
 0x1f1   : >> { %vm1006_vm0 = vcmp.lt.f32.partialorder %v9074_v60, 1e-06 }
 0x1f2   : >> { %v9080_v63 = vsel %vm1006_vm0, 1.0, %v9074_v60 }
 0x1f3   : >> { %v1020_v0 = vand.u32 2139095040, %v9080_v63  ;;  %v9084_v9 = vand.u32 2147483647, %v9080_v63 }
 0x1f5   : >> { %v1021_v3 = vshrl.u32 %v1020_v0, 23  ;;  %v1024_v11 = vand.u32 8388607, %v9084_v9 }
 0x1f7   : >> { %v7973_v6 = vadd.s32 4294967169, %v1021_v3  ;;  %v1025_v15 = vor.u32 8388608, %v1024_v11 }
 0x1f9   : >> { %v1027_v10 = vadd.s32 1, %v7973_v6  ;;  %v9111_v3 = vshll.u32 %v1025_v15, 8 }
 0x1fb   : >> { %vm1028_vm7 = vcmp.gt.s32.totalorder %v1027_v10, 0 }
 0x1fc   : >> { %v1029_v12 = vsel %vm1028_vm7, %v1027_v10, 0 }
 0x1fd   : >> { %v1031_v13 = vand.u32 31, %v1029_v12  ;;  %v9089_v17 = vshrl.u32 %v1029_v12, 5 }
 0x1ff   : >> { %v9087_v14 = vsub.s32 32, %v1031_v13  ;;  %v1034_v29 = vshll.u32 %v11100_v26, %v1031_v13  ;;  %v1037_v31 = vshll.u32 %v11098_v30, %v1031_v13  ;;  %v1040_v42 = vshll.u32 %v11096_v39, %v1031_v13 }
 0x200   : >> { %v1043_v47 = vshll.u32 %v11094_v45, %v1031_v13  ;;  %v1046_v51 = vshll.u32 %v11092_v48, %v1031_v13  ;;  %vm1049_vm15 = vcmp.lt.s32.totalorder %v9089_v17, 1  ;;  %vm1052_vm2 = vcmp.lt.s32.totalorder %v9089_v17, 4 }
 0x201   : >> { %v1035_v32 = vshrl.u32 %v11098_v30, %v9087_v14  ;;  %v1038_v40 = vshrl.u32 %v11096_v39, %v9087_v14  ;;  %v1041_v46 = vshrl.u32 %v11094_v45, %v9087_v14  ;;  %v1044_v50 = vshrl.u32 %v11092_v48, %v9087_v14 }
 0x202   : >> { %v1047_v55 = vshrl.u32 %v11090_v52, %v9087_v14  ;;  %vm1051_vm12 = vcmp.lt.s32.totalorder %v9089_v17, 3  ;;  %vm1050_vm8 = vcmp.lt.s32.totalorder %v9089_v17, 2  ;;  %v11109_v26 = vmov 0  }
 0x203   : >> { %v9106_v56 = vor.u32 %v1035_v32, %v1034_v29  ;;  %v9108_v57 = vor.u32 %v1038_v40, %v1037_v31  ;;  %v1042_v58 = vor.u32 %v1041_v46, %v1040_v42  ;;  %v1045_v59 = vor.u32 %v1044_v50, %v1043_v47 }
 0x204   : >> { %v1048_v0 = vor.u32 %v1047_v55, %v1046_v51  ;;  %v1066_v32 = vand.u32 65535, %v9111_v3  ;;  %v1067_v40 = vshrl.u32 %v9111_v3, 16 }
 0x205   : >> { %v1057_v6 = vsel %vm1049_vm15, %v9106_v56, %v9108_v57  ;;  %v1061_v10 = vsel %vm1049_vm15, %v9108_v57, %v1042_v58  ;;  %v1058_v11 = vsel %vm1052_vm2, %v1045_v59, 920167782 }
 0x206   : >> { %v1062_v12 = vsel %vm1052_vm2, %v1048_v0, 1326507024  ;;  %v1059_v13 = vsel %vm1051_vm12, %v1042_v58, %v1058_v11 }
 0x207   : >> { %v1063_v15 = vsel %vm1051_vm12, %v1045_v59, %v1062_v12  ;;  %v1060_v29 = vsel %vm1050_vm8, %v1057_v6, %v1059_v13 }
 0x208   : >> { %v1064_v31 = vsel %vm1050_vm8, %v1061_v10, %v1063_v15  ;;  %v1090_v47 = vand.u32 65535, %v1060_v29  ;;  %v1091_v50 = vshrl.u32 %v1060_v29, 16 }
 0x209   : >> { %v1068_v42 = vand.u32 65535, %v1064_v31  ;;  %v1069_v46 = vshrl.u32 %v1064_v31, 16 }
 0x20a   : >> { %v1093_v0 = vmul.u32 %v1091_v50, %v1066_v32  ;;  %v1094_v11 = vmul.u32 %v1090_v47, %v1067_v40  ;;  %v1092_v48 = vmul.u32 %v1090_v47, %v1066_v32  ;;  %v1095_v6 = vmul.u32 %v1091_v50, %v1067_v40 }
 0x20b   : >> { %v1071_v51 = vmul.u32 %v1069_v46, %v1066_v32  ;;  %v1072_v55 = vmul.u32 %v1068_v42, %v1067_v40  ;;  %v1070_v52 = vmul.u32 %v1068_v42, %v1066_v32  ;;  %v1073_v12 = vmul.u32 %v1069_v46, %v1067_v40 }
 0x20c   : >> { %v1096_v13 = vshll.u32 %v1093_v0, 16  ;;  %v1098_v39 = vshll.u32 %v1094_v11, 16 }
 0x20d   : >> { %v1074_v59 = vshll.u32 %v1071_v51, 16  ;;  %v1076_v10 = vshll.u32 %v1072_v55, 16  ;;  %v1075_v47 = vshrl.u32 %v1071_v51, 16 }
 0x20e   : >> { %vm1100_vm7 = vc.u32 %v1092_v48, %v1096_v13  ;;  %v1102_v46 = vadd.s32 %v1096_v13, %v1092_v48 }
 0x20f   : >> { %v938_v45 = vpop.f32.mrf.mxu0  ;;  %vm1078_vm9 = vc.u32 %v1070_v52, %v1074_v59  ;;  %v1080_v15 = vadd.s32 %v1074_v59, %v1070_v52  ;;  %v1101_v42 = vsel %vm1100_vm7, 1, %v11109_v26  ;;  %v1054_v52 = vsel %vm1052_vm2, %v1042_v58, 2102212464 }
 0x210   : >> { %8241 = vpush %v938_v45  ;;  %v946_v30 = vrot.slane %v938_v45, 1  ;;  %v952_v31 = vrot.slane %v938_v45, 2  ;;  %v1079_v29 = vsel %vm1078_vm9, 1, %v11109_v26  ;;  %v1103_v40 = vadd.s32 %v1101_v42, %v1095_v6 }
 0x211   : >> { %v1081_v2 = vadd.s32 %v1079_v29, %v1073_v12  ;;  %vm1082_vm5 = vc.u32 %v1080_v15, %v1076_v10  ;;  %vm1104_vm6 = vc.u32 %v1102_v46, %v1098_v39  ;;  %v11182_v45 = vmov 683565275  }
 0x212   : >> { %8243 = vpush %v946_v30  ;;  %v1083_v32 = vsel %vm1082_vm5, 1, %v11109_v26  ;;  %v1033_v59 = vshrl.u32 %v11182_v45, %v9087_v14  ;;  %v1105_v12 = vsel %vm1104_vm6, 1, %v11109_v26  ;;  %v1077_v10 = vshrl.u32 %v1072_v55, 16 }
 0x213   : >> { %8245 = vpush %v952_v31  ;;  %v1085_v50 = vadd.s32 %v1083_v32, %v1081_v2  ;;  %v1097_v29 = vshrl.u32 %v1093_v0, 16  ;;  %v1107_v48 = vadd.s32 %v1105_v12, %v1103_v40  ;;  %v1055_v58 = vsel %vm1051_vm12, %v9108_v57, %v1054_v52 }
 0x214   : >> { %v1053_v30 = vsel %vm1049_vm15, %v1033_v59, %v9106_v56  ;;  %v1099_v2 = vshrl.u32 %v1094_v11, 16  ;;  %v1106_v13 = vadd.s32 %v1102_v46, %v1098_v39  ;;  %v1948_v57 = vrot.slane %v9058_v37, 2 }
 0x215   : >> { %v1086_v15 = vadd.s32 %v1085_v50, %v1075_v47  ;;  %v1108_v6 = vadd.s32 %v1107_v48, %v1097_v29  ;;  %v1056_v14 = vsel %vm1050_vm8, %v1053_v30, %v1055_v58  ;;  %v8648_v39 = vmov 6.0  }
 0x216   : >> { %v1110_v0 = vmul.u32 %v9111_v3, %v1056_v14  ;;  %1949 = vrot.lane.b32.xlu0 %v1948_v57, %s11123_s2  ;;  %8462 = vrcp.f32 %v8648_v39  ;;  %v8649_v50 = vmov 24.0   ;;  %vm1019_vm2 = vcmp.lt.s32.totalorder %v9080_v63, 0 }
 0x217   : >> { %v1087_v51 = vadd.s32 %v1086_v15, %v1077_v10  ;;  %v1109_v31 = vadd.s32 %v1108_v6, %v1099_v2  ;;  %8464 = vrcp.f32 %v8649_v50  ;;  %vm1018_vm12 = vcmp.le.f32.partialorder %v9084_v9, 0.7853982 }
 0x218   : >> { %8466 = vrcp.f32 %v9080_v63 }
 0x219   : >> { %vm1112_vm5 = vc.u32 %v1087_v51, %v1106_v13  ;;  %v1113_v55 = vadd.s32 1, %v1109_v31  ;;  %v1111_v15 = vadd.s32 %v1106_v13, %v1087_v51 }
 0x21b   : >> { %v1114_v42 = vsel %vm1112_vm5, %v1113_v55, %v1109_v31  ;;  %vm1160_vm5 = vweird.f32 %v9080_v63 }
 0x21c   : >> { %v1115_v32 = vadd.s32 %v1114_v42, %v1110_v0  ;;  %v8463_v59 = vpop.eup %8462  ;;  %v9162_v0 = vmul.f32 %v9080_v63, %v9080_v63 }
 0x21d   : >> { %v8465_v10 = vpop.eup %8464  ;;  %v1009_v30 = vmul.f32 6.0, %v8463_v59  ;;  %vm1013_vm8 = vweird.f32 %v8463_v59 }
 0x21e   : >> { %v1116_v40 = vadd.s32 536870912, %v1115_v32  ;;  %v1189_v14 = vmul.f32 24.0, %v8465_v10  ;;  %v9164_v42 = vpop.eup %8466  ;;  %8468 = vrcp.f32 %v9162_v0  ;;  %vm1193_vm9 = vweird.f32 %v8465_v10 }
 0x21f   : >> { %v1173_v57 = vmul.f32 %v9164_v42, %v9080_v63  ;;  %vm1178_vm7 = vweird.f32 %v9164_v42 }
 0x220   : >> { %v9154_v56 = vshrl.u32 %v1116_v40, 30  ;;  %v1190_v51 = vsub.f32 1.0, %v1189_v14 }
 0x221   : >> { %v1174_v50 = vsub.f32 1.0, %v1173_v57 }
 0x222   : >> { %v1118_v47 = vshll.u32 %v9154_v56, 30  ;;  %v1191_v39 = vmul.f32 %v8465_v10, %v1190_v51 }
 0x224   : >> { %v1119_v11 = vsub.s32 %v1115_v32, %v1118_v47  ;;  %v1010_v32 = vsub.f32 1.0, %v1009_v30  ;;  %v1192_v30 = vadd.f32 %v8465_v10, %v1191_v39 }
 0x226   : >> { %vm1120_vm6 = vcmp.lt.s32.totalorder %v1119_v11, 0  ;;  %v1121_v17 = vsub.s32 0, %v1119_v11  ;;  %v9199_v57 = vsel %vm1193_vm9, %v8465_v10, %v1192_v30 }
 0x228   : >> { %v1122_v46 = vsel %vm1120_vm6, %v1121_v17, %v1119_v11  ;;  %vm9222_vm6 = vmor %vm1160_vm5, %vm1178_vm7 }
 0x229   : >> { %v1123_v52 = vclz %v1122_v46 }
 0x22b   : >> { %v7974_v3 = vadd.s32 4294967294, %v1123_v52 }
 0x22d   : >> { %vm7975_vm15 = vcmp.lt.s32.totalorder %v7974_v3, 0 }
 0x22e   : >> { %v1126_v12 = vsel %vm7975_vm15, 0, %v7974_v3  ;;  %v9174_v3 = vpop.eup %8468  ;;  %vm1182_vm15 = vcmp.eq.f32.partialorder %v9084_v9, 8.507059e+37 }
 0x22f   : >> { %v1127_v29 = vsub.s32 32, %v1126_v12  ;;  %v1131_v48 = vsub.s32 4294967266, %v1126_v12  ;;  %v1128_v58 = vshll.u32 %v1119_v11, %v1126_v12  ;;  %v1011_v11 = vmul.f32 %v8463_v59, %v1010_v32 }
 0x230   : >> { %v972_v52 = vpop.permute.xlu2 %971  ;;  %v1354_v14 = vmul.f32 %v9174_v3, %v9162_v0 }
 0x231   : >> { %v1129_v2 = vshrl.u32 %v1111_v15, %v1127_v29  ;;  %v1132_v6 = vadd.s32 127, %v1131_v48  ;;  %v1012_v12 = vadd.f32 %v8463_v59, %v1011_v11  ;;  %v1141_v29 = vsub.s32 4, %v9154_v56 }
 0x233   : >> { %v1130_v31 = vor.u32 %v1129_v2, %v1128_v58  ;;  %v1133_v55 = vshll.u32 %v1132_v6, 23  ;;  %v1175_v6 = vmul.f32 %v9164_v42, %v1174_v50 }
 0x235   : >> { %v1134_v40 = vor.u32 4788187, %v1133_v55  ;;  %v1137_v47 = vcvt.s32.f32 %v1130_v31  ;;  %v9192_v31 = vsel %vm1013_vm8, %v8463_v59, %v1012_v12  ;;  %v1142_v55 = vsel %vm1019_vm2, %v1141_v29, %v9154_v56 }
 0x236   : >> { %v1144_v50 = vsel %vm1018_vm12, 0, %v1142_v55  ;;  %v1176_v56 = vadd.f32 %v9164_v42, %v1175_v6  ;;  %v1355_v12 = vsub.f32 1.0, %v1354_v14  ;;  %v9214_v6 = vmul.f32 %v9199_v57, %v9062_v43 }
 0x237   : >> { %v1135_v13 = vand.u32 2147483647, %v1134_v40 }
 0x239   : >> { %v1138_v17 = vmul.f32 %v1137_v47, %v1135_v13  ;;  %v1183_v47 = vand.u32 2147483648, %v9080_v63 }
 0x23b   : >> { %v1139_v46 = vxor.u32 2147483648, %v1138_v17 }
 0x23d   : >> { %v1140_v15 = vsel %vm1019_vm2, %v1139_v46, %v1138_v17  ;;  %vm1358_vm2 = vweird.f32 %v9162_v0 }
 0x23e   : >> { %v9185_v48 = vsel %vm1018_vm12, %v9080_v63, %v1140_v15  ;;  %vm1359_vm12 = vweird.f32 %v9174_v3 }
 0x23f   : >> { %v1145_v58 = vmul.f32 %v9185_v48, %v9185_v48 }
 0x241   : >> { %s8242_s13 = spop %8241  ;;  %v1146_v32 = vmul.f32 -0.001358992, %v1145_v58  ;;  %v1153_v40 = vmul.f32 -0.00019511016, %v1145_v58 }
 0x242   : >> { %v943_v2 = vstv %s8242_s13 }
 0x243   : >> { %s8244_s22 = spop %8243  ;;  %v945_v51 = vmul.f32 %v943_v2, %v8998_v49  ;;  %v1147_v39 = vadd.f32 0.041655596, %v1146_v32  ;;  %v1154_v59 = vadd.f32 0.008332121, %v1153_v40  ;;  %v980_v2 = vpop.permute.xlu2 %979  ;;  %v9209_v32 = vmul.f32 %v9192_v31, %v9062_v43 }
 0x244   : >> { %v948_v13 = vstv %s8244_s22  ;;  %s8246_s24 = spop %8245  ;;  %v1184_v43 = vor.u32 1.1754944e-38, %v1183_v47  ;;  %v1341_v47 = vand.u32 3, %v1144_v50 }
 0x245   : >> { %v950_v11 = vmul.f32 %v948_v13, %v9002_v53  ;;  %v954_v17 = vstv %s8246_s24  ;;  %v1148_v10 = vmul.f32 %v1147_v39, %v1145_v58  ;;  %v1155_v30 = vmul.f32 %v1154_v59, %v1145_v58  ;;  %s8652_s24 = smov 3  }
 0x246   : >> { %v965_v46 = vpop.permute.xlu1 %964  ;;  %v956_v29 = vmul.f32 %v954_v17, %v9004_v54  ;;  %v1356_v13 = vmul.f32 %v9174_v3, %v1355_v12  ;;  %vm1342_vm8 = vcmp.lt.s32.totalorder %v1341_v47, 2  ;;  %vm1343_vm9 = vcmp.eq.s32.totalorder %v1341_v47, 0 }
 0x247   : >> { %v951_v15 = vadd.f32 %v950_v11, %v945_v51  ;;  %8247 = vpush %v965_v46  ;;  %v1149_v55 = vadd.f32 -0.4999988, %v1148_v10  ;;  %v1156_v40 = vadd.f32 -0.16666654, %v1155_v30  ;;  %v1161_v51 = vadd.s32 3, %v1144_v50 }
 0x248   : >> { %8249 = vpush %v972_v52  ;;  %v1364_v11 = vand.u32 2147483648, %v9162_v0  ;;  %v1180_v46 = vsel %vm9222_vm6, %v9164_v42, %v1176_v56  ;;  %v1362_v56 = vand.u32 2147483647, %v9162_v0  ;;  %vm1346_vm6 = vcmp.eq.s32.totalorder %v1341_v47, 2 }
 0x249   : >> { %8251 = vpush %v980_v2  ;;  %v9216_v14 = vadd.f32 %v956_v29, %v951_v15  ;;  %v1150_v39 = vmul.f32 %v1149_v55, %v1145_v58  ;;  %v1157_v59 = vmul.f32 %v1156_v40, %v1145_v58  ;;  %v859_v15 = vstv %s9169_s19  ;;  %s11121_s19 = smov 126  }
 0x24a   : >> { %v864_v29 = vstv %s9171_s28  ;;  %v1162_v2 = vand.u32 3, %v1161_v51  ;;  %v1185_v42 = vsel %vm1182_vm15, %v1184_v43, %v1180_v46  ;;  %v1365_v55 = vor.u32 1.1754944e-38, %v1364_v11  ;;  %s11139_s28 = smov 9  }
 0x24b   : >> { %7981 = vmatpush.msk.msra.mxu2 %vm917_vm3, %v9216_v14  ;;  %v11107_v17 = vsub.f32 0.0, %v9216_v14  ;;  %v1151_v58 = vadd.f32 1.0, %v1150_v39  ;;  %v1158_v30 = vadd.f32 1.0, %v1157_v59  ;;  %v861_v39 = vmul.f32 %v859_v15, %v8998_v49 }
 0x24c   : >> { %v2052_v10 = vpop.permute.xlu0 %2051  ;;  %7982 = vmatmul.msk.f32.vlgmr.msra.gmra.mxu2 %vm913_vm4, %v8803_v4  ;;  %v866_v51 = vmul.f32 %v864_v29, %v9002_v53  ;;  %vm1167_vm7 = vcmp.eq.s32.totalorder %v1162_v2, 2  ;;  %vm1163_vm15 = vcmp.lt.s32.totalorder %v1162_v2, 2  ;;  %vm1164_vm10 = vcmp.eq.s32.totalorder %v1162_v2, 0 }
 0x24d   : >> { %1541 = vst.msk [vmem:[#allocation9 + $0x9] sm:$0x7] %vm11181_vm1, %v11107_v17  ;;  %v2054_v12 = vmul.f32 %v2052_v10, %v9054_v18  ;;  %v1159_v40 = vmul.f32 %v1158_v30, %v9185_v48  ;;  %v1168_v52 = vxor.u32 2147483648, %v1151_v58  ;;  %v1357_v10 = vadd.f32 %v9174_v3, %v1356_v13  ;;  %vm9257_vm1 = vmor %vm1358_vm2, %vm1359_vm12 }
 0x24e   : >> { %v870_v15 = vstv %s9176_s30  ;;  %v867_v47 = vadd.f32 %v866_v51, %v861_v39  ;;  %vm1566_vm12 = vcmask 1041408  }
 0x24f   : >> { %v2078_v50 = vmul.f32 %v2054_v12, %v2054_v12  ;;  %2056 = vrot.lane.b32.xlu0 %v2054_v12, %s11121_s19  ;;  %v1165_v43 = vxor.u32 2147483648, %v1159_v40  ;;  %v1169_v59 = vsel %vm1167_vm7, %v1168_v52, %v1159_v40  ;;  %v1348_v17 = vsel %vm1346_vm6, %v1168_v52, %v1159_v40 }
 0x250   : >> { %v1361_v2 = vsel %vm9257_vm1, %v9174_v3, %v1357_v10  ;;  %v2062_v40 = vrot.slane %v2054_v12, 1  ;;  %v1016_v52 = vsub.f32 1.0, %v9209_v32 }
 0x251   : >> { %v2080_v9 = vrot.slane %v2078_v50, 1  ;;  %v2083_v11 = vrot.slane %v2078_v50, 2  ;;  %v1166_v48 = vsel %vm1164_vm10, %v1151_v58, %v1165_v43  ;;  %v1345_v30 = vsel %vm1343_vm9, %v1151_v58, %v1165_v43 }
 0x252   : >> { %v1170_v29 = vsel %vm1163_vm15, %v1166_v48, %v1169_v59  ;;  %v1349_v26 = vsel %vm1342_vm8, %v1345_v30, %v1348_v17  ;;  %vm1363_vm10 = vcmp.eq.f32.partialorder %v1362_v56, 8.507059e+37  ;;  %v872_v17 = vmul.f32 %v870_v15, %v9004_v54 }
 0x253   : >> { %v2082_v46 = vadd.f32 %v2080_v9, %v2078_v50  ;;  %v1171_v58 = vsel %vm1160_vm5, nan, %v1170_v29  ;;  %v1350_v0 = vsel %vm1160_vm5, nan, %v1349_v26  ;;  %v1366_v3 = vsel %vm1363_vm10, %v1365_v55, %v1361_v2 }
 0x254   : >> { %v1186_v9 = vmul.f32 %v1185_v42, %v1171_v58  ;;  %v1351_v43 = vsub.f32 1.0, %v1350_v0  ;;  %v9282_v32 = vadd.f32 %v872_v17, %v867_v47  ;;  %v2070_v56 = vrot.slane %v2054_v12, 2 }
 0x255   : >> { %v9266_v50 = vadd.f32 %v2083_v11, %v2082_v46  ;;  %v1196_v11 = vsub.f32 0.5, %v9214_v6 }
 0x256   : >> { %v1187_v10 = vsel %vm1006_vm0, %v1016_v52, %v1186_v9  ;;  %v1367_v63 = vmul.f32 %v1366_v3, %v1351_v43  ;;  %v11111_v39 = vsub.f32 0.0, %v9282_v32 }
 0x257   : >> { %2063 = vrot.lane.b32.xlu0 %v2062_v40, %s11121_s19  ;;  %8470 = vrsqrt.f32 %v9266_v50  ;;  %1370 = vrot.lane.b32.xlu1 %v1187_v10, %s11123_s2  ;;  %vm2093_vm1 = vcmp.eq.f32.partialorder %v9266_v50, inf  ;;  %v2096_v12 = vand.u32 2147483648, %v9266_v50 }
 0x258   : >> { %v1368_v26 = vsel %vm1006_vm0, %v1196_v11, %v1367_v63  ;;  %vm2095_vm0 = vcmp.eq.f32.partialorder %v9266_v50, 0.0 }
 0x259   : >> { %1403 = vrot.lane.b32.xlu2 %v1368_v26, %s11123_s2 }
 0x25d   : >> { %v8471_v42 = vpop.eup %8470 }
 0x25e   : >> { %v2087_v55 = vmul.f32 %v8471_v42, %v9266_v50 }
 0x25f   : >> { %2071 = vrot.lane.b32.xlu0 %v2070_v56, %s11121_s19  ;;  %1528 = vrot.lane.b32.xlu1 %v11111_v39, %s11139_s28  ;;  %v11187_v56 = vmov 2475754826  }
 0x260   : >> { %v2088_v51 = vmul.f32 %v8471_v42, %v2087_v55 }
 0x262   : >> { %v2089_v60 = vmul.f32 0.5, %v2088_v51 }
 0x264   : >> { %v2090_v6 = vsub.f32 1.5, %v2089_v60 }
 0x266   : >> { %v2091_v59 = vmul.f32 %v8471_v42, %v2090_v6  ;;  %v11188_v6 = vmov 2131351028  }
 0x268   : >> { %v2092_v46 = vmul.f32 %v2091_v59, %v9266_v50 }
 0x26a   : >> { %v2094_v48 = vsel %vm2093_vm1, %v9266_v50, %v2092_v46 }
 0x26b   : >> { %v9296_v30 = vsel %vm2095_vm0, %v2096_v12, %v2094_v48  ;;  %v11189_v48 = vmov 2102212464  }
 0x26c   : >> { %vm2098_vm5 = vcmp.lt.f32.partialorder %v9296_v30, 1e-06 }
 0x26d   : >> { %v9302_v13 = vsel %vm2098_vm5, 1.0, %v9296_v30 }
 0x26e   : >> { %v2105_v15 = vand.u32 2139095040, %v9302_v13  ;;  %v9306_v2 = vand.u32 2147483647, %v9302_v13  ;;  %8472 = vrcp.f32 %v9302_v13 }
 0x270   : >> { %v2106_v29 = vshrl.u32 %v2105_v15, 23  ;;  %v2109_v0 = vand.u32 8388607, %v9306_v2 }
 0x272   : >> { %v8021_v58 = vadd.s32 4294967169, %v2106_v29  ;;  %v2110_v47 = vor.u32 8388608, %v2109_v0 }
 0x274   : >> { %v2112_v40 = vadd.s32 1, %v8021_v58  ;;  %v11190_v58 = vmov 920167782   ;;  %v9337_v41 = vshll.u32 %v2110_v47, 8 }
 0x276   : >> { %vm2113_vm2 = vcmp.gt.s32.totalorder %v2112_v40, 0 }
 0x277   : >> { %v2114_v52 = vsel %vm2113_vm2, %v2112_v40, 0 }
 0x278   : >> { %s8248_s30 = spop %8247  ;;  %v2116_v9 = vand.u32 31, %v2114_v52  ;;  %v9310_v10 = vshrl.u32 %v2114_v52, 5 }
 0x279   : >> { %v967_v43 = vstv %s8248_s30  ;;  %s8250_s13 = spop %8249  ;;  %s8653_s30 = smov 12  }
 0x27a   : >> { %v969_v17 = vmul.f32 %v967_v43, %v8998_v49  ;;  %v974_v3 = vstv %s8250_s13  ;;  %s8252_s22 = spop %8251  ;;  %v9312_v11 = vsub.s32 32, %v2116_v9  ;;  %v2119_v42 = vshll.u32 %v11182_v45, %v2116_v9 }
 0x27b   : >> { %v976_v63 = vmul.f32 %v974_v3, %v9002_v53  ;;  %v982_v26 = vstv %s8252_s22  ;;  %v2122_v55 = vshll.u32 %v11187_v56, %v2116_v9  ;;  %v2125_v46 = vshll.u32 %v11188_v6, %v2116_v9 }
 0x27c   : >> { %v984_v51 = vmul.f32 %v982_v26, %v9004_v54  ;;  %v2120_v60 = vshrl.u32 %v11187_v56, %v9312_v11  ;;  %v2123_v59 = vshrl.u32 %v11188_v6, %v9312_v11  ;;  %v2126_v15 = vshrl.u32 %v11189_v48, %v9312_v11 }
 0x27d   : >> { %v977_v12 = vadd.f32 %v976_v63, %v969_v17  ;;  %v2128_v29 = vshll.u32 %v11189_v48, %v2116_v9  ;;  %v2129_v40 = vshrl.u32 %v11190_v58, %v9312_v11  ;;  %v2131_v43 = vshll.u32 %v11190_v58, %v2116_v9 }
 0x27e   : >> { %v9328_v0 = vor.u32 %v2120_v60, %v2119_v42  ;;  %v9330_v52 = vor.u32 %v2123_v59, %v2122_v55  ;;  %v11191_v3 = vmov 1326507024   ;;  %v2127_v17 = vor.u32 %v2126_v15, %v2125_v46 }
 0x27f   : >> { %v2132_v26 = vshrl.u32 %v11191_v3, %v9312_v11  ;;  %v9335_v39 = vadd.f32 %v984_v51, %v977_v12  ;;  %v2130_v63 = vor.u32 %v2129_v40, %v2128_v29  ;;  %vm2134_vm8 = vcmp.lt.s32.totalorder %v9310_v10, 1  ;;  %v9369_v12 = vld [vmem:[#allocation9 + $0x8] sm:$0xff] }
 0x280   : >> { %vm2137_vm9 = vcmp.lt.s32.totalorder %v9310_v10, 4  ;;  %vm2136_vm7 = vcmp.lt.s32.totalorder %v9310_v10, 3  ;;  %v2142_v9 = vsel %vm2134_vm8, %v9328_v0, %v9330_v52  ;;  %vm2135_vm6 = vcmp.lt.s32.totalorder %v9310_v10, 2 }
 0x281   : >> { %v2133_v36 = vor.u32 %v2132_v26, %v2131_v43  ;;  %7979 = vmatpush.msk.msra.mxu1 %vm917_vm3, %v9335_v39  ;;  %v2143_v47 = vsel %vm2137_vm9, %v2130_v63, 920167782  ;;  %v2146_v55 = vsel %vm2134_vm8, %v9330_v52, %v2127_v17  ;;  %v2151_v46 = vand.u32 65535, %v9337_v41 }
 0x282   : >> { %7980 = vmatmul.msk.f32.vlgmr.msra.gmra.mxu1 %vm913_vm4, %v9335_v39  ;;  %v2144_v42 = vsel %vm2136_vm7, %v2127_v17, %v2143_v47  ;;  %v2152_v29 = vshrl.u32 %v9337_v41, 16  ;;  %v11192_v48 = vmov 0  }
 0x283   : >> { %v2147_v51 = vsel %vm2137_vm9, %v2133_v36, 1326507024  ;;  %8222 = vmatpush.msk.msrb.mxu1 %vm1566_vm12, %v9339_v35  ;;  %v2145_v60 = vsel %vm2135_vm6, %v2142_v9, %v2144_v42 }
 0x284   : >> { %v2148_v59 = vsel %vm2136_vm7, %v2130_v63, %v2147_v51  ;;  %v2175_v40 = vand.u32 65535, %v2145_v60  ;;  %v2176_v36 = vshrl.u32 %v2145_v60, 16 }
 0x285   : >> { %v2149_v15 = vsel %vm2135_vm6, %v2146_v55, %v2148_v59  ;;  %8223 = vmatpush.msrb.mxu1 %v9369_v12 }
 0x286   : >> { %v2153_v43 = vand.u32 65535, %v2149_v15  ;;  %v2154_v26 = vshrl.u32 %v2149_v15, 16  ;;  %v2178_v47 = vmul.u32 %v2176_v36, %v2151_v46  ;;  %v2179_v9 = vmul.u32 %v2175_v40, %v2152_v29 }
 0x287   : >> { %v2177_v63 = vmul.u32 %v2175_v40, %v2151_v46  ;;  %v2180_v8 = vmul.u32 %v2176_v36, %v2152_v29  ;;  %v2139_v15 = vsel %vm2137_vm9, %v2127_v17, 2102212464 }
 0x288   : >> { %v2156_v42 = vmul.u32 %v2154_v26, %v2151_v46  ;;  %v2157_v61 = vmul.u32 %v2153_v43, %v2152_v29  ;;  %v2181_v51 = vshll.u32 %v2178_v47, 16  ;;  %v2155_v38 = vmul.u32 %v2153_v43, %v2151_v46 }
 0x289   : >> { %v2158_v3 = vmul.u32 %v2154_v26, %v2152_v29  ;;  %v2183_v58 = vshll.u32 %v2179_v9, 16  ;;  %v2118_v46 = vshrl.u32 %v11182_v45, %v9312_v11  ;;  %v2182_v43 = vshrl.u32 %v2178_v47, 16 }
 0x28a   : >> { %v2159_v62 = vshll.u32 %v2156_v42, 16  ;;  %vm2185_vm15 = vc.u32 %v2177_v63, %v2181_v51  ;;  %v2187_v55 = vadd.s32 %v2181_v51, %v2177_v63  ;;  %v2161_v59 = vshll.u32 %v2157_v61, 16 }
 0x28b   : >> { %v2186_v6 = vsel %vm2185_vm15, 1, %v11192_v48  ;;  %v2184_v26 = vshrl.u32 %v2179_v9, 16 }
 0x28c   : >> { %vm2163_vm10 = vc.u32 %v2155_v38, %v2159_v62  ;;  %v2165_v60 = vadd.s32 %v2159_v62, %v2155_v38  ;;  %v2188_v7 = vadd.s32 %v2186_v6, %v2180_v8  ;;  %vm2189_vm1 = vc.u32 %v2187_v55, %v2183_v58 }
 0x28d   : >> { %v2164_v56 = vsel %vm2163_vm10, 1, %v11192_v48  ;;  %v2190_v29 = vsel %vm2189_vm1, 1, %v11192_v48  ;;  %v2138_v62 = vsel %vm2134_vm8, %v2118_v46, %v9328_v0  ;;  %v2140_v8 = vsel %vm2136_vm7, %v9330_v52, %v2139_v15 }
 0x28e   : >> { %v2166_v40 = vadd.s32 %v2164_v56, %v2158_v3  ;;  %vm2167_vm0 = vc.u32 %v2165_v60, %v2161_v59  ;;  %v2192_v38 = vadd.s32 %v2190_v29, %v2188_v7  ;;  %v2160_v6 = vshrl.u32 %v2156_v42, 16 }
 0x28f   : >> { %v2168_v36 = vsel %vm2167_vm0, 1, %v11192_v48  ;;  %v2162_v56 = vshrl.u32 %v2157_v61, 16  ;;  %v2141_v63 = vsel %vm2135_vm6, %v2138_v62, %v2140_v8  ;;  %v2191_v7 = vadd.s32 %v2187_v55, %v2183_v58 }
 0x290   : >> { %v2170_v17 = vadd.s32 %v2168_v36, %v2166_v40  ;;  %v2193_v11 = vadd.s32 %v2192_v38, %v2182_v43  ;;  %v2195_v60 = vmul.u32 %v9337_v41, %v2141_v63  ;;  %vm2104_vm7 = vcmp.lt.s32.totalorder %v9302_v13, 0 }
 0x291   : >> { %vm2103_vm6 = vcmp.le.f32.partialorder %v9306_v2, 0.7853982  ;;  %vm2245_vm10 = vweird.f32 %v9302_v13  ;;  %vm2267_vm0 = vcmp.eq.f32.partialorder %v9306_v2, 8.507059e+37 }
 0x292   : >> { %v2171_v3 = vadd.s32 %v2170_v17, %v2160_v6  ;;  %v2194_v51 = vadd.s32 %v2193_v11, %v2184_v26 }
 0x294   : >> { %v2172_v47 = vadd.s32 %v2171_v3, %v2162_v56  ;;  %v2198_v59 = vadd.s32 1, %v2194_v51  ;;  %v9395_v3 = vmul.f32 %v9302_v13, %v9302_v13 }
 0x296   : >> { %vm2197_vm2 = vc.u32 %v2172_v47, %v2191_v7  ;;  %v2196_v43 = vadd.s32 %v2191_v7, %v2172_v47  ;;  %8474 = vrcp.f32 %v9395_v3 }
 0x297   : >> { %v2199_v0 = vsel %vm2197_vm2, %v2198_v59, %v2194_v51  ;;  %v9397_v51 = vpop.eup %8472 }
 0x298   : >> { %v2200_v46 = vadd.s32 %v2199_v0, %v2195_v60  ;;  %v2258_v0 = vmul.f32 %v9397_v51, %v9302_v13  ;;  %vm2263_vm15 = vweird.f32 %v9397_v51 }
 0x299   : >> { %vm9418_vm1 = vmor %vm2245_vm10, %vm2263_vm15 }
 0x29a   : >> { %v2201_v29 = vadd.s32 536870912, %v2200_v46 }
 0x29c   : >> { %v2202_v52 = vshrl.u32 %v2201_v29, 30 }
 0x29e   : >> { %v2203_v42 = vshll.u32 %v2202_v52, 30  ;;  %v2226_v7 = vsub.s32 4, %v2202_v52 }
 0x2a0   : >> { %v2204_v15 = vsub.s32 %v2200_v46, %v2203_v42  ;;  %v2227_v42 = vsel %vm2104_vm7, %v2226_v7, %v2202_v52  ;;  %v2268_v52 = vand.u32 2147483648, %v9302_v13 }
 0x2a2   : >> { %vm2205_vm8 = vcmp.lt.s32.totalorder %v2204_v15, 0  ;;  %v2206_v9 = vsub.s32 0, %v2204_v15 }
 0x2a4   : >> { %v2207_v61 = vsel %vm2205_vm8, %v2206_v9, %v2204_v15 }
 0x2a5   : >> { %v2208_v40 = vclz %v2207_v61 }
 0x2a7   : >> { %v8022_v36 = vadd.s32 4294967294, %v2208_v40  ;;  %v2259_v40 = vsub.f32 1.0, %v2258_v0 }
 0x2a9   : >> { %vm8023_vm9 = vcmp.lt.s32.totalorder %v8022_v36, 0 }
 0x2aa   : >> { %v2211_v10 = vsel %vm8023_vm9, 0, %v8022_v36  ;;  %v2229_v36 = vsel %vm2103_vm6, 0, %v2227_v42 }
 0x2ab   : >> { %v2212_v38 = vsub.s32 32, %v2211_v10  ;;  %v2216_v58 = vsub.s32 4294967266, %v2211_v10  ;;  %v2213_v55 = vshll.u32 %v2204_v15, %v2211_v10  ;;  %v9405_v15 = vpop.eup %8474 }
 0x2ad   : >> { %v2214_v62 = vshrl.u32 %v2196_v43, %v2212_v38  ;;  %v2217_v41 = vadd.s32 127, %v2216_v58  ;;  %v2432_v38 = vmul.f32 %v9405_v15, %v9395_v3 }
 0x2af   : >> { %v2215_v8 = vor.u32 %v2214_v62, %v2213_v55  ;;  %v2218_v6 = vshll.u32 %v2217_v41, 23  ;;  %v2260_v62 = vmul.f32 %v9397_v51, %v2259_v40  ;;  %v2246_v41 = vadd.s32 3, %v2229_v36 }
 0x2b1   : >> { %v2219_v17 = vor.u32 4788187, %v2218_v6  ;;  %v2222_v11 = vcvt.s32.f32 %v2215_v8  ;;  %v1502_v8 = vpop.f32.mrf.mxu3  ;;  %v2247_v0 = vand.u32 3, %v2246_v41 }
 0x2b2   : >> { %v1510_v7 = vrot.slane %v1502_v8, 1 }
 0x2b3   : >> { %v2220_v26 = vand.u32 2147483647, %v2219_v17  ;;  %vm2248_vm9 = vcmp.lt.s32.totalorder %v2247_v0, 2 }
 0x2b5   : >> { %v2223_v56 = vmul.f32 %v2222_v11, %v2220_v26  ;;  %v2433_v26 = vsub.f32 1.0, %v2432_v38 }
 0x2b7   : >> { %v2224_v63 = vxor.u32 2147483648, %v2223_v56  ;;  %v2434_v40 = vmul.f32 %v9405_v15, %v2433_v26 }
 0x2b9   : >> { %v2225_v47 = vsel %vm2104_vm7, %v2224_v63, %v2223_v56  ;;  %v2261_v63 = vadd.f32 %v9397_v51, %v2260_v62  ;;  %vm2249_vm7 = vcmp.eq.s32.totalorder %v2247_v0, 0 }
 0x2ba   : >> { %v2228_v59 = vsel %vm2103_vm6, %v9302_v13, %v2225_v47  ;;  %v2419_v47 = vand.u32 3, %v2229_v36  ;;  %vm2252_vm6 = vcmp.eq.s32.totalorder %v2247_v0, 2  ;;  %v2440_v0 = vand.u32 2147483647, %v9395_v3 }
 0x2bb   : >> { %v2230_v60 = vmul.f32 %v2228_v59, %v2228_v59 }
 0x2bc   : >> { %vm2420_vm2 = vcmp.lt.s32.totalorder %v2419_v47, 2  ;;  %vm2421_vm8 = vcmp.eq.s32.totalorder %v2419_v47, 0  ;;  %vm2424_vm15 = vcmp.eq.s32.totalorder %v2419_v47, 2 }
 0x2bd   : >> { %v2231_v46 = vmul.f32 -0.001358992, %v2230_v60  ;;  %v2238_v29 = vmul.f32 -0.00019511016, %v2230_v60 }
 0x2bf   : >> { %v2232_v9 = vadd.f32 0.041655596, %v2231_v46  ;;  %v2239_v61 = vadd.f32 0.008332121, %v2238_v29  ;;  %v1516_v46 = vrot.slane %v1502_v8, 2 }
 0x2c1   : >> { %v2233_v10 = vmul.f32 %v2232_v9, %v2230_v60  ;;  %v2240_v43 = vmul.f32 %v2239_v61, %v2230_v60  ;;  %v2269_v61 = vor.u32 1.1754944e-38, %v2268_v52 }
 0x2c3   : >> { %v2234_v58 = vadd.f32 -0.4999988, %v2233_v10  ;;  %v2241_v55 = vadd.f32 -0.16666654, %v2240_v43  ;;  %v1404_v43 = vpop.permute.xlu2 %1403 }
 0x2c5   : >> { %v2235_v6 = vmul.f32 %v2234_v58, %v2230_v60  ;;  %v2242_v17 = vmul.f32 %v2241_v55, %v2230_v60  ;;  %v2100_v60 = vmul.f32 %v9266_v50, %v9192_v31 }
 0x2c7   : >> { %v2236_v11 = vadd.f32 1.0, %v2235_v6  ;;  %v2243_v56 = vadd.f32 1.0, %v2242_v17  ;;  %v2435_v17 = vadd.f32 %v9405_v15, %v2434_v40 }
 0x2c9   : >> { %v2244_v29 = vmul.f32 %v2243_v56, %v2228_v59  ;;  %v2253_v42 = vxor.u32 2147483648, %v2236_v11  ;;  %v2265_v59 = vsel %vm9418_vm1, %v9397_v51, %v2261_v63  ;;  %v1371_v10 = vpop.permute.xlu1 %1370  ;;  %vm2437_vm1 = vweird.f32 %v9405_v15 }
 0x2ca   : >> { %8253 = vpush %v1371_v10  ;;  %v2270_v52 = vsel %vm2267_vm0, %v2269_v61, %v2265_v59  ;;  %v2101_v63 = vsub.f32 1.0, %v2100_v60 }
 0x2cb   : >> { %v2250_v36 = vxor.u32 2147483648, %v2244_v29  ;;  %v2254_v58 = vsel %vm2252_vm6, %v2253_v42, %v2244_v29  ;;  %v2426_v62 = vsel %vm2424_vm15, %v2253_v42, %v2244_v29  ;;  %8255 = vpush %v1404_v43  ;;  %v2273_v42 = vmul.f32 %v9266_v50, %v9199_v57 }
 0x2cc   : >> { %8257 = vpush %v1502_v8  ;;  %vm11209_vm15 = vcmask 140288  }
 0x2cd   : >> { %v2251_v38 = vsel %vm2249_vm7, %v2236_v11, %v2250_v36  ;;  %v2423_v55 = vsel %vm2421_vm8, %v2236_v11, %v2250_v36  ;;  %v2442_v11 = vand.u32 2147483648, %v9395_v3  ;;  %8259 = vpush %v1510_v7  ;;  %v2274_v60 = vsub.f32 0.5, %v2273_v42  ;;  %v835_v42 = vld [vmem:[#allocation7] sm:$0x7] }
 0x2ce   : >> { %v2255_v41 = vsel %vm2248_vm9, %v2251_v38, %v2254_v58  ;;  %v2427_v6 = vsel %vm2420_vm2, %v2423_v55, %v2426_v62  ;;  %vm2436_vm2 = vweird.f32 %v9395_v3  ;;  %8261 = vpush %v1516_v46 }
 0x2cf   : >> { %v2256_v51 = vsel %vm2245_vm10, nan, %v2255_v41  ;;  %v2428_v26 = vsel %vm2245_vm10, nan, %v2427_v6  ;;  %v1470_v56 = vpop.f32.mrf.mxu2  ;;  %vm2438_vm8 = vmor %vm2436_vm2, %vm2437_vm1  ;;  %v2443_v7 = vor.u32 1.1754944e-38, %v2442_v11  ;;  %vm2441_vm10 = vcmp.eq.f32.partialorder %v2440_v0, 8.507059e+37 }
 0x2d0   : >> { %v2271_v47 = vmul.f32 %v2270_v52, %v2256_v51  ;;  %v1473_v8 = vsub.f32 0.0, %v1470_v56  ;;  %v2429_v29 = vsub.f32 1.0, %v2428_v26  ;;  %v2439_v13 = vsel %vm2438_vm8, %v9405_v15, %v2435_v17 }
 0x2d1   : >> { %v2444_v3 = vsel %vm2441_vm10, %v2443_v7, %v2439_v13  ;;  %v11195_v15 = vsub.f32 0.0, %v9216_v14  ;;  %v11196_v17 = vsub.f32 0.0, %v9282_v32  ;;  %v9467_v51 = vmul.f32 %v9051_v16, %v9051_v16  ;;  %v9477_v32 = vld [vmem:[#allocation8 + $0x10] sm:$0x3]  ;;  %v1529_v56 = vpop.permute.xlu1 %1528 }
 0x2d2   : >> { %v2272_v2 = vsel %vm2098_vm5, %v2101_v63, %v2271_v47  ;;  %1475 = vrot.lane.b32.xlu2 %v1473_v8, %s8652_s24  ;;  %v2445_v46 = vmul.f32 %v2444_v3, %v2429_v29  ;;  %7985 = vmatpush.msk.msrb.mxu0 %vm1566_vm12, %v9477_v32  ;;  %v1943_v47 = vpop.permute.xlu0 %1942  ;;  %v9493_v3 = vrot.slane %v835_v42, 4 }
 0x2d3   : >> { %2448 = vrot.lane.b32.xlu0 %v2272_v2, %s11121_s19 }
 0x2d4   : >> { %v2446_v9 = vsel %vm2098_vm5, %v2274_v60, %v2445_v46  ;;  %vm11201_vm5 = vcmask 146432   ;;  %v9497_v46 = vld [vmem:[%s9036_s15] sm:$0x7f] }
 0x2d5   : >> { %vm11202_vm0 = vmmov %vm11201_vm5 }
 0x2d6   : >> { %vm11203_vm9 = vmmov %vm11202_vm0 }
 0x2d7   : >> { %vm11207_vm7 = vmmov %vm11202_vm0 }
 0x2d8   : >> { %vm11208_vm6 = vmmov %vm11202_vm0 }
 0x2d9   : >> { %vm11210_vm1 = vmmov %vm11202_vm0 }
 0x2da   : >> { %1534 = vrot.lane.b32.xlu2 %v11195_v15, %s8653_s30  ;;  %v1950_v13 = vpop.permute.xlu0 %1949  ;;  %v830_v15 = vld [vmem:[#allocation3 + $0x8] sm:$0xff]  ;;  %vm11211_vm2 = vmmov %vm11202_vm0 }
 0x2db   : >> { %2481 = vrot.lane.b32.xlu0 %v2446_v9, %s11121_s19  ;;  %v831_v9 = vld [vmem:[#allocation3 + $0x10] sm:$0x3]  ;;  %vm11212_vm8 = vmmov %vm11202_vm0 }
 0x2dc   : >> { %vm11213_vm10 = vmmov %vm11202_vm0 }
 0x2e2   : >> { %1546 = vrot.lane.b32.xlu2 %v9051_v16, %s11123_s2 }
 0x2fb   : >> { %s8254_s13 = spop %8253 }
 0x2fc   : >> { %v1373_v61 = vstv %s8254_s13  ;;  %s8256_s22 = spop %8255 }
 0x2fd   : >> { %v1375_v50 = vmul.f32 %v1373_v61, %v9335_v39  ;;  %s8258_s25 = spop %8257  ;;  %v1406_v30 = vstv %s8256_s22  ;;  %v829_v61 = vld [vmem:[#allocation3] sm:$0xff] }
 0x2fe   : >> { %v1507_v36 = vstv %s8258_s25  ;;  %s8260_s23 = spop %8259 }
 0x2ff   : >> { %v1399_v40 = vpop.f32.mrf.mxu1  ;;  %v1509_v59 = vmul.f32 %v1507_v36, %v8998_v49  ;;  %v1512_v10 = vstv %s8260_s23  ;;  %s8262_s19 = spop %8261  ;;  %v1376_v14 = vadd.f32 %v8803_v4, %v1375_v50  ;;  %v845_v50 = vmul.f32 %v11204_v25, %v831_v9  ;;  %v9530_v9 = vld [vmem:[#allocation4] sm:$0x7] }
 0x300   : >> { %v1514_v43 = vmul.f32 %v1512_v10, %v9002_v53  ;;  %v1518_v38 = vstv %s8262_s19  ;;  %v1408_v58 = vmul.f32 %v1406_v30, %v1399_v40  ;;  %v844_v40 = vmul.f32 %v830_v15, %v11205_v28 }
 0x301   : >> { %v1520_v62 = vmul.f32 %v1518_v38, %v9004_v54  ;;  %v843_v36 = vmul.f32 %v829_v61, %v11206_v27 }
 0x302   : >> { %v1515_v55 = vadd.f32 %v1514_v43, %v1509_v59  ;;  %v9458_v39 = vadd.f32 %v1408_v58, %v1376_v14 }
 0x304   : >> { %v1521_v41 = vadd.f32 %v1520_v62, %v1515_v55 }
 0x306   : >> { %v1522_v6 = vsub.f32 0.0, %v1521_v41 }
 0x308   : >> { %1410 = vxpose.xlu2.b32.start.end [1/1] (short) (narrow) %v9458_v39, 8  ;;  %1524 = vrot.lane.b32.xlu1 %v1522_v6, %s8652_s24 }
 0x310   : >> { %1444 = vrot.lane.b32.xlu1 %v11196_v17, %s8652_s24 }
 0x318   : >> { %1599 = vrot.lane.b32.xlu1 %v9467_v51, %s11123_s2 }
 0x32c   : >> { %v1476_v52 = vpop.permute.xlu2 %1475 }
 0x32d   : >> { %1478 = vst.msk [vmem:[#allocation8 + $0x6] sm:$0x7] %vm11197_vm13, %v1476_v52 }
 0x32e   : >> { %1479 = vst.msk [vmem:[#allocation8 + $0x6] sm:$0x7] %vm11199_vm14, %v11198_v44 }
 0x334   : >> { %v1535_v26 = vpop.permute.xlu2 %1534 }
 0x33c   : >> { %v9474_v11 = vpop.permute.xlu2 %1546 }
 0x33d   : >> { %8263 = vpush %v9474_v11 }
 0x36e   : >> { %s8264_s23 = spop %8263 }
 0x36f   : >> { %v9510_v30 = vstv %s8264_s23 }
 0x37a   : >> { %v1525_v63 = vpop.permute.xlu1 %1524 }
 0x37b   : >> { %1527 = vst.msk [vmem:[#allocation8 + $0x9] sm:$0x7] %vm11197_vm13, %v1525_v63  ;;  %v1553_v63 = vmul.f32 %v9510_v30, %v9477_v32 }
 0x37c   : >> { %1531 = vst.msk [vmem:[#allocation8 + $0x9] sm:$0x7] %vm11199_vm14, %v1529_v56 }
 0x37d   : >> { %1537 = vst.msk [vmem:[#allocation8 + $0x9] sm:$0x7] %vm11200_vm11, %v1535_v26 }
 0x382   : >> { %v1445_v0 = vpop.permute.xlu1 %1444 }
 0x383   : >> { %1447 = vst.msk [vmem:[#allocation8 + $0x3] sm:$0x7] %vm11197_vm13, %v1445_v0  ;;  %v11125_v0 = vmov 0.0  }
 0x384   : >> { %v1539_v8 = vld [vmem:[#allocation8 + $0x8] sm:$0xff] }
 0x385   : >> { %1583 = vmatpush.msrb.mxu0 %v1539_v8  ;;  %v1552_v62 = vmul.f32 %v9510_v30, %v1539_v8 }
 0x387   : >> { %v1555_v26 = vadd.f32 %v8886_v19, %v1552_v62 }
 0x38a   : >> { %v1600_v2 = vpop.permute.xlu1 %1599  ;;  %v1538_v29 = vld [vmem:[#allocation8] sm:$0xff] }
 0x38b   : >> { %1584 = vmatpush.msrb.mxu0 %v1538_v29  ;;  %8265 = vpush %v1600_v2  ;;  %v1551_v59 = vmul.f32 %v9510_v30, %v1538_v29 }
 0x38c   : >> { %7986 = vmatmul.msk.f32.vlgmr.msrb.gmra.mxu0 %vm11201_vm5, %v1538_v29  ;;  %8267 = vpush %v1943_v47  ;;  %v1556_v29 = vadd.f32 %v8889_v20, %v1553_v63  ;;  %vm11214_vm5 = vmmov %vm11202_vm0 }
 0x38d   : >> { %7989 = vmatpush.msk.msra.mxu0 %vm1566_vm12, %v9339_v35  ;;  %8269 = vpush %v1950_v13  ;;  %v909_v35 = vsub.f32 %v9497_v46, %v9493_v3  ;;  %v1554_v58 = vadd.f32 %v8803_v4, %v1551_v59 }
 0x38f   : >> { %1652 = vmatpush.msra.mxu0 %v9369_v12  ;;  %v1850_v60 = vrot.slane %v909_v35, 4  ;;  %v9502_v12 = vld [vmem:[#allocation9] sm:$0xff] }
 0x390   : >> { %8224 = vmatpush.msrb.mxu1 %v9502_v12 }
 0x391   : >> { %1653 = vmatpush.msra.mxu0 %v9502_v12 }
 0x393   : >> { %8003 = vmatpush.msk.msrb.mxu0 %vm1566_vm12, %v845_v50 }
 0x394   : >> { %7987 = vmatmul.msk.f32.gmra.mxu0 %vm11202_vm0, %v1539_v8 }
 0x395   : >> { %1758 = vmatpush.msrb.mxu0 %v844_v40 }
 0x397   : >> { %1759 = vmatpush.msrb.mxu0 %v843_v36 }
 0x39c   : >> { %7988 = vmatmul.msk.f32.gmra.mxu0 %vm11203_vm9, %v9477_v32  ;;  %v9528_v32 = vperm.slane %v9467_v51, 0  ;;  %vm11215_vm9 = vmmov %vm11202_vm0 }
 0x3a1   : >> { %v1426_v7 = vpop.trf.xlu2 }
 0x3a2   : >> { %1615 = vrot.lane.b32.xlu1 %v1426_v7, %s8652_s24 }
 0x3aa   : >> { %1619 = vrot.lane.b32.xlu1 %v1426_v7, %s11139_s28 }
 0x3b2   : >> { %1851 = vrot.lane.b32.xlu1 %v1850_v60, %s11133_s14 }
 0x3bc   : >> { %s8266_s25 = spop %8265 }
 0x3bd   : >> { %v1602_v43 = vstv %s8266_s25  ;;  %s8268_s19 = spop %8267 }
 0x3be   : >> { %s8270_s13 = spop %8269 }
 0x409   : >> { %v1586_v10 = vpop.f32.mrf.mxu0 }
 0x40a   : >> { %v1595_v14 = vmul.f32 0.5, %v1586_v10 }
 0x40c   : >> { %v1604_v38 = vmul.f32 %v1602_v43, %v1595_v14 }
 0x40e   : >> { %v1607_v55 = vadd.f32 %v1604_v38, %v1554_v58 }
 0x410   : >> { %1610 = vst.msk [vmem:[#allocation10] sm:$0xff] %vm11207_vm7, %v1607_v55  ;;  %vm11216_vm7 = vmmov %vm11202_vm0 }
 0x411   : >> { %v1589_v41 = vpop.f32.mrf.mxu0 }
 0x412   : >> { %v1596_v6 = vmul.f32 0.5, %v1589_v41 }
 0x414   : >> { %v1616_v17 = vpop.permute.xlu1 %1615  ;;  %v1605_v52 = vmul.f32 %v1602_v43, %v1596_v6 }
 0x415   : >> { %1618 = vst.msk [vmem:[#allocation10 + $0x3] sm:$0x7] %vm11197_vm13, %v1616_v17 }
 0x416   : >> { %v1608_v56 = vadd.f32 %v1605_v52, %v1555_v26  ;;  %v9576_v52 = vld [vmem:[#allocation5] sm:$0x7] }
 0x418   : >> { %1611 = vst.msk [vmem:[#allocation10 + $0x8] sm:$0xff] %vm11208_vm6, %v1608_v56  ;;  %vm11217_vm6 = vmmov %vm11202_vm0 }
 0x419   : >> { %v1592_v47 = vpop.f32.mrf.mxu0  ;;  %1613 = vst.msk [vmem:[#allocation10 + $0x6] sm:$0x7] %vm11200_vm11, %v11125_v0 }
 0x41a   : >> { %v1597_v8 = vmul.f32 0.5, %v1592_v47 }
 0x41c   : >> { %v1620_v2 = vpop.permute.xlu1 %1619  ;;  %v1606_v13 = vmul.f32 %v1602_v43, %v1597_v8  ;;  %v1956_v8 = vrot.slane %v9058_v37, 3 }
 0x41d   : >> { %1622 = vst.msk [vmem:[#allocation10 + $0x9] sm:$0x7] %vm11199_vm14, %v1620_v2 }
 0x41e   : >> { %v1609_v7 = vadd.f32 %v1606_v13, %v1556_v29 }
 0x420   : >> { %1612 = vst.msk [vmem:[#allocation10 + $0x10] sm:$0x3] %vm11209_vm15, %v1609_v7  ;;  %v1623_v42 = vld [vmem:[#allocation10] sm:$0xff]  ;;  %vm1673_vm15 = vcmask 1043456   ;;  %v1945_v7 = vstv %s8268_s19 }
 0x421   : >> { %7990 = vmatmul.msk.f32.vlgmr.msra.gmra.mxu0 %vm11210_vm1, %v1623_v42  ;;  %7993 = vmatpush.msk.msrb.mxu2 %vm1673_vm15, %v11178_v34  ;;  %vm11218_vm1 = vcmask 97280   ;;  %v1947_v37 = vmul.f32 %v1945_v7, %v8998_v49 }
 0x422   : >> { %8031 = vmatpush.msk.msra.mxu0 %vm917_vm3, %v9530_v9 }
 0x423   : >> { %1692 = vmatpush.msrb.mxu2 %v11179_v33 }
 0x424   : >> { %v1852_v35 = vpop.permute.xlu1 %1851  ;;  %v1624_v60 = vld [vmem:[#allocation10 + $0x8] sm:$0xff] }
 0x425   : >> { %v1854_v15 = vmul.f32 %v1852_v35, %v9528_v32  ;;  %v1886_v61 = vmul.f32 %v1852_v35, %v9054_v18  ;;  %7991 = vmatmul.msk.f32.vlgmr.msrb.gmra.mxu1 %vm11211_vm2, %v1624_v60  ;;  %vm11219_vm2 = vmmov %vm11218_vm1 }
 0x427   : >> { %1888 = vrot.lane.b32.xlu2 %v1886_v61, %s11123_s2  ;;  %1856 = vrot.lane.b32.xlu1 %v1854_v15, %s11123_s2  ;;  %v1625_v50 = vld [vmem:[#allocation10 + $0x10] sm:$0x3] }
 0x428   : >> { %8007 = vmatpush.xpose.msk.msra.mxu1 %vm11212_vm8, %v1625_v50  ;;  %vm11220_vm8 = vmmov %vm11202_vm0 }
 0x429   : >> { %8004 = vmatmul.msk.f32.vlgmr.msrb.gmra.mxu0 %vm11213_vm10, %v1623_v42  ;;  %vm11221_vm10 = vmmov %vm11218_vm1 }
 0x42c   : >> { %8008 = vmatpush.xpose.msk.msra.mxu1 %vm11202_vm0, %v1624_v60  ;;  %vm11223_vm0 = vmmov %vm11218_vm1 }
 0x42d   : >> { %7992 = vmatmul.msk.f32.gmra.mxu1 %vm11214_vm5, %v1625_v50  ;;  %vm11222_vm5 = vmmov %vm11218_vm1 }
 0x42f   : >> { %2002 = vrot.lane.b32.xlu1 %v9054_v18, %s11123_s2 }
 0x430   : >> { %8009 = vmatpush.xpose.msk.msra.mxu1 %vm11215_vm9, %v1623_v42  ;;  %vm11224_vm9 = vmmov %vm11217_vm6  ;;  %v1952_v42 = vstv %s8270_s13 }
 0x431   : >> { %8005 = vmatmul.msk.f32.gmra.mxu0 %vm11216_vm7, %v1624_v60  ;;  %vm11225_vm7 = vmmov %vm11223_vm0  ;;  %v1954_v35 = vmul.f32 %v1952_v42, %v9002_v53 }
 0x433   : >> { %v1955_v15 = vadd.f32 %v1954_v35, %v1947_v37 }
 0x439   : >> { %8006 = vmatmul.msk.f32.gmra.mxu0 %vm11217_vm6, %v1625_v50 }
 0x481   : >> { %v1889_v59 = vpop.permute.xlu2 %1888 }
 0x499   : >> { %v1857_v40 = vpop.permute.xlu1 %1856 }
 0x49a   : >> { %8013 = vmatpush.msk.msra.mxu2 %vm917_vm3, %v1857_v40 }
 0x49e   : >> { %v1655_v36 = vpop.f32.mrf.mxu0 }
 0x49f   : >> { %7994 = vmatmul.msk.f32.vlgmr.msrb.gmra.mxu2 %vm11218_vm1, %v1655_v36  ;;  %vm11226_vm1 = vmmov %vm11223_vm0 }
 0x4a0   : >> { %8015 = vmatpush.msk.msrb.mxu2 %vm917_vm3, %v1889_v59 }
 0x4a1   : >> { %v2003_v6 = vpop.permute.xlu1 %2002 }
 0x4a2   : >> { %v1658_v10 = vpop.f32.mrf.mxu1 }
 0x4a6   : >> { %v1761_v14 = vpop.f32.mrf.mxu0 }
 0x4a7   : >> { %7995 = vmatmul.msk.f32.gmra.mxu2 %vm11219_vm2, %v1658_v10  ;;  %8010 = vmatmul.msk.f32.vlgmr.msra.gmra.mxu1 %vm11220_vm8, %v1761_v14  ;;  %vm11227_vm2 = vmmov %vm11223_vm0 }
 0x4a8   : >> { %vm11228_vm8 = vmmov %vm11223_vm0 }
 0x4aa   : >> { %v1661_v43 = vpop.f32.mrf.mxu1 }
 0x4ab   : >> { %7997 = vmatpush.xpose.msk.msrb.mxu3 %vm11221_vm10, %v1661_v43  ;;  %vm11231_vm10 = vcmask 18432  }
 0x4ae   : >> { %v1764_v38 = vpop.f32.mrf.mxu0 }
 0x4af   : >> { %7998 = vmatpush.xpose.msk.msrb.mxu3 %vm11222_vm5, %v1658_v10  ;;  %7996 = vmatmul.msk.f32.gmra.mxu2 %vm11223_vm0, %v1661_v43  ;;  %vm11232_vm5 = vmmov %vm11231_vm10 }
 0x4b0   : >> { %8011 = vmatmul.msk.f32.gmra.mxu1 %vm11224_vm9, %v1764_v38  ;;  %vm11235_vm0 = vmmov %vm11217_vm6 }
 0x4b1   : >> { %vm11236_vm9 = vmmov %vm11235_vm0 }
 0x4b3   : >> { %7999 = vmatpush.xpose.msk.msrb.mxu3 %vm11225_vm7, %v1655_v36  ;;  %v2057_v36 = vpop.permute.xlu0 %2056  ;;  %vm11237_vm7 = vmmov %vm11235_vm0 }
 0x4b6   : >> { %v1767_v58 = vpop.f32.mrf.mxu0 }
 0x4b7   : >> { %8014 = vmatmul.msk.f32.vlgmr.msra.gmra.mxu2 %vm913_vm4, %v8803_v4 }
 0x4b8   : >> { %8012 = vmatmul.msk.f32.gmra.mxu1 %vm11217_vm6, %v1767_v58  ;;  %8017 = vmatpush.msk.msra.mxu2 %vm917_vm3, %v9458_v39  ;;  %v2005_v39 = vmul.f32 %v9530_v9, %v2003_v6  ;;  %vm11238_vm6 = vmmov %vm11235_vm0 }
 0x4ba   : >> { %v2006_v26 = vsub.f32 %v9576_v52, %v2005_v39 }
 0x4bb   : >> { %v2064_v10 = vpop.permute.xlu0 %2063 }
 0x4bf   : >> { %8016 = vmatmul.msk.f32.vlgmr.msrb.gmra.mxu2 %vm913_vm4, %v8803_v4 }
 0x4c3   : >> { %v2072_v43 = vpop.permute.xlu0 %2071 }
 0x4c7   : >> { %8018 = vmatmul.msk.f32.vlgmr.msra.gmra.mxu2 %vm913_vm4, %v8803_v4 }
 0x4cb   : >> { %v2449_v58 = vpop.permute.xlu0 %2448 }
 0x4d3   : >> { %v2482_v39 = vpop.permute.xlu0 %2481 }
 0x522   : >> { %v1694_v55 = vpop.f32.mrf.mxu2 }
 0x523   : >> { %8000 = vmatmul.msk.f32.vlgmr.msrb.gmra.mxu3 %vm11226_vm1, %v1694_v55  ;;  %vm11239_vm1 = vmmov %vm11235_vm0 }
 0x52a   : >> { %v1697_v62 = vpop.f32.mrf.mxu2 }
 0x52b   : >> { %8001 = vmatmul.msk.f32.gmra.mxu3 %vm11227_vm2, %v1697_v62  ;;  %vm11240_vm2 = vcmask 140288  }
 0x532   : >> { %v1700_v41 = vpop.f32.mrf.mxu2 }
 0x533   : >> { %8002 = vmatmul.msk.f32.gmra.mxu3 %vm11228_vm8, %v1700_v41  ;;  %vm11241_vm8 = vmmov %vm11235_vm0 }
 0x53a   : >> { %v9573_v17 = vpop.f32.mrf.mxu2 }
 0x53b   : >> { %11229 = vst [vmem:[#allocation42_spill] sm:$0xff] %v9573_v17 }
 0x542   : >> { %v9579_v56 = vpop.f32.mrf.mxu2 }
 0x543   : >> { %11230 = vst [vmem:[#allocation43_spill] sm:$0xff] %v9579_v56  ;;  %v2007_v63 = vadd.f32 %v2006_v26, %v9579_v56 }
 0x545   : >> { %8019 = vmatpush.msk.msra.mxu3 %vm917_vm3, %v2007_v63 }
 0x54a   : >> { %v9583_v47 = vpop.f32.mrf.mxu2 }
 0x54b   : >> { %2558 = vrot.lane.b32.xlu2 %v9583_v47, %s11139_s28  ;;  %1964 = vxpose.xlu1.b32.start.end [1/1] (short) (narrow) %v9583_v47, 8 }
 0x5a5   : >> { %1957 = vrot.lane.b32.xlu1 %v1956_v8, %s11123_s2 }
 0x5a6   : >> { %v9604_v59 = vpop.f32.mrf.mxu3 }
 0x5ad   : >> { %1996 = vrot.lane.b32.xlu1 %v9493_v3, %s11133_s14 }
 0x5ae   : >> { %v9606_v14 = vpop.f32.mrf.mxu3 }
 0x5b6   : >> { %v9608_v38 = vpop.f32.mrf.mxu3 }
 0x5ef   : >> { %v1980_v2 = vpop.trf.xlu1 }
 0x5f0   : >> { %v2562_v29 = vsub.f32 0.0, %v1980_v2  ;;  %8020 = vmatmul.msk.f32.vlgmr.msra.gmra.mxu3 %vm913_vm4, %v1980_v2  ;;  %8032 = vmatmul.msk.f32.vlgmr.msra.gmra.mxu0 %vm913_vm4, %v1980_v2 }
 0x5f2   : >> { %2563 = vst.msk [vmem:[#allocation8 + $0x9] sm:$0x7] %vm11231_vm10, %v2562_v29  ;;  %vm11242_vm10 = vmmov %vm11235_vm0 }
 0x617   : >> { %v1958_v13 = vpop.permute.xlu1 %1957 }
 0x618   : >> { %8271 = vpush %v1958_v13 }
 0x649   : >> { %s8272_s22 = spop %8271 }
 0x64a   : >> { %v1960_v60 = vstv %s8272_s22 }
 0x64b   : >> { %v1962_v61 = vmul.f32 %v1960_v60, %v9004_v54 }
 0x64d   : >> { %v9598_v50 = vadd.f32 %v1962_v61, %v1955_v15 }
 0x64f   : >> { %v2520_v40 = vsub.f32 0.0, %v9598_v50 }
 0x651   : >> { %2607 = vrot.lane.b32.xlu0 %v2520_v40, %s11139_s28 }
 0x66d   : >> { %v2581_v6 = vpop.f32.mrf.mxu0 }
 0x66e   : >> { %v2589_v26 = vrot.slane %v2581_v6, 1  ;;  %v2595_v63 = vrot.slane %v2581_v6, 2 }
 0x673   : >> { %v2031_v55 = vpop.f32.mrf.mxu3 }
 0x674   : >> { %8273 = vpush %v2031_v55  ;;  %v2039_v62 = vrot.slane %v2031_v55, 1  ;;  %v2045_v41 = vrot.slane %v2031_v55, 2 }
 0x676   : >> { %8275 = vpush %v2039_v62 }
 0x677   : >> { %8277 = vpush %v2045_v41 }
 0x678   : >> { %8279 = vpush %v2057_v36 }
 0x679   : >> { %8281 = vpush %v2064_v10 }
 0x67a   : >> { %8283 = vpush %v2072_v43 }
 0x67b   : >> { %8285 = vpush %v2449_v58 }
 0x67c   : >> { %8287 = vpush %v2482_v39 }
 0x67d   : >> { %8289 = vpush %v2581_v6 }
 0x67e   : >> { %8291 = vpush %v2589_v26 }
 0x67f   : >> { %8293 = vpush %v2595_v63 }
 0x6a5   : >> { %s8274_s23 = spop %8273 }
 0x6a6   : >> { %v2036_v8 = vstv %s8274_s23 }
 0x6a7   : >> { %s8276_s25 = spop %8275  ;;  %v2038_v29 = vmul.f32 %v2036_v8, %v8998_v49 }
 0x6a8   : >> { %v2041_v2 = vstv %s8276_s25  ;;  %s8278_s19 = spop %8277 }
 0x6a9   : >> { %v2043_v13 = vmul.f32 %v2041_v2, %v9002_v53  ;;  %v2047_v7 = vstv %s8278_s19  ;;  %s8280_s13 = spop %8279  ;;  %v2623_v2 = vld [vmem:[#allocation9 + $0x10] sm:$0x3] }
 0x6aa   : >> { %v2059_v42 = vstv %s8280_s13  ;;  %s8282_s22 = spop %8281  ;;  %v2049_v35 = vmul.f32 %v2047_v7, %v9004_v54 }
 0x6ab   : >> { %v2044_v37 = vadd.f32 %v2043_v13, %v2038_v29  ;;  %v2061_v60 = vmul.f32 %v2059_v42, %v8998_v49  ;;  %v2066_v15 = vstv %s8282_s22  ;;  %s8284_s2 = spop %8283 }
 0x6ac   : >> { %v2068_v61 = vmul.f32 %v2066_v15, %v9002_v53  ;;  %v2074_v36 = vstv %s8284_s2  ;;  %s8286_s23 = spop %8285  ;;  %s11233_s2 = smov 126  }
 0x6ad   : >> { %v2050_v10 = vadd.f32 %v2049_v35, %v2044_v37  ;;  %s9615_s25 = spop %8287  ;;  %v2076_v58 = vmul.f32 %v2074_v36, %v9004_v54  ;;  %v2451_v26 = vstv %s8286_s23 }
 0x6ae   : >> { %v2069_v43 = vadd.f32 %v2068_v61, %v2061_v60  ;;  %s8290_s19 = spop %8289 }
 0x6af   : >> { %v2611_v55 = vsub.f32 0.0, %v2050_v10  ;;  %v2586_v62 = vstv %s8290_s19  ;;  %s8292_s13 = spop %8291  ;;  %8029 = vmatpush.msk.msrb.mxu3 %vm917_vm3, %v2050_v10  ;;  %s11247_s19 = smov 127  }
 0x6b0   : >> { %v2077_v41 = vadd.f32 %v2076_v58, %v2069_v43  ;;  %v2588_v6 = vmul.f32 %v2586_v62, %v8998_v49  ;;  %v2591_v39 = vstv %s8292_s13  ;;  %s8294_s22 = spop %8293  ;;  %8030 = vmatmul.msk.f32.vlgmr.msrb.gmra.mxu3 %vm913_vm4, %v9583_v47  ;;  %v2484_v43 = vstv %s9615_s25  ;;  %s11135_s13 = smov 2  }
 0x6b1   : >> { %2620 = vst.msk [vmem:[#allocation9 + $0x9] sm:$0x7] %vm11232_vm5, %v2611_v55  ;;  %v2593_v63 = vmul.f32 %v2591_v39, %v9002_v53  ;;  %v2597_v8 = vstv %s8294_s22  ;;  %8041 = vmatpush.msk.msra.mxu3 %vm1673_vm15, %v11178_v34  ;;  %v2559_v39 = vpop.permute.xlu2 %2558  ;;  %vm11243_vm5 = vmmov %vm11235_vm0  ;;  %s8656_s22 = smov 125  }
 0x6b2   : >> { %v2453_v29 = vmul.f32 %v2451_v26, %v2077_v41  ;;  %8027 = vmatpush.msk.msrb.mxu2 %vm917_vm3, %v2077_v41  ;;  %v2599_v7 = vmul.f32 %v2597_v8, %v9004_v54 }
 0x6b3   : >> { %v2594_v13 = vadd.f32 %v2593_v63, %v2588_v6  ;;  %8028 = vmatmul.msk.f32.vlgmr.msrb.gmra.mxu2 %vm913_vm4, %v2077_v41  ;;  %2764 = vmatpush.msra.mxu3 %v11179_v33  ;;  %v2619_v6 = vld [vmem:[#allocation8 + $0x10] sm:$0x3] }
 0x6b4   : >> { %8037 = vmatpush.msk.msra.mxu2 %vm1566_vm12, %v2623_v2  ;;  %8033 = vmatpush.msk.msrb.mxu1 %vm1566_vm12, %v2619_v6 }
 0x6b5   : >> { %v2600_v42 = vadd.f32 %v2599_v7, %v2594_v13 }
 0x6b7   : >> { %v2601_v37 = vsub.f32 0.0, %v2600_v42  ;;  %v1796_v42 = vpop.f32.mrf.mxu1 }
 0x6b8   : >> { %v2622_v35 = vld [vmem:[#allocation9 + $0x8] sm:$0xff] }
 0x6b9   : >> { %2603 = vrot.lane.b32.xlu0 %v2601_v37, %s8652_s24  ;;  %2728 = vmatpush.msra.mxu2 %v2622_v35 }
 0x6bb   : >> { %2729 = vmatpush.msra.mxu2 %v9502_v12  ;;  %v2454_v12 = vadd.f32 %v8803_v4, %v2453_v29  ;;  %v1997_v29 = vpop.permute.xlu1 %1996 }
 0x6bc   : >> { %v1999_v13 = vsub.f32 %v9497_v46, %v1997_v29 }
 0x6be   : >> { %v2929_v7 = vrot.slane %v1999_v13, 4 }
 0x6bf   : >> { %v1799_v37 = vpop.f32.mrf.mxu1 }
 0x6c1   : >> { %2613 = vrot.lane.b32.xlu0 %v2611_v55, %s8653_s30 }
 0x6c3   : >> { %v2608_v60 = vpop.permute.xlu0 %2607 }
 0x6c7   : >> { %v1802_v35 = vpop.f32.mrf.mxu1 }
 0x6c9   : >> { %2624 = vrot.lane.b32.xlu0 %v9051_v16, %s11233_s2 }
 0x72b   : >> { %v2604_v15 = vpop.permute.xlu0 %2603 }
 0x72c   : >> { %2606 = vst.msk [vmem:[#allocation8 + $0x9] sm:$0x7] %vm11197_vm13, %v2604_v15 }
 0x72d   : >> { %2610 = vst.msk [vmem:[#allocation8 + $0x9] sm:$0x7] %vm11199_vm14, %v2608_v60 }
 0x733   : >> { %v2614_v61 = vpop.permute.xlu0 %2613  ;;  %v2549_v36 = vpop.f32.mrf.mxu3 }
 0x734   : >> { %2616 = vst.msk [vmem:[#allocation8 + $0x9] sm:$0x7] %vm11200_vm11, %v2614_v61  ;;  %v2552_v10 = vsub.f32 0.0, %v2549_v36 }
 0x736   : >> { %v2477_v58 = vpop.f32.mrf.mxu2  ;;  %2554 = vrot.lane.b32.xlu2 %v2552_v10, %s8652_s24 }
 0x737   : >> { %v2486_v55 = vmul.f32 %v2484_v43, %v2477_v58 }
 0x739   : >> { %v9642_v62 = vadd.f32 %v2486_v55, %v2454_v12 }
 0x73b   : >> { %v9644_v41 = vpop.permute.xlu0 %2624  ;;  %2488 = vxpose.xlu0.b32.start.end [1/1] (short) (narrow) %v9642_v62, 8 }
 0x73c   : >> { %11234 = vst [vmem:[#allocation44_spill] sm:$0xff] %v9644_v41 }
 0x73d   : >> { %8295 = vpush %v9644_v41 }
 0x73e   : >> { %2522 = vrot.lane.b32.xlu2 %v2520_v40, %s8652_s24 }
 0x746   : >> { %2675 = vrot.lane.b32.xlu2 %v9467_v51, %s11233_s2 }
 0x76e   : >> { %s8296_s23 = spop %8295 }
 0x76f   : >> { %v9664_v60 = vstv %s8296_s23 }
 0x790   : >> { %v2555_v26 = vpop.permute.xlu2 %2554 }
 0x791   : >> { %2557 = vst.msk [vmem:[#allocation8 + $0x6] sm:$0x7] %vm11197_vm13, %v2555_v26 }
 0x792   : >> { %2561 = vst.msk [vmem:[#allocation8 + $0x6] sm:$0x7] %vm11199_vm14, %v2559_v39 }
 0x798   : >> { %v2523_v63 = vpop.permute.xlu2 %2522 }
 0x799   : >> { %2525 = vst.msk [vmem:[#allocation8 + $0x3] sm:$0x7] %vm11197_vm13, %v2523_v63  ;;  %v2618_v8 = vld [vmem:[#allocation8 + $0x8] sm:$0xff] }
 0x79a   : >> { %2660 = vmatpush.msrb.mxu1 %v2618_v8  ;;  %v2630_v55 = vmul.f32 %v9664_v60, %v2618_v8 }
 0x79c   : >> { %v2633_v63 = vadd.f32 %v8886_v19, %v2630_v55 }
 0x7a0   : >> { %v2676_v2 = vpop.permute.xlu2 %2675  ;;  %v2617_v50 = vld [vmem:[#allocation8] sm:$0xff] }
 0x7a1   : >> { %2661 = vmatpush.msrb.mxu1 %v2617_v50  ;;  %8297 = vpush %v2676_v2  ;;  %v2629_v15 = vmul.f32 %v9664_v60, %v2617_v50 }
 0x7a2   : >> { %8034 = vmatmul.msk.f32.vlgmr.msrb.gmra.mxu1 %vm11235_vm0, %v2617_v50  ;;  %v2631_v50 = vmul.f32 %v9664_v60, %v2619_v6 }
 0x7a3   : >> { %v2632_v43 = vadd.f32 %v8803_v4, %v2629_v15 }
 0x7aa   : >> { %8035 = vmatmul.msk.f32.gmra.mxu1 %vm11236_vm9, %v2618_v8  ;;  %vm11245_vm9 = vmmov %vm11235_vm0 }
 0x7b2   : >> { %8036 = vmatmul.msk.f32.gmra.mxu1 %vm11237_vm7, %v2619_v6  ;;  %vm11246_vm7 = vmmov %vm11235_vm0 }
 0x7d2   : >> { %s8298_s25 = spop %8297 }
 0x7d3   : >> { %v2678_v10 = vstv %s8298_s25 }
 0x7df   : >> { %v2504_v40 = vpop.trf.xlu0 }
 0x7e0   : >> { %2691 = vrot.lane.b32.xlu2 %v2504_v40, %s8652_s24 }
 0x7e8   : >> { %2695 = vrot.lane.b32.xlu2 %v2504_v40, %s11139_s28 }
 0x7f0   : >> { %2930 = vrot.lane.b32.xlu2 %v2929_v7, %s11133_s14  ;;  %v2634_v7 = vadd.f32 %v8889_v20, %v2631_v50 }
 0x81f   : >> { %v2663_v61 = vpop.f32.mrf.mxu1 }
 0x820   : >> { %v2672_v36 = vmul.f32 0.5, %v2663_v61 }
 0x822   : >> { %v2680_v58 = vmul.f32 %v2678_v10, %v2672_v36 }
 0x824   : >> { %v2683_v12 = vadd.f32 %v2680_v58, %v2632_v43 }
 0x826   : >> { %2686 = vst.msk [vmem:[#allocation10] sm:$0xff] %vm11238_vm6, %v2683_v12  ;;  %vm11248_vm6 = vcmask 97280  }
 0x827   : >> { %v2666_v39 = vpop.f32.mrf.mxu1 }
 0x828   : >> { %v2673_v26 = vmul.f32 0.5, %v2666_v39  ;;  %v9692_v39 = vadd.f32 %v9474_v11, %v9051_v16  ;;  %v1739_v11 = vmul.f32 %v9606_v14, %v9510_v30 }
 0x82a   : >> { %v2681_v2 = vmul.f32 %v2678_v10, %v2673_v26  ;;  %11244 = vst [vmem:[#allocation45_spill] sm:$0xff] %v9692_v39  ;;  %v3081_v26 = vperm.slane %v9692_v39, 0  ;;  %v1800_v50 = vadd.f32 %v1799_v37, %v1739_v11 }
 0x82c   : >> { %v2684_v40 = vadd.f32 %v2681_v2, %v2633_v63  ;;  %v1738_v63 = vmul.f32 %v9604_v59, %v9510_v30 }
 0x82e   : >> { %2687 = vst.msk [vmem:[#allocation10 + $0x8] sm:$0xff] %vm11239_vm1, %v2684_v40  ;;  %v1797_v2 = vadd.f32 %v1796_v42, %v1738_v63  ;;  %vm11249_vm1 = vmmov %vm11248_vm6 }
 0x82f   : >> { %v2669_v29 = vpop.f32.mrf.mxu1  ;;  %2689 = vst.msk [vmem:[#allocation10 + $0x6] sm:$0x7] %vm11200_vm11, %v11125_v0 }
 0x830   : >> { %v2674_v13 = vmul.f32 0.5, %v2669_v29  ;;  %v1805_v40 = vmul.f32 %v8806_v5, %v1797_v2  ;;  %v1806_v29 = vmul.f32 %v8892_v21, %v1800_v50 }
 0x832   : >> { %v2682_v15 = vmul.f32 %v2678_v10, %v2674_v13  ;;  %v1740_v13 = vmul.f32 %v9608_v38, %v9510_v30 }
 0x834   : >> { %v2685_v61 = vadd.f32 %v2682_v15, %v2634_v7  ;;  %v1803_v7 = vadd.f32 %v1802_v35, %v1740_v13 }
 0x836   : >> { %2688 = vst.msk [vmem:[#allocation10 + $0x10] sm:$0x3] %vm11240_vm2, %v2685_v61  ;;  %v1807_v15 = vmul.f32 %v8895_v22, %v1803_v7  ;;  %vm11250_vm2 = vmmov %vm11249_vm1 }
 0x83a   : >> { %v2692_v8 = vpop.permute.xlu2 %2691 }
 0x83b   : >> { %2694 = vst.msk [vmem:[#allocation10 + $0x3] sm:$0x7] %vm11197_vm13, %v2692_v8 }
 0x83d   : >> { %v9678_v36 = vld [vmem:[#allocation10 + $0x10] sm:$0x3] }
 0x83e   : >> { %8055 = vmatpush.xpose.msk.msrb.mxu2 %vm11241_vm8, %v9678_v36  ;;  %vm11251_vm8 = vmmov %vm11249_vm1 }
 0x842   : >> { %v2696_v6 = vpop.permute.xlu2 %2695  ;;  %v2699_v43 = vld [vmem:[#allocation10] sm:$0xff] }
 0x843   : >> { %2698 = vst.msk [vmem:[#allocation10 + $0x9] sm:$0x7] %vm11199_vm14, %v2696_v6  ;;  %8038 = vmatmul.msk.f32.vlgmr.msra.gmra.mxu2 %vm11242_vm10, %v2699_v43  ;;  %vm11252_vm10 = vmmov %vm11249_vm1  ;;  %v11254_v6 = vld [vmem:[#allocation28_spill] sm:$0xff] }
 0x84a   : >> { %v2931_v58 = vpop.permute.xlu2 %2930  ;;  %v2700_v12 = vld [vmem:[#allocation10 + $0x8] sm:$0xff] }
 0x84b   : >> { %v2933_v10 = vmul.f32 %v2931_v58, %v9528_v32  ;;  %v2965_v55 = vmul.f32 %v2931_v58, %v9054_v18  ;;  %8039 = vmatmul.msk.f32.gmra.mxu2 %vm11243_vm5, %v2700_v12  ;;  %vm11253_vm5 = vmmov %vm11249_vm1 }
 0x84c   : >> { %8056 = vmatpush.xpose.msk.msrb.mxu2 %vm11235_vm0, %v2700_v12 }
 0x84d   : >> { %2967 = vrot.lane.b32.xlu2 %v2965_v55, %s11233_s2  ;;  %2935 = vrot.lane.b32.xlu1 %v2933_v10, %s11233_s2 }
 0x850   : >> { %8057 = vmatpush.xpose.msk.msrb.mxu2 %vm11245_vm9, %v2699_v43  ;;  %vm11255_vm9 = vmmov %vm11235_vm0 }
 0x853   : >> { %8040 = vmatmul.msk.f32.gmra.mxu2 %vm11246_vm7, %v9678_v36  ;;  %vm11256_vm7 = vmmov %vm11249_vm1 }
 0x854   : >> { %8079 = vmatpush.msk.msra.mxu2 %vm917_vm3, %v9530_v9 }
 0x855   : >> { %3083 = vrot.lane.b32.xlu2 %v3081_v26, %s11247_s19 }
 0x85d   : >> { %3017 = vrot.lane.b32.xlu2 %v9039_v1, %s11135_s13 }
 0x882   : >> { %1808 = vxpose.xlu1.b32.start [1/3] (short) (narrow) %v1805_v40, 24 }
 0x88a   : >> { %1809 = vxpose.xlu1.b32.cont [2/3] (short) (narrow) %v1806_v29, 24 }
 0x892   : >> { %1810 = vxpose.xlu1.b32.end [3/3] (short) (narrow) %v1807_v15, 24 }
 0x8a7   : >> { %v2968_v30 = vpop.permute.xlu2 %2967 }
 0x8bf   : >> { %v2936_v61 = vpop.permute.xlu1 %2935 }
 0x8c0   : >> { %8061 = vmatpush.msk.msrb.mxu3 %vm917_vm3, %v2936_v61 }
 0x8c6   : >> { %v2731_v59 = vpop.f32.mrf.mxu2 }
 0x8c7   : >> { %8042 = vmatmul.msk.f32.vlgmr.msra.gmra.mxu3 %vm11248_vm6, %v2731_v59  ;;  %vm11257_vm6 = vmmov %vm11235_vm0 }
 0x8c8   : >> { %8065 = vmatpush.msk.msra.mxu3 %vm917_vm3, %v9642_v62 }
 0x8ce   : >> { %v2734_v14 = vpop.f32.mrf.mxu2 }
 0x8cf   : >> { %8043 = vmatmul.msk.f32.gmra.mxu3 %vm11249_vm1, %v2734_v14 }
 0x8d6   : >> { %v2737_v42 = vpop.f32.mrf.mxu2 }
 0x8d7   : >> { %8044 = vmatmul.msk.f32.gmra.mxu3 %vm11250_vm2, %v2737_v42  ;;  %8045 = vmatpush.xpose.msk.msrb.mxu0 %vm11251_vm8, %v2737_v42  ;;  %vm11258_vm2 = vmmov %vm11249_vm1 }
 0x8d8   : >> { %vm11260_vm8 = vmmov %vm11235_vm0 }
 0x8db   : >> { %8046 = vmatpush.xpose.msk.msrb.mxu0 %vm11252_vm10, %v2734_v14  ;;  %vm11261_vm10 = vmmov %vm11235_vm0 }
 0x8df   : >> { %8047 = vmatpush.xpose.msk.msrb.mxu0 %vm11253_vm5, %v2731_v59  ;;  %8062 = vmatmul.msk.f32.vlgmr.msrb.gmra.mxu3 %vm913_vm4, %v9583_v47  ;;  %vm11262_vm5 = vmmov %vm11235_vm0 }
 0x8e3   : >> { %8063 = vmatpush.msk.msra.mxu0 %vm917_vm3, %v2968_v30 }
 0x8e7   : >> { %8066 = vmatmul.msk.f32.vlgmr.msra.gmra.mxu3 %vm913_vm4, %v9583_v47 }
 0x926   : >> { %v1824_v38 = vpop.trf.xlu1 }
 0x927   : >> { %v1840_v58 = vmul.f32 %v1824_v38, %v11254_v6 }
 0x929   : >> { %v1843_v26 = vadd.f32 %v1840_v58, %v1805_v40 }
 0x92e   : >> { %v1825_v62 = vpop.trf.xlu1 }
 0x92f   : >> { %v1841_v35 = vmul.f32 %v1825_v62, %v8901_v23 }
 0x931   : >> { %v1844_v55 = vadd.f32 %v1841_v35, %v1806_v29 }
 0x936   : >> { %v1826_v37 = vpop.trf.xlu1 }
 0x937   : >> { %v1842_v8 = vmul.f32 %v1826_v37, %v8904_v24 }
 0x939   : >> { %v1845_v10 = vadd.f32 %v1842_v8, %v1807_v15 }
 0x93b   : >> { %8051 = vmatpush.msk.msra.mxu1 %vm1566_vm12, %v1845_v10 }
 0x93d   : >> { %2830 = vmatpush.msra.mxu1 %v1844_v55 }
 0x93f   : >> { %2831 = vmatpush.msra.mxu1 %v1843_v26 }
 0x940   : >> { %8052 = vmatmul.msk.f32.vlgmr.msra.gmra.mxu1 %vm11235_vm0, %v2699_v43  ;;  %vm11264_vm0 = vcmask 18432  }
 0x948   : >> { %8053 = vmatmul.msk.f32.gmra.mxu1 %vm11255_vm9, %v2700_v12  ;;  %v3084_v12 = vpop.permute.xlu2 %3083 }
 0x949   : >> { %v3086_v14 = vmul.f32 %v9530_v9, %v3084_v12 }
 0x94a   : >> { %v2766_v1 = vpop.f32.mrf.mxu3 }
 0x94b   : >> { %8048 = vmatmul.msk.f32.vlgmr.msrb.gmra.mxu0 %vm11256_vm7, %v2766_v1  ;;  %v3087_v30 = vsub.f32 %v9576_v52, %v3086_v14 }
 0x950   : >> { %8054 = vmatmul.msk.f32.gmra.mxu1 %vm11257_vm6, %v9678_v36  ;;  %v3018_v40 = vpop.permute.xlu2 %3017 }
 0x951   : >> { %v3020_v50 = vsub.f32 %v9497_v46, %v3018_v40 }
 0x952   : >> { %v2769_v63 = vpop.f32.mrf.mxu3 }
 0x953   : >> { %8049 = vmatmul.msk.f32.gmra.mxu0 %vm11249_vm1, %v2769_v63  ;;  %v3022_v36 = vrot.slane %v3020_v50, 1  ;;  %v3029_v29 = vrot.slane %v3020_v50, 2  ;;  %v3037_v13 = vrot.slane %v3020_v50, 3 }
 0x955   : >> { %3023 = vrot.lane.b32.xlu2 %v3022_v36, %s11233_s2 }
 0x95a   : >> { %v2772_v2 = vpop.f32.mrf.mxu3 }
 0x95b   : >> { %8050 = vmatmul.msk.f32.gmra.mxu0 %vm11258_vm2, %v2772_v2 }
 0x95d   : >> { %3030 = vrot.lane.b32.xlu2 %v3029_v29, %s11233_s2 }
 0x962   : >> { %v9737_v11 = vpop.f32.mrf.mxu3 }
 0x963   : >> { %11259 = vst [vmem:[#allocation46_spill] sm:$0xff] %v9737_v11  ;;  %8064 = vmatmul.msk.f32.vlgmr.msra.gmra.mxu0 %vm913_vm4, %v9583_v47 }
 0x965   : >> { %3038 = vrot.lane.b32.xlu2 %v3037_v13, %s11233_s2 }
 0x96a   : >> { %v9741_v43 = vpop.f32.mrf.mxu3 }
 0x96b   : >> { %3045 = vxpose.xlu0.b32.start.end [1/1] (short) (narrow) %v9741_v43, 8 }
 0x9af   : >> { %v3024_v37 = vpop.permute.xlu2 %3023 }
 0x9b0   : >> { %8299 = vpush %v3024_v37 }
 0x9b7   : >> { %v3031_v35 = vpop.permute.xlu2 %3030 }
 0x9b8   : >> { %8301 = vpush %v3031_v35 }
 0x9bd   : >> { %v2833_v7 = vpop.f32.mrf.mxu1 }
 0x9be   : >> { %8058 = vmatmul.msk.f32.vlgmr.msrb.gmra.mxu2 %vm11260_vm8, %v2833_v7 }
 0x9bf   : >> { %v3039_v52 = vpop.permute.xlu2 %3038 }
 0x9c0   : >> { %8303 = vpush %v3039_v52 }
 0x9c5   : >> { %v2836_v47 = vpop.f32.mrf.mxu1 }
 0x9c6   : >> { %8059 = vmatmul.msk.f32.gmra.mxu2 %vm11261_vm10, %v2836_v47 }
 0x9c8   : >> { %v2801_v15 = vpop.f32.mrf.mxu0 }
 0x9cd   : >> { %v2839_v61 = vpop.f32.mrf.mxu1 }
 0x9ce   : >> { %8060 = vmatmul.msk.f32.gmra.mxu2 %vm11262_vm5, %v2839_v61 }
 0x9d0   : >> { %v2804_v46 = vpop.f32.mrf.mxu0 }
 0x9d1   : >> { %v2811_v55 = vmul.f32 %v2804_v46, %v9664_v60 }
 0x9d8   : >> { %v9751_v59 = vpop.f32.mrf.mxu0 }
 0x9d9   : >> { %3132 = vrot.lane.b32.xlu0 %v3022_v36, %s11133_s14 }
 0x9e0   : >> { %v2988_v42 = vpop.f32.mrf.mxu0 }
 0x9e1   : >> { %v9757_v38 = vadd.f32 %v2988_v42, %v9579_v56  ;;  %3705 = vrot.lane.b32.xlu0 %v9051_v16, %s8656_s22  ;;  %v2810_v16 = vmul.f32 %v2801_v15, %v9664_v60  ;;  %s8300_s23 = spop %8299 }
 0x9e3   : >> { %11263 = vst [vmem:[#allocation47_spill] sm:$0xff] %v9757_v38  ;;  %v3088_v62 = vadd.f32 %v3087_v30, %v9757_v38 }
 0x9e5   : >> { %8067 = vmatpush.msk.msrb.mxu0 %vm917_vm3, %v3088_v62 }
 0x9e9   : >> { %s8302_s25 = spop %8301 }
 0x9f1   : >> { %s9867_s14 = spop %8303 }
 0xa0f   : >> { %v3061_v8 = vpop.trf.xlu0 }
 0xa10   : >> { %v3643_v9 = vsub.f32 0.0, %v3061_v8  ;;  %8068 = vmatmul.msk.f32.vlgmr.msrb.gmra.mxu0 %vm913_vm4, %v3061_v8  ;;  %8080 = vmatmul.msk.f32.vlgmr.msra.gmra.mxu2 %vm913_vm4, %v3061_v8 }
 0xa12   : >> { %3644 = vst.msk [vmem:[#allocation8 + $0x9] sm:$0x7] %vm11264_vm0, %v3643_v9 }
 0xa41   : >> { %v2868_v58 = vpop.f32.mrf.mxu2 }
 0xa42   : >> { %v9767_v10 = vadd.f32 %v2868_v58, %v2810_v16 }
 0xa49   : >> { %v2871_v26 = vpop.f32.mrf.mxu2 }
 0xa4a   : >> { %v9770_v1 = vadd.f32 %v2871_v26, %v2811_v55 }
 0xa4b   : >> { %v3133_v63 = vpop.permute.xlu0 %3132 }
 0xa4c   : >> { %v3135_v2 = vmul.f32 %v3133_v63, %v9054_v18 }
 0xa4e   : >> { %v3159_v12 = vmul.f32 %v3135_v2, %v3135_v2  ;;  %3137 = vrot.lane.b32.xlu2 %v3135_v2, %s8656_s22  ;;  %v3143_v13 = vrot.slane %v3135_v2, 1  ;;  %v3151_v47 = vrot.slane %v3135_v2, 2 }
 0xa50   : >> { %v3161_v40 = vrot.slane %v3159_v12, 1  ;;  %v3164_v36 = vrot.slane %v3159_v12, 2 }
 0xa52   : >> { %v3163_v50 = vadd.f32 %v3161_v40, %v3159_v12 }
 0xa54   : >> { %v9774_v29 = vadd.f32 %v3164_v36, %v3163_v50 }
 0xa56   : >> { %3144 = vrot.lane.b32.xlu2 %v3143_v13, %s8656_s22  ;;  %8476 = vrsqrt.f32 %v9774_v29  ;;  %vm3174_vm9 = vcmp.eq.f32.partialorder %v9774_v29, inf  ;;  %v3177_v62 = vand.u32 2147483648, %v9774_v29  ;;  %vm3176_vm7 = vcmp.eq.f32.partialorder %v9774_v29, 0.0 }
 0xa57   : >> { %v11265_v13 = vmov 2475754826  }
 0xa5c   : >> { %v8477_v7 = vpop.eup %8476 }
 0xa5d   : >> { %v3168_v15 = vmul.f32 %v8477_v7, %v9774_v29 }
 0xa5e   : >> { %3152 = vrot.lane.b32.xlu2 %v3151_v47, %s8656_s22 }
 0xa5f   : >> { %v3169_v61 = vmul.f32 %v8477_v7, %v3168_v15  ;;  %v11266_v15 = vmov 2131351028  }
 0xa61   : >> { %v3170_v46 = vmul.f32 0.5, %v3169_v61 }
 0xa63   : >> { %v3171_v14 = vsub.f32 1.5, %v3170_v46 }
 0xa65   : >> { %v3172_v42 = vmul.f32 %v8477_v7, %v3171_v14  ;;  %v11267_v14 = vmov 2102212464  }
 0xa67   : >> { %v3173_v30 = vmul.f32 %v3172_v42, %v9774_v29 }
 0xa69   : >> { %v3175_v37 = vsel %vm3174_vm9, %v9774_v29, %v3173_v30 }
 0xa6a   : >> { %v9785_v35 = vsel %vm3176_vm7, %v3177_v62, %v3175_v37  ;;  %v11268_v62 = vmov 920167782  }
 0xa6b   : >> { %vm3179_vm6 = vcmp.lt.f32.partialorder %v9785_v35, 1e-06 }
 0xa6c   : >> { %v9791_v8 = vsel %vm3179_vm6, 1.0, %v9785_v35 }
 0xa6d   : >> { %v3186_v9 = vand.u32 2139095040, %v9791_v8  ;;  %v9795_v58 = vand.u32 2147483647, %v9791_v8  ;;  %8478 = vrcp.f32 %v9791_v8 }
 0xa6f   : >> { %v3187_v52 = vshrl.u32 %v3186_v9, 23  ;;  %v3190_v26 = vand.u32 8388607, %v9795_v58 }
 0xa71   : >> { %v8069_v16 = vadd.s32 4294967169, %v3187_v52  ;;  %v3191_v40 = vor.u32 8388608, %v3190_v26  ;;  %v11269_v52 = vmov 1326507024  }
 0xa73   : >> { %v3193_v55 = vadd.s32 1, %v8069_v16  ;;  %v9811_v27 = vshll.u32 %v3191_v40, 8 }
 0xa75   : >> { %vm3194_vm1 = vcmp.gt.s32.totalorder %v3193_v55, 0 }
 0xa76   : >> { %v3195_v63 = vsel %vm3194_vm1, %v3193_v55, 0 }
 0xa77   : >> { %v3197_v2 = vand.u32 31, %v3195_v63  ;;  %v9798_v50 = vshrl.u32 %v3195_v63, 5 }
 0xa79   : >> { %v3198_v12 = vsub.s32 32, %v3197_v2  ;;  %v3200_v36 = vshll.u32 %v11182_v45, %v3197_v2  ;;  %v3203_v7 = vshll.u32 %v11265_v13, %v3197_v2  ;;  %v3206_v46 = vshll.u32 %v11266_v15, %v3197_v2 }
 0xa7a   : >> { %v3209_v30 = vshll.u32 %v11267_v14, %v3197_v2  ;;  %v3212_v9 = vshll.u32 %v11268_v62, %v3197_v2  ;;  %vm3215_vm2 = vcmp.lt.s32.totalorder %v9798_v50, 1  ;;  %vm3218_vm8 = vcmp.lt.s32.totalorder %v9798_v50, 4 }
 0xa7b   : >> { %v3201_v47 = vshrl.u32 %v11265_v13, %v3198_v12  ;;  %v3204_v61 = vshrl.u32 %v11266_v15, %v3198_v12  ;;  %v3207_v42 = vshrl.u32 %v11267_v14, %v3198_v12  ;;  %v3210_v37 = vshrl.u32 %v11268_v62, %v3198_v12 }
 0xa7c   : >> { %v3213_v16 = vshrl.u32 %v11269_v52, %v3198_v12  ;;  %vm3217_vm10 = vcmp.lt.s32.totalorder %v9798_v50, 3  ;;  %vm3216_vm5 = vcmp.lt.s32.totalorder %v9798_v50, 2 }
 0xa7d   : >> { %v3202_v55 = vor.u32 %v3201_v47, %v3200_v36  ;;  %v3205_v26 = vor.u32 %v3204_v61, %v3203_v7  ;;  %v3208_v63 = vor.u32 %v3207_v42, %v3206_v46  ;;  %v3211_v0 = vor.u32 %v3210_v37, %v3209_v30 }
 0xa7e   : >> { %v3214_v25 = vor.u32 %v3213_v16, %v3212_v9  ;;  %v3232_v46 = vand.u32 65535, %v9811_v27  ;;  %v3233_v42 = vshrl.u32 %v9811_v27, 16 }
 0xa7f   : >> { %v3223_v28 = vsel %vm3215_vm2, %v3202_v55, %v3205_v26  ;;  %v3227_v44 = vsel %vm3215_vm2, %v3205_v26, %v3208_v63  ;;  %v3224_v2 = vsel %vm3218_vm8, %v3211_v0, 920167782 }
 0xa80   : >> { %v3228_v36 = vsel %vm3218_vm8, %v3214_v25, 1326507024  ;;  %v3225_v40 = vsel %vm3217_vm10, %v3208_v63, %v3224_v2 }
 0xa81   : >> { %v3229_v7 = vsel %vm3217_vm10, %v3211_v0, %v3228_v36  ;;  %v3226_v47 = vsel %vm3216_vm5, %v3223_v28, %v3225_v40 }
 0xa82   : >> { %v3230_v61 = vsel %vm3216_vm5, %v3227_v44, %v3229_v7  ;;  %v3256_v37 = vand.u32 65535, %v3226_v47  ;;  %v3257_v9 = vshrl.u32 %v3226_v47, 16 }
 0xa83   : >> { %v3234_v30 = vand.u32 65535, %v3230_v61  ;;  %v3235_v25 = vshrl.u32 %v3230_v61, 16 }
 0xa84   : >> { %v3259_v2 = vmul.u32 %v3257_v9, %v3232_v46  ;;  %v3260_v41 = vmul.u32 %v3256_v37, %v3233_v42  ;;  %v3258_v11 = vmul.u32 %v3256_v37, %v3232_v46  ;;  %v3261_v7 = vmul.u32 %v3257_v9, %v3233_v42 }
 0xa85   : >> { %v3237_v16 = vmul.u32 %v3235_v25, %v3232_v46  ;;  %v3238_v39 = vmul.u32 %v3234_v30, %v3233_v42  ;;  %v3236_v38 = vmul.u32 %v3234_v30, %v3232_v46  ;;  %v3239_v36 = vmul.u32 %v3235_v25, %v3233_v42 }
 0xa86   : >> { %v3262_v28 = vshll.u32 %v3259_v2, 16  ;;  %v3264_v17 = vshll.u32 %v3260_v41, 16  ;;  %v3220_v30 = vsel %vm3218_vm8, %v3208_v63, 2102212464 }
 0xa87   : >> { %v3240_v0 = vshll.u32 %v3237_v16, 16  ;;  %v3242_v40 = vshll.u32 %v3238_v39, 16  ;;  %v3241_v42 = vshrl.u32 %v3237_v16, 16  ;;  %v3221_v63 = vsel %vm3217_vm10, %v3205_v26, %v3220_v30 }
 0xa88   : >> { %vm3266_vm9 = vc.u32 %v3258_v11, %v3262_v28  ;;  %v3268_v61 = vadd.s32 %v3262_v28, %v3258_v11 }
 0xa89   : >> { %vm3244_vm0 = vc.u32 %v3236_v38, %v3240_v0  ;;  %v3246_v44 = vadd.s32 %v3240_v0, %v3236_v38  ;;  %v3267_v47 = vsel %vm3266_vm9, 1, %v11192_v48  ;;  %v3199_v38 = vshrl.u32 %v11182_v45, %v3198_v12 }
 0xa8a   : >> { %v3245_v56 = vsel %vm3244_vm0, 1, %v11192_v48  ;;  %v3269_v46 = vadd.s32 %v3267_v47, %v3261_v7  ;;  %vm3270_vm1 = vc.u32 %v3268_v61, %v3264_v17  ;;  %v3265_v47 = vshrl.u32 %v3260_v41, 16 }
 0xa8b   : >> { %v3247_v52 = vadd.s32 %v3245_v56, %v3239_v36  ;;  %vm3248_vm7 = vc.u32 %v3246_v44, %v3242_v40  ;;  %v3271_v0 = vsel %vm3270_vm1, 1, %v11192_v48  ;;  %v3263_v36 = vshrl.u32 %v3259_v2, 16 }
 0xa8c   : >> { %v3249_v25 = vsel %vm3248_vm7, 1, %v11192_v48  ;;  %v3273_v28 = vadd.s32 %v3271_v0, %v3269_v46  ;;  %v3219_v40 = vsel %vm3215_vm2, %v3199_v38, %v3202_v55  ;;  %v3243_v44 = vshrl.u32 %v3238_v39, 16 }
 0xa8d   : >> { %v3112_v37 = vpop.f32.mrf.mxu0  ;;  %v3251_v9 = vadd.s32 %v3249_v25, %v3247_v52  ;;  %v3272_v16 = vadd.s32 %v3268_v61, %v3264_v17  ;;  %v3222_v25 = vsel %vm3216_vm5, %v3219_v40, %v3221_v63  ;;  %vm3185_vm5 = vcmp.lt.s32.totalorder %v9791_v8, 0 }
 0xa8e   : >> { %8305 = vpush %v3112_v37  ;;  %v3120_v11 = vrot.slane %v3112_v37, 1  ;;  %v3126_v56 = vrot.slane %v3112_v37, 2  ;;  %v3274_v12 = vadd.s32 %v3273_v28, %v3263_v36  ;;  %v3276_v46 = vmul.u32 %v9811_v27, %v3222_v25 }
 0xa8f   : >> { %v3252_v7 = vadd.s32 %v3251_v9, %v3241_v42  ;;  %vm3184_vm0 = vcmp.le.f32.partialorder %v9795_v58, 0.7853982  ;;  %vm3326_vm7 = vweird.f32 %v9791_v8 }
 0xa90   : >> { %8307 = vpush %v3120_v11  ;;  %v3275_v37 = vadd.s32 %v3274_v12, %v3265_v47  ;;  %v9850_v12 = vmul.f32 %v9791_v8, %v9791_v8 }
 0xa91   : >> { %8309 = vpush %v3126_v56  ;;  %v3253_v52 = vadd.s32 %v3252_v7, %v3243_v44 }
 0xa92   : >> { %v3279_v2 = vadd.s32 1, %v3275_v37  ;;  %8480 = vrcp.f32 %v9850_v12  ;;  %vm3517_vm1 = vweird.f32 %v9850_v12 }
 0xa93   : >> { %vm3278_vm8 = vc.u32 %v3253_v52, %v3272_v16  ;;  %v3277_v61 = vadd.s32 %v3272_v16, %v3253_v52  ;;  %v9854_v16 = vpop.eup %8478 }
 0xa94   : >> { %v3280_v55 = vsel %vm3278_vm8, %v3279_v2, %v3275_v37  ;;  %vm3344_vm9 = vweird.f32 %v9854_v16 }
 0xa95   : >> { %v3281_v38 = vadd.s32 %v3280_v55, %v3276_v46  ;;  %vm9902_vm8 = vmor %vm3326_vm7, %vm3344_vm9 }
 0xa97   : >> { %v3282_v0 = vadd.s32 536870912, %v3281_v38 }
 0xa99   : >> { %v3283_v26 = vshrl.u32 %v3282_v0, 30 }
 0xa9b   : >> { %v3284_v39 = vshll.u32 %v3283_v26, 30 }
 0xa9d   : >> { %v3285_v30 = vsub.s32 %v3281_v38, %v3284_v39  ;;  %v3307_v38 = vsub.s32 4, %v3283_v26  ;;  %v9861_v39 = vpop.eup %8480 }
 0xa9f   : >> { %vm3286_vm2 = vcmp.lt.s32.totalorder %v3285_v30, 0  ;;  %v3287_v41 = vsub.s32 0, %v3285_v30 }
 0xaa1   : >> { %v3288_v42 = vsel %vm3286_vm2, %v3287_v41, %v3285_v30  ;;  %v3339_v41 = vmul.f32 %v9854_v16, %v9791_v8  ;;  %vm3518_vm2 = vweird.f32 %v9861_v39 }
 0xaa2   : >> { %v3289_v9 = vclz %v3288_v42  ;;  %v3026_v42 = vstv %s8300_s23 }
 0xaa4   : >> { %v8070_v11 = vadd.s32 4294967294, %v3289_v9 }
 0xaa6   : >> { %vm8071_vm10 = vcmp.lt.s32.totalorder %v8070_v11, 0 }
 0xaa7   : >> { %v3292_v50 = vsel %vm8071_vm10, 0, %v8070_v11 }
 0xaa8   : >> { %v3138_v17 = vpop.permute.xlu2 %3137  ;;  %v3293_v56 = vsub.s32 32, %v3292_v50  ;;  %v3297_v36 = vsub.s32 4294967266, %v3292_v50  ;;  %v3294_v28 = vshll.u32 %v3285_v30, %v3292_v50  ;;  %v3513_v50 = vmul.f32 %v9861_v39, %v9850_v12 }
 0xaa9   : >> { %8311 = vpush %v3138_v17  ;;  %v3308_v17 = vsel %vm3185_vm5, %v3307_v38, %v3283_v26 }
 0xaaa   : >> { %v3295_v27 = vshrl.u32 %v3277_v61, %v3293_v56  ;;  %v3298_v40 = vadd.s32 127, %v3297_v36  ;;  %v3033_v61 = vstv %s8302_s25 }
 0xaac   : >> { %v3296_v63 = vor.u32 %v3295_v27, %v3294_v28  ;;  %v3299_v44 = vshll.u32 %v3298_v40, 23  ;;  %v3340_v28 = vsub.f32 1.0, %v3339_v41  ;;  %v9870_v27 = vmul.f32 %v3026_v42, %v8998_v49 }
 0xaae   : >> { %v3300_v47 = vor.u32 4788187, %v3299_v44  ;;  %v3303_v37 = vcvt.s32.f32 %v3296_v63  ;;  %v3310_v63 = vsel %vm3184_vm0, 0, %v3308_v17  ;;  %v3181_v17 = vmul.f32 %v9774_v29, %v9192_v31 }
 0xaaf   : >> { %v3327_v42 = vadd.s32 3, %v3310_v63 }
 0xab0   : >> { %v3145_v7 = vpop.permute.xlu2 %3144  ;;  %v3301_v25 = vand.u32 2147483647, %v3300_v47 }
 0xab1   : >> { %8313 = vpush %v3145_v7  ;;  %v9875_v7 = vmul.f32 %v3033_v61, %v9002_v53 }
 0xab2   : >> { %v3304_v2 = vmul.f32 %v3303_v37, %v3301_v25  ;;  %v3514_v37 = vsub.f32 1.0, %v3513_v50 }
 0xab4   : >> { %v3305_v52 = vxor.u32 2147483648, %v3304_v2 }
 0xab6   : >> { %v3306_v55 = vsel %vm3185_vm5, %v3305_v52, %v3304_v2 }
 0xab7   : >> { %v3309_v0 = vsel %vm3184_vm0, %v9791_v8, %v3306_v55  ;;  %v3341_v55 = vmul.f32 %v9854_v16, %v3340_v28  ;;  %v3515_v28 = vmul.f32 %v9861_v39, %v3514_v37  ;;  %v3523_v37 = vand.u32 2147483648, %v9850_v12 }
 0xab8   : >> { %v3153_v46 = vpop.permute.xlu2 %3152  ;;  %v3311_v30 = vmul.f32 %v3309_v0, %v3309_v0  ;;  %vm11272_vm0 = vcmask 18432  }
 0xab9   : >> { %8315 = vpush %v3153_v46 }
 0xaba   : >> { %v3312_v9 = vmul.f32 -0.001358992, %v3311_v30  ;;  %v3319_v11 = vmul.f32 -0.00019511016, %v3311_v30 }
 0xabc   : >> { %v3313_v56 = vadd.f32 0.041655596, %v3312_v9  ;;  %v3320_v36 = vadd.f32 0.008332121, %v3319_v11  ;;  %v3349_v9 = vand.u32 2147483648, %v9791_v8 }
 0xabe   : >> { %v3314_v44 = vmul.f32 %v3313_v56, %v3311_v30  ;;  %v3321_v26 = vmul.f32 %v3320_v36, %v3311_v30  ;;  %v3354_v36 = vmul.f32 %v9774_v29, %v9199_v57 }
 0xabf   : >> { %s8306_s13 = spop %8305 }
 0xac0   : >> { %v3117_v40 = vstv %s8306_s13  ;;  %v3315_v52 = vadd.f32 -0.4999988, %v3314_v44  ;;  %v3322_v46 = vadd.f32 -0.16666654, %v3321_v26  ;;  %v3342_v26 = vadd.f32 %v9854_v16, %v3341_v55 }
 0xac1   : >> { %v3119_v25 = vmul.f32 %v3117_v40, %v8998_v49  ;;  %s8308_s23 = spop %8307 }
 0xac2   : >> { %v3122_v2 = vstv %s8308_s23  ;;  %s8310_s25 = spop %8309  ;;  %v3316_v61 = vmul.f32 %v3315_v52, %v3311_v30  ;;  %v3323_v56 = vmul.f32 %v3322_v46, %v3311_v30  ;;  %v3350_v52 = vor.u32 1.1754944e-38, %v3349_v9 }
 0xac3   : >> { %v3124_v38 = vmul.f32 %v3122_v2, %v9002_v53  ;;  %v3128_v41 = vstv %s8310_s25  ;;  %v3500_v2 = vand.u32 3, %v3310_v63  ;;  %v3521_v46 = vand.u32 2147483647, %v9850_v12 }
 0xac4   : >> { %v3130_v11 = vmul.f32 %v3128_v41, %v9004_v54  ;;  %v3317_v40 = vadd.f32 1.0, %v3316_v61  ;;  %v3324_v44 = vadd.f32 1.0, %v3323_v56  ;;  %v3328_v41 = vand.u32 3, %v3327_v42 }
 0xac5   : >> { %v3125_v50 = vadd.f32 %v3124_v38, %v3119_v25  ;;  %v3346_v38 = vsel %vm9902_vm8, %v9854_v16, %v3342_v26  ;;  %vm3501_vm10 = vcmp.lt.s32.totalorder %v3500_v2, 2  ;;  %vm3502_vm5 = vcmp.eq.s32.totalorder %v3500_v2, 0  ;;  %vm9923_vm8 = vmor %vm3517_vm1, %vm3518_vm2 }
 0xac6   : >> { %v3325_v30 = vmul.f32 %v3324_v44, %v3309_v0  ;;  %v3334_v25 = vxor.u32 2147483648, %v3317_v40  ;;  %v3516_v0 = vadd.f32 %v9861_v39, %v3515_v28  ;;  %vm3329_vm9 = vcmp.lt.s32.totalorder %v3328_v41, 2 }
 0xac7   : >> { %v9890_v47 = vadd.f32 %v3130_v11, %v3125_v50  ;;  %vm3330_vm11 = vcmp.eq.s32.totalorder %v3328_v41, 0  ;;  %vm3333_vm14 = vcmp.eq.s32.totalorder %v3328_v41, 2  ;;  %vm3505_vm13 = vcmp.eq.s32.totalorder %v3500_v2, 2 }
 0xac8   : >> { %v3331_v55 = vxor.u32 2147483648, %v3325_v30  ;;  %v3335_v9 = vsel %vm3333_vm14, %v3334_v25, %v3325_v30  ;;  %v3507_v61 = vsel %vm3505_vm13, %v3334_v25, %v3325_v30  ;;  %v3520_v28 = vsel %vm9923_vm8, %v9861_v39, %v3516_v0 }
 0xac9   : >> { %v3692_v29 = vsub.f32 0.0, %v9890_v47  ;;  %8077 = vmatpush.msk.msrb.mxu1 %vm917_vm3, %v9890_v47  ;;  %v3524_v26 = vor.u32 1.1754944e-38, %v3523_v37  ;;  %v3182_v2 = vsub.f32 1.0, %v3181_v17  ;;  %v11275_v25 = vstv %s9867_s14 }
 0xaca   : >> { %8078 = vmatmul.msk.f32.vlgmr.msrb.gmra.mxu1 %vm913_vm4, %v9741_v43  ;;  %v3332_v42 = vsel %vm3330_vm11, %v3317_v40, %v3331_v55  ;;  %v3504_v11 = vsel %vm3502_vm5, %v3317_v40, %v3331_v55  ;;  %vm3522_vm11 = vcmp.eq.f32.partialorder %v3521_v46, 8.507059e+37  ;;  %v3043_v39 = vmul.f32 %v11275_v25, %v9004_v54 }
 0xacb   : >> { %3701 = vst.msk [vmem:[#allocation9 + $0x9] sm:$0x7] %vm11272_vm0, %v3692_v29  ;;  %8089 = vmatpush.msk.msra.mxu1 %vm1673_vm15, %v11178_v34  ;;  %v3336_v56 = vsel %vm3329_vm9, %v3332_v42, %v3335_v9  ;;  %vm3348_vm0 = vcmp.eq.f32.partialorder %v9795_v58, 8.507059e+37  ;;  %v3508_v50 = vsel %vm3501_vm10, %v3504_v11, %v3507_v61  ;;  %v3036_v58 = vadd.f32 %v9875_v7, %v9870_v27  ;;  %v3704_v11 = vld [vmem:[#allocation9 + $0x10] sm:$0x3] }
 0xacc   : >> { %v3337_v40 = vsel %vm3326_vm7, nan, %v3336_v56  ;;  %v3351_v44 = vsel %vm3348_vm0, %v3350_v52, %v3346_v38  ;;  %v3509_v12 = vsel %vm3326_vm7, nan, %v3508_v50  ;;  %v3525_v63 = vsel %vm3522_vm11, %v3524_v26, %v3520_v28  ;;  %v9959_v56 = vpop.f32.mrf.mxu2  ;;  %v9961_v26 = vld [vmem:[#allocation8 + $0x10] sm:$0x3] }
 0xacd   : >> { %3845 = vmatpush.msra.mxu1 %v11179_v33  ;;  %v3352_v41 = vmul.f32 %v3351_v44, %v3337_v40  ;;  %v3510_v30 = vsub.f32 1.0, %v3509_v12  ;;  %v3355_v55 = vsub.f32 0.5, %v3354_v36  ;;  %v9946_v17 = vadd.f32 %v3043_v39, %v3036_v58  ;;  %v3706_v12 = vpop.permute.xlu0 %3705  ;;  %8081 = vmatpush.msk.msra.mxu0 %vm1566_vm12, %v9961_v26 }
 0xace   : >> { %vm11276_vm13 = vcmask 43032   ;;  %vm11277_vm14 = vcmask 92232   ;;  %vm11278_vm15 = vcmask 116832   ;;  %vm11282_vm2 = vcmask 146432  }
 0xacf   : >> { %v3353_v0 = vsel %vm3179_vm6, %v3182_v2, %v3352_v41  ;;  %v3526_v52 = vmul.f32 %v3525_v63, %v3510_v30  ;;  %v3601_v27 = vsub.f32 0.0, %v9946_v17  ;;  %vm11280_vm7 = vmmov %vm11277_vm14 }
 0xad0   : >> { %3529 = vrot.lane.b32.xlu2 %v3353_v0, %s8656_s22  ;;  %vm11283_vm10 = vmmov %vm11282_vm2 }
 0xad1   : >> { %v3527_v8 = vsel %vm3179_vm6, %v3355_v55, %v3526_v52  ;;  %vm11279_vm6 = vmmov %vm11276_vm13 }
 0xad2   : >> { %3562 = vrot.lane.b32.xlu1 %v3527_v8, %s8656_s22  ;;  %v3703_v61 = vld [vmem:[#allocation9 + $0x8] sm:$0xff]  ;;  %vm11281_vm1 = vmmov %vm11279_vm6 }
 0xad3   : >> { %vm11284_vm5 = vmmov %vm11282_vm2 }
 0xad4   : >> { %v3662_v50 = vpop.f32.mrf.mxu2  ;;  %vm11287_vm9 = vmmov %vm11282_vm2 }
 0xad5   : >> { %v3670_v40 = vrot.slane %v3662_v50, 1  ;;  %v3676_v44 = vrot.slane %v3662_v50, 2  ;;  %vm11288_vm8 = vmmov %vm11281_vm1 }
 0xad6   : >> { %vm11289_vm0 = vmmov %vm11282_vm2 }
 0xad7   : >> { %vm11291_vm11 = vmmov %vm11278_vm15 }
 0xad8   : >> { %3688 = vrot.lane.b32.xlu2 %v3601_v27, %s11139_s28 }
 0xada   : >> { %s8312_s14 = spop %8311 }
 0xadb   : >> { %v3140_v36 = vstv %s8312_s14 }
 0xadc   : >> { %v3142_v35 = vmul.f32 %v3140_v36, %v8998_v49 }
 0xae0   : >> { %3639 = vrot.lane.b32.xlu2 %v9741_v43, %s11139_s28 }
 0xae2   : >> { %s8314_s13 = spop %8313 }
 0xae3   : >> { %v3147_v7 = vstv %s8314_s13 }
 0xae4   : >> { %v3149_v46 = vmul.f32 %v3147_v7, %v9002_v53 }
 0xae6   : >> { %v3150_v38 = vadd.f32 %v3149_v46, %v3142_v35 }
 0xaea   : >> { %s8316_s23 = spop %8315 }
 0xaeb   : >> { %v3155_v37 = vstv %s8316_s23 }
 0xaec   : >> { %v3157_v42 = vmul.f32 %v3155_v37, %v9004_v54 }
 0xaee   : >> { %v3158_v9 = vadd.f32 %v3157_v42, %v3150_v38 }
 0xaf0   : >> { %8075 = vmatpush.msk.msrb.mxu3 %vm917_vm3, %v3158_v9 }
 0xaf1   : >> { %8076 = vmatmul.msk.f32.vlgmr.msrb.gmra.mxu3 %vm913_vm4, %v3158_v9 }
 0xaf2   : >> { %8085 = vmatpush.msk.msra.mxu3 %vm1566_vm12, %v3704_v11 }
 0xaf4   : >> { %3809 = vmatpush.msra.mxu3 %v3703_v61 }
 0xb2a   : >> { %v3530_v16 = vpop.permute.xlu2 %3529 }
 0xb2b   : >> { %8317 = vpush %v3530_v16 }
 0xb32   : >> { %v3689_v42 = vpop.permute.xlu2 %3688 }
 0xb44   : >> { %v3563_v28 = vpop.permute.xlu1 %3562 }
 0xb45   : >> { %8319 = vpush %v3563_v28  ;;  %v3702_v28 = vld [vmem:[#allocation9] sm:$0xff] }
 0xb46   : >> { %8321 = vpush %v3662_v50  ;;  %3810 = vmatpush.msra.mxu3 %v3702_v28 }
 0xb47   : >> { %8323 = vpush %v3670_v40  ;;  %v3630_v37 = vpop.f32.mrf.mxu1 }
 0xb48   : >> { %8325 = vpush %v3676_v44  ;;  %v3633_v38 = vsub.f32 0.0, %v3630_v37 }
 0xb49   : >> { %8327 = vpush %v3706_v12 }
 0xb5c   : >> { %s8318_s25 = spop %8317 }
 0xb5d   : >> { %v3532_v2 = vstv %s8318_s25  ;;  %s11286_s25 = smov 2  }
 0xb5e   : >> { %v3534_v41 = vmul.f32 %v3532_v2, %v3158_v9  ;;  %v3640_v9 = vpop.permute.xlu2 %3639 }
 0xb60   : >> { %v3535_v25 = vadd.f32 %v8803_v4, %v3534_v41 }
 0xb74   : >> { %v3558_v30 = vpop.f32.mrf.mxu3 }
 0xb76   : >> { %s8320_s14 = spop %8319 }
 0xb77   : >> { %v3565_v58 = vstv %s8320_s14  ;;  %s8322_s13 = spop %8321 }
 0xb78   : >> { %v3567_v39 = vmul.f32 %v3565_v58, %v3558_v30  ;;  %v3667_v63 = vstv %s8322_s13  ;;  %s8324_s23 = spop %8323 }
 0xb79   : >> { %v3669_v0 = vmul.f32 %v3667_v63, %v8998_v49  ;;  %v3672_v55 = vstv %s8324_s23  ;;  %s8326_s28 = spop %8325  ;;  %s11293_s23 = smov 1  }
 0xb7a   : >> { %v9967_v52 = vadd.f32 %v3567_v39, %v3535_v25  ;;  %v3674_v8 = vmul.f32 %v3672_v55, %v9002_v53  ;;  %v3678_v17 = vstv %s8326_s28  ;;  %s11285_s28 = smov 9   ;;  %s8328_s14 = spop %8327 }
 0xb7b   : >> { %v3680_v36 = vmul.f32 %v3678_v17, %v9004_v54  ;;  %v9995_v40 = vstv %s8328_s14  ;;  %s11346_s14 = scalar_lea.vmem %s11072_s9, %s8820_s16 }
 0xb7c   : >> { %v3675_v7 = vadd.f32 %v3674_v8, %v3669_v0  ;;  %3569 = vxpose.xlu0.b32.start.end [1/1] (short) (narrow) %v9967_v52, 8 }
 0xb7e   : >> { %v3681_v46 = vadd.f32 %v3680_v36, %v3675_v7  ;;  %v3712_v36 = vmul.f32 %v9995_v40, %v9961_v26 }
 0xb80   : >> { %v3682_v35 = vsub.f32 0.0, %v3681_v46  ;;  %v11290_v46 = vmov 0.0  }
 0xb82   : >> { %3684 = vrot.lane.b32.xlu2 %v3682_v35, %s8652_s24 }
 0xb8a   : >> { %3694 = vrot.lane.b32.xlu2 %v3692_v29, %s8653_s30 }
 0xb92   : >> { %3635 = vrot.lane.b32.xlu2 %v3633_v38, %s8652_s24 }
 0xb9a   : >> { %3603 = vrot.lane.b32.xlu2 %v3601_v27, %s8652_s24 }
 0xba2   : >> { %3756 = vrot.lane.b32.xlu2 %v9467_v51, %s8656_s22 }
 0xbdc   : >> { %v3685_v11 = vpop.permute.xlu2 %3684 }
 0xbdd   : >> { %3687 = vst.msk [vmem:[#allocation8 + $0x9] sm:$0x7] %vm11276_vm13, %v3685_v11  ;;  %vm11292_vm13 = vmmov %vm11280_vm7  ;;  %v3715_v11 = vadd.f32 %v8889_v20, %v3712_v36 }
 0xbde   : >> { %3691 = vst.msk [vmem:[#allocation8 + $0x9] sm:$0x7] %vm11277_vm14, %v3689_v42  ;;  %v8521_v42 = vld [vmem:[%s9036_s15] sm:$0x7f]  ;;  %vm11294_vm14 = vcmask 140288  }
 0xbe3   : >> { %8448 = vset.pattern.permute.xlu0 %v11192_v48 }
 0xbe4   : >> { %v3695_v47 = vpop.permute.xlu2 %3694 }
 0xbe5   : >> { %3697 = vst.msk [vmem:[#allocation8 + $0x9] sm:$0x7] %vm11278_vm15, %v3695_v47  ;;  %vm11295_vm15 = vmmov %vm11289_vm0 }
 0xbec   : >> { %v3636_v29 = vpop.permute.xlu2 %3635 }
 0xbed   : >> { %3638 = vst.msk [vmem:[#allocation8 + $0x6] sm:$0x7] %vm11279_vm6, %v3636_v29  ;;  %vm11296_vm6 = vmmov %vm11289_vm0 }
 0xbee   : >> { %3642 = vst.msk [vmem:[#allocation8 + $0x6] sm:$0x7] %vm11280_vm7, %v3640_v9  ;;  %vm11297_vm7 = vmmov %vm11289_vm0 }
 0xbf4   : >> { %v3604_v27 = vpop.permute.xlu2 %3603 }
 0xbf5   : >> { %3606 = vst.msk [vmem:[#allocation8 + $0x3] sm:$0x7] %vm11281_vm1, %v3604_v27  ;;  %v3699_v51 = vld [vmem:[#allocation8 + $0x8] sm:$0xff]  ;;  %vm11298_vm1 = vmmov %vm11289_vm0 }
 0xbf6   : >> { %3741 = vmatpush.msra.mxu0 %v3699_v51  ;;  %v3711_v63 = vmul.f32 %v9995_v40, %v3699_v51 }
 0xbf8   : >> { %v3714_v8 = vadd.f32 %v8886_v19, %v3711_v63 }
 0xbfc   : >> { %v3757_v61 = vpop.permute.xlu2 %3756  ;;  %v3698_v16 = vld [vmem:[#allocation8] sm:$0xff] }
 0xbfd   : >> { %3742 = vmatpush.msra.mxu0 %v3698_v16  ;;  %8329 = vpush %v3757_v61  ;;  %v3710_v44 = vmul.f32 %v9995_v40, %v3698_v16 }
 0xbfe   : >> { %8082 = vmatmul.msk.f32.vlgmr.msra.gmra.mxu0 %vm11282_vm2, %v3698_v16  ;;  %vm11299_vm2 = vmmov %vm11289_vm0 }
 0xbff   : >> { %v3713_v58 = vadd.f32 %v8803_v4, %v3710_v44  ;;  %v2877_v44 = vmul.f32 %v8806_v5, %v9767_v10 }
 0xc06   : >> { %8083 = vmatmul.msk.f32.gmra.mxu0 %vm11283_vm10, %v3699_v51  ;;  %vm11300_vm10 = vmmov %vm11289_vm0 }
 0xc0e   : >> { %8084 = vmatmul.msk.f32.gmra.mxu0 %vm11284_vm5, %v9961_v26  ;;  %vm11301_vm5 = vcmask 97280  }
 0xc20   : >> { %v3585_v50 = vpop.trf.xlu0 }
 0xc21   : >> { %3772 = vrot.lane.b32.xlu2 %v3585_v50, %s8652_s24 }
 0xc29   : >> { %3776 = vrot.lane.b32.xlu2 %v3585_v50, %s11285_s28 }
 0xc2e   : >> { %s8330_s13 = spop %8329 }
 0xc2f   : >> { %v3759_v30 = vstv %s8330_s13  ;;  %s11337_s13 = scalar_lea.vmem %s11071_s8, %s8820_s16 }
 0xc31   : >> { %3077 = vrot.lane.b32.xlu2 %v9493_v3, %s11286_s25 }
 0xc7b   : >> { %v3744_v12 = vpop.f32.mrf.mxu0  ;;  %v3773_v2 = vpop.permute.xlu2 %3772 }
 0xc7c   : >> { %v3753_v41 = vmul.f32 0.5, %v3744_v12 }
 0xc7e   : >> { %v3761_v25 = vmul.f32 %v3759_v30, %v3753_v41  ;;  %v2812_v41 = vmul.f32 %v9751_v59, %v9664_v60  ;;  %v11307_v59 = vld [vmem:[#allocation29_spill] sm:$0xff] }
 0xc80   : >> { %v3764_v39 = vadd.f32 %v3761_v25, %v3713_v58 }
 0xc82   : >> { %3767 = vst.msk [vmem:[#allocation10] sm:$0xff] %vm11287_vm9, %v3764_v39  ;;  %vm11302_vm9 = vmmov %vm11301_vm5 }
 0xc83   : >> { %3775 = vst.msk [vmem:[#allocation10 + $0x3] sm:$0x7] %vm11288_vm8, %v3773_v2  ;;  %v3747_v3 = vpop.f32.mrf.mxu0  ;;  %v3777_v0 = vpop.permute.xlu2 %3776  ;;  %v2878_v2 = vmul.f32 %v8892_v21, %v9770_v1  ;;  %vm11303_vm8 = vmmov %vm11301_vm5 }
 0xc84   : >> { %v3754_v55 = vmul.f32 0.5, %v3747_v3 }
 0xc86   : >> { %v3762_v17 = vmul.f32 %v3759_v30, %v3754_v55 }
 0xc88   : >> { %v3765_v7 = vadd.f32 %v3762_v17, %v3714_v8 }
 0xc8a   : >> { %3768 = vst.msk [vmem:[#allocation10 + $0x8] sm:$0xff] %vm11289_vm0, %v3765_v7  ;;  %vm11304_vm0 = vmmov %vm11301_vm5 }
 0xc8b   : >> { %3770 = vst.msk [vmem:[#allocation10 + $0x6] sm:$0x7] %vm11291_vm11, %v11290_v46  ;;  %v3750_v35 = vpop.f32.mrf.mxu0  ;;  %v3078_v37 = vpop.permute.xlu2 %3077  ;;  %vm11305_vm11 = vmmov %vm11304_vm0 }
 0xc8c   : >> { %3779 = vst.msk [vmem:[#allocation10 + $0x9] sm:$0x7] %vm11292_vm13, %v3777_v0  ;;  %v3755_v38 = vmul.f32 0.5, %v3750_v35  ;;  %v3080_v9 = vsub.f32 %v8521_v42, %v3078_v37  ;;  %vm11306_vm13 = vmmov %vm11304_vm0  ;;  %v11313_v35 = vld [vmem:[#allocation37_spill] sm:$0xff] }
 0xc8e   : >> { %v3763_v47 = vmul.f32 %v3759_v30, %v3755_v38  ;;  %v4009_v29 = vrot.slane %v3080_v9, 4 }
 0xc90   : >> { %v3766_v27 = vadd.f32 %v3763_v47, %v3715_v11  ;;  %4010 = vrot.lane.b32.xlu2 %v4009_v29, %s11293_s23 }
 0xc92   : >> { %3769 = vst.msk [vmem:[#allocation10 + $0x10] sm:$0x3] %vm11294_vm14, %v3766_v27  ;;  %v3780_v26 = vld [vmem:[#allocation10] sm:$0xff]  ;;  %vm11309_vm14 = vmmov %vm11304_vm0 }
 0xc93   : >> { %8086 = vmatmul.msk.f32.vlgmr.msra.gmra.mxu3 %vm11295_vm15, %v3780_v26  ;;  %v3781_v61 = vld [vmem:[#allocation10 + $0x8] sm:$0xff]  ;;  %vm11310_vm15 = vmmov %vm11304_vm0 }
 0xc99   : >> { %v3782_v51 = vld [vmem:[#allocation10 + $0x10] sm:$0x3] }
 0xc9a   : >> { %8103 = vmatpush.xpose.msk.msrb.mxu3 %vm11296_vm6, %v3782_v51  ;;  %vm11311_vm6 = vmmov %vm11304_vm0 }
 0xc9b   : >> { %8087 = vmatmul.msk.f32.gmra.mxu3 %vm11297_vm7, %v3781_v61  ;;  %vm11312_vm7 = vmmov %vm11298_vm1 }
 0xc9e   : >> { %8104 = vmatpush.xpose.msk.msrb.mxu3 %vm11298_vm1, %v3781_v61 }
 0xca2   : >> { %8105 = vmatpush.xpose.msk.msrb.mxu3 %vm11299_vm2, %v3780_v26  ;;  %vm11315_vm2 = vmmov %vm11298_vm1 }
 0xca3   : >> { %8088 = vmatmul.msk.f32.gmra.mxu3 %vm11300_vm10, %v3782_v51  ;;  %vm11316_vm10 = vmmov %vm11298_vm1 }
 0xcea   : >> { %v4011_v16 = vpop.permute.xlu2 %4010 }
 0xceb   : >> { %v4013_v50 = vmul.f32 %v4011_v16, %v9528_v32  ;;  %v4045_v28 = vmul.f32 %v4011_v16, %v9054_v18  ;;  %v2875_v32 = vadd.f32 %v9959_v56, %v2812_v41  ;;  %v11308_v56 = vld [vmem:[#allocation41_spill] sm:$0xff] }
 0xced   : >> { %4047 = vrot.lane.b32.xlu2 %v4045_v28, %s8656_s22  ;;  %4015 = vrot.lane.b32.xlu1 %v4013_v50, %s8656_s22  ;;  %v2879_v58 = vmul.f32 %v8895_v22, %v2875_v32 }
 0xd13   : >> { %2880 = vxpose.xlu2.b32.start [1/3] (short) (narrow) %v2877_v44, 24 }
 0xd16   : >> { %v3812_v12 = vpop.f32.mrf.mxu3 }
 0xd17   : >> { %8090 = vmatmul.msk.f32.vlgmr.msra.gmra.mxu1 %vm11301_vm5, %v3812_v12  ;;  %vm11317_vm5 = vmmov %vm11298_vm1 }
 0xd1b   : >> { %2881 = vxpose.xlu2.b32.cont [2/3] (short) (narrow) %v2878_v2, 24 }
 0xd1e   : >> { %v3815_v30 = vpop.f32.mrf.mxu3 }
 0xd1f   : >> { %8091 = vmatmul.msk.f32.gmra.mxu1 %vm11302_vm9, %v3815_v30  ;;  %vm11318_vm9 = vmmov %vm11298_vm1 }
 0xd23   : >> { %2882 = vxpose.xlu2.b32.end [3/3] (short) (narrow) %v2879_v58, 24 }
 0xd26   : >> { %v3818_v10 = vpop.f32.mrf.mxu3 }
 0xd27   : >> { %8092 = vmatmul.msk.f32.gmra.mxu1 %vm11303_vm8, %v3818_v10  ;;  %8093 = vmatpush.xpose.msk.msrb.mxu2 %vm11304_vm0, %v3818_v10 }
 0xd2b   : >> { %8094 = vmatpush.xpose.msk.msrb.mxu2 %vm11305_vm11, %v3815_v30 }
 0xd2f   : >> { %8095 = vmatpush.xpose.msk.msrb.mxu2 %vm11306_vm13, %v3812_v12 }
 0xd47   : >> { %v4048_v1 = vpop.permute.xlu2 %4047 }
 0xd48   : >> { %8111 = vmatpush.msk.msra.mxu2 %vm917_vm3, %v4048_v1 }
 0xd5f   : >> { %v4016_v60 = vpop.permute.xlu1 %4015 }
 0xd60   : >> { %8109 = vmatpush.msk.msrb.mxu1 %vm917_vm3, %v4016_v60 }
 0xd61   : >> { %8110 = vmatmul.msk.f32.vlgmr.msrb.gmra.mxu1 %vm913_vm4, %v9741_v43 }
 0xd62   : >> { %8113 = vmatpush.msk.msra.mxu1 %vm917_vm3, %v9967_v52 }
 0xd64   : >> { %8117 = vmatpush.msk.msrb.mxu1 %vm917_vm3, %v11307_v59 }
 0xd69   : >> { %8114 = vmatmul.msk.f32.vlgmr.msra.gmra.mxu1 %vm913_vm4, %v9741_v43 }
 0xd6a   : >> { %8160 = vmatpush.msk.msra.mxu1 %vm917_vm3, %v11308_v56 }
 0xd94   : >> { %v3847_v25 = vpop.f32.mrf.mxu1 }
 0xd95   : >> { %8096 = vmatmul.msk.f32.vlgmr.msrb.gmra.mxu2 %vm11309_vm14, %v3847_v25 }
 0xd9c   : >> { %v3850_v39 = vpop.f32.mrf.mxu1 }
 0xd9d   : >> { %8097 = vmatmul.msk.f32.gmra.mxu2 %vm11310_vm15, %v3850_v39 }
 0xda4   : >> { %v3853_v63 = vpop.f32.mrf.mxu1 }
 0xda5   : >> { %8098 = vmatmul.msk.f32.gmra.mxu2 %vm11311_vm6, %v3853_v63 }
 0xdac   : >> { %v2896_v3 = vpop.trf.xlu2 }
 0xdad   : >> { %8112 = vmatmul.msk.f32.vlgmr.msra.gmra.mxu2 %vm913_vm4, %v9741_v43  ;;  %v2912_v17 = vmul.f32 %v2896_v3, %v11254_v6  ;;  %v11314_v43 = vld [vmem:[#allocation40_spill] sm:$0xff] }
 0xdaf   : >> { %v2915_v46 = vadd.f32 %v2912_v17, %v2877_v44 }
 0xdb4   : >> { %v2897_v52 = vpop.trf.xlu2 }
 0xdb5   : >> { %v2913_v55 = vmul.f32 %v2897_v52, %v8901_v23 }
 0xdb7   : >> { %v2916_v36 = vadd.f32 %v2913_v55, %v2878_v2 }
 0xdbc   : >> { %v2898_v0 = vpop.trf.xlu2 }
 0xdbd   : >> { %v2914_v8 = vmul.f32 %v2898_v0, %v8904_v24 }
 0xdbf   : >> { %v2917_v7 = vadd.f32 %v2914_v8, %v2879_v58 }
 0xdc1   : >> { %8099 = vmatpush.msk.msrb.mxu0 %vm1566_vm12, %v2917_v7 }
 0xdc3   : >> { %3911 = vmatpush.msrb.mxu0 %v2916_v36 }
 0xdc5   : >> { %3912 = vmatpush.msrb.mxu0 %v2915_v46 }
 0xdc6   : >> { %8100 = vmatmul.msk.f32.vlgmr.msrb.gmra.mxu0 %vm11312_vm7, %v3780_v26 }
 0xdc7   : >> { %8148 = vmatpush.msk.msra.mxu0 %vm917_vm3, %v11313_v35 }
 0xdc9   : >> { %8162 = vmatpush.msk.msrb.mxu0 %vm917_vm3, %v11314_v43 }
 0xdce   : >> { %8101 = vmatmul.msk.f32.gmra.mxu0 %vm11298_vm1, %v3781_v61 }
 0xdd6   : >> { %8102 = vmatmul.msk.f32.gmra.mxu0 %vm11315_vm2, %v3782_v51 }
 0xdde   : >> { %v10065_v37 = vpop.f32.mrf.mxu1 }
 0xde6   : >> { %v10067_v38 = vpop.f32.mrf.mxu1 }
 0xde7   : >> { %8115 = vmatpush.msk.msrb.mxu2 %vm917_vm3, %v10067_v38 }
 0xde8   : >> { %8116 = vmatmul.msk.f32.vlgmr.msrb.gmra.mxu2 %vm913_vm4, %v11308_v56 }
 0xe18   : >> { %v10074_v9 = vpop.f32.mrf.mxu2 }
 0xe20   : >> { %v10077_v47 = vpop.f32.mrf.mxu2 }
 0xe28   : >> { %v10080_v27 = vpop.f32.mrf.mxu2 }
 0xe30   : >> { %v10082_v26 = vpop.f32.mrf.mxu2 }
 0xe43   : >> { %v3914_v42 = vpop.f32.mrf.mxu0 }
 0xe44   : >> { %8106 = vmatmul.msk.f32.vlgmr.msrb.gmra.mxu3 %vm11316_vm10, %v3914_v42 }
 0xe4b   : >> { %v3917_v11 = vpop.f32.mrf.mxu0 }
 0xe4c   : >> { %8107 = vmatmul.msk.f32.gmra.mxu3 %vm11317_vm5, %v3917_v11 }
 0xe53   : >> { %v3920_v29 = vpop.f32.mrf.mxu0 }
 0xe54   : >> { %8108 = vmatmul.msk.f32.gmra.mxu3 %vm11318_vm9, %v3920_v29 }
 0xe6b   : >> { %v4170_v51 = vpop.f32.mrf.mxu2 }
 0xe6c   : >> { %8118 = vmatmul.msk.f32.vlgmr.msrb.gmra.mxu1 %vm913_vm4, %v4170_v51  ;;  %8149 = vmatmul.msk.f32.vlgmr.msra.gmra.mxu0 %vm913_vm4, %v4170_v51 }
 0xe74   : >> { %8163 = vmatmul.msk.f32.vlgmr.msrb.gmra.mxu0 %vm913_vm4, %v4170_v51 }
 0xee9   : >> { %v10087_v61 = vpop.f32.mrf.mxu1 }
 0xeea   : >> { %v4204_v16 = vrot.slane %v10087_v61, 2  ;;  %v4199_v50 = vrot.slane %v10087_v61, 1 }
 0xeec   : >> { %4205 = vrot.lane.b32.xlu1 %v4204_v16, %s11233_s2  ;;  %4200 = vrot.lane.b32.xlu0 %v4199_v50, %s11247_s19 }
 0xf21   : >> { %5546 = vxpose.xlu1.b32.start.end [1/1] (short) (narrow) %v10087_v61, 8 }
 0xf5e   : >> { %v4201_v28 = vpop.permute.xlu0 %4200  ;;  %v4206_v12 = vpop.permute.xlu1 %4205 }
 0xf5f   : >> { %v4203_v44 = vadd.f32 %v4201_v28, %v10087_v61 }
 0xf61   : >> { %v4208_v2 = vadd.f32 %v4206_v12, %v4203_v44 }
 0xf63   : >> { %v8119_v41 = vadd.f32 -1.0, %v4208_v2 }
 0xf65   : >> { %v4210_v32 = vmul.f32 0.5, %v8119_v41 }
 0xf67   : >> { %v10095_v30 = vclamps-f32 %v4210_v32, 1.0 }
 0xf69   : >> { %v4215_v58 = vsub.f32 1.0, %v10095_v30 }
 0xf6b   : >> { %v4216_v10 = vmul.f32 2.0, %v4215_v58 }
 0xf6d   : >> { %v4217_v1 = vmax.f32 %v4216_v10, 0.0 }
 0xf6f   : >> { %8482 = vrsqrt.f32 %v4217_v1  ;;  %vm4225_vm8 = vcmp.eq.f32.partialorder %v4217_v1, inf  ;;  %v4228_v0 = vand.u32 2147483648, %v4217_v1  ;;  %vm4227_vm0 = vcmp.eq.f32.partialorder %v4217_v1, 0.0 }
 0xf74   : >> { %8447 = vset.pattern.permute.xlu1 %v11192_v48 }
 0xf75   : >> { %v8483_v60 = vpop.eup %8482 }
 0xf76   : >> { %v4219_v59 = vmul.f32 %v8483_v60, %v4217_v1 }
 0xf78   : >> { %v4220_v25 = vmul.f32 %v8483_v60, %v4219_v59 }
 0xf7a   : >> { %v4221_v39 = vmul.f32 0.5, %v4220_v25 }
 0xf7c   : >> { %v4222_v63 = vsub.f32 1.5, %v4221_v39 }
 0xf7e   : >> { %v4223_v3 = vmul.f32 %v8483_v60, %v4222_v63  ;;  %v11319_v60 = vmov 1326507024  }
 0xf80   : >> { %v4224_v52 = vmul.f32 %v4223_v3, %v4217_v1 }
 0xf82   : >> { %v4226_v55 = vsel %vm4225_vm8, %v4217_v1, %v4224_v52 }
 0xf83   : >> { %v10099_v8 = vsel %vm4227_vm0, %v4228_v0, %v4226_v55 }
 0xf84   : >> { %v4233_v17 = vand.u32 2139095040, %v10099_v8  ;;  %v11141_v46 = vand.u32 2147483647, %v10099_v8  ;;  %vm4232_vm0 = vcmp.lt.s32.totalorder %v10099_v8, 0 }
 0xf86   : >> { %v4234_v7 = vshrl.u32 %v4233_v17, 23  ;;  %v4237_v42 = vand.u32 8388607, %v11141_v46 }
 0xf88   : >> { %v8121_v36 = vadd.s32 4294967169, %v4234_v7  ;;  %v4238_v16 = vor.u32 8388608, %v4237_v42 }
 0xf8a   : >> { %v4240_v43 = vadd.s32 1, %v8121_v36  ;;  %v10118_v0 = vshll.u32 %v4238_v16, 8 }
 0xf8c   : >> { %vm4241_vm11 = vcmp.gt.s32.totalorder %v4240_v43, 0  ;;  %v4279_v16 = vand.u32 65535, %v10118_v0 }
 0xf8d   : >> { %v4242_v11 = vsel %vm4241_vm11, %v4240_v43, 0 }
 0xf8e   : >> { %v4244_v29 = vand.u32 31, %v4242_v11  ;;  %v10105_v50 = vshrl.u32 %v4242_v11, 5 }
 0xf90   : >> { %v4245_v51 = vsub.s32 32, %v4244_v29  ;;  %v4247_v28 = vshll.u32 %v11182_v45, %v4244_v29  ;;  %v4250_v44 = vshll.u32 %v11265_v13, %v4244_v29  ;;  %v4253_v41 = vshll.u32 %v11266_v15, %v4244_v29 }
 0xf91   : >> { %v4256_v58 = vshll.u32 %v11267_v14, %v4244_v29  ;;  %v4259_v1 = vshll.u32 %v11268_v62, %v4244_v29  ;;  %vm4262_vm13 = vcmp.lt.s32.totalorder %v10105_v50, 1  ;;  %vm4265_vm14 = vcmp.lt.s32.totalorder %v10105_v50, 4 }
 0xf92   : >> { %v4248_v12 = vshrl.u32 %v11265_v13, %v4245_v51  ;;  %v4251_v2 = vshrl.u32 %v11266_v15, %v4245_v51  ;;  %v4254_v32 = vshrl.u32 %v11267_v14, %v4245_v51  ;;  %v4257_v10 = vshrl.u32 %v11268_v62, %v4245_v51 }
 0xf93   : >> { %v4260_v59 = vshrl.u32 %v11319_v60, %v4245_v51  ;;  %vm4264_vm15 = vcmp.lt.s32.totalorder %v10105_v50, 3  ;;  %vm4263_vm6 = vcmp.lt.s32.totalorder %v10105_v50, 2 }
 0xf94   : >> { %v4249_v25 = vor.u32 %v4248_v12, %v4247_v28  ;;  %v4252_v39 = vor.u32 %v4251_v2, %v4250_v44  ;;  %v4255_v63 = vor.u32 %v4254_v32, %v4253_v41  ;;  %v4258_v3 = vor.u32 %v4257_v10, %v4256_v58 }
 0xf95   : >> { %v4261_v52 = vor.u32 %v4260_v59, %v4259_v1  ;;  %v4280_v28 = vshrl.u32 %v10118_v0, 16 }
 0xf96   : >> { %v4270_v55 = vsel %vm4262_vm13, %v4249_v25, %v4252_v39  ;;  %v4274_v17 = vsel %vm4262_vm13, %v4252_v39, %v4255_v63  ;;  %v4271_v7 = vsel %vm4265_vm14, %v4258_v3, 920167782 }
 0xf97   : >> { %v4275_v36 = vsel %vm4265_vm14, %v4261_v52, 1326507024  ;;  %v4272_v43 = vsel %vm4264_vm15, %v4255_v63, %v4271_v7 }
 0xf98   : >> { %v4276_v42 = vsel %vm4264_vm15, %v4258_v3, %v4275_v36  ;;  %v4273_v11 = vsel %vm4263_vm6, %v4270_v55, %v4272_v43 }
 0xf99   : >> { %v4277_v29 = vsel %vm4263_vm6, %v4274_v17, %v4276_v42  ;;  %v4303_v2 = vand.u32 65535, %v4273_v11  ;;  %v4304_v41 = vshrl.u32 %v4273_v11, 16 }
 0xf9a   : >> { %v4281_v44 = vand.u32 65535, %v4277_v29  ;;  %v4282_v12 = vshrl.u32 %v4277_v29, 16 }
 0xf9b   : >> { %v4306_v10 = vmul.u32 %v4304_v41, %v4279_v16  ;;  %v4307_v1 = vmul.u32 %v4303_v2, %v4280_v28  ;;  %v4305_v7 = vmul.u32 %v4303_v2, %v4279_v16  ;;  %v4308_v43 = vmul.u32 %v4304_v41, %v4280_v28 }
 0xf9c   : >> { %v4284_v32 = vmul.u32 %v4282_v12, %v4279_v16  ;;  %v4285_v58 = vmul.u32 %v4281_v44, %v4280_v28  ;;  %v4283_v59 = vmul.u32 %v4281_v44, %v4279_v16  ;;  %v4286_v52 = vmul.u32 %v4282_v12, %v4280_v28 }
 0xf9d   : >> { %v4309_v55 = vshll.u32 %v4306_v10, 16  ;;  %v4311_v46 = vshll.u32 %v4307_v1, 16  ;;  %v4267_v44 = vsel %vm4265_vm14, %v4255_v63, 2102212464  ;;  %v4246_v2 = vshrl.u32 %v11182_v45, %v4245_v51 }
 0xf9e   : >> { %v4287_v3 = vshll.u32 %v4284_v32, 16  ;;  %v4289_v36 = vshll.u32 %v4285_v58, 16 }
 0xf9f   : >> { %vm4313_vm1 = vc.u32 %v4305_v7, %v4309_v55  ;;  %v4315_v29 = vadd.s32 %v4309_v55, %v4305_v7  ;;  %v4268_v7 = vsel %vm4264_vm15, %v4252_v39, %v4267_v44  ;;  %v4290_v55 = vshrl.u32 %v4285_v58, 16 }
 0xfa0   : >> { %vm4291_vm7 = vc.u32 %v4283_v59, %v4287_v3  ;;  %v4293_v17 = vadd.s32 %v4287_v3, %v4283_v59  ;;  %v4314_v11 = vsel %vm4313_vm1, 1, %v11192_v48  ;;  %v4288_v59 = vshrl.u32 %v4284_v32, 16 }
 0xfa1   : >> { %v4292_v42 = vsel %vm4291_vm7, 1, %v11192_v48  ;;  %v4316_v16 = vadd.s32 %v4314_v11, %v4308_v43  ;;  %vm4317_vm10 = vc.u32 %v4315_v29, %v4311_v46  ;;  %v4310_v3 = vshrl.u32 %v4306_v10, 16 }
 0xfa2   : >> { %v4294_v33 = vadd.s32 %v4292_v42, %v4286_v52  ;;  %vm4295_vm2 = vc.u32 %v4293_v17, %v4289_v36  ;;  %v4318_v41 = vsel %vm4317_vm10, 1, %v11192_v48  ;;  %v4266_v52 = vsel %vm4262_vm13, %v4246_v2, %v4249_v25 }
 0xfa3   : >> { %v4296_v12 = vsel %vm4295_vm2, 1, %v11192_v48  ;;  %v4320_v34 = vadd.s32 %v4318_v41, %v4316_v16  ;;  %v4312_v36 = vshrl.u32 %v4307_v1, 16  ;;  %v4319_v42 = vadd.s32 %v4315_v29, %v4311_v46 }
 0xfa4   : >> { %v4298_v28 = vadd.s32 %v4296_v12, %v4294_v33  ;;  %v4269_v51 = vsel %vm4263_vm6, %v4266_v52, %v4268_v7  ;;  %vm4373_vm6 = vweird.f32 %v10099_v8 }
 0xfa5   : >> { %v4321_v17 = vadd.s32 %v4320_v34, %v4310_v3  ;;  %v4323_v10 = vmul.u32 %v10118_v0, %v4269_v51  ;;  %v10155_v0 = vpop.f32.mrf.mxu0 }
 0xfa6   : >> { %v4299_v63 = vadd.s32 %v4298_v28, %v4288_v59 }
 0xfa7   : >> { %v4322_v33 = vadd.s32 %v4321_v17, %v4312_v36 }
 0xfa8   : >> { %v4300_v43 = vadd.s32 %v4299_v63, %v4290_v55 }
 0xfa9   : >> { %v4326_v32 = vadd.s32 1, %v4322_v33 }
 0xfaa   : >> { %vm4325_vm5 = vc.u32 %v4300_v43, %v4319_v42  ;;  %v4324_v50 = vadd.s32 %v4319_v42, %v4300_v43  ;;  %v11320_v42 = vld [vmem:[#allocation36_spill] sm:$0xff] }
 0xfab   : >> { %v4327_v11 = vsel %vm4325_vm5, %v4326_v32, %v4322_v33 }
 0xfac   : >> { %v4328_v12 = vadd.s32 %v4327_v11, %v4323_v10  ;;  %v11321_v10 = vld [vmem:[#allocation35_spill] sm:$0xff] }
 0xfae   : >> { %v4329_v25 = vadd.s32 536870912, %v4328_v12 }
 0xfb0   : >> { %v4330_v16 = vshrl.u32 %v4329_v25, 30 }
 0xfb2   : >> { %v4331_v2 = vshll.u32 %v4330_v16, 30 }
 0xfb4   : >> { %v4332_v39 = vsub.s32 %v4328_v12, %v4331_v2  ;;  %v11322_v2 = vand.u32 2147483647, %v10099_v8 }
 0xfb6   : >> { %vm4333_vm9 = vcmp.lt.s32.totalorder %v4332_v39, 0  ;;  %v4334_v58 = vsub.s32 0, %v4332_v39  ;;  %vm4231_vm11 = vcmp.le.f32.partialorder %v11322_v2, 0.7853982 }
 0xfb8   : >> { %v4335_v1 = vsel %vm4333_vm9, %v4334_v58, %v4332_v39  ;;  %v4354_v58 = vsub.s32 4, %v4330_v16 }
 0xfb9   : >> { %v4336_v34 = vclz %v4335_v1 }
 0xfbb   : >> { %v8122_v44 = vadd.s32 4294967294, %v4336_v34 }
 0xfbd   : >> { %vm8123_vm8 = vcmp.lt.s32.totalorder %v8122_v44, 0 }
 0xfbe   : >> { %v4339_v46 = vsel %vm8123_vm8, 0, %v8122_v44 }
 0xfbf   : >> { %v4340_v29 = vsub.s32 32, %v4339_v46  ;;  %v4344_v59 = vsub.s32 4294967266, %v4339_v46  ;;  %v4341_v28 = vshll.u32 %v4332_v39, %v4339_v46 }
 0xfc1   : >> { %v4342_v41 = vshrl.u32 %v4324_v50, %v4340_v29  ;;  %v4345_v3 = vadd.s32 127, %v4344_v59  ;;  %v4355_v29 = vsel %vm4232_vm0, %v4354_v58, %v4330_v16  ;;  %v3949_v58 = vpop.f32.mrf.mxu3 }
 0xfc3   : >> { %v4343_v52 = vor.u32 %v4342_v41, %v4341_v28  ;;  %v4346_v7 = vshll.u32 %v4345_v3, 23  ;;  %v4357_v41 = vsel %vm4231_vm11, 0, %v4355_v29 }
 0xfc5   : >> { %v5562_v55 = vpop.trf.xlu1  ;;  %v4347_v36 = vor.u32 4788187, %v4346_v7  ;;  %v4350_v43 = vcvt.s32.f32 %v4343_v52 }
 0xfc6   : >> { %v10158_v63 = vsub.f32 %v10087_v61, %v5562_v55  ;;  %v6299_v61 = vpop.f32.mrf.mxu0 }
 0xfc7   : >> { %v4348_v33 = vand.u32 2147483647, %v4347_v36  ;;  %v6302_v44 = vsub.f32 0.0, %v6299_v61  ;;  %v4374_v36 = vadd.s32 3, %v4357_v41 }
 0xfc8   : >> { %v5588_v17 = vperm.slane %v10158_v63, 1  ;;  %v5581_v51 = vperm.slane %v10158_v63, 0 }
 0xfc9   : >> { %v4351_v12 = vmul.f32 %v4350_v43, %v4348_v33 }
 0xfca   : >> { %v5589_v32 = vmul.f32 %v11320_v42, %v5588_v17  ;;  %v5582_v11 = vmul.f32 %v11321_v10, %v5581_v51  ;;  %v4375_v42 = vand.u32 3, %v4374_v36 }
 0xfcb   : >> { %v4352_v25 = vxor.u32 2147483648, %v4351_v12 }
 0xfcc   : >> { %5591 = vrot.lane.b32.xlu1 %v5589_v32, %s11293_s23  ;;  %5584 = vrot.lane.b32.xlu2 %v5582_v11, %s11247_s19  ;;  %vm4377_vm13 = vcmp.eq.s32.totalorder %v4375_v42, 0  ;;  %vm4380_vm14 = vcmp.eq.s32.totalorder %v4375_v42, 2  ;;  %vm4376_vm15 = vcmp.lt.s32.totalorder %v4375_v42, 2 }
 0xfcd   : >> { %v4353_v39 = vsel %vm4232_vm0, %v4352_v25, %v4351_v12 }
 0xfce   : >> { %v4356_v1 = vsel %vm4231_vm11, %v10099_v8, %v4353_v39  ;;  %v4530_v39 = vand.u32 3, %v4357_v41 }
 0xfcf   : >> { %v4358_v34 = vmul.f32 %v4356_v1, %v4356_v1 }
 0xfd0   : >> { %vm4532_vm1 = vcmp.eq.s32.totalorder %v4530_v39, 0  ;;  %vm4535_vm2 = vcmp.eq.s32.totalorder %v4530_v39, 2  ;;  %vm4531_vm10 = vcmp.lt.s32.totalorder %v4530_v39, 2 }
 0xfd1   : >> { %v4359_v46 = vmul.f32 -0.001358992, %v4358_v34  ;;  %v4366_v50 = vmul.f32 -0.00019511016, %v4358_v34 }
 0xfd3   : >> { %v4360_v59 = vadd.f32 0.041655596, %v4359_v46  ;;  %v4367_v28 = vadd.f32 0.008332121, %v4366_v50 }
 0xfd4   : >> { %6304 = vrot.lane.b32.xlu2 %v6302_v44, %s8652_s24 }
 0xfd5   : >> { %v4361_v3 = vmul.f32 %v4360_v59, %v4358_v34  ;;  %v4368_v52 = vmul.f32 %v4367_v28, %v4358_v34  ;;  %v3891_v59 = vmul.f32 %v10074_v9, %v9995_v40 }
 0xfd7   : >> { %v4362_v7 = vadd.f32 -0.4999988, %v4361_v3  ;;  %v4369_v55 = vadd.f32 -0.16666654, %v4368_v52 }
 0xfd9   : >> { %v4363_v17 = vmul.f32 %v4362_v7, %v4358_v34  ;;  %v4370_v51 = vmul.f32 %v4369_v55, %v4358_v34  ;;  %v3950_v7 = vadd.f32 %v3949_v58, %v3891_v59  ;;  %v3893_v58 = vmul.f32 %v10080_v27, %v9995_v40 }
 0xfdb   : >> { %v4364_v33 = vadd.f32 1.0, %v4363_v17  ;;  %v4371_v43 = vadd.f32 1.0, %v4370_v51  ;;  %v3952_v17 = vpop.f32.mrf.mxu3 }
 0xfdd   : >> { %v4372_v32 = vmul.f32 %v4371_v43, %v4356_v1  ;;  %v4381_v10 = vxor.u32 2147483648, %v4364_v33  ;;  %v10181_v43 = vmul.f32 %v8806_v5, %v3950_v7 }
 0xfdf   : >> { %v4378_v11 = vxor.u32 2147483648, %v4372_v32  ;;  %v4382_v12 = vsel %vm4380_vm14, %v4381_v10, %v4372_v32  ;;  %v4537_v46 = vsel %vm4535_vm2, %v4381_v10, %v4372_v32  ;;  %v3892_v32 = vmul.f32 %v10077_v47, %v9995_v40 }
 0xfe1   : >> { %v4379_v16 = vsel %vm4377_vm13, %v4364_v33, %v4378_v11  ;;  %v4534_v34 = vsel %vm4532_vm1, %v4364_v33, %v4378_v11  ;;  %v3953_v11 = vadd.f32 %v3952_v17, %v3892_v32 }
 0xfe2   : >> { %v4383_v25 = vsel %vm4376_vm15, %v4379_v16, %v4382_v12  ;;  %v4538_v50 = vsel %vm4531_vm10, %v4534_v34, %v4537_v46 }
 0xfe3   : >> { %v4384_v61 = vsel %vm4373_vm6, nan, %v4383_v25  ;;  %v4539_v41 = vsel %vm4373_vm6, nan, %v4538_v50  ;;  %v10192_v25 = vmul.f32 %v8892_v21, %v3953_v11  ;;  %v3955_v39 = vpop.f32.mrf.mxu3 }
 0xfe4   : >> { %vm4385_vm7 = vcmp.gt.f32.partialorder %v4384_v61, 1e-06  ;;  %v4540_v51 = vsub.f32 %v4539_v41, %v10095_v30 }
 0xfe5   : >> { %v4541_v2 = vsel %vm4385_vm7, %v4384_v61, 1.0  ;;  %v3956_v61 = vadd.f32 %v3955_v39, %v3893_v58 }
 0xfe6   : >> { %8484 = vrcp.f32 %v4541_v2  ;;  %v4553_v28 = vand.u32 2147483648, %v4541_v2  ;;  %v4551_v52 = vand.u32 2147483647, %v4541_v2  ;;  %vm4547_vm9 = vweird.f32 %v4541_v2 }
 0xfe7   : >> { %v10201_v46 = vmul.f32 %v8895_v22, %v3956_v61 }
 0xfe8   : >> { %v4554_v36 = vor.u32 1.1754944e-38, %v4553_v28  ;;  %vm4552_vm0 = vcmp.eq.f32.partialorder %v4551_v52, 8.507059e+37 }
 0xfec   : >> { %v8485_v1 = vpop.eup %8484 }
 0xfed   : >> { %v4543_v44 = vmul.f32 %v8485_v1, %v4541_v2  ;;  %vm4548_vm5 = vweird.f32 %v8485_v1 }
 0xfee   : >> { %vm4549_vm8 = vmor %vm4547_vm9, %vm4548_vm5  ;;  %vm11323_vm9 = vcmask 43032  }
 0xfef   : >> { %v4544_v29 = vsub.f32 1.0, %v4543_v44 }
 0xff1   : >> { %v4545_v3 = vmul.f32 %v8485_v1, %v4544_v29 }
 0xff3   : >> { %v4546_v55 = vadd.f32 %v8485_v1, %v4545_v3 }
 0xff5   : >> { %v4550_v33 = vsel %vm4549_vm8, %v8485_v1, %v4546_v55 }
 0xff6   : >> { %v4555_v9 = vsel %vm4552_vm0, %v4554_v36, %v4550_v33 }
 0xff7   : >> { %v4556_v42 = vmul.f32 %v4555_v9, %v4540_v51 }
 0xff9   : >> { %v4557_v10 = vsel %vm4385_vm7, %v4556_v42, 0.0 }
 0xffa   : >> { %3961 = vxpose.xlu2.b32.start [1/3] (short) (narrow) %v10181_v43, 24  ;;  %v10188_v16 = vadd.f32 %v4557_v10, %v10099_v8 }
 0xffc   : >> { %v4562_v12 = vand.u32 2139095040, %v10188_v16  ;;  %v11144_v47 = vand.u32 2147483647, %v10188_v16 }
 0xffe   : >> { %v4563_v2 = vshrl.u32 %v4562_v12, 23  ;;  %v4566_v8 = vand.u32 8388607, %v11144_v47 }
0x1000   : >> { %v8127_v1 = vadd.s32 4294967169, %v4563_v2  ;;  %v4567_v40 = vor.u32 8388608, %v4566_v8 }
0x1002   : >> { %3962 = vxpose.xlu2.b32.cont [2/3] (short) (narrow) %v10192_v25, 24  ;;  %v4569_v34 = vadd.s32 1, %v8127_v1  ;;  %v10217_v11 = vshll.u32 %v4567_v40, 8 }
0x1004   : >> { %vm4570_vm11 = vcmp.gt.s32.totalorder %v4569_v34, 0 }
0x1005   : >> { %v4571_v44 = vsel %vm4570_vm11, %v4569_v34, 0  ;;  %vm4561_vm11 = vcmp.lt.s32.totalorder %v10188_v16, 0 }
0x1006   : >> { %v4573_v50 = vand.u32 31, %v4571_v44  ;;  %v10204_v27 = vshrl.u32 %v4571_v44, 5  ;;  %v4608_v44 = vand.u32 65535, %v10217_v11 }
0x1008   : >> { %v4574_v29 = vsub.s32 32, %v4573_v50  ;;  %v4576_v59 = vshll.u32 %v11182_v45, %v4573_v50  ;;  %v4579_v28 = vshll.u32 %v11265_v13, %v4573_v50  ;;  %v4582_v7 = vshll.u32 %v11266_v15, %v4573_v50 }
0x1009   : >> { %v4585_v55 = vshll.u32 %v11267_v14, %v4573_v50  ;;  %v4588_v17 = vshll.u32 %v11268_v62, %v4573_v50  ;;  %vm4591_vm13 = vcmp.lt.s32.totalorder %v10204_v27, 1  ;;  %vm4594_vm14 = vcmp.lt.s32.totalorder %v10204_v27, 4 }
0x100a   : >> { %3963 = vxpose.xlu2.b32.end [3/3] (short) (narrow) %v10201_v46, 24  ;;  %v4577_v3 = vshrl.u32 %v11265_v13, %v4574_v29  ;;  %v4580_v52 = vshrl.u32 %v11266_v15, %v4574_v29  ;;  %v4583_v41 = vshrl.u32 %v11267_v14, %v4574_v29  ;;  %v4586_v36 = vshrl.u32 %v11268_v62, %v4574_v29 }
0x100b   : >> { %v4589_v51 = vshrl.u32 %v11319_v60, %v4574_v29  ;;  %vm4593_vm15 = vcmp.lt.s32.totalorder %v10204_v27, 3  ;;  %vm4592_vm6 = vcmp.lt.s32.totalorder %v10204_v27, 2  ;;  %v4609_v50 = vshrl.u32 %v10217_v11, 16 }
0x100c   : >> { %v4578_v33 = vor.u32 %v4577_v3, %v4576_v59  ;;  %v4581_v9 = vor.u32 %v4580_v52, %v4579_v28  ;;  %v4584_v42 = vor.u32 %v4583_v41, %v4582_v7  ;;  %v4587_v32 = vor.u32 %v4586_v36, %v4585_v55 }
0x100d   : >> { %v4590_v10 = vor.u32 %v4589_v51, %v4588_v17 }
0x100e   : >> { %v4599_v12 = vsel %vm4591_vm13, %v4578_v33, %v4581_v9  ;;  %v4603_v2 = vsel %vm4591_vm13, %v4581_v9, %v4584_v42  ;;  %v4600_v39 = vsel %vm4594_vm14, %v4587_v32, 920167782 }
0x100f   : >> { %v4604_v58 = vsel %vm4594_vm14, %v4590_v10, 1326507024  ;;  %v4601_v1 = vsel %vm4593_vm15, %v4584_v42, %v4600_v39 }
0x1010   : >> { %v4605_v61 = vsel %vm4593_vm15, %v4587_v32, %v4604_v58  ;;  %v4602_v34 = vsel %vm4592_vm6, %v4599_v12, %v4601_v1 }
0x1011   : >> { %v4606_v8 = vsel %vm4592_vm6, %v4603_v2, %v4605_v61  ;;  %v4632_v28 = vand.u32 65535, %v4602_v34  ;;  %v4633_v3 = vshrl.u32 %v4602_v34, 16 }
0x1012   : >> { %v4610_v40 = vand.u32 65535, %v4606_v8  ;;  %v4611_v59 = vshrl.u32 %v4606_v8, 16 }
0x1013   : >> { %v4635_v41 = vmul.u32 %v4633_v3, %v4608_v44  ;;  %v4636_v55 = vmul.u32 %v4632_v28, %v4609_v50  ;;  %v4634_v32 = vmul.u32 %v4632_v28, %v4608_v44  ;;  %v4637_v39 = vmul.u32 %v4633_v3, %v4609_v50 }
0x1014   : >> { %v4613_v52 = vmul.u32 %v4611_v59, %v4608_v44  ;;  %v4614_v7 = vmul.u32 %v4610_v40, %v4609_v50  ;;  %v4612_v36 = vmul.u32 %v4610_v40, %v4608_v44  ;;  %v4615_v51 = vmul.u32 %v4611_v59, %v4609_v50 }
0x1015   : >> { %v4638_v10 = vshll.u32 %v4635_v41, 16  ;;  %v4640_v1 = vshll.u32 %v4636_v55, 16  ;;  %v4596_v40 = vsel %vm4594_vm14, %v4584_v42, 2102212464  ;;  %v4575_v28 = vshrl.u32 %v11182_v45, %v4574_v29 }
0x1016   : >> { %v4616_v17 = vshll.u32 %v4613_v52, 16  ;;  %v4618_v12 = vshll.u32 %v4614_v7, 16 }
0x1017   : >> { %vm4642_vm1 = vc.u32 %v4634_v32, %v4638_v10  ;;  %v4644_v61 = vadd.s32 %v4638_v10, %v4634_v32  ;;  %v4597_v32 = vsel %vm4593_vm15, %v4581_v9, %v4596_v40  ;;  %v4619_v10 = vshrl.u32 %v4614_v7, 16 }
0x1018   : >> { %vm4620_vm7 = vc.u32 %v4612_v36, %v4616_v17  ;;  %v4622_v2 = vadd.s32 %v4616_v17, %v4612_v36  ;;  %v4643_v34 = vsel %vm4642_vm1, 1, %v11192_v48  ;;  %v4617_v36 = vshrl.u32 %v4613_v52, 16 }
0x1019   : >> { %v4621_v58 = vsel %vm4620_vm7, 1, %v11192_v48  ;;  %v4645_v44 = vadd.s32 %v4643_v34, %v4637_v39  ;;  %vm4646_vm10 = vc.u32 %v4644_v61, %v4640_v1  ;;  %v4639_v17 = vshrl.u32 %v4635_v41, 16 }
0x101a   : >> { %v4623_v8 = vadd.s32 %v4621_v58, %v4615_v51  ;;  %vm4624_vm2 = vc.u32 %v4622_v2, %v4618_v12  ;;  %v4647_v3 = vsel %vm4646_vm10, 1, %v11192_v48  ;;  %v4595_v51 = vsel %vm4591_vm13, %v4575_v28, %v4578_v33 }
0x101b   : >> { %v4625_v59 = vsel %vm4624_vm2, 1, %v11192_v48  ;;  %v4649_v47 = vadd.s32 %v4647_v3, %v4645_v44  ;;  %v4641_v12 = vshrl.u32 %v4636_v55, 16  ;;  %v4648_v58 = vadd.s32 %v4644_v61, %v4640_v1 }
0x101c   : >> { %v4627_v50 = vadd.s32 %v4625_v59, %v4623_v8  ;;  %v4598_v29 = vsel %vm4592_vm6, %v4595_v51, %v4597_v32  ;;  %v5579_v40 = vperm.slane %v10158_v63, 2  ;;  %vm4702_vm7 = vweird.f32 %v10188_v16 }
0x101d   : >> { %v4650_v2 = vadd.s32 %v4649_v47, %v4639_v17  ;;  %v4652_v41 = vmul.u32 %v10217_v11, %v4598_v29  ;;  %v11324_v17 = vld [vmem:[#allocation38_spill] sm:$0xff] }
0x101e   : >> { %v4628_v42 = vadd.s32 %v4627_v50, %v4617_v36  ;;  %v5580_v51 = vmul.f32 %v11324_v17, %v5579_v40 }
0x101f   : >> { %v4651_v52 = vadd.s32 %v4650_v2, %v4641_v12 }
0x1020   : >> { %v4629_v39 = vadd.s32 %v4628_v42, %v4619_v10 }
0x1021   : >> { %v4655_v8 = vadd.s32 1, %v4651_v52 }
0x1022   : >> { %vm4654_vm5 = vc.u32 %v4629_v39, %v4648_v58  ;;  %v4653_v11 = vadd.s32 %v4648_v58, %v4629_v39  ;;  %v11325_v39 = vand.u32 2147483647, %v10188_v16 }
0x1023   : >> { %v4656_v59 = vsel %vm4654_vm5, %v4655_v8, %v4651_v52 }
0x1024   : >> { %v4657_v33 = vadd.s32 %v4656_v59, %v4652_v41  ;;  %vm4560_vm13 = vcmp.le.f32.partialorder %v11325_v39, 0.7853982 }
0x1026   : >> { %v5585_v34 = vpop.permute.xlu2 %5584  ;;  %v4658_v44 = vadd.s32 536870912, %v4657_v33 }
0x1027   : >> { %v5587_v12 = vadd.f32 %v5585_v34, %v5580_v51 }
0x1028   : >> { %v4659_v28 = vshrl.u32 %v4658_v44, 30 }
0x102a   : >> { %v4660_v9 = vshll.u32 %v4659_v28, 30  ;;  %v4683_v34 = vsub.s32 4, %v4659_v28 }
0x102c   : >> { %v4661_v47 = vsub.s32 %v4657_v33, %v4660_v9 }
0x102e   : >> { %v6305_v7 = vpop.permute.xlu2 %6304  ;;  %vm4662_vm8 = vcmp.lt.s32.totalorder %v4661_v47, 0  ;;  %v4663_v55 = vsub.s32 0, %v4661_v47 }
0x102f   : >> { %6307 = vst.msk [vmem:[#allocation11 + $0x3] sm:$0x7] %vm11323_vm9, %v6305_v7 }
0x1030   : >> { %v4664_v1 = vsel %vm4662_vm8, %v4663_v55, %v4661_v47 }
0x1031   : >> { %v4665_v27 = vclz %v4664_v1  ;;  %v4684_v1 = vsel %vm4561_vm11, %v4683_v34, %v4659_v28 }
0x1032   : >> { %v4686_v40 = vsel %vm4560_vm13, 0, %v4684_v1 }
0x1033   : >> { %v8128_v61 = vadd.s32 4294967294, %v4665_v27  ;;  %v4703_v17 = vadd.s32 3, %v4686_v40  ;;  %v4859_v39 = vand.u32 3, %v4686_v40 }
0x1035   : >> { %vm8129_vm0 = vcmp.lt.s32.totalorder %v8128_v61, 0  ;;  %vm4861_vm2 = vcmp.eq.s32.totalorder %v4859_v39, 0  ;;  %vm4864_vm10 = vcmp.eq.s32.totalorder %v4859_v39, 2  ;;  %vm4860_vm5 = vcmp.lt.s32.totalorder %v4859_v39, 2 }
0x1036   : >> { %v4668_v36 = vsel %vm8129_vm0, 0, %v8128_v61 }
0x1037   : >> { %v4669_v50 = vsub.s32 32, %v4668_v36  ;;  %v4673_v3 = vsub.s32 4294967266, %v4668_v36  ;;  %v4670_v32 = vshll.u32 %v4661_v47, %v4668_v36 }
0x1039   : >> { %v4671_v10 = vshrl.u32 %v4653_v11, %v4669_v50  ;;  %v4674_v42 = vadd.s32 127, %v4673_v3 }
0x103b   : >> { %v4672_v29 = vor.u32 %v4671_v10, %v4670_v32  ;;  %v4675_v52 = vshll.u32 %v4674_v42, 23  ;;  %v11326_v10 = vld [vmem:[#allocation42_spill] sm:$0xff] }
0x103c   : >> { %v1880_v42 = vmul.f32 0.5, %v11326_v10 }
0x103d   : >> { %v4676_v41 = vor.u32 4788187, %v4675_v52  ;;  %v4679_v63 = vcvt.s32.f32 %v4672_v29  ;;  %v4704_v29 = vand.u32 3, %v4703_v17 }
0x103e   : >> { %v5592_v2 = vpop.permute.xlu1 %5591 }
0x103f   : >> { %v5594_v8 = vadd.f32 %v5592_v2, %v5587_v12  ;;  %v4677_v59 = vand.u32 2147483647, %v4676_v41  ;;  %vm4706_vm14 = vcmp.eq.s32.totalorder %v4704_v29, 0  ;;  %vm4709_vm15 = vcmp.eq.s32.totalorder %v4704_v29, 2 }
0x1040   : >> { %vm4705_vm6 = vcmp.lt.s32.totalorder %v4704_v29, 2 }
0x1041   : >> { %5771 = vrot.lane.b32.xlu0 %v5594_v8, %s11247_s19  ;;  %v4680_v33 = vmul.f32 %v4679_v63, %v4677_v59 }
0x1043   : >> { %v4681_v44 = vxor.u32 2147483648, %v4680_v33 }
0x1045   : >> { %v4682_v58 = vsel %vm4561_vm11, %v4681_v44, %v4680_v33 }
0x1046   : >> { %v4685_v9 = vsel %vm4560_vm13, %v10188_v16, %v4682_v58 }
0x1047   : >> { %v4687_v7 = vmul.f32 %v4685_v9, %v4685_v9 }
0x1049   : >> { %2919 = vrot.lane.b32.xlu0 %v9054_v18, %s11233_s2  ;;  %v4688_v47 = vmul.f32 -0.001358992, %v4687_v7  ;;  %v4695_v55 = vmul.f32 -0.00019511016, %v4687_v7 }
0x104b   : >> { %v4689_v27 = vadd.f32 0.041655596, %v4688_v47  ;;  %v4696_v61 = vadd.f32 0.008332121, %v4695_v55 }
0x104d   : >> { %v4690_v36 = vmul.f32 %v4689_v27, %v4687_v7  ;;  %v4697_v11 = vmul.f32 %v4696_v61, %v4687_v7 }
0x104f   : >> { %v4691_v50 = vadd.f32 -0.4999988, %v4690_v36  ;;  %v4698_v3 = vadd.f32 -0.16666654, %v4697_v11 }
0x1051   : >> { %3999 = vrot.lane.b32.xlu0 %v9054_v18, %s8656_s22  ;;  %v4692_v51 = vmul.f32 %v4691_v50, %v4687_v7  ;;  %v4699_v32 = vmul.f32 %v4698_v3, %v4687_v7 }
0x1053   : >> { %v4693_v12 = vadd.f32 1.0, %v4692_v51  ;;  %v4700_v2 = vadd.f32 1.0, %v4699_v32 }
0x1055   : >> { %v4701_v52 = vmul.f32 %v4700_v2, %v4685_v9  ;;  %v4710_v28 = vxor.u32 2147483648, %v4693_v12 }
0x1057   : >> { %v4707_v8 = vxor.u32 2147483648, %v4701_v52  ;;  %v4711_v59 = vsel %vm4709_vm15, %v4710_v28, %v4701_v52  ;;  %v4866_v7 = vsel %vm4864_vm10, %v4710_v28, %v4701_v52 }
0x1059   : >> { %1882 = vrot.lane.b32.xlu0 %v1880_v42, %s11293_s23  ;;  %v4708_v41 = vsel %vm4706_vm14, %v4693_v12, %v4707_v8  ;;  %v4863_v34 = vsel %vm4861_vm2, %v4693_v12, %v4707_v8 }
0x105a   : >> { %v4712_v63 = vsel %vm4705_vm6, %v4708_v41, %v4711_v59  ;;  %v4867_v47 = vsel %vm4860_vm5, %v4863_v34, %v4866_v7 }
0x105b   : >> { %v4713_v33 = vsel %vm4702_vm7, nan, %v4712_v63  ;;  %v4868_v36 = vsel %vm4702_vm7, nan, %v4867_v47 }
0x105c   : >> { %vm4714_vm1 = vcmp.gt.f32.partialorder %v4713_v33, 1e-06  ;;  %v4869_v50 = vsub.f32 %v4868_v36, %v10095_v30 }
0x105d   : >> { %v4870_v44 = vsel %vm4714_vm1, %v4713_v33, 1.0 }
0x105e   : >> { %8486 = vrcp.f32 %v4870_v44  ;;  %v4882_v1 = vand.u32 2147483648, %v4870_v44  ;;  %v4880_v61 = vand.u32 2147483647, %v4870_v44  ;;  %vm4876_vm8 = vweird.f32 %v4870_v44 }
0x1060   : >> { %v4883_v40 = vor.u32 1.1754944e-38, %v4882_v1  ;;  %vm4881_vm11 = vcmp.eq.f32.partialorder %v4880_v61, 8.507059e+37 }
0x1064   : >> { %v8487_v58 = vpop.eup %8486 }
0x1065   : >> { %v4872_v9 = vmul.f32 %v8487_v58, %v4870_v44  ;;  %vm4877_vm9 = vweird.f32 %v8487_v58 }
0x1066   : >> { %vm4878_vm0 = vmor %vm4876_vm8, %vm4877_vm9 }
0x1067   : >> { %v4873_v55 = vsub.f32 1.0, %v4872_v9 }
0x1069   : >> { %v4874_v27 = vmul.f32 %v8487_v58, %v4873_v55 }
0x106b   : >> { %v4875_v11 = vadd.f32 %v8487_v58, %v4874_v27 }
0x106d   : >> { %v4879_v3 = vsel %vm4878_vm0, %v8487_v58, %v4875_v11 }
0x106e   : >> { %v4884_v17 = vsel %vm4881_vm11, %v4883_v40, %v4879_v3 }
0x106f   : >> { %v4885_v51 = vmul.f32 %v4884_v17, %v4869_v50 }
0x1071   : >> { %v4886_v32 = vsel %vm4714_vm1, %v4885_v51, 0.0 }
0x1072   : >> { %v10277_v10 = vadd.f32 %v4886_v32, %v10188_v16 }
0x1074   : >> { %v4891_v42 = vand.u32 2139095040, %v10277_v10  ;;  %v4888_v29 = vand.u32 2147483647, %v10277_v10  ;;  %vm4890_vm11 = vcmp.lt.s32.totalorder %v10277_v10, 0 }
0x1076   : >> { %v4892_v12 = vshrl.u32 %v4891_v42, 23  ;;  %v4895_v28 = vand.u32 8388607, %v4888_v29 }
0x1078   : >> { %v8133_v2 = vadd.s32 4294967169, %v4892_v12  ;;  %v4896_v63 = vor.u32 8388608, %v4895_v28 }
0x107a   : >> { %v4898_v52 = vadd.s32 1, %v8133_v2  ;;  %v10296_v50 = vshll.u32 %v4896_v63, 8 }
0x107c   : >> { %vm4899_vm13 = vcmp.gt.s32.totalorder %v4898_v52, 0  ;;  %v4937_v28 = vand.u32 65535, %v10296_v50 }
0x107d   : >> { %v4900_v8 = vsel %vm4899_vm13, %v4898_v52, 0  ;;  %vm10340_vm13 = vcmp.le.f32.partialorder %v4888_v29, 0.7853982 }
0x107e   : >> { %v4902_v41 = vand.u32 31, %v4900_v8  ;;  %v10283_v33 = vshrl.u32 %v4900_v8, 5  ;;  %v4938_v8 = vshrl.u32 %v10296_v50, 16 }
0x1080   : >> { %v4903_v59 = vsub.s32 32, %v4902_v41  ;;  %v4905_v16 = vshll.u32 %v11182_v45, %v4902_v41  ;;  %v4908_v44 = vshll.u32 %v11265_v13, %v4902_v41  ;;  %v4911_v34 = vshll.u32 %v11266_v15, %v4902_v41 }
0x1081   : >> { %v4914_v7 = vshll.u32 %v11267_v14, %v4902_v41  ;;  %v4917_v55 = vshll.u32 %v11268_v62, %v4902_v41  ;;  %vm4920_vm14 = vcmp.lt.s32.totalorder %v10283_v33, 1  ;;  %vm4923_vm15 = vcmp.lt.s32.totalorder %v10283_v33, 4 }
0x1082   : >> { %v4906_v39 = vshrl.u32 %v11265_v13, %v4903_v59  ;;  %v4909_v58 = vshrl.u32 %v11266_v15, %v4903_v59  ;;  %v4912_v9 = vshrl.u32 %v11267_v14, %v4903_v59  ;;  %v4915_v47 = vshrl.u32 %v11268_v62, %v4903_v59 }
0x1083   : >> { %v4918_v1 = vshrl.u32 %v11319_v60, %v4903_v59  ;;  %vm4922_vm6 = vcmp.lt.s32.totalorder %v10283_v33, 3  ;;  %vm4921_vm7 = vcmp.lt.s32.totalorder %v10283_v33, 2 }
0x1084   : >> { %v4907_v27 = vor.u32 %v4906_v39, %v4905_v16  ;;  %v4910_v61 = vor.u32 %v4909_v58, %v4908_v44  ;;  %v4913_v36 = vor.u32 %v4912_v9, %v4911_v34  ;;  %v4916_v11 = vor.u32 %v4915_v47, %v4914_v7 }
0x1085   : >> { %v4919_v40 = vor.u32 %v4918_v1, %v4917_v55 }
0x1086   : >> { %v4928_v3 = vsel %vm4920_vm14, %v4907_v27, %v4910_v61  ;;  %v4932_v17 = vsel %vm4920_vm14, %v4910_v61, %v4913_v36  ;;  %v4929_v51 = vsel %vm4923_vm15, %v4916_v11, 920167782 }
0x1087   : >> { %v4933_v32 = vsel %vm4923_vm15, %v4919_v40, 1326507024  ;;  %v4930_v42 = vsel %vm4922_vm6, %v4913_v36, %v4929_v51 }
0x1088   : >> { %v4934_v12 = vsel %vm4922_vm6, %v4916_v11, %v4933_v32  ;;  %v4931_v2 = vsel %vm4921_vm7, %v4928_v3, %v4930_v42 }
0x1089   : >> { %v4935_v52 = vsel %vm4921_vm7, %v4932_v17, %v4934_v12  ;;  %v4961_v16 = vand.u32 65535, %v4931_v2  ;;  %v4962_v44 = vshrl.u32 %v4931_v2, 16 }
0x108a   : >> { %v4939_v41 = vand.u32 65535, %v4935_v52  ;;  %v4940_v63 = vshrl.u32 %v4935_v52, 16  ;;  %v4925_v52 = vsel %vm4923_vm15, %v4913_v36, 2102212464 }
0x108b   : >> { %v4964_v34 = vmul.u32 %v4962_v44, %v4937_v28  ;;  %v4965_v9 = vmul.u32 %v4961_v16, %v4938_v8  ;;  %v4963_v1 = vmul.u32 %v4961_v16, %v4937_v28  ;;  %v4966_v17 = vmul.u32 %v4962_v44, %v4938_v8 }
0x108c   : >> { %v4942_v39 = vmul.u32 %v4940_v63, %v4937_v28  ;;  %v4943_v58 = vmul.u32 %v4939_v41, %v4938_v8  ;;  %v4941_v7 = vmul.u32 %v4939_v41, %v4937_v28  ;;  %v4944_v55 = vmul.u32 %v4940_v63, %v4938_v8 }
0x108d   : >> { %v4967_v11 = vshll.u32 %v4964_v34, 16  ;;  %v4969_v32 = vshll.u32 %v4965_v9, 16  ;;  %v4904_v63 = vshrl.u32 %v11182_v45, %v4903_v59 }
0x108e   : >> { %v4945_v47 = vshll.u32 %v4942_v39, 16  ;;  %v4947_v40 = vshll.u32 %v4943_v58, 16  ;;  %v4946_v16 = vshrl.u32 %v4942_v39, 16 }
0x108f   : >> { %vm4971_vm2 = vc.u32 %v4963_v1, %v4967_v11  ;;  %v4973_v42 = vadd.s32 %v4967_v11, %v4963_v1  ;;  %v4926_v1 = vsel %vm4922_vm6, %v4910_v61, %v4925_v52  ;;  %v4948_v11 = vshrl.u32 %v4943_v58, 16 }
0x1090   : >> { %vm4949_vm1 = vc.u32 %v4941_v7, %v4945_v47  ;;  %v4951_v3 = vadd.s32 %v4945_v47, %v4941_v7  ;;  %v4972_v2 = vsel %vm4971_vm2, 1, %v11192_v48  ;;  %v4968_v7 = vshrl.u32 %v4964_v34, 16 }
0x1091   : >> { %v4950_v51 = vsel %vm4949_vm1, 1, %v11192_v48  ;;  %v4974_v28 = vadd.s32 %v4972_v2, %v4966_v17  ;;  %vm4975_vm5 = vc.u32 %v4973_v42, %v4969_v32 }
0x1092   : >> { %v4952_v12 = vadd.s32 %v4950_v51, %v4944_v55  ;;  %vm4953_vm10 = vc.u32 %v4951_v3, %v4947_v40  ;;  %v4976_v44 = vsel %vm4975_vm5, 1, %v11192_v48  ;;  %v4924_v55 = vsel %vm4920_vm14, %v4904_v63, %v4907_v27 }
0x1093   : >> { %v4954_v41 = vsel %vm4953_vm10, 1, %v11192_v48  ;;  %v4978_v47 = vadd.s32 %v4976_v44, %v4974_v28  ;;  %v4970_v40 = vshrl.u32 %v4965_v9, 16  ;;  %v4977_v51 = vadd.s32 %v4973_v42, %v4969_v32 }
0x1094   : >> { %v4956_v8 = vadd.s32 %v4954_v41, %v4952_v12  ;;  %v4927_v59 = vsel %vm4921_vm7, %v4924_v55, %v4926_v1  ;;  %vm5031_vm7 = vweird.f32 %v10277_v10 }
0x1095   : >> { %v4979_v3 = vadd.s32 %v4978_v47, %v4968_v7  ;;  %v4981_v34 = vmul.u32 %v10296_v50, %v4927_v59 }
0x1096   : >> { %v4957_v36 = vadd.s32 %v4956_v8, %v4946_v16 }
0x1097   : >> { %v4980_v39 = vadd.s32 %v4979_v3, %v4970_v40  ;;  %v11327_v40 = vld [vmem:[#allocation43_spill] sm:$0xff] }
0x1098   : >> { %v4958_v17 = vadd.s32 %v4957_v36, %v4948_v11 }
0x1099   : >> { %v4984_v12 = vadd.s32 1, %v4980_v39 }
0x109a   : >> { %vm4983_vm9 = vc.u32 %v4958_v17, %v4977_v51  ;;  %v4982_v42 = vadd.s32 %v4977_v51, %v4958_v17 }
0x109b   : >> { %v4985_v2 = vsel %vm4983_vm9, %v4984_v12, %v4980_v39 }
0x109c   : >> { %v4986_v41 = vadd.s32 %v4985_v2, %v4981_v34 }
0x109e   : >> { %v4987_v27 = vadd.s32 536870912, %v4986_v41 }
0x10a0   : >> { %v4988_v28 = vshrl.u32 %v4987_v27, 30 }
0x10a2   : >> { %v4989_v63 = vshll.u32 %v4988_v28, 30 }
0x10a4   : >> { %v4990_v61 = vsub.s32 %v4986_v41, %v4989_v63  ;;  %v11330_v41 = vld [vmem:[#allocation46_spill] sm:$0xff]  ;;  %v5012_v63 = vsub.s32 4, %v4988_v28 }
0x10a5   : >> { %v2959_v27 = vmul.f32 0.5, %v11330_v41 }
0x10a6   : >> { %vm4991_vm8 = vcmp.lt.s32.totalorder %v4990_v61, 0  ;;  %v4992_v58 = vsub.s32 0, %v4990_v61 }
0x10a8   : >> { %v4993_v9 = vsel %vm4991_vm8, %v4992_v58, %v4990_v61  ;;  %v11331_v58 = vld [vmem:[#allocation47_spill] sm:$0xff] }
0x10a9   : >> { %v4994_v52 = vclz %v4993_v9 }
0x10ab   : >> { %v8134_v16 = vadd.s32 4294967294, %v4994_v52 }
0x10ad   : >> { %vm8135_vm0 = vcmp.lt.s32.totalorder %v8134_v16, 0 }
0x10ae   : >> { %v4997_v33 = vsel %vm8135_vm0, 0, %v8134_v16 }
0x10af   : >> { %v4998_v8 = vsub.s32 32, %v4997_v33  ;;  %v5002_v44 = vsub.s32 4294967266, %v4997_v33  ;;  %v4999_v7 = vshll.u32 %v4990_v61, %v4997_v33  ;;  %v11332_v33 = vld [vmem:[#allocation44_spill] sm:$0xff] }
0x10b1   : >> { %v5000_v50 = vshrl.u32 %v4982_v42, %v4998_v8  ;;  %v5003_v47 = vadd.s32 127, %v5002_v44  ;;  %v11333_v42 = vld [vmem:[#allocation45_spill] sm:$0xff]  ;;  %v5013_v44 = vsel %vm4890_vm11, %v5012_v63, %v4988_v28 }
0x10b2   : >> { %v4096_v8 = vadd.f32 %v11333_v42, %v11332_v33 }
0x10b3   : >> { %v10333_v32 = vpop.permute.xlu0 %5771  ;;  %v5001_v55 = vor.u32 %v5000_v50, %v4999_v7  ;;  %v5004_v1 = vshll.u32 %v5003_v47, 23  ;;  %v5015_v47 = vsel %vm10340_vm13, 0, %v5013_v44 }
0x10b5   : >> { %v5005_v11 = vor.u32 4788187, %v5004_v1  ;;  %v5008_v39 = vcvt.s32.f32 %v5001_v55 }
0x10b7   : >> { %v5006_v59 = vand.u32 2147483647, %v5005_v11  ;;  %v4097_v11 = vperm.slane %v4096_v8, 0 }
0x10b9   : >> { %v5009_v12 = vmul.f32 %v5008_v39, %v5006_v59  ;;  %v5032_v59 = vadd.s32 3, %v5015_v47 }
0x10bb   : >> { %v2920_v36 = vpop.permute.xlu0 %2919  ;;  %v5010_v34 = vxor.u32 2147483648, %v5009_v12 }
0x10bc   : >> { %v2922_v3 = vmul.f32 %v2920_v36, %v11327_v40  ;;  %v4039_v36 = vmul.f32 0.5, %v10065_v37 }
0x10bd   : >> { %v5011_v51 = vsel %vm4890_vm11, %v5010_v34, %v5009_v12 }
0x10be   : >> { %2924 = vrot.lane.b32.xlu0 %v2922_v3, %s11293_s23  ;;  %v5014_v61 = vsel %vm10340_vm13, %v10277_v10, %v5011_v51  ;;  %v5033_v51 = vand.u32 3, %v5032_v59 }
0x10bf   : >> { %v5016_v52 = vmul.f32 %v5014_v61, %v5014_v61 }
0x10c0   : >> { %vm5035_vm14 = vcmp.eq.s32.totalorder %v5033_v51, 0  ;;  %vm5038_vm15 = vcmp.eq.s32.totalorder %v5033_v51, 2  ;;  %vm5034_vm6 = vcmp.lt.s32.totalorder %v5033_v51, 2 }
0x10c1   : >> { %v5017_v29 = vmul.f32 -0.001358992, %v5016_v52  ;;  %v5024_v16 = vmul.f32 -0.00019511016, %v5016_v52 }
0x10c3   : >> { %v4000_v2 = vpop.permute.xlu0 %3999  ;;  %v5018_v7 = vadd.f32 0.041655596, %v5017_v29  ;;  %v5025_v50 = vadd.f32 0.008332121, %v5024_v16  ;;  %v5188_v29 = vand.u32 3, %v5015_v47 }
0x10c4   : >> { %v4002_v9 = vmul.f32 %v4000_v2, %v11331_v58 }
0x10c5   : >> { %v5019_v55 = vmul.f32 %v5018_v7, %v5016_v52  ;;  %v5026_v1 = vmul.f32 %v5025_v50, %v5016_v52  ;;  %vm5190_vm2 = vcmp.eq.s32.totalorder %v5188_v29, 0  ;;  %vm5193_vm10 = vcmp.eq.s32.totalorder %v5188_v29, 2 }
0x10c6   : >> { %2961 = vrot.lane.b32.xlu0 %v2959_v27, %s11293_s23  ;;  %4004 = vrot.lane.b32.xlu1 %v4002_v9, %s11293_s23  ;;  %vm5189_vm5 = vcmp.lt.s32.totalorder %v5188_v29, 2 }
0x10c7   : >> { %v5020_v40 = vadd.f32 -0.4999988, %v5019_v55  ;;  %v5027_v3 = vadd.f32 -0.16666654, %v5026_v1 }
0x10c9   : >> { %v5021_v39 = vmul.f32 %v5020_v40, %v5016_v52  ;;  %v5028_v12 = vmul.f32 %v5027_v3, %v5016_v52 }
0x10cb   : >> { %v5022_v28 = vadd.f32 1.0, %v5021_v39  ;;  %v5029_v34 = vadd.f32 1.0, %v5028_v12 }
0x10cd   : >> { %v5030_v2 = vmul.f32 %v5029_v34, %v5014_v61  ;;  %v5039_v17 = vxor.u32 2147483648, %v5022_v28 }
0x10ce   : >> { %4099 = vrot.lane.b32.xlu1 %v4097_v11, %s11247_s19  ;;  %4041 = vrot.lane.b32.xlu0 %v4039_v36, %s11293_s23  ;;  %s839_s23 = scalar_lea.vmem %s11337_s13, %s9028_s10  ;;  %s841_s13 = scalar_lea.vmem %s11346_s14, %s9028_s10 }
0x10cf   : >> { %v5036_v41 = vxor.u32 2147483648, %v5030_v2  ;;  %v5040_v37 = vsel %vm5038_vm15, %v5039_v17, %v5030_v2  ;;  %v5195_v42 = vsel %vm5193_vm10, %v5039_v17, %v5030_v2 }
0x10d1   : >> { %v5037_v27 = vsel %vm5035_vm14, %v5022_v28, %v5036_v41  ;;  %v5192_v16 = vsel %vm5190_vm2, %v5022_v28, %v5036_v41 }
0x10d2   : >> { %v5041_v63 = vsel %vm5034_vm6, %v5037_v27, %v5040_v37  ;;  %v5196_v8 = vsel %vm5189_vm5, %v5192_v16, %v5195_v42 }
0x10d3   : >> { %v5042_v9 = vsel %vm5031_vm7, nan, %v5041_v63  ;;  %v5197_v1 = vsel %vm5031_vm7, nan, %v5196_v8 }
0x10d4   : >> { %vm5043_vm1 = vcmp.gt.f32.partialorder %v5042_v9, 1e-06  ;;  %v5198_v36 = vsub.f32 %v5197_v1, %v10095_v30 }
0x10d5   : >> { %v5199_v52 = vsel %vm5043_vm1, %v5042_v9, 1.0 }
0x10d6   : >> { %8488 = vrcp.f32 %v5199_v52  ;;  %v5211_v7 = vand.u32 2147483648, %v5199_v52  ;;  %v5209_v55 = vand.u32 2147483647, %v5199_v52  ;;  %vm5205_vm8 = vweird.f32 %v5199_v52 }
0x10d8   : >> { %v5212_v47 = vor.u32 1.1754944e-38, %v5211_v7  ;;  %vm5210_vm11 = vcmp.eq.f32.partialorder %v5209_v55, 8.507059e+37 }
0x10dc   : >> { %v8489_v61 = vpop.eup %8488 }
0x10dd   : >> { %v5201_v33 = vmul.f32 %v8489_v61, %v5199_v52  ;;  %vm5206_vm9 = vweird.f32 %v8489_v61 }
0x10de   : >> { %vm5207_vm0 = vmor %vm5205_vm8, %vm5206_vm9 }
0x10df   : >> { %v5202_v44 = vsub.f32 1.0, %v5201_v33 }
0x10e1   : >> { %v5203_v50 = vmul.f32 %v8489_v61, %v5202_v44 }
0x10e3   : >> { %v5204_v11 = vadd.f32 %v8489_v61, %v5203_v50 }
0x10e5   : >> { %v5208_v40 = vsel %vm5207_vm0, %v8489_v61, %v5204_v11 }
0x10e6   : >> { %v5213_v3 = vsel %vm5210_vm11, %v5212_v47, %v5208_v40 }
0x10e7   : >> { %v5214_v59 = vmul.f32 %v5213_v3, %v5198_v36 }
0x10e9   : >> { %v5215_v39 = vsel %vm5043_vm1, %v5214_v59, 0.0 }
0x10ea   : >> { %v10367_v12 = vadd.f32 %v5215_v39, %v10277_v10 }
0x10ec   : >> { %v5220_v28 = vand.u32 2139095040, %v10367_v12  ;;  %v11145_v2 = vand.u32 2147483647, %v10367_v12  ;;  %vm5219_vm11 = vcmp.lt.s32.totalorder %v10367_v12, 0 }
0x10ee   : >> { %v5221_v34 = vshrl.u32 %v5220_v28, 23  ;;  %v5224_v41 = vand.u32 8388607, %v11145_v2 }
0x10f0   : >> { %v8139_v51 = vadd.s32 4294967169, %v5221_v34  ;;  %v5225_v52 = vor.u32 8388608, %v5224_v41 }
0x10f2   : >> { %v5227_v17 = vadd.s32 1, %v8139_v51  ;;  %v10386_v40 = vshll.u32 %v5225_v52, 8 }
0x10f4   : >> { %vm5228_vm13 = vcmp.gt.s32.totalorder %v5227_v17, 0 }
0x10f5   : >> { %v5229_v27 = vsel %vm5228_vm13, %v5227_v17, 0 }
0x10f6   : >> { %v5231_v37 = vand.u32 31, %v5229_v27  ;;  %v10373_v9 = vshrl.u32 %v5229_v27, 5  ;;  %v5266_v27 = vand.u32 65535, %v10386_v40 }
0x10f8   : >> { %v5232_v63 = vsub.s32 32, %v5231_v37  ;;  %v5234_v10 = vshll.u32 %v11182_v45, %v5231_v37  ;;  %v5237_v29 = vshll.u32 %v11265_v13, %v5231_v37  ;;  %v5240_v33 = vshll.u32 %v11266_v15, %v5231_v37 }
0x10f9   : >> { %v5243_v8 = vshll.u32 %v11267_v14, %v5231_v37  ;;  %v5246_v7 = vshll.u32 %v11268_v62, %v5231_v37  ;;  %vm5249_vm14 = vcmp.lt.s32.totalorder %v10373_v9, 1  ;;  %vm5252_vm15 = vcmp.lt.s32.totalorder %v10373_v9, 4 }
0x10fa   : >> { %v5235_v61 = vshrl.u32 %v11265_v13, %v5232_v63  ;;  %v5238_v16 = vshrl.u32 %v11266_v15, %v5232_v63  ;;  %v5241_v42 = vshrl.u32 %v11267_v14, %v5232_v63  ;;  %v5244_v44 = vshrl.u32 %v11268_v62, %v5232_v63 }
0x10fb   : >> { %v5247_v50 = vshrl.u32 %v11319_v60, %v5232_v63  ;;  %vm5251_vm6 = vcmp.lt.s32.totalorder %v10373_v9, 3  ;;  %vm5250_vm7 = vcmp.lt.s32.totalorder %v10373_v9, 2  ;;  %v5267_v37 = vshrl.u32 %v10386_v40, 16 }
0x10fc   : >> { %v5236_v55 = vor.u32 %v5235_v61, %v5234_v10  ;;  %v5239_v1 = vor.u32 %v5238_v16, %v5237_v29  ;;  %v5242_v11 = vor.u32 %v5241_v42, %v5240_v33  ;;  %v5245_v47 = vor.u32 %v5244_v44, %v5243_v8 }
0x10fd   : >> { %v5248_v36 = vor.u32 %v5247_v50, %v5246_v7 }
0x10fe   : >> { %v5257_v3 = vsel %vm5249_vm14, %v5236_v55, %v5239_v1  ;;  %v5261_v59 = vsel %vm5249_vm14, %v5239_v1, %v5242_v11  ;;  %v5258_v39 = vsel %vm5252_vm15, %v5245_v47, 920167782 }
0x10ff   : >> { %v5262_v28 = vsel %vm5252_vm15, %v5248_v36, 1326507024  ;;  %v5259_v34 = vsel %vm5251_vm6, %v5242_v11, %v5258_v39 }
0x1100   : >> { %v5263_v51 = vsel %vm5251_vm6, %v5245_v47, %v5262_v28  ;;  %v5260_v17 = vsel %vm5250_vm7, %v5257_v3, %v5259_v34 }
0x1101   : >> { %v5264_v41 = vsel %vm5250_vm7, %v5261_v59, %v5263_v51  ;;  %v5290_v29 = vand.u32 65535, %v5260_v17  ;;  %v5291_v61 = vshrl.u32 %v5260_v17, 16 }
0x1102   : >> { %v5268_v52 = vand.u32 65535, %v5264_v41  ;;  %v5269_v10 = vshrl.u32 %v5264_v41, 16 }
0x1103   : >> { %v5293_v42 = vmul.u32 %v5291_v61, %v5266_v27  ;;  %v5294_v8 = vmul.u32 %v5290_v29, %v5267_v37  ;;  %v5292_v47 = vmul.u32 %v5290_v29, %v5266_v27  ;;  %v5295_v39 = vmul.u32 %v5291_v61, %v5267_v37 }
0x1104   : >> { %v5271_v16 = vmul.u32 %v5269_v10, %v5266_v27  ;;  %v5272_v33 = vmul.u32 %v5268_v52, %v5267_v37  ;;  %v5270_v44 = vmul.u32 %v5268_v52, %v5266_v27  ;;  %v5273_v50 = vmul.u32 %v5269_v10, %v5267_v37 }
0x1105   : >> { %v5296_v36 = vshll.u32 %v5293_v42, 16  ;;  %v5298_v34 = vshll.u32 %v5294_v8, 16  ;;  %v5254_v52 = vsel %vm5252_vm15, %v5242_v11, 2102212464  ;;  %v5233_v29 = vshrl.u32 %v11182_v45, %v5232_v63 }
0x1106   : >> { %v5274_v7 = vshll.u32 %v5271_v16, 16  ;;  %v5276_v3 = vshll.u32 %v5272_v33, 16 }
0x1107   : >> { %vm5300_vm2 = vc.u32 %v5292_v47, %v5296_v36  ;;  %v5302_v51 = vadd.s32 %v5296_v36, %v5292_v47  ;;  %v5255_v47 = vsel %vm5251_vm6, %v5239_v1, %v5254_v52  ;;  %v5277_v36 = vshrl.u32 %v5272_v33, 16 }
0x1108   : >> { %vm5278_vm1 = vc.u32 %v5270_v44, %v5274_v7  ;;  %v5280_v59 = vadd.s32 %v5274_v7, %v5270_v44  ;;  %v5301_v17 = vsel %vm5300_vm2, 1, %v11192_v48  ;;  %v5275_v44 = vshrl.u32 %v5271_v16, 16 }
0x1109   : >> { %v5279_v28 = vsel %vm5278_vm1, 1, %v11192_v48  ;;  %v5303_v27 = vadd.s32 %v5301_v17, %v5295_v39  ;;  %vm5304_vm5 = vc.u32 %v5302_v51, %v5298_v34  ;;  %v5297_v7 = vshrl.u32 %v5293_v42, 16 }
0x110a   : >> { %v5281_v41 = vadd.s32 %v5279_v28, %v5273_v50  ;;  %vm5282_vm10 = vc.u32 %v5280_v59, %v5276_v3  ;;  %v5305_v61 = vsel %vm5304_vm5, 1, %v11192_v48  ;;  %v5253_v50 = vsel %vm5249_vm14, %v5233_v29, %v5236_v55 }
0x110b   : >> { %v5283_v10 = vsel %vm5282_vm10, 1, %v11192_v48  ;;  %v5307_v2 = vadd.s32 %v5305_v61, %v5303_v27  ;;  %v5299_v3 = vshrl.u32 %v5294_v8, 16  ;;  %v5306_v28 = vadd.s32 %v5302_v51, %v5298_v34 }
0x110c   : >> { %v5285_v37 = vadd.s32 %v5283_v10, %v5281_v41  ;;  %v5256_v63 = vsel %vm5250_vm7, %v5253_v50, %v5255_v47  ;;  %vm5360_vm7 = vweird.f32 %v10367_v12 }
0x110d   : >> { %v5308_v59 = vadd.s32 %v5307_v2, %v5297_v7  ;;  %v5310_v42 = vmul.u32 %v10386_v40, %v5256_v63  ;;  %v1883_v2 = vpop.permute.xlu0 %1882 }
0x110e   : >> { %v5286_v11 = vadd.s32 %v5285_v37, %v5275_v44 }
0x110f   : >> { %v5309_v16 = vadd.s32 %v5308_v59, %v5299_v3  ;;  %v1846_v3 = vmul.f32 0.0, %v9054_v18 }
0x1110   : >> { %v5287_v39 = vadd.s32 %v5286_v11, %v5277_v36 }
0x1111   : >> { %v5313_v41 = vadd.s32 1, %v5309_v16 }
0x1112   : >> { %vm5312_vm9 = vc.u32 %v5287_v39, %v5306_v28  ;;  %v5311_v51 = vadd.s32 %v5306_v28, %v5287_v39  ;;  %v11334_v28 = vand.u32 2147483647, %v10367_v12 }
0x1113   : >> { %v5314_v17 = vsel %vm5312_vm9, %v5313_v41, %v5309_v16  ;;  %v1885_v16 = vadd.f32 %v1883_v2, %v1846_v3 }
0x1114   : >> { %v5315_v10 = vadd.s32 %v5314_v17, %v5310_v42  ;;  %vm5218_vm13 = vcmp.le.f32.partialorder %v11334_v28, 0.7853982 }
0x1116   : >> { %v5316_v55 = vadd.s32 536870912, %v5315_v10 }
0x1118   : >> { %v5317_v27 = vshrl.u32 %v5316_v55, 30 }
0x111a   : >> { %v5318_v29 = vshll.u32 %v5317_v27, 30 }
0x111c   : >> { %v5319_v1 = vsub.s32 %v5315_v10, %v5318_v29  ;;  %v5341_v29 = vsub.s32 4, %v5317_v27 }
0x111e   : >> { %vm5320_vm8 = vcmp.lt.s32.totalorder %v5319_v1, 0  ;;  %v5321_v33 = vsub.s32 0, %v5319_v1 }
0x1120   : >> { %v5322_v8 = vsel %vm5320_vm8, %v5321_v33, %v5319_v1 }
0x1121   : >> { %v5323_v52 = vclz %v5322_v8 }
0x1123   : >> { %v8140_v34 = vadd.s32 4294967294, %v5323_v52 }
0x1125   : >> { %vm8141_vm0 = vcmp.lt.s32.totalorder %v8140_v34, 0 }
0x1126   : >> { %v5326_v9 = vsel %vm8141_vm0, 0, %v8140_v34 }
0x1127   : >> { %v5327_v44 = vsub.s32 32, %v5326_v9  ;;  %v5331_v37 = vsub.s32 4294967266, %v5326_v9  ;;  %v5328_v7 = vshll.u32 %v5319_v1, %v5326_v9  ;;  %v5342_v9 = vsel %vm5219_vm11, %v5341_v29, %v5317_v27 }
0x1129   : >> { %v5329_v40 = vshrl.u32 %v5311_v51, %v5327_v44  ;;  %v5332_v50 = vadd.s32 127, %v5331_v37 }
0x112b   : >> { %v5330_v47 = vor.u32 %v5329_v40, %v5328_v7  ;;  %v5333_v36 = vshll.u32 %v5332_v50, 23 }
0x112d   : >> { %v5334_v11 = vor.u32 4788187, %v5333_v36  ;;  %v5337_v63 = vcvt.s32.f32 %v5330_v47 }
0x112f   : >> { %v5335_v59 = vand.u32 2147483647, %v5334_v11 }
0x1130   : >> { %v2925_v61 = vpop.permute.xlu0 %2924 }
0x1131   : >> { %v5338_v42 = vmul.f32 %v5337_v63, %v5335_v59  ;;  %v2927_v17 = vadd.f32 %v2925_v61, %v1885_v16  ;;  %v5344_v61 = vsel %vm5218_vm13, 0, %v5342_v9 }
0x1132   : >> { %v5361_v36 = vadd.s32 3, %v5344_v61  ;;  %v5517_v29 = vand.u32 3, %v5344_v61 }
0x1133   : >> { %v5339_v10 = vxor.u32 2147483648, %v5338_v42 }
0x1134   : >> { %v5362_v16 = vand.u32 3, %v5361_v36  ;;  %vm5519_vm2 = vcmp.eq.s32.totalorder %v5517_v29, 0  ;;  %vm5522_vm10 = vcmp.eq.s32.totalorder %v5517_v29, 2  ;;  %vm5518_vm5 = vcmp.lt.s32.totalorder %v5517_v29, 2 }
0x1135   : >> { %v5340_v55 = vsel %vm5219_vm11, %v5339_v10, %v5338_v42 }
0x1136   : >> { %v5343_v1 = vsel %vm5218_vm13, %v10367_v12, %v5340_v55  ;;  %vm5364_vm14 = vcmp.eq.s32.totalorder %v5362_v16, 0  ;;  %vm5367_vm15 = vcmp.eq.s32.totalorder %v5362_v16, 2  ;;  %vm5363_vm6 = vcmp.lt.s32.totalorder %v5362_v16, 2 }
0x1137   : >> { %v5345_v33 = vmul.f32 %v5343_v1, %v5343_v1 }
0x1138   : >> { %v2962_v41 = vpop.permute.xlu0 %2961  ;;  %v4005_v8 = vpop.permute.xlu1 %4004 }
0x1139   : >> { %v2964_v39 = vadd.f32 %v2962_v41, %v2927_v17  ;;  %v5346_v34 = vmul.f32 -0.001358992, %v5345_v33  ;;  %v5353_v2 = vmul.f32 -0.00019511016, %v5345_v33 }
0x113b   : >> { %v4007_v18 = vadd.f32 %v4005_v8, %v2964_v39  ;;  %v5347_v44 = vadd.f32 0.041655596, %v5346_v34  ;;  %v5354_v37 = vadd.f32 0.008332121, %v5353_v2 }
0x113d   : >> { %v5348_v7 = vmul.f32 %v5347_v44, %v5345_v33  ;;  %v5355_v40 = vmul.f32 %v5354_v37, %v5345_v33 }
0x113f   : >> { %v5349_v50 = vadd.f32 -0.4999988, %v5348_v7  ;;  %v5356_v47 = vadd.f32 -0.16666654, %v5355_v40 }
0x1140   : >> { %v4042_v52 = vpop.permute.xlu0 %4041 }
0x1141   : >> { %v4044_v51 = vadd.f32 %v4042_v52, %v4007_v18  ;;  %v5350_v11 = vmul.f32 %v5349_v50, %v5345_v33  ;;  %v5357_v3 = vmul.f32 %v5356_v47, %v5345_v33 }
0x1143   : >> { %4108 = vrot.lane.b32.xlu0 %v4044_v51, %s11247_s19  ;;  %v5351_v59 = vadd.f32 1.0, %v5350_v11  ;;  %v5358_v63 = vadd.f32 1.0, %v5357_v3 }
0x1145   : >> { %v5359_v41 = vmul.f32 %v5358_v63, %v5343_v1  ;;  %v5368_v42 = vxor.u32 2147483648, %v5351_v59 }
0x1147   : >> { %v5365_v17 = vxor.u32 2147483648, %v5359_v41  ;;  %v5369_v10 = vsel %vm5367_vm15, %v5368_v42, %v5359_v41  ;;  %v5524_v18 = vsel %vm5522_vm10, %v5368_v42, %v5359_v41 }
0x1149   : >> { %v5366_v27 = vsel %vm5364_vm14, %v5351_v59, %v5365_v17  ;;  %v5521_v33 = vsel %vm5519_vm2, %v5351_v59, %v5365_v17 }
0x114a   : >> { %v5370_v39 = vsel %vm5363_vm6, %v5366_v27, %v5369_v10  ;;  %v5525_v52 = vsel %vm5518_vm5, %v5521_v33, %v5524_v18 }
0x114b   : >> { %v5371_v28 = vsel %vm5360_vm7, nan, %v5370_v39  ;;  %v5526_v44 = vsel %vm5360_vm7, nan, %v5525_v52 }
0x114c   : >> { %vm5372_vm1 = vcmp.gt.f32.partialorder %v5371_v28, 1e-06  ;;  %v5527_v7 = vsub.f32 %v5526_v44, %v10095_v30 }
0x114d   : >> { %v5528_v55 = vsel %vm5372_vm1, %v5371_v28, 1.0 }
0x114e   : >> { %8490 = vrcp.f32 %v5528_v55  ;;  %v5540_v2 = vand.u32 2147483648, %v5528_v55  ;;  %v5538_v51 = vand.u32 2147483647, %v5528_v55  ;;  %vm5534_vm8 = vweird.f32 %v5528_v55 }
0x1150   : >> { %v5541_v61 = vor.u32 1.1754944e-38, %v5540_v2  ;;  %vm5539_vm11 = vcmp.eq.f32.partialorder %v5538_v51, 8.507059e+37 }
0x1154   : >> { %v8491_v1 = vpop.eup %8490 }
0x1155   : >> { %v5530_v8 = vmul.f32 %v8491_v1, %v5528_v55  ;;  %vm5535_vm9 = vweird.f32 %v8491_v1 }
0x1156   : >> { %vm5536_vm0 = vmor %vm5534_vm8, %vm5535_vm9 }
0x1157   : >> { %v5531_v34 = vsub.f32 1.0, %v5530_v8 }
0x1159   : >> { %v5532_v9 = vmul.f32 %v8491_v1, %v5531_v34 }
0x115b   : >> { %v5533_v37 = vadd.f32 %v8491_v1, %v5532_v9 }
0x115d   : >> { %v5537_v40 = vsel %vm5536_vm0, %v8491_v1, %v5533_v37 }
0x115e   : >> { %v5542_v50 = vsel %vm5539_vm11, %v5541_v61, %v5537_v40 }
0x115f   : >> { %v5543_v47 = vmul.f32 %v5542_v50, %v5527_v7 }
0x1161   : >> { %v5544_v36 = vsel %vm5372_vm1, %v5543_v47, 0.0 }
0x1162   : >> { %v10438_v11 = vadd.f32 %v5544_v36, %v10367_v12 }
0x1164   : >> { %v5599_v3 = vand.u32 2139095040, %v10438_v11  ;;  %v5596_v16 = vand.u32 2147483647, %v10438_v11  ;;  %vm5598_vm11 = vcmp.lt.s32.totalorder %v10438_v11, 0 }
0x1166   : >> { %v5600_v59 = vshrl.u32 %v5599_v3, 23  ;;  %v5603_v30 = vand.u32 8388607, %v5596_v16 }
0x1168   : >> { %v8145_v63 = vadd.s32 4294967169, %v5600_v59  ;;  %v5604_v10 = vor.u32 8388608, %v5603_v30 }
0x116a   : >> { %v5606_v41 = vadd.s32 1, %v8145_v63  ;;  %v10457_v61 = vshll.u32 %v5604_v10, 8 }
0x116c   : >> { %vm5607_vm13 = vcmp.gt.s32.totalorder %v5606_v41, 0  ;;  %v5646_v30 = vshrl.u32 %v10457_v61, 16 }
0x116d   : >> { %v5608_v42 = vsel %vm5607_vm13, %v5606_v41, 0  ;;  %v5645_v41 = vand.u32 65535, %v10457_v61  ;;  %vm10502_vm13 = vcmp.le.f32.partialorder %v5596_v16, 0.7853982 }
0x116e   : >> { %v5610_v17 = vand.u32 31, %v5608_v42  ;;  %v10444_v39 = vshrl.u32 %v5608_v42, 5 }
0x1170   : >> { %v5611_v27 = vsub.s32 32, %v5610_v17  ;;  %v5613_v12 = vshll.u32 %v11182_v45, %v5610_v17  ;;  %v5616_v28 = vshll.u32 %v11265_v13, %v5610_v17  ;;  %v5619_v1 = vshll.u32 %v11266_v15, %v5610_v17 }
0x1171   : >> { %v5622_v8 = vshll.u32 %v11267_v14, %v5610_v17  ;;  %v5625_v52 = vshll.u32 %v11268_v62, %v5610_v17  ;;  %vm5628_vm14 = vcmp.lt.s32.totalorder %v10444_v39, 1  ;;  %vm5631_vm15 = vcmp.lt.s32.totalorder %v10444_v39, 4 }
0x1172   : >> { %v5614_v55 = vshrl.u32 %v11265_v13, %v5611_v27  ;;  %v5617_v29 = vshrl.u32 %v11266_v15, %v5611_v27  ;;  %v5620_v33 = vshrl.u32 %v11267_v14, %v5611_v27  ;;  %v5623_v18 = vshrl.u32 %v11268_v62, %v5611_v27 }
0x1173   : >> { %v5626_v34 = vshrl.u32 %v11319_v60, %v5611_v27  ;;  %vm5630_vm6 = vcmp.lt.s32.totalorder %v10444_v39, 3  ;;  %vm5629_vm7 = vcmp.lt.s32.totalorder %v10444_v39, 2 }
0x1174   : >> { %v5615_v2 = vor.u32 %v5614_v55, %v5613_v12  ;;  %v5618_v9 = vor.u32 %v5617_v29, %v5616_v28  ;;  %v5621_v51 = vor.u32 %v5620_v33, %v5619_v1  ;;  %v5624_v44 = vor.u32 %v5623_v18, %v5622_v8 }
0x1175   : >> { %v5627_v37 = vor.u32 %v5626_v34, %v5625_v52 }
0x1176   : >> { %v5636_v7 = vsel %vm5628_vm14, %v5615_v2, %v5618_v9  ;;  %v5640_v40 = vsel %vm5628_vm14, %v5618_v9, %v5621_v51  ;;  %v5637_v50 = vsel %vm5631_vm15, %v5624_v44, 920167782 }
0x1177   : >> { %v5641_v47 = vsel %vm5631_vm15, %v5627_v37, 1326507024  ;;  %v5638_v36 = vsel %vm5630_vm6, %v5621_v51, %v5637_v50 }
0x1178   : >> { %v5642_v3 = vsel %vm5630_vm6, %v5624_v44, %v5641_v47  ;;  %v5639_v59 = vsel %vm5629_vm7, %v5636_v7, %v5638_v36 }
0x1179   : >> { %v5643_v63 = vsel %vm5629_vm7, %v5640_v40, %v5642_v3  ;;  %v5669_v10 = vand.u32 65535, %v5639_v59  ;;  %v5670_v12 = vshrl.u32 %v5639_v59, 16  ;;  %v5633_v59 = vsel %vm5631_vm15, %v5621_v51, 2102212464 }
0x117a   : >> { %v5647_v42 = vand.u32 65535, %v5643_v63  ;;  %v5648_v17 = vshrl.u32 %v5643_v63, 16 }
0x117b   : >> { %v5672_v29 = vmul.u32 %v5670_v12, %v5645_v41  ;;  %v5673_v1 = vmul.u32 %v5669_v10, %v5646_v30  ;;  %v5671_v52 = vmul.u32 %v5669_v10, %v5645_v41  ;;  %v5674_v7 = vmul.u32 %v5670_v12, %v5646_v30 }
0x117c   : >> { %v5650_v28 = vmul.u32 %v5648_v17, %v5645_v41  ;;  %v5651_v55 = vmul.u32 %v5647_v42, %v5646_v30  ;;  %v5649_v33 = vmul.u32 %v5647_v42, %v5645_v41  ;;  %v5652_v18 = vmul.u32 %v5648_v17, %v5646_v30 }
0x117d   : >> { %v5675_v34 = vshll.u32 %v5672_v29, 16  ;;  %v5677_v50 = vshll.u32 %v5673_v1, 16  ;;  %v5612_v42 = vshrl.u32 %v11182_v45, %v5611_v27  ;;  %v5676_v12 = vshrl.u32 %v5672_v29, 16 }
0x117e   : >> { %v5653_v8 = vshll.u32 %v5650_v28, 16  ;;  %v5655_v44 = vshll.u32 %v5651_v55, 16  ;;  %v5654_v17 = vshrl.u32 %v5650_v28, 16 }
0x117f   : >> { %vm5679_vm2 = vc.u32 %v5671_v52, %v5675_v34  ;;  %v5681_v47 = vadd.s32 %v5675_v34, %v5671_v52  ;;  %v5656_v52 = vshrl.u32 %v5651_v55, 16  ;;  %v5678_v34 = vshrl.u32 %v5673_v1, 16 }
0x1180   : >> { %vm5657_vm1 = vc.u32 %v5649_v33, %v5653_v8  ;;  %v5659_v37 = vadd.s32 %v5653_v8, %v5649_v33  ;;  %v5680_v3 = vsel %vm5679_vm2, 1, %v11192_v48  ;;  %v5632_v8 = vsel %vm5628_vm14, %v5612_v42, %v5615_v2 }
0x1181   : >> { %v5658_v40 = vsel %vm5657_vm1, 1, %v11192_v48  ;;  %v5682_v41 = vadd.s32 %v5680_v3, %v5674_v7  ;;  %vm5683_vm5 = vc.u32 %v5681_v47, %v5677_v50  ;;  %v5685_v7 = vadd.s32 %v5681_v47, %v5677_v50 }
0x1182   : >> { %v5660_v36 = vadd.s32 %v5658_v40, %v5652_v18  ;;  %vm5661_vm10 = vc.u32 %v5659_v37, %v5655_v44  ;;  %v5684_v10 = vsel %vm5683_vm5, 1, %v11192_v48  ;;  %v5634_v18 = vsel %vm5630_vm6, %v5618_v9, %v5633_v59 }
0x1183   : >> { %v5662_v63 = vsel %vm5661_vm10, 1, %v11192_v48  ;;  %v5686_v33 = vadd.s32 %v5684_v10, %v5682_v41  ;;  %v5635_v27 = vsel %vm5629_vm7, %v5632_v8, %v5634_v18  ;;  %vm5739_vm7 = vweird.f32 %v10438_v11 }
0x1184   : >> { %v5664_v30 = vadd.s32 %v5662_v63, %v5660_v36  ;;  %v5689_v29 = vmul.u32 %v10457_v61, %v5635_v27  ;;  %vm5595_vm1 = vcmp.lt.f32.partialorder %v10438_v11, 1e-06 }
0x1185   : >> { %v5687_v44 = vadd.s32 %v5686_v33, %v5676_v12  ;;  %v10494_v12 = vpop.permute.xlu1 %4099 }
0x1186   : >> { %v5665_v51 = vadd.s32 %v5664_v30, %v5654_v17  ;;  %v8522_v30 = vld [vmem:[#allocation4] sm:$0x7] }
0x1187   : >> { %v5688_v28 = vadd.s32 %v5687_v44, %v5678_v34  ;;  %v4103_v10 = vmul.f32 0.5, %v8522_v30 }
0x1188   : >> { %v5666_v37 = vadd.s32 %v5665_v51, %v5656_v52 }
0x1189   : >> { %v5692_v40 = vadd.s32 1, %v5688_v28  ;;  %v4104_v51 = vmul.f32 %v4103_v10, %v10494_v12 }
0x118a   : >> { %vm5691_vm9 = vc.u32 %v5666_v37, %v5685_v7  ;;  %v5690_v39 = vadd.s32 %v5685_v7, %v5666_v37  ;;  %v8523_v37 = vld [vmem:[#allocation5] sm:$0x7] }
0x118b   : >> { %v5693_v36 = vsel %vm5691_vm9, %v5692_v40, %v5688_v28  ;;  %v4105_v28 = vmul.f32 %v4104_v51, %v10494_v12  ;;  %v4102_v7 = vmul.f32 %v8523_v37, %v10494_v12 }
0x118c   : >> { %v5694_v3 = vadd.s32 %v5693_v36, %v5689_v29 }
0x118d   : >> { %v4106_v36 = vsub.f32 %v4102_v7, %v4105_v28 }
0x118e   : >> { %v5695_v2 = vadd.s32 536870912, %v5694_v3 }
0x1190   : >> { %v5696_v63 = vshrl.u32 %v5695_v2, 30 }
0x1192   : >> { %v5697_v41 = vshll.u32 %v5696_v63, 30 }
0x1194   : >> { %v5698_v9 = vsub.s32 %v5694_v3, %v5697_v41 }
0x1196   : >> { %vm5699_vm8 = vcmp.lt.s32.totalorder %v5698_v9, 0  ;;  %v5700_v55 = vsub.s32 0, %v5698_v9 }
0x1198   : >> { %v5701_v1 = vsel %vm5699_vm8, %v5700_v55, %v5698_v9  ;;  %v5720_v55 = vsub.s32 4, %v5696_v63 }
0x1199   : >> { %v5702_v59 = vclz %v5701_v1 }
0x119a   : >> { %v5721_v16 = vsel %vm5598_vm11, %v5720_v55, %v5696_v63 }
0x119b   : >> { %v8146_v42 = vadd.s32 4294967294, %v5702_v59  ;;  %v5723_v30 = vsel %vm10502_vm13, 0, %v5721_v16 }
0x119d   : >> { %vm8147_vm0 = vcmp.lt.s32.totalorder %v8146_v42, 0 }
0x119e   : >> { %v5705_v50 = vsel %vm8147_vm0, 0, %v8146_v42 }
0x119f   : >> { %v5706_v47 = vsub.s32 32, %v5705_v50  ;;  %v5710_v17 = vsub.s32 4294967266, %v5705_v50  ;;  %v5707_v61 = vshll.u32 %v5698_v9, %v5705_v50 }
0x11a1   : >> { %v5708_v33 = vshrl.u32 %v5690_v39, %v5706_v47  ;;  %v5711_v8 = vadd.s32 127, %v5710_v17 }
0x11a3   : >> { %v5709_v18 = vor.u32 %v5708_v33, %v5707_v61  ;;  %v5712_v52 = vshll.u32 %v5711_v8, 23 }
0x11a5   : >> { %v5713_v34 = vor.u32 4788187, %v5712_v52  ;;  %v5716_v27 = vcvt.s32.f32 %v5709_v18  ;;  %v5740_v18 = vadd.s32 3, %v5723_v30 }
0x11a7   : >> { %v5714_v44 = vand.u32 2147483647, %v5713_v34 }
0x11a9   : >> { %v5717_v40 = vmul.f32 %v5716_v27, %v5714_v44  ;;  %v5741_v27 = vand.u32 3, %v5740_v18 }
0x11ab   : >> { %v5718_v29 = vxor.u32 2147483648, %v5717_v40  ;;  %vm5743_vm14 = vcmp.eq.s32.totalorder %v5741_v27, 0  ;;  %vm5746_vm15 = vcmp.eq.s32.totalorder %v5741_v27, 2  ;;  %vm5742_vm6 = vcmp.lt.s32.totalorder %v5741_v27, 2 }
0x11ad   : >> { %v5719_v41 = vsel %vm5598_vm11, %v5718_v29, %v5717_v40 }
0x11ae   : >> { %v5722_v1 = vsel %vm10502_vm13, %v10438_v11, %v5719_v41 }
0x11af   : >> { %v5724_v59 = vmul.f32 %v5722_v1, %v5722_v1 }
0x11b1   : >> { %v5725_v50 = vmul.f32 -0.001358992, %v5724_v59  ;;  %v5732_v39 = vmul.f32 -0.00019511016, %v5724_v59 }
0x11b3   : >> { %v5726_v47 = vadd.f32 0.041655596, %v5725_v50  ;;  %v5733_v17 = vadd.f32 0.008332121, %v5732_v39 }
0x11b5   : >> { %v4109_v3 = vpop.permute.xlu0 %4108  ;;  %v5727_v10 = vmul.f32 %v5726_v47, %v5724_v59  ;;  %v5734_v61 = vmul.f32 %v5733_v17, %v5724_v59 }
0x11b6   : >> { %v10506_v9 = vadd.f32 %v4109_v3, %v4106_v36 }
0x11b7   : >> { %v5728_v33 = vadd.f32 -0.4999988, %v5727_v10  ;;  %v5735_v8 = vadd.f32 -0.16666654, %v5734_v61 }
0x11b8   : >> { %v5803_v42 = vsub.f32 %v10506_v9, %v11313_v35 }
0x11b9   : >> { %v5729_v52 = vmul.f32 %v5728_v33, %v5724_v59  ;;  %v5736_v51 = vmul.f32 %v5735_v8, %v5724_v59 }
0x11ba   : >> { %8150 = vmatpush.msk.msra.mxu2 %vm917_vm3, %v5803_v42 }
0x11bb   : >> { %8151 = vmatmul.msk.f32.vlgmr.msra.gmra.mxu2 %vm913_vm4, %v11308_v56  ;;  %v5730_v34 = vadd.f32 1.0, %v5729_v52  ;;  %v5737_v44 = vadd.f32 1.0, %v5736_v51 }
0x11bd   : >> { %v5738_v28 = vmul.f32 %v5737_v44, %v5722_v1  ;;  %v5747_v63 = vxor.u32 2147483648, %v5730_v34 }
0x11bf   : >> { %v5744_v40 = vxor.u32 2147483648, %v5738_v28  ;;  %v5748_v7 = vsel %vm5746_vm15, %v5747_v63, %v5738_v28 }
0x11c1   : >> { %v5745_v37 = vsel %vm5743_vm14, %v5730_v34, %v5744_v40 }
0x11c2   : >> { %v5749_v29 = vsel %vm5742_vm6, %v5745_v37, %v5748_v7 }
0x11c3   : >> { %v5750_v36 = vsel %vm5739_vm7, nan, %v5749_v29 }
0x11c4   : >> { %v5751_v3 = vsel %vm5595_vm1, 1.0, %v5750_v36 }
0x11c5   : >> { %v5752_v2 = vmul.f32 2.0, %v5751_v3 }
0x11c7   : >> { %8492 = vrcp.f32 %v5752_v2  ;;  %v5764_v59 = vand.u32 2147483648, %v5752_v2  ;;  %v5762_v50 = vand.u32 2147483647, %v5752_v2  ;;  %vm5758_vm10 = vweird.f32 %v5752_v2 }
0x11c9   : >> { %v5765_v16 = vor.u32 1.1754944e-38, %v5764_v59  ;;  %vm5763_vm9 = vcmp.eq.f32.partialorder %v5762_v50, 8.507059e+37 }
0x11cd   : >> { %v8493_v41 = vpop.eup %8492 }
0x11ce   : >> { %v5754_v55 = vmul.f32 %v8493_v41, %v5752_v2  ;;  %vm5759_vm2 = vweird.f32 %v8493_v41 }
0x11cf   : >> { %vm5760_vm5 = vmor %vm5758_vm10, %vm5759_vm2 }
0x11d0   : >> { %v5755_v1 = vsub.f32 1.0, %v5754_v55 }
0x11d2   : >> { %v5756_v42 = vmul.f32 %v8493_v41, %v5755_v1 }
0x11d4   : >> { %v5757_v39 = vadd.f32 %v8493_v41, %v5756_v42 }
0x11d6   : >> { %v5761_v47 = vsel %vm5760_vm5, %v8493_v41, %v5757_v39 }
0x11d7   : >> { %v5766_v17 = vsel %vm5763_vm9, %v5765_v16, %v5761_v47 }
0x11d8   : >> { %v5767_v30 = vmul.f32 %v5766_v17, %v10438_v11 }
0x11da   : >> { %v5768_v10 = vsel %vm5595_vm1, 0.5, %v5767_v30 }
0x11db   : >> { %v5769_v61 = vperm.slane %v5768_v10, 0 }
0x11dd   : >> { %v10526_v33 = vmul.f32 %v10333_v32, %v5769_v61 }
0x11df   : >> { %v5831_v8 = vsub.f32 0.0, %v10526_v33 }
0x11e1   : >> { %v5849_v18 = vmul.f32 %v5831_v8, %v5831_v8  ;;  %8331 = vpush %v5831_v8  ;;  %v5837_v52 = vrot.slane %v5831_v8, 1  ;;  %v5843_v51 = vrot.slane %v5831_v8, 2 }
0x11e3   : >> { %v5851_v34 = vrot.slane %v5849_v18, 1  ;;  %8333 = vpush %v5837_v52  ;;  %v5854_v27 = vrot.slane %v5849_v18, 2 }
0x11e4   : >> { %8335 = vpush %v5843_v51 }
0x11e5   : >> { %v5853_v44 = vadd.f32 %v5851_v34, %v5849_v18 }
0x11e7   : >> { %v5856_v28 = vadd.f32 %v5854_v27, %v5853_v44 }
0x11e9   : >> { %8494 = vrsqrt.f32 %v5856_v28  ;;  %vm5864_vm8 = vcmp.eq.f32.partialorder %v5856_v28, inf  ;;  %v5867_v36 = vand.u32 2147483648, %v5856_v28  ;;  %vm5866_vm0 = vcmp.eq.f32.partialorder %v5856_v28, 0.0 }
0x11ef   : >> { %v8495_v63 = vpop.eup %8494 }
0x11f0   : >> { %v5858_v11 = vmul.f32 %v8495_v63, %v5856_v28 }
0x11f2   : >> { %v5859_v40 = vmul.f32 %v8495_v63, %v5858_v11 }
0x11f4   : >> { %v5860_v37 = vmul.f32 0.5, %v5859_v40 }
0x11f6   : >> { %v5861_v7 = vsub.f32 1.5, %v5860_v37 }
0x11f8   : >> { %v5862_v32 = vmul.f32 %v8495_v63, %v5861_v7 }
0x11fa   : >> { %v5863_v29 = vmul.f32 %v5862_v32, %v5856_v28 }
0x11fc   : >> { %v5865_v3 = vsel %vm5864_vm8, %v5856_v28, %v5863_v29 }
0x11fd   : >> { %v10529_v2 = vsel %vm5866_vm0, %v5867_v36, %v5865_v3 }
0x11fe   : >> { %vm5869_vm11 = vcmp.lt.f32.partialorder %v10529_v2, 1e-06 }
0x11ff   : >> { %v10535_v41 = vsel %vm5869_vm11, 1.0, %v10529_v2 }
0x1200   : >> { %v5890_v55 = vand.u32 2139095040, %v10535_v41  ;;  %v11146_v42 = vand.u32 2147483647, %v10535_v41 }
0x1202   : >> { %v5891_v1 = vshrl.u32 %v5890_v55, 23  ;;  %v5894_v39 = vand.u32 8388607, %v11146_v42 }
0x1204   : >> { %v8152_v59 = vadd.s32 4294967169, %v5891_v1  ;;  %v5895_v30 = vor.u32 8388608, %v5894_v39 }
0x1206   : >> { %v5897_v50 = vadd.s32 1, %v8152_v59  ;;  %v10570_v3 = vshll.u32 %v5895_v30, 8 }
0x1208   : >> { %vm5898_vm13 = vcmp.gt.s32.totalorder %v5897_v50, 0 }
0x1209   : >> { %v5899_v16 = vsel %vm5898_vm13, %v5897_v50, 0  ;;  %vm5889_vm13 = vcmp.lt.s32.totalorder %v10535_v41, 0 }
0x120a   : >> { %v5901_v47 = vand.u32 31, %v5899_v16  ;;  %v10543_v10 = vshrl.u32 %v5899_v16, 5 }
0x120c   : >> { %v10541_v17 = vsub.s32 32, %v5901_v47  ;;  %v5904_v61 = vshll.u32 %v11182_v45, %v5901_v47  ;;  %v5907_v8 = vshll.u32 %v11265_v13, %v5901_v47  ;;  %v5910_v51 = vshll.u32 %v11266_v15, %v5901_v47 }
0x120d   : >> { %v5913_v34 = vshll.u32 %v11267_v14, %v5901_v47  ;;  %v5916_v28 = vshll.u32 %v11268_v62, %v5901_v47  ;;  %vm5919_vm14 = vcmp.lt.s32.totalorder %v10543_v10, 1  ;;  %vm5922_vm15 = vcmp.lt.s32.totalorder %v10543_v10, 4 }
0x120e   : >> { %v5905_v18 = vshrl.u32 %v11265_v13, %v10541_v17  ;;  %v5908_v52 = vshrl.u32 %v11266_v15, %v10541_v17  ;;  %v5911_v44 = vshrl.u32 %v11267_v14, %v10541_v17  ;;  %v5914_v27 = vshrl.u32 %v11268_v62, %v10541_v17 }
0x120f   : >> { %v5917_v63 = vshrl.u32 %v11319_v60, %v10541_v17  ;;  %vm5920_vm6 = vcmp.lt.s32.totalorder %v10543_v10, 2  ;;  %vm5921_vm7 = vcmp.lt.s32.totalorder %v10543_v10, 3  ;;  %v5799_v10 = vrot.slane %v10155_v0, 5 }
0x1210   : >> { %v10560_v11 = vor.u32 %v5905_v18, %v5904_v61  ;;  %v10562_v40 = vor.u32 %v5908_v52, %v5907_v8  ;;  %v5912_v37 = vor.u32 %v5911_v44, %v5910_v51  ;;  %v5915_v7 = vor.u32 %v5914_v27, %v5913_v34 }
0x1211   : >> { %v5918_v32 = vor.u32 %v5917_v63, %v5916_v28  ;;  %v5936_v18 = vand.u32 65535, %v10570_v3  ;;  %v5937_v28 = vshrl.u32 %v10570_v3, 16 }
0x1212   : >> { %s8332_s15 = spop %8331  ;;  %v5927_v36 = vsel %vm5919_vm14, %v10560_v11, %v10562_v40  ;;  %v5928_v55 = vsel %vm5922_vm15, %v5915_v7, 920167782  ;;  %v5931_v50 = vsel %vm5919_vm14, %v10562_v40, %v5912_v37  ;;  %v5924_v42 = vsel %vm5922_vm15, %v5912_v37, 2102212464 }
0x1213   : >> { %v5834_v29 = vstv %s8332_s15  ;;  %v5929_v59 = vsel %vm5921_vm7, %v5912_v37, %v5928_v55  ;;  %v5932_v39 = vsel %vm5922_vm15, %v5918_v32, 1326507024  ;;  %v5925_v37 = vsel %vm5921_vm7, %v10562_v40, %v5924_v42 }
0x1214   : >> { %s8334_s2 = spop %8333  ;;  %v5836_v16 = vmul.f32 %v5834_v29, %v8998_v49  ;;  %v5930_v61 = vsel %vm5920_vm6, %v5927_v36, %v5929_v59  ;;  %v5933_v8 = vsel %vm5921_vm7, %v5915_v7, %v5932_v39 }
0x1215   : >> { %v5839_v1 = vstv %s8334_s2  ;;  %s8336_s19 = spop %8335  ;;  %v5960_v52 = vand.u32 65535, %v5930_v61  ;;  %v5961_v51 = vshrl.u32 %v5930_v61, 16  ;;  %v5934_v27 = vsel %vm5920_vm6, %v5931_v50, %v5933_v8  ;;  %s8657_s2 = smov 6  }
0x1216   : >> { %v5841_v47 = vmul.f32 %v5839_v1, %v9002_v53  ;;  %v5845_v30 = vstv %s8336_s19  ;;  %v5938_v63 = vand.u32 65535, %v5934_v27  ;;  %v5939_v32 = vshrl.u32 %v5934_v27, 16  ;;  %6308 = vrot.lane.b32.xlu0 %v11308_v56, %s8657_s2 }
0x1217   : >> { %v5847_v44 = vmul.f32 %v5845_v30, %v9004_v54  ;;  %v5963_v29 = vmul.u32 %v5961_v51, %v5936_v18  ;;  %v5964_v36 = vmul.u32 %v5960_v52, %v5937_v28  ;;  %v5962_v59 = vmul.u32 %v5960_v52, %v5936_v18 }
0x1218   : >> { %v5842_v34 = vadd.f32 %v5841_v47, %v5836_v16  ;;  %v5941_v1 = vmul.u32 %v5939_v32, %v5936_v18  ;;  %v5942_v7 = vmul.u32 %v5938_v63, %v5937_v28  ;;  %v5940_v16 = vmul.u32 %v5938_v63, %v5936_v18 }
0x1219   : >> { %v5966_v39 = vshll.u32 %v5963_v29, 16  ;;  %v5965_v47 = vmul.u32 %v5961_v51, %v5937_v28  ;;  %v5943_v30 = vmul.u32 %v5939_v32, %v5937_v28  ;;  %v5968_v61 = vshll.u32 %v5964_v36, 16 }
0x121a   : >> { %v10594_v55 = vadd.f32 %v5847_v44, %v5842_v34  ;;  %v5944_v50 = vshll.u32 %v5941_v1, 16  ;;  %v5946_v34 = vshll.u32 %v5942_v7, 16  ;;  %v5903_v18 = vshrl.u32 %v11182_v45, %v10541_v17 }
0x121b   : >> { %vm5970_vm1 = vc.u32 %v5962_v59, %v5966_v39  ;;  %v5972_v8 = vadd.s32 %v5966_v39, %v5962_v59  ;;  %v5967_v32 = vshrl.u32 %v5963_v29, 16  ;;  %v5969_v17 = vshrl.u32 %v5964_v36, 16 }
0x121c   : >> { %8158 = vmatpush.msk.msra.mxu3 %vm917_vm3, %v10594_v55  ;;  %vm5948_vm2 = vc.u32 %v5940_v16, %v5944_v50  ;;  %v5950_v44 = vadd.s32 %v5944_v50, %v5940_v16  ;;  %v5971_v27 = vsel %vm5970_vm1, 1, %v11192_v48  ;;  %v5923_v39 = vsel %vm5919_vm14, %v5903_v18, %v10560_v11 }
0x121d   : >> { %8159 = vmatmul.msk.f32.vlgmr.msra.gmra.mxu3 %vm913_vm4, %v10594_v55  ;;  %v5949_v52 = vsel %vm5948_vm2, 1, %v11192_v48  ;;  %v5973_v35 = vadd.s32 %v5971_v27, %v5965_v47  ;;  %vm5974_vm10 = vc.u32 %v5972_v8, %v5968_v61  ;;  %v5945_v16 = vshrl.u32 %v5941_v1, 16 }
0x121e   : >> { %v5951_v51 = vadd.s32 %v5949_v52, %v5943_v30  ;;  %vm5952_vm5 = vc.u32 %v5950_v44, %v5946_v34  ;;  %v5975_v28 = vsel %vm5974_vm10, 1, %v11192_v48  ;;  %v5947_v30 = vshrl.u32 %v5942_v7, 16  ;;  %v10624_v7 = vld [vmem:[%s839_s23] sm:$0x3f] }
0x121f   : >> { %v5953_v63 = vsel %vm5952_vm5, 1, %v11192_v48  ;;  %v5977_v59 = vadd.s32 %v5975_v28, %v5973_v35  ;;  %v5926_v29 = vsel %vm5920_vm6, %v5923_v39, %v5925_v37  ;;  %v5976_v27 = vadd.s32 %v5972_v8, %v5968_v61 }
0x1220   : >> { %v5955_v50 = vadd.s32 %v5953_v63, %v5951_v51  ;;  %v5980_v11 = vmul.u32 %v10570_v3, %v5926_v29  ;;  %v5801_v3 = vsub.f32 %v10624_v7, %v5799_v10  ;;  %vm6030_vm1 = vweird.f32 %v10535_v41 }
0x1221   : >> { %v5978_v47 = vadd.s32 %v5977_v59, %v5967_v32 }
0x1222   : >> { %v5956_v34 = vadd.s32 %v5955_v50, %v5945_v16 }
0x1223   : >> { %v5979_v35 = vadd.s32 %v5978_v47, %v5969_v17 }
0x1224   : >> { %v5957_v44 = vadd.s32 %v5956_v34, %v5947_v30 }
0x1225   : >> { %v5983_v52 = vadd.s32 1, %v5979_v35 }
0x1226   : >> { %vm5982_vm9 = vc.u32 %v5957_v44, %v5976_v27  ;;  %v5981_v50 = vadd.s32 %v5976_v27, %v5957_v44 }
0x1227   : >> { %v5984_v18 = vsel %vm5982_vm9, %v5983_v52, %v5979_v35 }
0x1228   : >> { %v5985_v42 = vadd.s32 %v5984_v18, %v5980_v11 }
0x122a   : >> { %v5986_v40 = vadd.s32 536870912, %v5985_v42 }
0x122c   : >> { %v5987_v1 = vshrl.u32 %v5986_v40, 30 }
0x122e   : >> { %v5988_v36 = vshll.u32 %v5987_v1, 30 }
0x1230   : >> { %v5989_v51 = vsub.s32 %v5985_v42, %v5988_v36  ;;  %v11338_v36 = vand.u32 2147483647, %v10535_v41 }
0x1232   : >> { %vm5990_vm8 = vcmp.lt.s32.totalorder %v5989_v51, 0  ;;  %v5991_v8 = vsub.s32 0, %v5989_v51  ;;  %vm5888_vm14 = vcmp.le.f32.partialorder %v11338_v36, 0.7853982 }
0x1234   : >> { %v5992_v63 = vsel %vm5990_vm8, %v5991_v8, %v5989_v51 }
0x1235   : >> { %v5993_v59 = vclz %v5992_v63 }
0x1237   : >> { %v8153_v37 = vadd.s32 4294967294, %v5993_v59 }
0x1239   : >> { %vm8154_vm0 = vcmp.lt.s32.totalorder %v8153_v37, 0 }
0x123a   : >> { %v5996_v16 = vsel %vm8154_vm0, 0, %v8153_v37 }
0x123b   : >> { %v5997_v0 = vsub.s32 32, %v5996_v16  ;;  %v6001_v17 = vsub.s32 4294967266, %v5996_v16  ;;  %v5998_v47 = vshll.u32 %v5989_v51, %v5996_v16 }
0x123d   : >> { %v5999_v30 = vshrl.u32 %v5981_v50, %v5997_v0  ;;  %v6002_v34 = vadd.s32 127, %v6001_v17  ;;  %v5871_v50 = vmul.f32 %v10535_v41, %v10535_v41 }
0x123e   : >> { %v5824_v61 = vpop.f32.mrf.mxu2 }
0x123f   : >> { %v5828_v28 = vrot.slane %v5824_v61, 5  ;;  %v6000_v29 = vor.u32 %v5999_v30, %v5998_v47  ;;  %v6003_v35 = vshll.u32 %v6002_v34, 23  ;;  %v6011_v61 = vsub.s32 4, %v5987_v1 }
0x1240   : >> { %8496 = vrcp.f32 %v5871_v50  ;;  %vm5877_vm0 = vweird.f32 %v5871_v50 }
0x1241   : >> { %v5830_v32 = vsub.f32 %v5801_v3, %v5828_v28  ;;  %v6004_v52 = vor.u32 4788187, %v6003_v35  ;;  %v6007_v18 = vcvt.s32.f32 %v6000_v29  ;;  %v6012_v3 = vsel %vm5889_vm13, %v6011_v61, %v5987_v1 }
0x1243   : >> { %v6631_v39 = vrot.slane %v5830_v32, 3  ;;  %v6005_v11 = vand.u32 2147483647, %v6004_v52  ;;  %v6014_v32 = vsel %vm5888_vm14, 0, %v6012_v3 }
0x1244   : >> { %v6187_v0 = vadd.s32 3, %v6014_v32 }
0x1245   : >> { %8174 = vmatpush.msk.msra.mxu0 %vm917_vm3, %v6631_v39  ;;  %v6008_v42 = vmul.f32 %v6007_v18, %v6005_v11 }
0x1246   : >> { %v6188_v29 = vand.u32 3, %v6187_v0 }
0x1247   : >> { %v6009_v40 = vxor.u32 2147483648, %v6008_v42 }
0x1248   : >> { %vm6190_vm15 = vcmp.eq.s32.totalorder %v6188_v29, 0  ;;  %vm6193_vm6 = vcmp.eq.s32.totalorder %v6188_v29, 2  ;;  %vm6189_vm7 = vcmp.lt.s32.totalorder %v6188_v29, 2 }
0x1249   : >> { %v6010_v10 = vsel %vm5889_vm13, %v6009_v40, %v6008_v42  ;;  %v8497_v42 = vpop.eup %8496  ;;  %v6042_v40 = vmul.f32 2.0, %v10535_v41 }
0x124a   : >> { %v6013_v44 = vsel %vm5888_vm14, %v10535_v41, %v6010_v10  ;;  %vm5878_vm9 = vweird.f32 %v8497_v42 }
0x124b   : >> { %v6015_v27 = vmul.f32 %v6013_v44, %v6013_v44  ;;  %vm5879_vm13 = vmor %vm5877_vm0, %vm5878_vm9 }
0x124d   : >> { %v6016_v51 = vmul.f32 -0.001358992, %v6015_v27  ;;  %v6023_v8 = vmul.f32 -0.00019511016, %v6015_v27 }
0x124f   : >> { %v6017_v28 = vadd.f32 0.041655596, %v6016_v51  ;;  %v6024_v63 = vadd.f32 0.008332121, %v6023_v8 }
0x1251   : >> { %v6018_v59 = vmul.f32 %v6017_v28, %v6015_v27  ;;  %v6025_v39 = vmul.f32 %v6024_v63, %v6015_v27 }
0x1253   : >> { %v6019_v37 = vadd.f32 -0.4999988, %v6018_v59  ;;  %v6026_v16 = vadd.f32 -0.16666654, %v6025_v39 }
0x1255   : >> { %v6020_v17 = vmul.f32 %v6019_v37, %v6015_v27  ;;  %v6027_v47 = vmul.f32 %v6026_v16, %v6015_v27  ;;  %v5873_v27 = vmul.f32 %v8497_v42, %v5871_v50 }
0x1257   : >> { %v6021_v30 = vadd.f32 1.0, %v6020_v17  ;;  %v6028_v34 = vadd.f32 1.0, %v6027_v47  ;;  %v5874_v51 = vsub.f32 1.0, %v5873_v27 }
0x1259   : >> { %v6029_v35 = vmul.f32 %v6028_v34, %v6013_v44  ;;  %v6037_v52 = vxor.u32 2147483648, %v6021_v30  ;;  %v6031_v44 = vand.u32 3, %v6014_v32  ;;  %v5875_v28 = vmul.f32 %v8497_v42, %v5874_v51 }
0x125a   : >> { %v5883_v34 = vand.u32 2147483648, %v5871_v50 }
0x125b   : >> { %v6034_v1 = vxor.u32 2147483648, %v6029_v35  ;;  %v6195_v18 = vsel %vm6193_vm6, %v6037_v52, %v6029_v35  ;;  %vm6033_vm2 = vcmp.eq.s32.totalorder %v6031_v44, 0  ;;  %vm6036_vm10 = vcmp.eq.s32.totalorder %v6031_v44, 2 }
0x125c   : >> { %vm6032_vm5 = vcmp.lt.s32.totalorder %v6031_v44, 2  ;;  %v6038_v59 = vsel %vm6036_vm10, %v6037_v52, %v6029_v35  ;;  %v5876_v0 = vadd.f32 %v8497_v42, %v5875_v28  ;;  %vm11341_vm10 = vcmask 146432  }
0x125d   : >> { %v6192_v11 = vsel %vm6190_vm15, %v6021_v30, %v6034_v1  ;;  %v6035_v3 = vsel %vm6033_vm2, %v6021_v30, %v6034_v1  ;;  %v5881_v30 = vand.u32 2147483647, %v5871_v50  ;;  %v6216_v50 = vmul.f32 0.5, %v10594_v55  ;;  %v3977_v55 = vpop.trf.xlu2 }
0x125e   : >> { %v6196_v36 = vsel %vm6189_vm7, %v6192_v11, %v6195_v18  ;;  %v6039_v39 = vsel %vm6032_vm5, %v6035_v3, %v6038_v59  ;;  %v5880_v35 = vsel %vm5879_vm13, %v8497_v42, %v5876_v0  ;;  %v5884_v18 = vor.u32 1.1754944e-38, %v5883_v34  ;;  %vm11342_vm5 = vmmov %vm11341_vm10 }
0x125f   : >> { %v6197_v10 = vsel %vm6030_vm1, nan, %v6196_v36  ;;  %v6040_v32 = vsel %vm6030_vm1, nan, %v6039_v39  ;;  %vm5882_vm7 = vcmp.eq.f32.partialorder %v5881_v30, 8.507059e+37  ;;  %v6217_v42 = vsub.f32 %v8803_v4, %v6216_v50  ;;  %vm11343_vm9 = vmmov %vm11342_vm5 }
0x1260   : >> { %v6198_v61 = vmul.f32 %v6197_v10, %v6042_v40  ;;  %v6041_v52 = vadd.f32 1.0, %v6040_v32  ;;  %v5885_v10 = vsel %vm5882_vm7, %v5884_v18, %v5880_v35  ;;  %vm11340_vm1 = vcmask 43032   ;;  %vm11345_vm0 = vmmov %vm11342_vm5 }
0x1261   : >> { %vm6591_vm2 = vcmask 1045504  }
0x1262   : >> { %8498 = vrcp.f32 %v6198_v61  ;;  %v6210_v16 = vand.u32 2147483648, %v6198_v61  ;;  %v6208_v47 = vand.u32 2147483647, %v6198_v61  ;;  %vm6204_vm14 = vweird.f32 %v6198_v61 }
0x1264   : >> { %v6211_v1 = vor.u32 1.1754944e-38, %v6210_v16  ;;  %vm6209_vm6 = vcmp.eq.f32.partialorder %v6208_v47, 8.507059e+37 }
0x1265   : >> { %v3978_v39 = vpop.trf.xlu2 }
0x1266   : >> { %v3994_v16 = vmul.f32 %v3978_v39, %v8901_v23 }
0x1268   : >> { %v8499_v8 = vpop.eup %8498  ;;  %v10660_v0 = vadd.f32 %v3994_v16, %v10192_v25  ;;  %v5775_v25 = vsub.f32 %v10624_v7, %v10526_v33 }
0x1269   : >> { %v6200_v63 = vmul.f32 %v8499_v8, %v6198_v61  ;;  %vm6205_vm8 = vweird.f32 %v8499_v8 }
0x126a   : >> { %vm6206_vm15 = vmor %vm6204_vm14, %vm6205_vm8 }
0x126b   : >> { %v6201_v37 = vsub.f32 1.0, %v6200_v63  ;;  %v3993_v63 = vmul.f32 %v3977_v55, %v11254_v6  ;;  %vm11344_vm8 = vmmov %vm11342_vm5 }
0x126d   : >> { %v6202_v17 = vmul.f32 %v8499_v8, %v6201_v37  ;;  %v10653_v37 = vadd.f32 %v3993_v63, %v10181_v43 }
0x126f   : >> { %v6203_v29 = vadd.f32 %v8499_v8, %v6202_v17  ;;  %v3979_v17 = vpop.trf.xlu2 }
0x1270   : >> { %v3995_v47 = vmul.f32 %v3979_v17, %v8904_v24 }
0x1271   : >> { %v6207_v11 = vsel %vm6206_vm15, %v8499_v8, %v6203_v29 }
0x1272   : >> { %v6212_v40 = vsel %vm6209_vm6, %v6211_v1, %v6207_v11  ;;  %v10666_v43 = vadd.f32 %v3995_v47, %v10201_v46  ;;  %v842_v46 = vld [vmem:[%s841_s13] sm:$0x3f] }
0x1273   : >> { %v6213_v36 = vmul.f32 %v6212_v40, %v6041_v52 }
0x1275   : >> { %v6214_v27 = vsub.f32 %v5885_v10, %v6213_v36 }
0x1277   : >> { %v6215_v41 = vsel %vm5869_vm11, 0.083333336, %v6214_v27  ;;  %vm11339_vm11 = vcmask 67632  }
0x1278   : >> { %8337 = vpush %v6215_v41  ;;  %v8658_v41 = vmov 1  }
0x1288   : >> { %v6309_v2 = vpop.permute.xlu0 %6308 }
0x1289   : >> { %6311 = vst.msk [vmem:[#allocation11 + $0x3] sm:$0x7] %vm11339_vm11, %v6309_v2 }
0x12a0   : >> { %v6240_v61 = vpop.f32.mrf.mxu3 }
0x12a9   : >> { %s8338_s15 = spop %8337 }
0x12aa   : >> { %v6245_v44 = vstv %s8338_s15 }
0x12ab   : >> { %v6247_v51 = vmul.f32 %v6245_v44, %v6240_v61 }
0x12ad   : >> { %v6248_v8 = vadd.f32 %v6247_v51, %v6217_v42 }
0x12af   : >> { %8161 = vmatmul.msk.f32.vlgmr.msra.gmra.mxu1 %vm913_vm4, %v6248_v8 }
0x132c   : >> { %v6271_v3 = vpop.f32.mrf.mxu1 }
0x132d   : >> { %6275 = vrot.lane.b32.xlu1 %v6271_v3, %s8652_s24  ;;  %v11347_v3 = vld [vmem:[#allocation27_spill] sm:$0xff] }
0x132e   : >> { %vm11348_vm7 = vcmp.eq.s32.totalorder %v11347_v3, 0 }
0x139f   : >> { %v6276_v28 = vpop.permute.xlu1 %6275 }
0x13a0   : >> { %6278 = vst.msk [vmem:[#allocation11] sm:$0x7] %vm11340_vm1, %v6276_v28 }
0x13a7   : >> { %v6312_v59 = vld [vmem:[#allocation11] sm:$0x3f] }
0x13a8   : >> { %8164 = vmatpush.xpose.msk.msrb.mxu2 %vm11341_vm10, %v6312_v59 }
0x13ab   : >> { %8165 = vmatmul.msk.f32.vlgmr.msrb.gmra.mxu2 %vm11342_vm5, %v10653_v37 }
0x13ac   : >> { %8182 = vmatpush.msk.msra.mxu2 %vm6591_vm2, %v6312_v59 }
0x13b3   : >> { %8166 = vmatmul.msk.f32.gmra.mxu2 %vm11343_vm9, %v10660_v0  ;;  %vm11349_vm9 = vcmp.eq.s32.totalorder %v11347_v3, 1 }
0x13bb   : >> { %8167 = vmatmul.msk.f32.gmra.mxu2 %vm11344_vm8, %v10666_v43 }
0x142e   : >> { %v10670_v34 = vpop.f32.mrf.mxu2 }
0x1436   : >> { %v10672_v32 = vpop.f32.mrf.mxu2 }
0x143e   : >> { %v10674_v30 = vpop.f32.mrf.mxu2 }
0x143f   : >> { %8168 = vmatpush.msk.msrb.mxu3 %vm1566_vm12, %v10674_v30 }
0x1441   : >> { %6368 = vmatpush.msrb.mxu3 %v10672_v32 }
0x1443   : >> { %6369 = vmatpush.msrb.mxu3 %v10670_v34 }
0x1444   : >> { %8169 = vmatmul.msk.f32.vlgmr.msrb.gmra.mxu3 %vm11345_vm0, %v6312_v59 }
0x1445   : >> { %8178 = vmatpush.msk.msra.mxu3 %vm917_vm3, %v5775_v25 }
0x14c7   : >> { %v6371_v29 = vpop.f32.mrf.mxu3 }
0x14c8   : >> { %v6372_v1 = vadd.f32 %v6371_v29, %v842_v46  ;;  %v8659_v29 = vmov 2  }
0x14ca   : >> { %8500 = vrcp.f32 %v6372_v1  ;;  %6398 = vperm.xlu0 %8448, %v6372_v1   ;;  %v6385_v33 = vand.u32 2147483648, %v6372_v1  ;;  %v6383_v18 = vand.u32 2147483647, %v6372_v1  ;;  %vm6379_vm14 = vweird.f32 %v6372_v1 }
0x14cc   : >> { %v6386_v36 = vor.u32 1.1754944e-38, %v6385_v33  ;;  %vm6384_vm6 = vcmp.eq.f32.partialorder %v6383_v18, 8.507059e+37 }
0x14d0   : >> { %v8501_v35 = vpop.eup %8500 }
0x14d1   : >> { %v6375_v52 = vmul.f32 %v8501_v35, %v6372_v1  ;;  %vm6380_vm13 = vweird.f32 %v8501_v35 }
0x14d2   : >> { %vm6381_vm15 = vmor %vm6379_vm14, %vm6380_vm13  ;;  %8450 = vset.pattern.permute.xlu0 %v8659_v29 }
0x14d3   : >> { %v6376_v11 = vsub.f32 1.0, %v6375_v52 }
0x14d5   : >> { %v6377_v7 = vmul.f32 %v8501_v35, %v6376_v11 }
0x14d7   : >> { %v6378_v40 = vadd.f32 %v8501_v35, %v6377_v7 }
0x14d9   : >> { %v6382_v10 = vsel %vm6381_vm15, %v8501_v35, %v6378_v40  ;;  %vm11350_vm15 = vcmp.eq.s32.totalorder %v11347_v3, 2 }
0x14da   : >> { %v6387_v27 = vsel %vm6384_vm6, %v6386_v36, %v6382_v10 }
0x14db   : >> { %6391 = vperm.xlu1 %8447, %v6387_v27  }
0x14e3   : >> { %8449 = vset.pattern.permute.xlu1 %v8658_v41 }
0x153c   : >> { %v10693_v42 = vpop.permute.xlu0 %6398 }
0x154d   : >> { %v10690_v50 = vpop.permute.xlu1 %6391 }
0x154e   : >> { %v6394_v61 = vmul.f32 %v10690_v50, %v6372_v1 }
0x1550   : >> { %v6401_v44 = vperm.slane %v6394_v61, 0 }
0x1552   : >> { %v6402_v51 = vmul.f32 %v6401_v44, %v10693_v42 }
0x1554   : >> { %v6403_v8 = vsub.f32 %v6372_v1, %v6402_v51 }
0x1556   : >> { %v6407_v2 = vsel %vm11348_vm7, %v6401_v44, %v6403_v8 }
0x1557   : >> { %8502 = vrcp.f32 %v6407_v2  ;;  %v6420_v59 = vand.u32 2147483648, %v6407_v2  ;;  %v6418_v16 = vand.u32 2147483647, %v6407_v2  ;;  %vm6414_vm1 = vweird.f32 %v6407_v2 }
0x1559   : >> { %v6421_v47 = vor.u32 1.1754944e-38, %v6420_v59  ;;  %vm6419_vm5 = vcmp.eq.f32.partialorder %v6418_v16, 8.507059e+37 }
0x155d   : >> { %v8503_v55 = vpop.eup %8502 }
0x155e   : >> { %v6410_v28 = vmul.f32 %v8503_v55, %v6407_v2  ;;  %vm6415_vm11 = vweird.f32 %v8503_v55 }
0x155f   : >> { %vm6416_vm10 = vmor %vm6414_vm1, %vm6415_vm11 }
0x1560   : >> { %v6411_v63 = vsub.f32 1.0, %v6410_v28 }
0x1562   : >> { %v6412_v39 = vmul.f32 %v8503_v55, %v6411_v63 }
0x1564   : >> { %v6413_v17 = vadd.f32 %v8503_v55, %v6412_v39 }
0x1566   : >> { %v6417_v25 = vsel %vm6416_vm10, %v8503_v55, %v6413_v17  ;;  %vm11351_vm10 = vcmp.eq.s32.totalorder %v11347_v3, 0 }
0x1567   : >> { %v6422_v46 = vsel %vm6419_vm5, %v6421_v47, %v6417_v25  ;;  %vm11352_vm5 = vmmov %vm11349_vm9 }
0x1568   : >> { %6426 = vperm.xlu1 %8449, %v6422_v46  }
0x1570   : >> { %6433 = vperm.xlu1 %8449, %v6407_v2  }
0x1578   : >> { %8451 = vset.pattern.permute.xlu1 %v8659_v29 }
0x15da   : >> { %v6427_v1 = vpop.permute.xlu1 %6426 }
0x15db   : >> { %v6429_v35 = vmul.f32 %v6427_v1, %v6407_v2 }
0x15dd   : >> { %v6436_v52 = vperm.slane %v6429_v35, 1 }
0x15e2   : >> { %v6434_v11 = vpop.permute.xlu1 %6433 }
0x15e3   : >> { %v6437_v33 = vmul.f32 %v6436_v52, %v6434_v11 }
0x15e5   : >> { %v6438_v7 = vsub.f32 %v6407_v2, %v6437_v33  ;;  %v8660_v2 = vmov 3  }
0x15e7   : >> { %v6442_v18 = vsel %vm11349_vm9, %v6436_v52, %v6438_v7  ;;  %vm11353_vm9 = vmmov %vm11350_vm15 }
0x15e8   : >> { %8504 = vrcp.f32 %v6442_v18  ;;  %6468 = vperm.xlu1 %8451, %v6442_v18   ;;  %v6455_v27 = vand.u32 2147483648, %v6442_v18  ;;  %v6453_v61 = vand.u32 2147483647, %v6442_v18  ;;  %vm6449_vm0 = vweird.f32 %v6442_v18 }
0x15ea   : >> { %v6456_v51 = vor.u32 1.1754944e-38, %v6455_v27  ;;  %vm6454_vm14 = vcmp.eq.f32.partialorder %v6453_v61, 8.507059e+37 }
0x15ee   : >> { %v8505_v40 = vpop.eup %8504 }
0x15ef   : >> { %v6445_v36 = vmul.f32 %v8505_v40, %v6442_v18  ;;  %vm6450_vm8 = vweird.f32 %v8505_v40 }
0x15f0   : >> { %vm6451_vm13 = vmor %vm6449_vm0, %vm6450_vm8  ;;  %8452 = vset.pattern.permute.xlu1 %v8660_v2  ;;  %vm6512_vm8 = vcmp.eq.s32.totalorder %v11347_v3, 3 }
0x15f1   : >> { %v6446_v10 = vsub.f32 1.0, %v6445_v36 }
0x15f3   : >> { %v6447_v41 = vmul.f32 %v8505_v40, %v6446_v10 }
0x15f5   : >> { %v6448_v44 = vadd.f32 %v8505_v40, %v6447_v41 }
0x15f7   : >> { %v6452_v8 = vsel %vm6451_vm13, %v8505_v40, %v6448_v44 }
0x15f8   : >> { %v6457_v55 = vsel %vm6454_vm14, %v6456_v51, %v6452_v8 }
0x15f9   : >> { %6461 = vperm.xlu0 %8450, %v6457_v55  }
0x1601   : >> { %8453 = vset.pattern.permute.xlu0 %v8660_v2 }
0x165a   : >> { %v6469_v39 = vpop.permute.xlu1 %6468 }
0x166b   : >> { %v6462_v28 = vpop.permute.xlu0 %6461 }
0x166c   : >> { %v6464_v63 = vmul.f32 %v6462_v28, %v6442_v18 }
0x166e   : >> { %v6471_v59 = vperm.slane %v6464_v63, 2  ;;  %v8661_v63 = vmov 4  }
0x166f   : >> { %8455 = vset.pattern.permute.xlu2 %v8661_v63 }
0x1670   : >> { %v6472_v16 = vmul.f32 %v6471_v59, %v6469_v39 }
0x1672   : >> { %v6473_v17 = vsub.f32 %v6442_v18, %v6472_v16  ;;  %v6395_v18 = vmul.f32 %v8803_v4, %v10690_v50 }
0x1674   : >> { %v6477_v47 = vsel %vm11350_vm15, %v6471_v59, %v6473_v17  ;;  %v6404_v27 = vperm.slane %v6395_v18, 0 }
0x1675   : >> { %8506 = vrcp.f32 %v6477_v47  ;;  %6503 = vperm.xlu0 %8453, %v6477_v47   ;;  %v6490_v35 = vand.u32 2147483648, %v6477_v47  ;;  %v6488_v33 = vand.u32 2147483647, %v6477_v47  ;;  %vm6484_vm7 = vweird.f32 %v6477_v47 }
0x1676   : >> { %v6405_v41 = vmul.f32 %v6404_v27, %v10693_v42 }
0x1677   : >> { %v6491_v40 = vor.u32 1.1754944e-38, %v6490_v35  ;;  %vm6489_vm1 = vcmp.eq.f32.partialorder %v6488_v33, 8.507059e+37 }
0x1678   : >> { %v6406_v61 = vsub.f32 %v8803_v4, %v6405_v41 }
0x167a   : >> { %v6408_v44 = vsel %vm11351_vm10, %v6404_v27, %v6406_v61 }
0x167b   : >> { %v8507_v25 = vpop.eup %8506  ;;  %v6430_v51 = vmul.f32 %v6427_v1, %v6408_v44 }
0x167c   : >> { %v6480_v46 = vmul.f32 %v8507_v25, %v6477_v47  ;;  %vm6485_vm6 = vweird.f32 %v8507_v25 }
0x167d   : >> { %vm6486_vm11 = vmor %vm6484_vm7, %vm6485_vm6  ;;  %v6439_v8 = vperm.slane %v6430_v51, 1  ;;  %vm6548_vm6 = vcmp.eq.s32.totalorder %v11347_v3, 4 }
0x167e   : >> { %v6481_v29 = vsub.f32 1.0, %v6480_v46 }
0x167f   : >> { %v6440_v55 = vmul.f32 %v6439_v8, %v6434_v11 }
0x1680   : >> { %v6482_v52 = vmul.f32 %v8507_v25, %v6481_v29 }
0x1681   : >> { %v6441_v2 = vsub.f32 %v6408_v44, %v6440_v55 }
0x1682   : >> { %v6483_v7 = vadd.f32 %v8507_v25, %v6482_v52 }
0x1683   : >> { %v6443_v59 = vsel %vm11352_vm5, %v6439_v8, %v6441_v2  ;;  %v8662_v2 = vmov 5   ;;  %vm6580_vm5 = vcmp.eq.s32.totalorder %v11347_v3, 5 }
0x1684   : >> { %v6487_v36 = vsel %vm6486_vm11, %v8507_v25, %v6483_v7  ;;  %v6465_v16 = vmul.f32 %v6462_v28, %v6443_v59  ;;  %8457 = vset.pattern.permute.xlu0 %v8662_v2 }
0x1685   : >> { %v6492_v10 = vsel %vm6489_vm1, %v6491_v40, %v6487_v36 }
0x1686   : >> { %6496 = vperm.xlu1 %8452, %v6492_v10   ;;  %v6474_v50 = vperm.slane %v6465_v16, 2 }
0x1688   : >> { %v6475_v17 = vmul.f32 %v6474_v50, %v6469_v39 }
0x168a   : >> { %v6476_v25 = vsub.f32 %v6443_v59, %v6475_v17 }
0x168c   : >> { %v6478_v46 = vsel %vm11353_vm9, %v6474_v50, %v6476_v25  ;;  %vm6582_vm9 = vcmask 48128  }
0x168e   : >> { %8454 = vset.pattern.permute.xlu1 %v8661_v63 }
0x16e7   : >> { %v6504_v11 = vpop.permute.xlu0 %6503 }
0x16f8   : >> { %v6497_v42 = vpop.permute.xlu1 %6496 }
0x16f9   : >> { %v6499_v29 = vmul.f32 %v6497_v42, %v6477_v47  ;;  %v6500_v35 = vmul.f32 %v6497_v42, %v6478_v46 }
0x16fb   : >> { %v6506_v1 = vperm.slane %v6499_v29, 3  ;;  %v6509_v52 = vperm.slane %v6500_v35, 3 }
0x16fd   : >> { %v6507_v33 = vmul.f32 %v6506_v1, %v6504_v11  ;;  %v6510_v7 = vmul.f32 %v6509_v52, %v6504_v11 }
0x16ff   : >> { %v6508_v40 = vsub.f32 %v6477_v47, %v6507_v33  ;;  %v6511_v36 = vsub.f32 %v6478_v46, %v6510_v7 }
0x1701   : >> { %v6513_v10 = vsel %vm6512_vm8, %v6506_v1, %v6508_v40  ;;  %v6514_v28 = vsel %vm6512_vm8, %v6509_v52, %v6511_v36 }
0x1702   : >> { %8508 = vrcp.f32 %v6513_v10  ;;  %6539 = vperm.xlu2 %8455, %v6513_v10   ;;  %v6526_v41 = vand.u32 2147483648, %v6513_v10  ;;  %v6524_v44 = vand.u32 2147483647, %v6513_v10  ;;  %vm6520_vm13 = vweird.f32 %v6513_v10 }
0x1704   : >> { %v6527_v8 = vor.u32 1.1754944e-38, %v6526_v41  ;;  %vm6525_vm15 = vcmp.eq.f32.partialorder %v6524_v44, 8.507059e+37 }
0x1708   : >> { %v8509_v39 = vpop.eup %8508 }
0x1709   : >> { %v6516_v18 = vmul.f32 %v8509_v39, %v6513_v10  ;;  %vm6521_vm0 = vweird.f32 %v8509_v39 }
0x170a   : >> { %8458 = vset.pattern.permute.xlu2 %v11192_v48  ;;  %vm6522_vm14 = vmor %vm6520_vm13, %vm6521_vm0  ;;  %vm11357_vm13 = vcmask 2048  }
0x170b   : >> { %v6517_v27 = vsub.f32 1.0, %v6516_v18 }
0x170d   : >> { %v6518_v61 = vmul.f32 %v8509_v39, %v6517_v27 }
0x170f   : >> { %v6519_v51 = vadd.f32 %v8509_v39, %v6518_v61 }
0x1711   : >> { %v6523_v55 = vsel %vm6522_vm14, %v8509_v39, %v6519_v51  ;;  %vm7265_vm14 = vcmask 1040384  }
0x1712   : >> { %v6528_v47 = vsel %vm6525_vm15, %v6527_v8, %v6523_v55  ;;  %vm11358_vm15 = vmmov %vm11357_vm13 }
0x1713   : >> { %6532 = vperm.xlu1 %8454, %v6528_v47  }
0x171b   : >> { %8456 = vset.pattern.permute.xlu1 %v8662_v2 }
0x175c   : >> { %v6540_v25 = vpop.permute.xlu2 %6539 }
0x1785   : >> { %v6533_v63 = vpop.permute.xlu1 %6532 }
0x1786   : >> { %v6535_v59 = vmul.f32 %v6533_v63, %v6513_v10  ;;  %v6536_v16 = vmul.f32 %v6533_v63, %v6514_v28 }
0x1788   : >> { %v6542_v50 = vperm.slane %v6535_v59, 4  ;;  %v6545_v17 = vperm.slane %v6536_v16, 4 }
0x178a   : >> { %v6543_v42 = vmul.f32 %v6542_v50, %v6540_v25  ;;  %v6546_v46 = vmul.f32 %v6545_v17, %v6540_v25 }
0x178c   : >> { %v6544_v29 = vsub.f32 %v6513_v10, %v6543_v42  ;;  %v6547_v35 = vsub.f32 %v6514_v28, %v6546_v46 }
0x178e   : >> { %v6549_v1 = vsel %vm6548_vm6, %v6542_v50, %v6544_v29  ;;  %v6550_v52 = vsel %vm6548_vm6, %v6545_v17, %v6547_v35 }
0x178f   : >> { %8510 = vrcp.f32 %v6549_v1  ;;  %6574 = vperm.xlu0 %8457, %v6549_v1   ;;  %v6562_v40 = vand.u32 2147483648, %v6549_v1  ;;  %v6560_v39 = vand.u32 2147483647, %v6549_v1  ;;  %vm6556_vm11 = vweird.f32 %v6549_v1 }
0x1791   : >> { %v6563_v27 = vor.u32 1.1754944e-38, %v6562_v40  ;;  %vm6561_vm10 = vcmp.eq.f32.partialorder %v6560_v39, 8.507059e+37 }
0x1795   : >> { %v8511_v11 = vpop.eup %8510 }
0x1796   : >> { %v6552_v33 = vmul.f32 %v8511_v11, %v6549_v1  ;;  %vm6557_vm7 = vweird.f32 %v8511_v11 }
0x1797   : >> { %vm6558_vm1 = vmor %vm6556_vm11, %vm6557_vm7 }
0x1798   : >> { %v6553_v7 = vsub.f32 1.0, %v6552_v33 }
0x179a   : >> { %v6554_v36 = vmul.f32 %v8511_v11, %v6553_v7 }
0x179c   : >> { %v6555_v18 = vadd.f32 %v8511_v11, %v6554_v36 }
0x179e   : >> { %v6559_v41 = vsel %vm6558_vm1, %v8511_v11, %v6555_v18  ;;  %v8524_v11 = vld [vmem:[#allocation4] sm:$0x7] }
0x179f   : >> { %v6564_v61 = vsel %vm6561_vm10, %v6563_v27, %v6559_v41 }
0x17a0   : >> { %6568 = vperm.xlu1 %8456, %v6564_v61  }
0x1801   : >> { %v6575_v51 = vpop.permute.xlu0 %6574 }
0x1812   : >> { %v6569_v10 = vpop.permute.xlu1 %6568 }
0x1813   : >> { %v6571_v28 = vmul.f32 %v6569_v10, %v6550_v52 }
0x1815   : >> { %v6577_v44 = vperm.slane %v6571_v28, 5 }
0x1817   : >> { %v6578_v8 = vmul.f32 %v6577_v44, %v6575_v51  ;;  %v8525_v51 = vld [vmem:[#allocation6] sm:$0x7] }
0x1819   : >> { %v6579_v55 = vsub.f32 %v6550_v52, %v6578_v8 }
0x181b   : >> { %v6581_v47 = vsel %vm6580_vm5, %v6577_v44, %v6579_v55 }
0x181c   : >> { %8170 = vmatpush.msk.msrb.mxu1 %vm6591_vm2, %v6581_v47  ;;  %vm11354_vm2 = vcmask 146432  }
0x181d   : >> { %8171 = vmatmul.msk.f32.vlgmr.msrb.gmra.mxu1 %vm6582_vm9, %v10670_v34  ;;  %vm11355_vm8 = vmmov %vm11354_vm2 }
0x181e   : >> { %8186 = vmatpush.msk.msra.mxu1 %vm1566_vm12, %v10666_v43  ;;  %vm11356_vm0 = vmmov %vm11354_vm2 }
0x1820   : >> { %6763 = vmatpush.msra.mxu1 %v10660_v0 }
0x1822   : >> { %6764 = vmatpush.msra.mxu1 %v10653_v37 }
0x1825   : >> { %8172 = vmatmul.msk.f32.gmra.mxu1 %vm6582_vm9, %v10672_v32 }
0x182d   : >> { %8173 = vmatmul.msk.f32.gmra.mxu1 %vm6582_vm9, %v10674_v30 }
0x189a   : >> { %v6612_v2 = vpop.f32.mrf.mxu1 }
0x189b   : >> { %6624 = vrot.lane.b32.xlu1 %v6612_v2, %s8656_s22  ;;  %8179 = vmatmul.msk.f32.vlgmr.msra.gmra.mxu3 %vm913_vm4, %v6612_v2 }
0x189c   : >> { %8183 = vmatmul.msk.f32.vlgmr.msra.gmra.mxu2 %vm6582_vm9, %v6612_v2 }
0x18a2   : >> { %v6615_v34 = vpop.f32.mrf.mxu1 }
0x18a3   : >> { %6626 = vrot.lane.b32.xlu1 %v6615_v34, %s8656_s22  ;;  %8180 = vmatmul.msk.f32.gmra.mxu3 %vm913_vm4, %v6615_v34 }
0x18a4   : >> { %8184 = vmatmul.msk.f32.gmra.mxu2 %vm6582_vm9, %v6615_v34 }
0x18aa   : >> { %v6618_v37 = vpop.f32.mrf.mxu1 }
0x18ab   : >> { %6628 = vrot.lane.b32.xlu0 %v6618_v37, %s8656_s22  ;;  %8181 = vmatmul.msk.f32.gmra.mxu3 %vm913_vm4, %v6618_v37 }
0x18ac   : >> { %8185 = vmatmul.msk.f32.gmra.mxu2 %vm6582_vm9, %v6618_v37 }
0x190d   : >> { %v6625_v0 = vpop.permute.xlu1 %6624 }
0x190e   : >> { %8175 = vmatmul.msk.f32.vlgmr.msra.gmra.mxu0 %vm913_vm4, %v6625_v0 }
0x1915   : >> { %v6627_v43 = vpop.permute.xlu1 %6626 }
0x1916   : >> { %8176 = vmatmul.msk.f32.gmra.mxu0 %vm913_vm4, %v6627_v43 }
0x191d   : >> { %v6629_v32 = vpop.permute.xlu0 %6628 }
0x191e   : >> { %8177 = vmatmul.msk.f32.gmra.mxu0 %vm913_vm4, %v6629_v32  ;;  %v6692_v25 = vpop.f32.mrf.mxu3 }
0x191f   : >> { %v6726_v30 = vpop.f32.mrf.mxu2 }
0x1920   : >> { %v6735_v63 = vsub.f32 %v8803_v4, %v6726_v30 }
0x1922   : >> { %8187 = vmatmul.msk.f32.vlgmr.msra.gmra.mxu1 %vm11354_vm2, %v6735_v63 }
0x1926   : >> { %v6695_v40 = vpop.f32.mrf.mxu3 }
0x1927   : >> { %v6729_v59 = vpop.f32.mrf.mxu2 }
0x1928   : >> { %v6736_v16 = vsub.f32 %v8886_v19, %v6729_v59 }
0x192a   : >> { %8188 = vmatmul.msk.f32.gmra.mxu1 %vm11355_vm8, %v6736_v16 }
0x192e   : >> { %v6698_v47 = vpop.f32.mrf.mxu3 }
0x192f   : >> { %v6732_v50 = vpop.f32.mrf.mxu2 }
0x1930   : >> { %v6737_v17 = vsub.f32 %v8889_v20, %v6732_v50 }
0x1932   : >> { %8189 = vmatmul.msk.f32.gmra.mxu1 %vm11356_vm0, %v6737_v17 }
0x198b   : >> { %v6657_v42 = vpop.f32.mrf.mxu0 }
0x198c   : >> { %v6693_v46 = vadd.f32 %v6692_v25, %v6657_v42 }
0x198e   : >> { %v6794_v29 = vmul.f32 %v6693_v46, %v6693_v46  ;;  %v6777_v35 = vrot.slane %v6693_v46, 3  ;;  %v6782_v1 = vrot.slane %v6693_v46, 4  ;;  %v6788_v52 = vrot.slane %v6693_v46, 5 }
0x198f   : >> { %v6775_v33 = vadd.f32 %v8524_v11, %v6693_v46  ;;  %v7228_v28 = vrot.slane %v6693_v46, 6 }
0x1990   : >> { %v6796_v7 = vrot.slane %v6794_v29, 1  ;;  %8339 = vpush %v6777_v35  ;;  %v6799_v39 = vrot.slane %v6794_v29, 2 }
0x1991   : >> { %8341 = vpush %v6782_v1  ;;  %8206 = vmatpush.msk.msrb.mxu2 %vm917_vm3, %v6775_v33 }
0x1992   : >> { %v6798_v36 = vadd.f32 %v6796_v7, %v6794_v29  ;;  %8343 = vpush %v6788_v52 }
0x1993   : >> { %v6660_v18 = vpop.f32.mrf.mxu0 }
0x1994   : >> { %v10746_v27 = vadd.f32 %v6799_v39, %v6798_v36  ;;  %v10748_v41 = vadd.f32 %v6695_v40, %v6660_v18 }
0x1996   : >> { %v7229_v61 = vrot.slane %v10748_v41, 6  ;;  %v7261_v10 = vrot.slane %v10748_v41, 4  ;;  %8512 = vrsqrt.f32 %v10746_v27  ;;  %v7266_v43 = vrot.slane %v10748_v41, 7 }
0x1997   : >> { %vm6809_vm6 = vcmp.eq.f32.partialorder %v10746_v27, inf  ;;  %v6812_v42 = vand.u32 2147483648, %v10746_v27  ;;  %vm6811_vm7 = vcmp.eq.f32.partialorder %v10746_v27, 0.0 }
0x1998   : >> { %v7230_v44 = vsel %vm1566_vm12, %v7228_v28, %v7229_v61  ;;  %v10754_v8 = vadd.f32 %v8525_v51, %v7261_v10  ;;  %v4144_v28 = vmul.f32 %v8524_v11, %v10494_v12 }
0x1999   : >> { %v10757_v55 = vadd.f32 %v7230_v44, %v10506_v9  ;;  %v8526_v9 = vld [vmem:[#allocation7] sm:$0x7] }
0x199a   : >> { %7534 = vst.msk [vmem:[#allocation6] sm:$0x7] %vm11357_vm13, %v10754_v8 }
0x199b   : >> { %7330 = vrot.lane.b32.xlu0 %v10757_v55, %s8652_s24  ;;  %v6663_v2 = vpop.f32.mrf.mxu0 }
0x199c   : >> { %v8513_v34 = vpop.eup %8512  ;;  %v6699_v37 = vadd.f32 %v6698_v47, %v6663_v2 }
0x199d   : >> { %v6803_v0 = vmul.f32 %v8513_v34, %v10746_v27 }
0x199e   : >> { %v7267_v32 = vrot.slane %v6699_v37, 7 }
0x199f   : >> { %v6804_v30 = vmul.f32 %v8513_v34, %v6803_v0 }
0x19a0   : >> { %v7268_v63 = vsel %vm7265_vm14, %v7266_v43, %v7267_v32 }
0x19a1   : >> { %v10765_v59 = vadd.f32 %v8526_v9, %v7268_v63  ;;  %v6805_v16 = vmul.f32 0.5, %v6804_v30 }
0x19a3   : >> { %7535 = vst.msk [vmem:[#allocation7] sm:$0x7] %vm11358_vm15, %v10765_v59  ;;  %v6806_v50 = vsub.f32 1.5, %v6805_v16 }
0x19a5   : >> { %v6807_v17 = vmul.f32 %v8513_v34, %v6806_v50 }
0x19a7   : >> { %v6808_v25 = vmul.f32 %v6807_v17, %v10746_v27 }
0x19a9   : >> { %v6810_v46 = vsel %vm6809_vm6, %v10746_v27, %v6808_v25 }
0x19aa   : >> { %v10774_v29 = vsel %vm6811_vm7, %v6812_v42, %v6810_v46 }
0x19ab   : >> { %vm6814_vm11 = vcmp.lt.f32.partialorder %v10774_v29, 1e-06 }
0x19ac   : >> { %v10780_v35 = vsel %vm6814_vm11, 1.0, %v10774_v29  ;;  %v828_v29 = vld [vmem:[#allocation2] sm:$0xf] }
0x19ad   : >> { %v6821_v1 = vand.u32 2139095040, %v10780_v35  ;;  %v10784_v33 = vand.u32 2147483647, %v10780_v35  ;;  %8514 = vrcp.f32 %v10780_v35 }
0x19af   : >> { %v6822_v52 = vshrl.u32 %v6821_v1, 23  ;;  %v6825_v36 = vand.u32 8388607, %v10784_v33 }
0x19b1   : >> { %v8190_v7 = vadd.s32 4294967169, %v6822_v52  ;;  %v6826_v61 = vor.u32 8388608, %v6825_v36 }
0x19b3   : >> { %v6828_v40 = vadd.s32 1, %v8190_v7  ;;  %v10811_v9 = vshll.u32 %v6826_v61, 8 }
0x19b5   : >> { %vm6829_vm1 = vcmp.gt.s32.totalorder %v6828_v40, 0  ;;  %v6867_v1 = vand.u32 65535, %v10811_v9  ;;  %v6868_v36 = vshrl.u32 %v10811_v9, 16 }
0x19b6   : >> { %v6830_v39 = vsel %vm6829_vm1, %v6828_v40, 0  ;;  %vm6820_vm1 = vcmp.lt.s32.totalorder %v10780_v35, 0 }
0x19b7   : >> { %v6832_v18 = vand.u32 31, %v6830_v39  ;;  %v10790_v44 = vshrl.u32 %v6830_v39, 5 }
0x19b9   : >> { %v10787_v10 = vsub.s32 32, %v6832_v18  ;;  %v6835_v51 = vshll.u32 %v11182_v45, %v6832_v18  ;;  %v6838_v47 = vshll.u32 %v11265_v13, %v6832_v18  ;;  %v6841_v37 = vshll.u32 %v11266_v15, %v6832_v18 }
0x19ba   : >> { %v6844_v43 = vshll.u32 %v11267_v14, %v6832_v18  ;;  %v6847_v11 = vshll.u32 %v11268_v62, %v6832_v18  ;;  %vm6850_vm10 = vcmp.lt.s32.totalorder %v10790_v44, 1  ;;  %vm6853_vm5 = vcmp.lt.s32.totalorder %v10790_v44, 4 }
0x19bb   : >> { %v6836_v2 = vshrl.u32 %v11265_v13, %v10787_v10  ;;  %v6839_v34 = vshrl.u32 %v11266_v15, %v10787_v10  ;;  %v6842_v0 = vshrl.u32 %v11267_v14, %v10787_v10  ;;  %v6845_v12 = vshrl.u32 %v11268_v62, %v10787_v10 }
0x19bc   : >> { %v6848_v32 = vshrl.u32 %v11319_v60, %v10787_v10  ;;  %v8527_v60 = vld [vmem:[#allocation5] sm:$0x7]  ;;  %vm6852_vm9 = vcmp.lt.s32.totalorder %v10790_v44, 3  ;;  %vm6851_vm2 = vcmp.lt.s32.totalorder %v10790_v44, 2 }
0x19bd   : >> { %v10807_v30 = vor.u32 %v6836_v2, %v6835_v51  ;;  %v10809_v13 = vor.u32 %v6839_v34, %v6838_v47  ;;  %v6843_v63 = vor.u32 %v6842_v0, %v6841_v37  ;;  %v6846_v15 = vor.u32 %v6845_v12, %v6844_v43 }
0x19be   : >> { %v6849_v16 = vor.u32 %v6848_v32, %v6847_v11  ;;  %v4145_v50 = vsub.f32 %v8527_v60, %v4144_v28  ;;  %v4071_v37 = vadd.f32 %v10082_v26, %v11331_v58 }
0x19bf   : >> { %v6858_v14 = vsel %vm6850_vm10, %v10807_v30, %v10809_v13  ;;  %v6862_v62 = vsel %vm6850_vm10, %v10809_v13, %v6843_v63  ;;  %v6859_v17 = vsel %vm6853_vm5, %v6846_v15, 920167782 }
0x19c0   : >> { %v6863_v25 = vsel %vm6853_vm5, %v6849_v16, 1326507024  ;;  %v6860_v42 = vsel %vm6852_vm9, %v6843_v63, %v6859_v17 }
0x19c1   : >> { %s8340_s10 = spop %8339  ;;  %v6864_v46 = vsel %vm6852_vm9, %v6846_v15, %v6863_v25  ;;  %v6861_v7 = vsel %vm6851_vm2, %v6858_v14, %v6860_v42  ;;  %v4146_v15 = vadd.f32 %v4145_v50, %v4071_v37 }
0x19c2   : >> { %v6779_v52 = vstv %s8340_s10  ;;  %s8342_s23 = spop %8341  ;;  %v6865_v40 = vsel %vm6851_vm2, %v6862_v62, %v6864_v46  ;;  %v6891_v2 = vand.u32 65535, %v6861_v7  ;;  %v6892_v34 = vshrl.u32 %v6861_v7, 16 }
0x19c3   : >> { %v6781_v39 = vmul.f32 %v6779_v52, %v8998_v49  ;;  %v6784_v18 = vstv %s8342_s23  ;;  %s8344_s15 = spop %8343  ;;  %v6869_v61 = vand.u32 65535, %v6865_v40  ;;  %v6870_v28 = vshrl.u32 %v6865_v40, 16 }
0x19c4   : >> { %v6786_v51 = vmul.f32 %v6784_v18, %v9002_v53  ;;  %v6790_v47 = vstv %s8344_s15  ;;  %v6894_v32 = vmul.u32 %v6892_v34, %v6867_v1  ;;  %v6893_v60 = vmul.u32 %v6891_v2, %v6867_v1  ;;  %s8218_s15 = sshll.u32 %s8630_s17, 2 }
0x19c5   : >> { %v6872_v0 = vmul.u32 %v6870_v28, %v6867_v1  ;;  %v6873_v43 = vmul.u32 %v6869_v61, %v6868_v36  ;;  %v6792_v11 = vmul.f32 %v6790_v47, %v9004_v54  ;;  %v6871_v16 = vmul.u32 %v6869_v61, %v6867_v1 }
0x19c6   : >> { %v6787_v12 = vadd.f32 %v6786_v51, %v6781_v39  ;;  %v6895_v17 = vmul.u32 %v6891_v2, %v6868_v36  ;;  %v6897_v25 = vshll.u32 %v6894_v32, 16  ;;  %v6874_v42 = vmul.u32 %v6870_v28, %v6868_v36 }
0x19c7   : >> { %v6875_v14 = vshll.u32 %v6872_v0, 16  ;;  %v6877_v46 = vshll.u32 %v6873_v43, 16  ;;  %v6896_v58 = vmul.u32 %v6892_v34, %v6868_v36  ;;  %v6855_v61 = vsel %vm6853_vm5, %v6843_v63, 2102212464 }
0x19c8   : >> { %v10843_v62 = vadd.f32 %v6792_v11, %v6787_v12  ;;  %v6899_v7 = vshll.u32 %v6895_v17, 16  ;;  %vm6901_vm0 = vc.u32 %v6893_v60, %v6897_v25  ;;  %v6903_v40 = vadd.s32 %v6897_v25, %v6893_v60 }
0x19c9   : >> { %vm6879_vm8 = vc.u32 %v6871_v16, %v6875_v14  ;;  %v6881_v52 = vadd.s32 %v6875_v14, %v6871_v16  ;;  %v6902_v1 = vsel %vm6901_vm0, 1, %v11192_v48  ;;  %v6876_v28 = vshrl.u32 %v6872_v0, 16 }
0x19ca   : >> { %8196 = vmatpush.msk.msrb.mxu0 %vm917_vm3, %v10843_v62  ;;  %v6880_v26 = vsel %vm6879_vm8, 1, %v11192_v48  ;;  %v6904_v18 = vadd.s32 %v6902_v1, %v6896_v58  ;;  %vm6905_vm14 = vc.u32 %v6903_v40, %v6899_v7  ;;  %v6834_v51 = vshrl.u32 %v11182_v45, %v10787_v10 }
0x19cb   : >> { %8197 = vmatmul.msk.f32.vlgmr.msrb.gmra.mxu0 %vm913_vm4, %v10843_v62  ;;  %v6882_v50 = vadd.s32 %v6880_v26, %v6874_v42  ;;  %vm6883_vm13 = vc.u32 %v6881_v52, %v6877_v46  ;;  %v6906_v47 = vsel %vm6905_vm14, 1, %v11192_v48  ;;  %v6878_v2 = vshrl.u32 %v6873_v43, 16 }
0x19cc   : >> { %8200 = vmatpush.msk.msra.mxu0 %vm917_vm3, %v4146_v15  ;;  %v6884_v39 = vsel %vm6883_vm13, 1, %v11192_v48  ;;  %v6898_v37 = vshrl.u32 %v6894_v32, 16  ;;  %v6908_v12 = vadd.s32 %v6906_v47, %v6904_v18  ;;  %v6854_v11 = vsel %vm6850_vm10, %v6834_v51, %v10807_v30 }
0x19cd   : >> { %v6886_v36 = vadd.s32 %v6884_v39, %v6882_v50  ;;  %v6856_v63 = vsel %vm6852_vm9, %v10809_v13, %v6855_v61  ;;  %v6900_v15 = vshrl.u32 %v6895_v17, 16  ;;  %v6907_v14 = vadd.s32 %v6903_v40, %v6899_v7 }
0x19ce   : >> { %v6909_v16 = vadd.s32 %v6908_v12, %v6898_v37  ;;  %v6857_v45 = vsel %vm6851_vm2, %v6854_v11, %v6856_v63  ;;  %v10873_v37 = vpop.eup %8514  ;;  %vm6819_vm10 = vcmp.le.f32.partialorder %v10784_v33, 0.7853982  ;;  %vm6961_vm9 = vweird.f32 %v10780_v35 }
0x19cf   : >> { %v6887_v34 = vadd.s32 %v6886_v36, %v6876_v28  ;;  %v6911_v32 = vmul.u32 %v10811_v9, %v6857_v45  ;;  %v10869_v36 = vmul.f32 %v10780_v35, %v10780_v35  ;;  %vm6979_vm5 = vweird.f32 %v10873_v37 }
0x19d0   : >> { %v6910_v10 = vadd.s32 %v6909_v16, %v6900_v15  ;;  %v6974_v16 = vmul.f32 %v10873_v37, %v10780_v35  ;;  %vm10897_vm8 = vmor %vm6961_vm9, %vm6979_vm5  ;;  %vm6983_vm5 = vcmp.eq.f32.partialorder %v10784_v33, 8.507059e+37 }
0x19d1   : >> { %v6888_v0 = vadd.s32 %v6887_v34, %v6878_v2  ;;  %8516 = vrcp.f32 %v10869_v36  ;;  %vm7152_vm2 = vweird.f32 %v10869_v36 }
0x19d2   : >> { %v6914_v43 = vadd.s32 1, %v6910_v10 }
0x19d3   : >> { %vm6913_vm15 = vc.u32 %v6888_v0, %v6907_v14  ;;  %v6912_v44 = vadd.s32 %v6907_v14, %v6888_v0 }
0x19d4   : >> { %v6915_v60 = vsel %vm6913_vm15, %v6914_v43, %v6910_v10 }
0x19d5   : >> { %v6916_v25 = vadd.s32 %v6915_v60, %v6911_v32 }
0x19d7   : >> { %v6917_v42 = vadd.s32 536870912, %v6916_v25  ;;  %v10878_v0 = vpop.eup %8516 }
0x19d8   : >> { %v7148_v43 = vmul.f32 %v10878_v0, %v10869_v36  ;;  %vm7153_vm0 = vweird.f32 %v10878_v0 }
0x19d9   : >> { %v6918_v30 = vshrl.u32 %v6917_v42, 30 }
0x19db   : >> { %v6919_v46 = vshll.u32 %v6918_v30, 30  ;;  %v6942_v11 = vsub.s32 4, %v6918_v30 }
0x19dd   : >> { %v6920_v52 = vsub.s32 %v6916_v25, %v6919_v46  ;;  %v6943_v10 = vsel %vm6820_vm1, %v6942_v11, %v6918_v30  ;;  %v6975_v25 = vsub.f32 1.0, %v6974_v16 }
0x19de   : >> { %v6945_v42 = vsel %vm6819_vm10, 0, %v6943_v10 }
0x19df   : >> { %vm6921_vm6 = vcmp.lt.s32.totalorder %v6920_v52, 0  ;;  %v6922_v13 = vsub.s32 0, %v6920_v52 }
0x19e1   : >> { %v6923_v26 = vsel %vm6921_vm6, %v6922_v13, %v6920_v52  ;;  %v7149_v13 = vsub.f32 1.0, %v7148_v43 }
0x19e2   : >> { %v6924_v17 = vclz %v6923_v26 }
0x19e3   : >> { %v7150_v30 = vmul.f32 %v10878_v0, %v7149_v13 }
0x19e4   : >> { %v8191_v58 = vadd.s32 4294967294, %v6924_v17 }
0x19e5   : >> { %v7151_v11 = vadd.f32 %v10878_v0, %v7150_v30 }
0x19e6   : >> { %vm8192_vm7 = vcmp.lt.s32.totalorder %v8191_v58, 0 }
0x19e7   : >> { %v6927_v7 = vsel %vm8192_vm7, 0, %v8191_v58  ;;  %v6976_v58 = vmul.f32 %v10873_v37, %v6975_v25 }
0x19e8   : >> { %v6928_v50 = vsub.s32 32, %v6927_v7  ;;  %v6932_v1 = vsub.s32 4294967266, %v6927_v7  ;;  %v6929_v40 = vshll.u32 %v6920_v52, %v6927_v7  ;;  %v6962_v7 = vadd.s32 3, %v6945_v42 }
0x19ea   : >> { %v6930_v39 = vshrl.u32 %v6912_v44, %v6928_v50  ;;  %v6933_v18 = vadd.s32 127, %v6932_v1  ;;  %v6984_v1 = vand.u32 2147483648, %v10780_v35 }
0x19ec   : >> { %v6931_v9 = vor.u32 %v6930_v39, %v6929_v40  ;;  %v6934_v61 = vshll.u32 %v6933_v18, 23  ;;  %v6977_v18 = vadd.f32 %v10873_v37, %v6976_v58 }
0x19ee   : >> { %v6935_v28 = vor.u32 4788187, %v6934_v61  ;;  %v6938_v47 = vcvt.s32.f32 %v6931_v9  ;;  %v7135_v9 = vand.u32 3, %v6945_v42  ;;  %v6816_v61 = vmul.f32 %v10746_v27, %v9192_v31 }
0x19ef   : >> { %v7156_v31 = vand.u32 2147483647, %v10869_v36 }
0x19f0   : >> { %v6936_v51 = vand.u32 2147483647, %v6935_v28  ;;  %v6963_v28 = vand.u32 3, %v6962_v7  ;;  %vm7136_vm13 = vcmp.lt.s32.totalorder %v7135_v9, 2  ;;  %vm7137_vm14 = vcmp.eq.s32.totalorder %v7135_v9, 0 }
0x19f2   : >> { %v6939_v2 = vmul.f32 %v6938_v47, %v6936_v51  ;;  %v6989_v51 = vmul.f32 %v10746_v27, %v9199_v57  ;;  %v6981_v27 = vsel %vm10897_vm8, %v10873_v37, %v6977_v18  ;;  %vm6964_vm15 = vcmp.lt.s32.totalorder %v6963_v28, 2 }
0x19f3   : >> { %vm6965_vm6 = vcmp.eq.s32.totalorder %v6963_v28, 0  ;;  %vm6968_vm7 = vcmp.eq.s32.totalorder %v6963_v28, 2  ;;  %vm7157_vm8 = vcmp.eq.f32.partialorder %v7156_v31, 8.507059e+37 }
0x19f4   : >> { %v6940_v34 = vxor.u32 2147483648, %v6939_v2  ;;  %v6990_v33 = vsub.f32 0.5, %v6989_v51 }
0x19f6   : >> { %v6941_v12 = vsel %vm6820_vm1, %v6940_v34, %v6939_v2  ;;  %v6985_v34 = vor.u32 1.1754944e-38, %v6984_v1  ;;  %vm7140_vm1 = vcmp.eq.s32.totalorder %v7135_v9, 2 }
0x19f7   : >> { %v6944_v63 = vsel %vm6819_vm10, %v10780_v35, %v6941_v12  ;;  %vm7154_vm10 = vmor %vm7152_vm2, %vm7153_vm0  ;;  %v6766_v35 = vpop.f32.mrf.mxu1  ;;  %vm7548_vm0 = vcmask 16384  }
0x19f8   : >> { %v6946_v15 = vmul.f32 %v6944_v63, %v6944_v63  ;;  %v7155_v37 = vsel %vm7154_vm10, %v10878_v0, %v7151_v11 }
0x19fa   : >> { %v6947_v14 = vmul.f32 -0.001358992, %v6946_v15  ;;  %v6954_v45 = vmul.f32 -0.00019511016, %v6946_v15 }
0x19fc   : >> { %v6948_v32 = vadd.f32 0.041655596, %v6947_v14  ;;  %v6955_v60 = vadd.f32 0.008332121, %v6954_v45 }
0x19fe   : >> { %v6949_v46 = vmul.f32 %v6948_v32, %v6946_v15  ;;  %v6956_v52 = vmul.f32 %v6955_v60, %v6946_v15  ;;  %v6986_v60 = vsel %vm6983_vm5, %v6985_v34, %v6981_v27 }
0x1a00   : >> { %v6950_v26 = vadd.f32 -0.4999988, %v6949_v46  ;;  %v6957_v17 = vadd.f32 -0.16666654, %v6956_v52  ;;  %v6817_v46 = vsub.f32 1.0, %v6816_v61 }
0x1a02   : >> { %v6951_v44 = vmul.f32 %v6950_v26, %v6946_v15  ;;  %v6958_v50 = vmul.f32 %v6957_v17, %v6946_v15  ;;  %v7158_v15 = vand.u32 2147483648, %v10869_v36 }
0x1a04   : >> { %v6952_v40 = vadd.f32 1.0, %v6951_v44  ;;  %v6959_v39 = vadd.f32 1.0, %v6958_v50  ;;  %v7159_v42 = vor.u32 1.1754944e-38, %v7158_v15  ;;  %v6769_v44 = vpop.f32.mrf.mxu1 }
0x1a06   : >> { %v6960_v47 = vmul.f32 %v6959_v39, %v6944_v63  ;;  %v6969_v2 = vxor.u32 2147483648, %v6952_v40  ;;  %v7160_v36 = vsel %vm7157_vm8, %v7159_v42, %v7155_v37  ;;  %v7407_v42 = vld [vmem:[#allocation12 + $0x10] sm:$0x3] }
0x1a08   : >> { %v6966_v57 = vxor.u32 2147483648, %v6960_v47  ;;  %v6970_v16 = vsel %vm6968_vm7, %v6969_v2, %v6960_v47  ;;  %v7142_v45 = vsel %vm7140_vm1, %v6969_v2, %v6960_v47 }
0x1a0a   : >> { %v6967_v63 = vsel %vm6965_vm6, %v6952_v40, %v6966_v57  ;;  %v7139_v14 = vsel %vm7137_vm14, %v6952_v40, %v6966_v57 }
0x1a0b   : >> { %v6971_v10 = vsel %vm6964_vm15, %v6967_v63, %v6970_v16  ;;  %v7143_v43 = vsel %vm7136_vm13, %v7139_v14, %v7142_v45  ;;  %vm11365_vm13 = vcmask 146432   ;;  %vm11367_vm15 = vcmask 43032  }
0x1a0c   : >> { %v6972_v32 = vsel %vm6961_vm9, nan, %v6971_v10  ;;  %v7144_v25 = vsel %vm6961_vm9, nan, %v7143_v43  ;;  %v6772_v61 = vpop.f32.mrf.mxu1  ;;  %vm11362_vm9 = vcmask 2048   ;;  %8212 = vmatpush.xpose.msk.msrb.mxu1 %vm11365_vm13, %v7407_v42  ;;  %vm11366_vm14 = vmmov %vm11365_vm13 }
0x1a0d   : >> { %v6987_v52 = vmul.f32 %v6986_v60, %v6972_v32  ;;  %v7145_v13 = vsub.f32 1.0, %v7144_v25  ;;  %vm11368_vm6 = vmmov %vm11365_vm13  ;;  %vm7559_vm13 = vcmask 66609  }
0x1a0e   : >> { %vm11369_vm7 = vmmov %vm11368_vm6 }
0x1a0f   : >> { %v6988_v26 = vsel %vm6814_vm11, %v6817_v46, %v6987_v52  ;;  %v7161_v17 = vmul.f32 %v7160_v36, %v7145_v13  ;;  %v7406_v46 = vld [vmem:[#allocation12 + $0x8] sm:$0xff]  ;;  %v7331_v52 = vpop.permute.xlu0 %7330  ;;  %vm11370_vm1 = vmmov %vm11368_vm6 }
0x1a10   : >> { %v7164_v58 = vrot.slane %v6988_v26, 3  ;;  %8213 = vmatpush.xpose.msk.msrb.mxu1 %vm11366_vm14, %v7406_v46  ;;  %vm11371_vm10 = vmmov %vm11370_vm1  ;;  %vm7564_vm14 = vcmask 92234  }
0x1a11   : >> { %v7162_v0 = vsel %vm6814_vm11, %v6990_v33, %v7161_v17  ;;  %vm11361_vm11 = vcmask 18432   ;;  %vm11372_vm5 = vmmov %vm11370_vm1 }
0x1a12   : >> { %8345 = vpush %v7164_v58  ;;  %v7196_v7 = vrot.slane %v7162_v0, 3  ;;  %vm11364_vm2 = vmmov %vm11361_vm11  ;;  %v7233_v0 = vrot.slane %v10748_v41, 1 }
0x1a13   : >> { %vm11373_vm8 = vmmov %vm11370_vm1 }
0x1a14   : >> { %8347 = vpush %v7196_v7 }
0x1a43   : >> { %s8346_s19 = spop %8345 }
0x1a44   : >> { %v7166_v50 = vstv %s8346_s19  ;;  %s7643_s19 = scalar_lea.vmem %s9015_s20, %s8218_s15 [#allocation14] }
0x1a45   : >> { %v7168_v1 = vmul.f32 %v7166_v50, %v10843_v62  ;;  %s8348_s25 = spop %8347 }
0x1a46   : >> { %v7198_v40 = vstv %s8348_s25 }
0x1a47   : >> { %v7169_v39 = vadd.f32 %v8803_v4, %v7168_v1 }
0x1a48   : >> { %v7192_v30 = vpop.f32.mrf.mxu0 }
0x1a49   : >> { %v7200_v18 = vmul.f32 %v7198_v40, %v7192_v30 }
0x1a4b   : >> { %v7201_v9 = vadd.f32 %v7200_v18, %v7169_v39 }
0x1a4d   : >> { %8198 = vmatpush.msk.msrb.mxu3 %vm917_vm3, %v7201_v9 }
0x1a4e   : >> { %8199 = vmatmul.msk.f32.vlgmr.msrb.gmra.mxu3 %vm913_vm4, %v10067_v38 }
0x1a4f   : >> { %8202 = vmatpush.msk.msra.mxu3 %vm917_vm3, %v828_v29 }
0x1a51   : >> { %8208 = vmatpush.msk.msrb.mxu3 %vm1566_vm12, %v6772_v61  ;;  %vm11363_vm12 = vmmov %vm11361_vm11 }
0x1a53   : >> { %7434 = vmatpush.msrb.mxu3 %v6769_v44 }
0x1a55   : >> { %7435 = vmatpush.msrb.mxu3 %v6766_v35 }
0x1ad1   : >> { %v10929_v62 = vpop.f32.mrf.mxu3 }
0x1ad2   : >> { %7271 = vxpose.xlu1.b32.start.end [1/1] (short) (narrow) %v10929_v62, 8 }
0x1b76   : >> { %v7287_v28 = vpop.trf.xlu1 }
0x1b77   : >> { %7382 = vst.msk [vmem:[#allocation12] sm:$0x7] %vm11361_vm11, %v7287_v28  ;;  %8207 = vmatmul.msk.f32.vlgmr.msrb.gmra.mxu2 %vm913_vm4, %v7287_v28  ;;  %8203 = vmatmul.msk.f32.vlgmr.msra.gmra.mxu3 %vm913_vm4, %v7287_v28  ;;  %vm11374_vm11 = vmmov %vm11370_vm1 }
0x1bfa   : >> { %v7379_v51 = vpop.f32.mrf.mxu2  ;;  %v7326_v34 = vpop.f32.mrf.mxu3 }
0x1bfb   : >> { %7532 = vst.msk [vmem:[#allocation4] sm:$0x7] %vm11362_vm9, %v7379_v51  ;;  %7537 = vperm.xlu2 %8458, %v7379_v51   ;;  %v7388_v47 = vrot.slane %v7379_v51, 1  ;;  %v7394_v2 = vrot.slane %v7379_v51, 2 }
0x1bfc   : >> { %8349 = vpush %v7379_v51 }
0x1bfd   : >> { %8351 = vpush %v7388_v47 }
0x1bfe   : >> { %8353 = vpush %v7394_v2 }
0x1bff   : >> { %7522 = vst.msk [vmem:[#allocation2] sm:$0x7] %vm11363_vm12, %v7326_v34  ;;  %vm11377_vm12 = vmmov %vm11364_vm2 }
0x1c03   : >> { %7567 = vperm.xlu2 %8458, %v10757_v55  }
0x1c2d   : >> { %s8350_s14 = spop %8349 }
0x1c2e   : >> { %v7385_v12 = vstv %s8350_s14  ;;  %s8352_s13 = spop %8351 }
0x1c2f   : >> { %v7390_v11 = vstv %s8352_s13  ;;  %s8354_s10 = spop %8353  ;;  %v7387_v31 = vmul.f32 %v7385_v12, %v8998_v49 }
0x1c30   : >> { %v7392_v15 = vmul.f32 %v7390_v11, %v9002_v53  ;;  %v7396_v57 = vstv %s8354_s10 }
0x1c31   : >> { %v7398_v63 = vmul.f32 %v7396_v57, %v9004_v54 }
0x1c32   : >> { %v7393_v27 = vadd.f32 %v7392_v15, %v7387_v31 }
0x1c34   : >> { %v7399_v16 = vadd.f32 %v7398_v63, %v7393_v27 }
0x1c36   : >> { %7401 = vrot.lane.b32.xlu0 %v7399_v16, %s8652_s24 }
0x1c55   : >> { %v7538_v14 = vpop.permute.xlu2 %7537 }
0x1c56   : >> { %v7540_v45 = vmul.f32 %v8803_v4, %v7538_v14 }
0x1c58   : >> { %v7541_v55 = vsel %vm11364_vm2, %v7540_v45, 0.0  ;;  %4112 = vxpose.xlu0.b32.start.end [1/1] (short) (narrow) %v10067_v38, 8  ;;  %v7333_v38 = vsub.f32 %v828_v29, %v7331_v52 }
0x1c59   : >> { %v7542_v10 = vrot.slane %v7541_v55, 4 }
0x1c5b   : >> { %v7543_v43 = vadd.f32 %v7542_v10, %v7541_v55 }
0x1c5d   : >> { %v7544_v37 = vrot.slane %v7543_v43, 2  ;;  %v7568_v44 = vpop.permute.xlu2 %7567 }
0x1c5e   : >> { %v7570_v50 = vmul.f32 %v8803_v4, %v7568_v44 }
0x1c5f   : >> { %v7545_v32 = vadd.f32 %v7544_v37, %v7543_v43 }
0x1c61   : >> { %v7546_v60 = vrot.slane %v7545_v32, 1 }
0x1c63   : >> { %v7547_v25 = vadd.f32 %v7546_v60, %v7545_v32 }
0x1c65   : >> { %7549 = vst.msk [vmem:[#allocation13] sm:$0x1] %vm7548_vm0, %v7547_v25  ;;  %vm7554_vm0 = vcmask 40984  }
0x1ca8   : >> { %v7402_v13 = vpop.permute.xlu0 %7401 }
0x1ca9   : >> { %7404 = vst.msk [vmem:[#allocation12] sm:$0x7] %vm11367_vm15, %v7402_v13  ;;  %vm7582_vm15 = vcmask 114784  }
0x1cb0   : >> { %v7405_v36 = vld [vmem:[#allocation12] sm:$0xff] }
0x1cb1   : >> { %8209 = vmatmul.msk.f32.vlgmr.msrb.gmra.mxu3 %vm11368_vm6, %v7405_v36  ;;  %8214 = vmatpush.xpose.msk.msrb.mxu1 %vm11369_vm7, %v7405_v36  ;;  %vm7601_vm6 = vcmask 139384   ;;  %vm7620_vm7 = vcmask 163984  }
0x1cb9   : >> { %8210 = vmatmul.msk.f32.gmra.mxu3 %vm11370_vm1, %v7406_v46 }
0x1cbf   : >> { %8459 = vset.pattern.permute.xlu0 %v11192_v48 }
0x1cc1   : >> { %8211 = vmatmul.msk.f32.gmra.mxu3 %vm11371_vm10, %v7407_v42  ;;  %vm11378_vm10 = vmmov %vm11370_vm1 }
0x1cc6   : >> { %7335 = vrot.lane.b32.xlu0 %v7333_v38, %s8656_s22  ;;  %s8664_s22 = smov 18  }
0x1cfc   : >> { %v4128_v26 = vpop.trf.xlu0 }
0x1cfd   : >> { %8201 = vmatmul.msk.f32.vlgmr.msra.gmra.mxu0 %vm913_vm4, %v4128_v26 }
0x1d34   : >> { %v7437_v33 = vpop.f32.mrf.mxu3 }
0x1d35   : >> { %8215 = vmatmul.msk.f32.vlgmr.msrb.gmra.mxu1 %vm11372_vm5, %v7437_v33  ;;  %vm11379_vm5 = vmmov %vm11370_vm1 }
0x1d38   : >> { %v7336_v17 = vpop.permute.xlu0 %7335 }
0x1d39   : >> { %8204 = vmatpush.msk.msrb.mxu0 %vm917_vm3, %v7336_v17  ;;  %vm11375_vm3 = vmmov %vm11364_vm2 }
0x1d3a   : >> { %8205 = vmatmul.msk.f32.vlgmr.msrb.gmra.mxu0 %vm913_vm4, %v7287_v28  ;;  %v7571_v1 = vsel %vm11375_vm3, %v7570_v50, 0.0  ;;  %vm11376_vm4 = vmmov %vm11364_vm2 }
0x1d3b   : >> { %v7572_v30 = vrot.slane %v7571_v1, 4 }
0x1d3c   : >> { %v7440_v58 = vpop.f32.mrf.mxu3 }
0x1d3d   : >> { %8216 = vmatmul.msk.f32.gmra.mxu1 %vm11373_vm8, %v7440_v58  ;;  %v7573_v40 = vadd.f32 %v7572_v30, %v7571_v1  ;;  %vm11380_vm8 = vmmov %vm11370_vm1 }
0x1d3f   : >> { %v7574_v41 = vrot.slane %v7573_v40, 2 }
0x1d41   : >> { %v7575_v39 = vadd.f32 %v7574_v41, %v7573_v40 }
0x1d44   : >> { %v7443_v48 = vpop.f32.mrf.mxu3 }
0x1d45   : >> { %8217 = vmatmul.msk.f32.gmra.mxu1 %vm11374_vm11, %v7443_v48  ;;  %vm7639_vm11 = vcmask 188584  }
0x1d7a   : >> { %v7258_v7 = vpop.f32.mrf.mxu0 }
0x1d7b   : >> { %v7259_v35 = vadd.f32 %v7258_v7, %v7233_v0 }
0x1d7d   : >> { %7533 = vst.msk [vmem:[#allocation5] sm:$0x7] %vm11362_vm9, %v7259_v35  ;;  %7586 = vperm.xlu2 %8458, %v7259_v35   ;;  %vm11381_vm9 = vcmask 140288  }
0x1d7e   : >> { %vm11382_vm3 = vmmov %vm11381_vm9 }
0x1d85   : >> { %7605 = vperm.xlu2 %8458, %v10754_v8   ;;  %v7576_v8 = vrot.slane %v7575_v39, 1 }
0x1d87   : >> { %v7577_v18 = vadd.f32 %v7576_v8, %v7575_v39 }
0x1d8d   : >> { %7624 = vperm.xlu2 %8458, %v10765_v59  }
0x1d95   : >> { %7551 = vrot.lane.b32.xlu2 %v10929_v62, %s8652_s24 }
0x1d9d   : >> { %7556 = vrot.lane.b32.xlu2 %v10929_v62, %s8657_s2  ;;  %s7649_s2 = smul.u32 24, %s8630_s17 }
0x1d9f   : >> { %s7650_s23 = scalar_lea.vmem %s8825_s26, %s7649_s2 }
0x1da5   : >> { %7561 = vrot.lane.b32.xlu2 %v10929_v62, %s11285_s28  ;;  %s8665_s28 = smov 21  }
0x1dad   : >> { %7579 = vrot.lane.b32.xlu2 %v7577_v18, %s8653_s30  ;;  %s8663_s30 = smov 15  }
0x1db2   : >> { %v7472_v59 = vpop.f32.mrf.mxu1 }
0x1db3   : >> { %v10974_v9 = vmul.f32 %v8806_v5, %v7472_v59 }
0x1db5   : >> { %7484 = vxpose.xlu1.b32.start [1/3] (short) (narrow) %v10974_v9, 24 }
0x1db7   : >> { %v7356_v48 = vpop.f32.mrf.mxu0 }
0x1dba   : >> { %v7475_v29 = vpop.f32.mrf.mxu1 }
0x1dbb   : >> { %v10978_v61 = vmul.f32 %v8892_v21, %v7475_v29 }
0x1dbd   : >> { %7485 = vxpose.xlu1.b32.cont [2/3] (short) (narrow) %v10978_v61, 24 }
0x1dc2   : >> { %v7478_v28 = vpop.f32.mrf.mxu1 }
0x1dc3   : >> { %v10982_v51 = vmul.f32 %v8895_v22, %v7478_v28 }
0x1dc5   : >> { %7486 = vxpose.xlu1.b32.end [3/3] (short) (narrow) %v10982_v51, 24 }
0x1dd7   : >> { %v7587_v62 = vpop.permute.xlu2 %7586 }
0x1dd8   : >> { %v7589_v47 = vmul.f32 %v8803_v4, %v7587_v62 }
0x1dda   : >> { %v7590_v2 = vsel %vm11376_vm4, %v7589_v47, 0.0  ;;  %vm7647_vm4 = vcmask 188416  }
0x1ddb   : >> { %v7591_v34 = vrot.slane %v7590_v2, 4 }
0x1ddd   : >> { %v7592_v12 = vadd.f32 %v7591_v34, %v7590_v2 }
0x1ddf   : >> { %v7593_v11 = vrot.slane %v7592_v12, 2  ;;  %v7606_v31 = vpop.permute.xlu2 %7605 }
0x1de0   : >> { %v7608_v15 = vmul.f32 %v8803_v4, %v7606_v31 }
0x1de1   : >> { %v7594_v57 = vadd.f32 %v7593_v11, %v7592_v12 }
0x1de2   : >> { %v7609_v27 = vsel %vm11377_vm12, %v7608_v15, 0.0  ;;  %vm7527_vm12 = vcmask 26648  }
0x1de3   : >> { %v7595_v63 = vrot.slane %v7594_v57, 1  ;;  %v7610_v16 = vrot.slane %v7609_v27, 4 }
0x1de5   : >> { %v7596_v14 = vadd.f32 %v7595_v63, %v7594_v57  ;;  %v7611_v45 = vadd.f32 %v7610_v16, %v7609_v27 }
0x1de7   : >> { %v7612_v55 = vrot.slane %v7611_v45, 2  ;;  %7598 = vrot.lane.b32.xlu2 %v7596_v14, %s8663_s30  ;;  %v7625_v10 = vpop.permute.xlu2 %7624 }
0x1de8   : >> { %v7627_v43 = vmul.f32 %v8803_v4, %v7625_v10 }
0x1de9   : >> { %v7613_v37 = vadd.f32 %v7612_v55, %v7611_v45 }
0x1dea   : >> { %v7628_v32 = vsel %vm11364_vm2, %v7627_v43, 0.0  ;;  %vm11383_vm2 = vcmask 27648  }
0x1deb   : >> { %v7614_v60 = vrot.slane %v7613_v37, 1  ;;  %v7629_v25 = vrot.slane %v7628_v32, 4 }
0x1ded   : >> { %v7615_v42 = vadd.f32 %v7614_v60, %v7613_v37  ;;  %v7630_v46 = vadd.f32 %v7629_v25, %v7628_v32 }
0x1def   : >> { %v7631_v52 = vrot.slane %v7630_v46, 2  ;;  %7617 = vrot.lane.b32.xlu2 %v7615_v42, %s8664_s22  ;;  %v7552_v13 = vpop.permute.xlu2 %7551 }
0x1df0   : >> { %7555 = vst.msk [vmem:[#allocation13] sm:$0x1] %vm7554_vm0, %v7552_v13 }
0x1df1   : >> { %v7632_v36 = vadd.f32 %v7631_v52, %v7630_v46 }
0x1df3   : >> { %v7633_v38 = vrot.slane %v7632_v36, 1 }
0x1df5   : >> { %v7634_v26 = vadd.f32 %v7633_v38, %v7632_v36 }
0x1df7   : >> { %7636 = vrot.lane.b32.xlu0 %v7634_v26, %s8665_s28  ;;  %v7557_v33 = vpop.permute.xlu2 %7556 }
0x1df8   : >> { %7560 = vst.msk [vmem:[#allocation13 - $0x1] sm:$0x2] %vm7559_vm13, %v7557_v33 }
0x1dff   : >> { %v7562_v17 = vpop.permute.xlu2 %7561 }
0x1e00   : >> { %7565 = vst.msk [vmem:[#allocation13 - $0x2] sm:$0x4] %vm7564_vm14, %v7562_v17 }
0x1e07   : >> { %v7580_v58 = vpop.permute.xlu2 %7579 }
0x1e08   : >> { %7583 = vst.msk [vmem:[#allocation13] sm:$0x1] %vm7582_vm15, %v7580_v58 }
0x1e1f   : >> { %7524 = vrot.lane.b32.xlu1 %v7356_v48, %s8652_s24  ;;  %s7646_s24 = scalar_lea.vmem %s9019_s27, %s8630_s17 [#allocation16]  ;;  %s827_s17 = sadd.s32 1, %s8630_s17  }
0x1e20   : >> { %p824_p11 = scmp.ge.s32.totalorder %s827_s17, 3  }
0x1e21   : > { %s8355_s25 = smul.u32 (%p824_p11), 12, %s8761_s29  ;;  %s7677_s14 = sshll.u32 (%p824_p11), %s9015_s20, 4  ;;  %s7678_s14 = int_to_ptr.vmem [resolvable:$true] %s7677_s14 }
0x1e22   : > { %s7655_s28 = scalar_lea.sflag (%p824_p11), [#allocation15], %s8800_s21  ;;  %s8548_s17 = scalar_lea.hbm (%p824_p11), %s11074_s11, 24 }
0x1e23   : > { %s7676_s30 = scalar_lea.hbm (%p824_p11), %s11074_s11, %s8355_s25 }
0x1e24   : > { %s7679_s22 = sshll.u32 (%p824_p11), %s7676_s30, 4  ;;  %s7680_s22 = int_to_ptr.hbm [resolvable:$true] %s7679_s22 }
0x1e25   : > { %s8542_s2 = sshra.s32 (%p824_p11), %s7680_s22, 4  ;;  %s8543_s2 = int_to_ptr.hbm [resolvable:$true] %s8542_s2 }
0x1e26   : > { %p8549_p1 = scmp.lt.s32.totalorder (%p824_p11), %s8543_s2, %s11074_s11 }
0x1e41   : >> { %v7599_v0 = vpop.permute.xlu2 %7598 }
0x1e42   : >> { %7602 = vst.msk [vmem:[#allocation13] sm:$0x1] %vm7601_vm6, %v7599_v0 }
0x1e49   : >> { %v7618_v7 = vpop.permute.xlu2 %7617 }
0x1e4a   : >> { %7621 = vst.msk [vmem:[#allocation13] sm:$0x1] %vm7620_vm7, %v7618_v7 }
0x1e59   : >> { %v7500_v35 = vpop.trf.xlu1 }
0x1e5a   : >> { %v7516_v44 = vmul.f32 %v7500_v35, %v11254_v6 }
0x1e5c   : >> { %v7519_v50 = vadd.f32 %v7516_v44, %v10974_v9 }
0x1e5e   : >> { %7529 = vst.msk [vmem:[#allocation3] sm:$0xff] %vm11370_vm1, %v7519_v50 }
0x1e5f   : >> { %7651 = vst.msk [vmem:[%s7650_s23] sm:$0xff] %vm11378_vm10, %v7519_v50 }
0x1e61   : >> { %v7501_v1 = vpop.trf.xlu1 }
0x1e62   : >> { %v7517_v30 = vmul.f32 %v7501_v1, %v8901_v23 }
0x1e64   : >> { %v7520_v40 = vadd.f32 %v7517_v30, %v10978_v61 }
0x1e66   : >> { %7530 = vst.msk [vmem:[#allocation3 + $0x8] sm:$0xff] %vm11379_vm5, %v7520_v40 }
0x1e67   : >> { %7652 = vst.msk [vmem:[%s7650_s23 + $0x8] sm:$0xff] %vm11380_vm8, %v7520_v40 }
0x1e69   : >> { %v7502_v41 = vpop.trf.xlu1  ;;  %v7637_v39 = vpop.permute.xlu0 %7636 }
0x1e6a   : >> { %v7518_v8 = vmul.f32 %v7502_v41, %v8904_v24  ;;  %7640 = vst.msk [vmem:[#allocation13] sm:$0x1] %vm7639_vm11, %v7637_v39 }
0x1e6c   : >> { %v7521_v18 = vadd.f32 %v7518_v8, %v10982_v51 }
0x1e6e   : >> { %7531 = vst.msk [vmem:[#allocation3 + $0x10] sm:$0x3] %vm11381_vm9, %v7521_v18 }
0x1e6f   : >> { %7653 = vst.msk [vmem:[%s7650_s23 + $0x10] sm:$0x3] %vm11382_vm3, %v7521_v18  ;;  %s8544_s23 = scalar_lea.hbm (%p824_p11), %s8543_s2, 12 }
0x1e70   : > { %p8545_p12 = scmp.ne.s32.totalorder (%p824_p11), %s8543_s2, %s8544_s23  ;;  %p8550_p2 = scmp.lt.s32.totalorder (%p824_p11), %s8548_s17, %s8544_s23 }
0x1e71   : >> { %v7645_v59 = vld [vmem:[#allocation13] sm:$0x1] }
0x1e72   : >> { %7648 = vst.msk [vmem:[%s7646_s24] sm:$0x1] %vm7647_vm4, %v7645_v59  ;;  %p8546_p13 = pnand (%p824_p11), %p8545_p12, %p8778_p5  ;;  %p8551_p3 = por (%p824_p11), %p8550_p2, %p8549_p1 }
0x1e74   : > { %p8547_p0 = pneg (%p824_p11), %p8546_p13 }
0x1e76   : > { %p8552_p4 = pnand (%p824_p11), %p8551_p3, %p8547_p0 }
0x1e91   : >> { %v7525_v9 = vpop.permute.xlu1 %7524 }
0x1e92   : >> { %7528 = vst.msk [vmem:[#allocation2] sm:$0x7] %vm7527_vm12, %v7525_v9 }
0x1e96   : > { %826 = sbr.rel (!%p824_p11) target bundleno = 237 (0xed), region = 168 }
0x1e99   : >> { %v7641_v29 = vld [vmem:[#allocation2] sm:$0xf] }
0x1e9a   : >> { %7644 = vst.msk [vmem:[%s7643_s19] sm:$0xf] %vm11383_vm2, %v7641_v29 }
0x1e9b   : > { %8555 = shalt.err (!%p8552_p4)
}
0x1e9c   : > { %s8666_s15 = smov 64   ;;  %s8667_s19 = smov 4  }
0x1e9d   : > { %8357 = dma.vmem_to_hbm [thread:$0]  (%p8778_p5), %s7678_s14, 192, %s7680_s22, %s7655_s28, %s8666_s15, %s8666_s15, %s8667_s19  }
0x1e9e   : > { %s8356_s25 = smul.u32 3, %s8761_s29  ;;  %s7693_s13 = sshll.u32 %s9019_s27, 4  ;;  %s7694_s13 = int_to_ptr.vmem [resolvable:$true] %s7693_s13 }
0x1e9f   : > { %s7660_s26 = scalar_lea.sflag [#allocation17], %s8800_s21  ;;  %s8576_s29 = scalar_lea.hbm %s11075_s12, 6 }
0x1ea0   : > { %s7692_s2 = scalar_lea.hbm %s11075_s12, %s8356_s25 }
0x1ea1   : > { %s7695_s23 = sshll.u32 %s7692_s2, 4  ;;  %s7696_s23 = int_to_ptr.hbm [resolvable:$true] %s7695_s23 }
0x1ea2   : > { %s8570_s16 = sshra.s32 %s7696_s23, 4  ;;  %s8571_s16 = int_to_ptr.hbm [resolvable:$true] %s8570_s16 }
0x1ea3   : > { %s8572_s17 = scalar_lea.hbm %s8571_s16, 3  ;;  %p8577_p10 = scmp.lt.s32.totalorder %s8571_s16, %s11075_s12 }
0x1ea4   : > { %p8573_p7 = scmp.ne.s32.totalorder %s8571_s16, %s8572_s17  ;;  %p8578_p11 = scmp.lt.s32.totalorder %s8576_s29, %s8572_s17 }
0x1ea6   : > { %p8574_p8 = pnand %p8573_p7, %p8778_p5  ;;  %p8579_p12 = por %p8578_p11, %p8577_p10 }
0x1ea8   : > { %p8575_p9 = pneg %p8574_p8 }
0x1eaa   : > { %p8580_p13 = pnand %p8579_p12, %p8575_p9 }
0x1eac   : > { %8583 = shalt.err (!%p8580_p13)
}
0x1ead   : > { %s8668_s21 = smov 16   ;;  %s8669_s22 = smov 1  }
0x1eae   : > { %8358 = dma.vmem_to_hbm [thread:$0]  (%p8778_p5), %s7694_s13, 48, %s7696_s23, %s7660_s26, %s8668_s21, %s8668_s21, %s8669_s22  }
0x1eaf PF: > { %s11384_s28 = sld [smem:[#allocation23_spill]] }
0x1eb0   : > { %s11385_s15 = sld [smem:[#allocation20_spill]] }
0x1eb5   : > { %p8368_p0 = scmp.ge.s32.totalorder %s11384_s28, 2 }
0x1eb6   : > { %s7713_s25 = sand.u32 1, %s11385_s15  }
0x1eb7   : > { %p8362_p1 = pnand %p8368_p0, %p8782_p6  ;;  %s7714_s10 = scalar_lea.sflag [#allocation15], %s7713_s25 }
0x1eb9   : > { %p8363_p2 = pneg %p8362_p1 }
0x1ebb   : > { %8605 = dma.done.wait (%p8363_p2), %s7714_s10, 192  }
0x1ebc   : > { %8607 = vsyncadd (%p8363_p2), %s7714_s10, 4294967104  ;;  %s7724_s30 = scalar_lea.sflag [#allocation17], %s7713_s25 }
0x1ebd   : > { %8609 = dma.done.wait (%p8363_p2), %s7724_s30, 48  }
0x1ebe   : > { %8611 = vsyncadd (%p8363_p2), %s7724_s30, 4294967248  ;;  %s11387_s28 = sld [smem:[#allocation24_spill]] }
0x1ebf   : > { %s11388_s25 = sld [smem:[#allocation21_spill]] }
0x1ec0   : > { %s11389_s26 = sld [smem:[#allocation22_spill]] }
0x1ec1   : > { %s11390_s27 = sld [smem:[#allocation25_spill]] }
0x1ec4   : > { %p27_p5 = scmp.ge.s32.totalorder %s11387_s28, 4  }
0x1ec6   :  { %29 = sbr.rel (!%p27_p5) target bundleno = 9 (0x9), region = 179 }
0x1ecb   :  { %7738 = vsyncpa [#allocation15], 1 }
0x1ecc   :  { %7740 = vsyncpa [#allocation15 + $0x1], 1 }
0x1ecd   :  { %7741 = vsyncpa [#allocation17], 1 }
0x1ece   :  { %7743 = vsyncpa [#allocation17 + $0x1], 1 }

</bundles_post_ra>
